<compile_context>
chip_gen: v5e
topology: v5e:2x2
jax: 0.10.0
libtpu: 0.0.40
codegen_flags: <defaults>
</compile_context>

<pallas_src>
import functools
import math

import jax
import jax.numpy as jnp
from jax.experimental import pallas as pl
from jax.experimental.pallas import tpu as pltpu

LANE = 128
_NEG_BIG = -1e30                       # finite "-inf" for masked kv columns
_VMEM_LIMIT = 48 * 1024 * 1024         # fits v7x's 64 MiB/TC with headroom


def _round_up(n, m):
    return ((n + m - 1) // m) * m


def _erf(x):
    # Abramowitz & Stegun 7.1.26 rational approximation (abs err ~1.5e-7);
    # built only from VPU ops + exp (EUP slot).
    a1, a2, a3, a4, a5 = 0.254829592, -0.284496736, 1.421413741, -1.453152027, 1.061405429
    p = 0.3275911
    sgn = jnp.where(x >= 0.0, 1.0, -1.0)
    ax = jnp.abs(x)
    t = 1.0 / (1.0 + p * ax)
    poly = ((((a5 * t + a4) * t + a3) * t + a2) * t + a1) * t
    return sgn * (1.0 - poly * jnp.exp(-ax * ax))


def _gelu(x):
    # Exact (erf-based) GELU, matching nn.GELU() default.
    return 0.5 * x * (1.0 + _erf(x * 0.7071067811865475))


def _layer_norm(y, gamma, beta, dim, eps=1e-5):
    # Channels are zero-padded to a lane multiple; stats use the true channel
    # count and gamma/beta are zero-padded so padded lanes stay exactly zero.
    inv_dim = 1.0 / dim
    s1 = jnp.sum(y, axis=-1, keepdims=True)
    s2 = jnp.sum(y * y, axis=-1, keepdims=True)
    mu = s1 * inv_dim
    var = jnp.maximum(s2 * inv_dim - mu * mu, 0.0)
    return (y - mu) * jax.lax.rsqrt(var + eps) * gamma + beta


# --------------------------------------------------------------------------- #
# Kernels
# --------------------------------------------------------------------------- #
def _qkv_prepass_kernel(dim, compute_dtype, q_scale,
                        x_ref, g1_ref, be1_ref, wqkv_ref, bqkv_ref,
                        q_ref, kT_ref, v_ref):
    cp = x_ref.shape[-1]
    x1 = _layer_norm(x_ref[0], g1_ref[0], be1_ref[0], dim)
    qkv = jnp.dot(x1.astype(compute_dtype), wqkv_ref[...],
                  preferred_element_type=jnp.float32) + bqkv_ref[0]
    q_ref[0] = (qkv[:, :cp] * q_scale).astype(q_ref.dtype)          # pre-scaled Q
    kT_ref[0] = qkv[:, cp:2 * cp].T.astype(kT_ref.dtype)            # K^T, once
    v_ref[0] = qkv[:, 2 * cp:].astype(v_ref.dtype)


def _attn_mlp_kernel(dim, n_true, compute_dtype, approx_recip, needs_mask,
                     xq_ref, q_ref, kT_ref, v_ref,
                     wo_ref, bo_ref, g2_ref, be2_ref,
                     w1_ref, b1_ref, w2_ref, b2_ref,
                     o_ref, m_scr, l_scr, acc_scr):
    ki = pl.program_id(2)
    n_kv = pl.num_programs(2)
    tk = kT_ref.shape[-1]

    @pl.when(ki == 0)
    def _init():
        m_scr[...] = jnp.full(m_scr.shape, -jnp.inf, m_scr.dtype)
        l_scr[...] = jnp.zeros(l_scr.shape, l_scr.dtype)
        acc_scr[...] = jnp.zeros(acc_scr.shape, acc_scr.dtype)

    # ---- online-softmax update over one (tq, tk) score tile ----
    s = jnp.dot(q_ref[0], kT_ref[0], preferred_element_type=jnp.float32)
    if needs_mask:
        col = jax.lax.broadcasted_iota(jnp.int32, s.shape, 1) + ki * tk
        s = jnp.where(col < n_true, s, _NEG_BIG)
    m_prev = m_scr[...]
    m_new = jnp.maximum(m_prev, jnp.max(s, axis=-1, keepdims=True))
    alpha = jnp.exp(m_prev - m_new)
    # exp in compute_dtype (bf16 on v6e/v7x keeps the single EUP slot off the
    # critical path); accumulation stays f32.
    p = jnp.exp((s - m_new).astype(compute_dtype))
    l_scr[...] = alpha * l_scr[...] + jnp.sum(p.astype(jnp.float32),
                                              axis=-1, keepdims=True)
    acc_scr[...] = alpha * acc_scr[...] + jnp.dot(p, v_ref[0],
                                                  preferred_element_type=jnp.float32)
    m_scr[...] = m_new

    # ---- last kv tile: finish attention, residual, LN2 + MLP, residual ----
    @pl.when(ki == n_kv - 1)
    def _finalize():
        xq = xq_ref[0]
        ctx = acc_scr[...] * pl.reciprocal(l_scr[...], approx=approx_recip)
        attn_out = jnp.dot(ctx.astype(compute_dtype), wo_ref[...],
                           preferred_element_type=jnp.float32) + bo_ref[0]
        xa = xq + attn_out                                           # residual 1
        x2 = _layer_norm(xa, g2_ref[0], be2_ref[0], dim)
        h = jnp.dot(x2.astype(compute_dtype), w1_ref[...],
                    preferred_element_type=jnp.float32) + b1_ref[0]
        h = _gelu(h)
        y = jnp.dot(h.astype(compute_dtype), w2_ref[...],
                    preferred_element_type=jnp.float32) + b2_ref[0]
        o_ref[0] = (xa + y).astype(o_ref.dtype)                      # residual 2


# --------------------------------------------------------------------------- #
# Wrapper
# --------------------------------------------------------------------------- #
def _const_spec(shape):
    # Grid-invariant weight tile; Pallas skips the re-fetch when the block
    # index does not change between consecutive grid steps.
    return pl.BlockSpec(shape, lambda *_: (0,) * len(shape))


def _choose_tiles(n_tokens, q_tile, kv_tile, batch):
    n128 = _round_up(n_tokens, LANE)
    tq = min(_round_up(max(q_tile, 1), LANE), n128)
    tk = min(_round_up(max(kv_tile, 1), LANE), n128)
    n_pad = _round_up(n_tokens, math.lcm(tq, tk))
    # v7x has two TensorCores; keep >= 2 blocks of work on the parallel axes.
    while batch * (n_pad // tq) < 2 and tq > LANE:
        tq = max(LANE, _round_up(tq // 2, LANE))
        n_pad = _round_up(n_tokens, math.lcm(tq, tk))
    return tq, tk, n_pad


def mix_transformer_block(x_nchw, params, *, compute_dtype=jnp.bfloat16,
                          q_tile=256, kv_tile=512, approx_recip=True):
    """Forward pass of MixTransformerBlock. x_nchw: (B, C, H, W) f32 -> same."""
    B, C, H, W = x_nchw.shape
    N = H * W
    dim = C
    hidden = params["mlp_w1"].shape[0]

    cp = _round_up(dim, LANE)
    hp = _round_up(hidden, LANE)
    tq, tk, n_pad = _choose_tiles(N, q_tile, kv_tile, B)
    n_q, n_kv = n_pad // tq, n_pad // tk
    tp = max(tq, tk)                     # prepass tile (n_pad is a multiple of it)
    n_pre = n_pad // tp
    needs_mask = n_pad != N
    wdt = compute_dtype
    wbytes = jnp.dtype(wdt).itemsize

    # b c h w -> b (h w) c; zero-pad channels to a lane multiple and tokens to a
    # tile multiple (stays f32 for LN statistics / residual adds).
    x = jnp.transpose(x_nchw, (0, 2, 3, 1)).reshape(B, N, C).astype(jnp.float32)
    x = jnp.pad(x, ((0, 0), (0, n_pad - N), (0, cp - C)))

    # ---- pre-slice / pad / transpose weights so the kernels only do x @ W ----
    in_w = params["in_proj_weight"]          # (3C, C) packed QKV (PyTorch layout)
    in_b = params["in_proj_bias"]            # (3C,)
    wqkv = jnp.zeros((cp, 3 * cp), wdt)
    bqkv = jnp.zeros((1, 3 * cp), jnp.float32)
    for seg in range(3):                     # each cp-wide segment padded separately
        wqkv = wqkv.at[:dim, seg * cp:seg * cp + dim].set(
            in_w[seg * dim:(seg + 1) * dim].T.astype(wdt))
        bqkv = bqkv.at[0, seg * cp:seg * cp + dim].set(in_b[seg * dim:(seg + 1) * dim])

    def _pad2(a, rows, cols):
        return jnp.zeros((rows, cols), wdt).at[:a.shape[0], :a.shape[1]].set(a.astype(wdt))

    def _padb(b, cols):
        return jnp.zeros((1, cols), jnp.float32).at[0, :b.shape[0]].set(b)

    wo = _pad2(params["out_proj_weight"].T, cp, cp)
    bo = _padb(params["out_proj_bias"], cp)
    g1 = _padb(params["ln1_weight"], cp)
    be1 = _padb(params["ln1_bias"], cp)
    g2 = _padb(params["ln2_weight"], cp)
    be2 = _padb(params["ln2_bias"], cp)
    w1 = _pad2(params["mlp_w1"].T, cp, hp)
    b1 = _padb(params["mlp_b1"], hp)
    w2 = _pad2(params["mlp_w2"].T, hp, cp)
    b2 = _padb(params["mlp_b2"], cp)

    # ---- pre-pass: LN1 + fused QKV projection, once per token -------------- #
    q_scale = 1.0 / math.sqrt(dim)
    cost_pre = pl.CostEstimate(
        flops=2 * B * n_pad * cp * 3 * cp, transcendentals=0,
        bytes_accessed=4 * B * n_pad * cp + 3 * B * n_pad * cp * wbytes)

    q, kT, v = pl.pallas_call(
        functools.partial(_qkv_prepass_kernel, dim, compute_dtype, q_scale),
        out_shape=(jax.ShapeDtypeStruct((B, n_pad, cp), wdt),
                   jax.ShapeDtypeStruct((B, cp, n_pad), wdt),
                   jax.ShapeDtypeStruct((B, n_pad, cp), wdt)),
        grid_spec=pltpu.PrefetchScalarGridSpec(
            num_scalar_prefetch=0,
            grid=(B, n_pre),
            in_specs=[
                pl.BlockSpec((1, tp, cp), lambda b, i: (b, i, 0)),
                _const_spec(g1.shape), _const_spec(be1.shape),
                _const_spec(wqkv.shape), _const_spec(bqkv.shape),
            ],
            out_specs=[
                pl.BlockSpec((1, tp, cp), lambda b, i: (b, i, 0)),    # Q
                pl.BlockSpec((1, cp, tp), lambda b, i: (b, 0, i)),    # K^T
                pl.BlockSpec((1, tp, cp), lambda b, i: (b, i, 0)),    # V
            ]),
        compiler_params=pltpu.CompilerParams(
            dimension_semantics=("parallel", "parallel"),
            vmem_limit_bytes=_VMEM_LIMIT),
        cost_estimate=cost_pre,
    )(x, g1, be1, wqkv, bqkv)

    # ---- main pass: flash attention + out-proj + LN2 + MLP + residuals ----- #
    cost_main = pl.CostEstimate(
        flops=B * (4 * n_pad * n_pad * cp + 2 * n_pad * cp * cp + 4 * n_pad * cp * hp),
        transcendentals=B * (n_pad * n_pad + n_pad * hp),
        bytes_accessed=8 * B * n_pad * cp + 2 * n_q * B * n_pad * cp * wbytes)

    out = pl.pallas_call(
        functools.partial(_attn_mlp_kernel, dim, N, compute_dtype,
                          approx_recip, needs_mask),
        out_shape=jax.ShapeDtypeStruct((B, n_pad, cp), jnp.float32),
        grid_spec=pltpu.PrefetchScalarGridSpec(
            num_scalar_prefetch=0,
            grid=(B, n_q, n_kv),
            in_specs=[
                pl.BlockSpec((1, tq, cp), lambda b, qi, ki: (b, qi, 0)),   # x (residual)
                pl.BlockSpec((1, tq, cp), lambda b, qi, ki: (b, qi, 0)),   # Q tile
                pl.BlockSpec((1, cp, tk), lambda b, qi, ki: (b, 0, ki)),   # K^T tile
                pl.BlockSpec((1, tk, cp), lambda b, qi, ki: (b, ki, 0)),   # V tile
                _const_spec(wo.shape), _const_spec(bo.shape),
                _const_spec(g2.shape), _const_spec(be2.shape),
                _const_spec(w1.shape), _const_spec(b1.shape),
                _const_spec(w2.shape), _const_spec(b2.shape),
            ],
            out_specs=pl.BlockSpec((1, tq, cp), lambda b, qi, ki: (b, qi, 0)),
            scratch_shapes=[
                pltpu.VMEM((tq, 1), jnp.float32),    # running max
                pltpu.VMEM((tq, 1), jnp.float32),    # running sum
                pltpu.VMEM((tq, cp), jnp.float32),   # output accumulator
            ]),
        compiler_params=pltpu.CompilerParams(
            dimension_semantics=("parallel", "parallel", "arbitrary"),
            vmem_limit_bytes=_VMEM_LIMIT),
        cost_estimate=cost_main,
    )(x, q, kT, v, wo, bo, g2, be2, w1, b1, w2, b2)

    # strip token/channel padding, b (h w) c -> b c h w
    out = out[:, :N, :C]
    return jnp.transpose(out.reshape(B, H, W, C), (0, 3, 1, 2))


# --------------------------------------------------------------------------- #
# Params / reference / test
# --------------------------------------------------------------------------- #
def init_params(key, dim, mlp_ratio=4.0):
    hidden = int(dim * mlp_ratio)
    ks = jax.random.split(key, 8)
    return {
        "ln1_weight": jnp.ones((dim,), jnp.float32),
        "ln1_bias": jnp.zeros((dim,), jnp.float32),
        "ln2_weight": jnp.ones((dim,), jnp.float32),
        "ln2_bias": jnp.zeros((dim,), jnp.float32),
        "in_proj_weight": 0.2 * jax.random.normal(ks[0], (3 * dim, dim), jnp.float32),
        "in_proj_bias": 0.05 * jax.random.normal(ks[1], (3 * dim,), jnp.float32),
        "out_proj_weight": 0.2 * jax.random.normal(ks[2], (dim, dim), jnp.float32),
        "out_proj_bias": 0.05 * jax.random.normal(ks[3], (dim,), jnp.float32),
        "mlp_w1": 0.2 * jax.random.normal(ks[4], (hidden, dim), jnp.float32),
        "mlp_b1": 0.05 * jax.random.normal(ks[5], (hidden,), jnp.float32),
        "mlp_w2": 0.2 * jax.random.normal(ks[6], (dim, hidden), jnp.float32),
        "mlp_b2": 0.05 * jax.random.normal(ks[7], (dim,), jnp.float32),
    }


def reference_forward(x_nchw, params):
    """Pure-JAX reference mirroring the PyTorch forward (num_heads=1)."""
    B, C, H, W = x_nchw.shape
    dim = C
    x = jnp.transpose(x_nchw, (0, 2, 3, 1)).reshape(B, H * W, C)

    def ln(y, g, b, eps=1e-5):
        mu = jnp.mean(y, -1, keepdims=True)
        var = jnp.mean((y - mu) ** 2, -1, keepdims=True)
        return (y - mu) / jnp.sqrt(var + eps) * g + b

    x1 = ln(x, params["ln1_weight"], params["ln1_bias"])
    in_w, in_b = params["in_proj_weight"], params["in_proj_bias"]
    q = x1 @ in_w[:dim].T + in_b[:dim]
    k = x1 @ in_w[dim:2 * dim].T + in_b[dim:2 * dim]
    v = x1 @ in_w[2 * dim:].T + in_b[2 * dim:]
    q = q / jnp.sqrt(jnp.float32(dim))
    scores = jnp.einsum("bnc,bmc->bnm", q, k)
    attn = jax.nn.softmax(scores, axis=-1)
    ctx = jnp.einsum("bnm,bmc->bnc", attn, v)
    attn_out = ctx @ params["out_proj_weight"].T + params["out_proj_bias"]
    x = x + attn_out
    x2 = ln(x, params["ln2_weight"], params["ln2_bias"])
    h = x2 @ params["mlp_w1"].T + params["mlp_b1"]
    h = 0.5 * h * (1.0 + jax.scipy.special.erf(h / jnp.sqrt(2.0)))
    y = h @ params["mlp_w2"].T + params["mlp_b2"]
    x = x + y
    return jnp.transpose(x.reshape(B, H, W, C), (0, 3, 1, 2))


if __name__ == "__main__":
    key = jax.random.PRNGKey(0)
    k_x, k_p, k_x2 = jax.random.split(key, 3)

    # Main test: B=2, C=4, H=W=16 (N=256, no token padding needed).
    B, C, H, W = 2, 4, 16, 16
    x = jax.random.normal(k_x, (B, C, H, W), jnp.float32)
    params = init_params(k_p, dim=C, mlp_ratio=4.0)
    ref = reference_forward(x, params)

    # bf16 MXU fast path (default on all generations), f32 accumulation.
    out_bf16 = jax.block_until_ready(jax.jit(mix_transformer_block)(x, params))
    assert out_bf16.shape == (B, C, H, W)
    err = float(jnp.max(jnp.abs(out_bf16 - ref)))
    assert err < 7.5e-2, f"bf16 path mismatch vs reference: {err}"

    # f32 MXU path: tight tolerance.
    out_f32 = jax.block_until_ready(
        jax.jit(functools.partial(mix_transformer_block,
                                  compute_dtype=jnp.float32))(x, params))
    err = float(jnp.max(jnp.abs(out_f32 - ref)))
    assert err < 3e-3, f"f32 path mismatch vs reference: {err}"

    # Ragged token count (N = 196, not a multiple of 128): exercises the padded
    # kv-column masking and the v7x parallel-axis balancing.
    B2, H2, W2 = 1, 14, 14
    x2 = jax.random.normal(k_x2, (B2, C, H2, W2), jnp.float32)
    ref2 = reference_forward(x2, params)
    out2 = jax.block_until_ready(
        jax.jit(functools.partial(mix_transformer_block,
                                  compute_dtype=jnp.float32))(x2, params))
    err = float(jnp.max(jnp.abs(out2 - ref2)))
    assert err < 3e-3, f"masked ragged-N path mismatch vs reference: {err}"

    print("KERNEL_OK")
</pallas_src>

<mosaic_0001>
module attributes {stable_mosaic.version = 11 : i64} {
  func.func @_qkv_prepass_kernel(%arg0: i32, %arg1: i32, %arg2: memref<1x256x128xf32, #tpu.memory_space<vmem>>, %arg3: memref<1x128xf32, #tpu.memory_space<vmem>>, %arg4: memref<1x128xf32, #tpu.memory_space<vmem>>, %arg5: memref<128x384xbf16, #tpu.memory_space<vmem>>, %arg6: memref<1x384xf32, #tpu.memory_space<vmem>>, %arg7: memref<1x256x128xbf16, #tpu.memory_space<vmem>>, %arg8: memref<1x128x256xbf16, #tpu.memory_space<vmem>>, %arg9: memref<1x256x128xbf16, #tpu.memory_space<vmem>>) attributes {dimension_semantics = [#tpu.dimension_semantics<parallel>, #tpu.dimension_semantics<parallel>], iteration_bounds = array<i64: 2, 1>, scalar_prefetch = 0 : i64, scratch_operands = 0 : i64, tpu.core_type = #tpu.core_type<tc>, window_params = [{transform_indices = @transform_0, window_bounds = array<i64: 1, 256, 128>}, {pipeline_mode = #tpu.pipeline_mode<synchronous>, transform_indices = @transform_1, window_bounds = array<i64: 1, 128>}, {pipeline_mode = #tpu.pipeline_mode<synchronous>, transform_indices = @transform_2, window_bounds = array<i64: 1, 128>}, {pipeline_mode = #tpu.pipeline_mode<synchronous>, transform_indices = @transform_3, window_bounds = array<i64: 128, 384>}, {pipeline_mode = #tpu.pipeline_mode<synchronous>, transform_indices = @transform_4, window_bounds = array<i64: 1, 384>}, {transform_indices = @transform_5, window_bounds = array<i64: 1, 256, 128>}, {transform_indices = @transform_6, window_bounds = array<i64: 1, 128, 256>}, {transform_indices = @transform_7, window_bounds = array<i64: 1, 256, 128>}]} {
    %c0 = arith.constant 0 : index
    %c0_0 = arith.constant 0 : index
    %c0_1 = arith.constant 0 : index
    %0 = vector.load %arg2[%c0, %c0_0, %c0_1] : memref<1x256x128xf32, #tpu.memory_space<vmem>>, vector<1x256x128xf32>
    %1 = vector.shape_cast %0 : vector<1x256x128xf32> to vector<256x128xf32>
    %c0_2 = arith.constant 0 : index
    %c0_3 = arith.constant 0 : index
    %2 = vector.load %arg3[%c0_2, %c0_3] : memref<1x128xf32, #tpu.memory_space<vmem>>, vector<1x128xf32>
    %3 = vector.shape_cast %2 : vector<1x128xf32> to vector<128xf32>
    %c0_4 = arith.constant 0 : index
    %c0_5 = arith.constant 0 : index
    %4 = vector.load %arg4[%c0_4, %c0_5] : memref<1x128xf32, #tpu.memory_space<vmem>>, vector<1x128xf32>
    %5 = vector.shape_cast %4 : vector<1x128xf32> to vector<128xf32>
    %cst = arith.constant dense<0.000000e+00> : vector<256xf32>
    %6 = vector.multi_reduction <add>, %1, %cst [1] : vector<256x128xf32> to vector<256xf32>
    %7 = vector.shape_cast %6 : vector<256xf32> to vector<256x1xf32>
    %8 = arith.mulf %1, %1 : vector<256x128xf32>
    %cst_6 = arith.constant dense<0.000000e+00> : vector<256xf32>
    %9 = vector.multi_reduction <add>, %8, %cst_6 [1] : vector<256x128xf32> to vector<256xf32>
    %10 = vector.shape_cast %9 : vector<256xf32> to vector<256x1xf32>
    %cst_7 = arith.constant 2.500000e-01 : f32
    %11 = vector.broadcast %cst_7 : f32 to vector<256x1xf32>
    %12 = arith.mulf %7, %11 : vector<256x1xf32>
    %cst_8 = arith.constant 2.500000e-01 : f32
    %13 = vector.broadcast %cst_8 : f32 to vector<256x1xf32>
    %14 = arith.mulf %10, %13 : vector<256x1xf32>
    %15 = arith.mulf %12, %12 : vector<256x1xf32>
    %16 = arith.subf %14, %15 : vector<256x1xf32>
    %cst_9 = arith.constant 0.000000e+00 : f32
    %17 = vector.broadcast %cst_9 : f32 to vector<256x1xf32>
    %18 = arith.maximumf %16, %17 : vector<256x1xf32>
    %19 = vector.broadcast %12 : vector<256x1xf32> to vector<256x128xf32>
    %20 = arith.subf %1, %19 : vector<256x128xf32>
    %cst_10 = arith.constant 9.99999974E-6 : f32
    %21 = vector.broadcast %cst_10 : f32 to vector<256x1xf32>
    %22 = arith.addf %18, %21 : vector<256x1xf32>
    %23 = math.rsqrt %22 : vector<256x1xf32>
    %24 = vector.broadcast %23 : vector<256x1xf32> to vector<256x128xf32>
    %25 = arith.mulf %20, %24 : vector<256x128xf32>
    %26 = vector.shape_cast %3 : vector<128xf32> to vector<1x128xf32>
    %27 = vector.broadcast %26 : vector<1x128xf32> to vector<256x128xf32>
    %28 = arith.mulf %25, %27 : vector<256x128xf32>
    %29 = vector.shape_cast %5 : vector<128xf32> to vector<1x128xf32>
    %30 = vector.broadcast %29 : vector<1x128xf32> to vector<256x128xf32>
    %31 = arith.addf %28, %30 : vector<256x128xf32>
    %32 = arith.truncf %31 : vector<256x128xf32> to vector<256x128xbf16>
    %c0_11 = arith.constant 0 : index
    %c0_12 = arith.constant 0 : index
    %33 = vector.load %arg5[%c0_11, %c0_12] : memref<128x384xbf16, #tpu.memory_space<vmem>>, vector<128x384xbf16>
    %cst_13 = arith.constant dense<0.000000e+00> : vector<256x384xf32>
    %34 = tpu.matmul %32, %33, %cst_13 {dimension_numbers = #tpu.dot_dimension_numbers<[1], [0], [0], [1], [0, 0, 1, 1], [], []>} : vector<256x128xbf16>, vector<128x384xbf16>, vector<256x384xf32> -> vector<256x384xf32>
    %c0_14 = arith.constant 0 : index
    %c0_15 = arith.constant 0 : index
    %35 = vector.load %arg6[%c0_14, %c0_15] : memref<1x384xf32, #tpu.memory_space<vmem>>, vector<1x384xf32>
    %36 = vector.shape_cast %35 : vector<1x384xf32> to vector<384xf32>
    %37 = vector.shape_cast %36 : vector<384xf32> to vector<1x384xf32>
    %38 = vector.broadcast %37 : vector<1x384xf32> to vector<256x384xf32>
    %39 = arith.addf %34, %38 : vector<256x384xf32>
    %40 = vector.extract_strided_slice %39 {offsets = [0, 0], sizes = [256, 128], strides = [1, 1]} : vector<256x384xf32> to vector<256x128xf32>
    %cst_16 = arith.constant 5.000000e-01 : f32
    %41 = vector.broadcast %cst_16 : f32 to vector<256x128xf32>
    %42 = arith.mulf %40, %41 : vector<256x128xf32>
    %43 = arith.truncf %42 : vector<256x128xf32> to vector<256x128xbf16>
    %c0_17 = arith.constant 0 : index
    %c0_18 = arith.constant 0 : index
    %c0_19 = arith.constant 0 : index
    %44 = vector.load %arg7[%c0_17, %c0_18, %c0_19] : memref<1x256x128xbf16, #tpu.memory_space<vmem>>, vector<1x256x128xbf16>
    %45 = vector.shape_cast %44 : vector<1x256x128xbf16> to vector<256x128xbf16>
    %46 = vector.shape_cast %43 : vector<256x128xbf16> to vector<1x256x128xbf16>
    tpu.vector_store %arg7[%c0_17, %c0_18, %c0_19], %46 {strides = array<i32>} : memref<1x256x128xbf16, #tpu.memory_space<vmem>>, vector<1x256x128xbf16>,
    %47 = vector.extract_strided_slice %39 {offsets = [0, 128], sizes = [256, 128], strides = [1, 1]} : vector<256x384xf32> to vector<256x128xf32>
    %48 = tpu.transpose %47, [1, 0] : vector<256x128xf32> -> vector<128x256xf32>
    %49 = arith.truncf %48 : vector<128x256xf32> to vector<128x256xbf16>
    %c0_20 = arith.constant 0 : index
    %c0_21 = arith.constant 0 : index
    %c0_22 = arith.constant 0 : index
    %50 = vector.load %arg8[%c0_20, %c0_21, %c0_22] : memref<1x128x256xbf16, #tpu.memory_space<vmem>>, vector<1x128x256xbf16>
    %51 = vector.shape_cast %50 : vector<1x128x256xbf16> to vector<128x256xbf16>
    %52 = vector.shape_cast %49 : vector<128x256xbf16> to vector<1x128x256xbf16>
    tpu.vector_store %arg8[%c0_20, %c0_21, %c0_22], %52 {strides = array<i32>} : memref<1x128x256xbf16, #tpu.memory_space<vmem>>, vector<1x128x256xbf16>,
    %53 = vector.extract_strided_slice %39 {offsets = [0, 256], sizes = [256, 128], strides = [1, 1]} : vector<256x384xf32> to vector<256x128xf32>
    %54 = arith.truncf %53 : vector<256x128xf32> to vector<256x128xbf16>
    %c0_23 = arith.constant 0 : index
    %c0_24 = arith.constant 0 : index
    %c0_25 = arith.constant 0 : index
    %55 = vector.load %arg9[%c0_23, %c0_24, %c0_25] : memref<1x256x128xbf16, #tpu.memory_space<vmem>>, vector<1x256x128xbf16>
    %56 = vector.shape_cast %55 : vector<1x256x128xbf16> to vector<256x128xbf16>
    %57 = vector.shape_cast %54 : vector<256x128xbf16> to vector<1x256x128xbf16>
    tpu.vector_store %arg9[%c0_23, %c0_24, %c0_25], %57 {strides = array<i32>} : memref<1x256x128xbf16, #tpu.memory_space<vmem>>, vector<1x256x128xbf16>,
    return
  }
  func.func @transform_0(%arg0: i32, %arg1: i32) -> (i32, i32, i32) {
    %c0_i32 = arith.constant 0 : i32
    %c0_i32_0 = arith.constant 0 : i32
    return %arg0, %arg1, %c0_i32 : i32, i32, i32
  }
  func.func @transform_1(%arg0: i32, %arg1: i32) -> (i32, i32) {
    %c0_i32 = arith.constant 0 : i32
    %c0_i32_0 = arith.constant 0 : i32
    %c0_i32_1 = arith.constant 0 : i32
    return %c0_i32, %c0_i32_0 : i32, i32
  }
  func.func @transform_2(%arg0: i32, %arg1: i32) -> (i32, i32) {
    %c0_i32 = arith.constant 0 : i32
    %c0_i32_0 = arith.constant 0 : i32
    %c0_i32_1 = arith.constant 0 : i32
    return %c0_i32, %c0_i32_0 : i32, i32
  }
  func.func @transform_3(%arg0: i32, %arg1: i32) -> (i32, i32) {
    %c0_i32 = arith.constant 0 : i32
    %c0_i32_0 = arith.constant 0 : i32
    %c0_i32_1 = arith.constant 0 : i32
    return %c0_i32, %c0_i32_0 : i32, i32
  }
  func.func @transform_4(%arg0: i32, %arg1: i32) -> (i32, i32) {
    %c0_i32 = arith.constant 0 : i32
    %c0_i32_0 = arith.constant 0 : i32
    %c0_i32_1 = arith.constant 0 : i32
    return %c0_i32, %c0_i32_0 : i32, i32
  }
  func.func @transform_5(%arg0: i32, %arg1: i32) -> (i32, i32, i32) {
    %c0_i32 = arith.constant 0 : i32
    %c0_i32_0 = arith.constant 0 : i32
    return %arg0, %arg1, %c0_i32 : i32, i32, i32
  }
  func.func @transform_6(%arg0: i32, %arg1: i32) -> (i32, i32, i32) {
    %c0_i32 = arith.constant 0 : i32
    %c0_i32_0 = arith.constant 0 : i32
    return %arg0, %c0_i32, %arg1 : i32, i32, i32
  }
  func.func @transform_7(%arg0: i32, %arg1: i32) -> (i32, i32, i32) {
    %c0_i32 = arith.constant 0 : i32
    %c0_i32_0 = arith.constant 0 : i32
    return %arg0, %arg1, %c0_i32 : i32, i32, i32
  }
}

module attributes {stable_mosaic.version = 11 : i64} {
  func.func @_attn_mlp_kernel(%arg0: i32, %arg1: i32, %arg2: i32, %arg3: memref<1x256x128xf32, #tpu.memory_space<vmem>>, %arg4: memref<1x256x128xbf16, #tpu.memory_space<vmem>>, %arg5: memref<1x128x256xbf16, #tpu.memory_space<vmem>>, %arg6: memref<1x256x128xbf16, #tpu.memory_space<vmem>>, %arg7: memref<128x128xbf16, #tpu.memory_space<vmem>>, %arg8: memref<1x128xf32, #tpu.memory_space<vmem>>, %arg9: memref<1x128xf32, #tpu.memory_space<vmem>>, %arg10: memref<1x128xf32, #tpu.memory_space<vmem>>, %arg11: memref<128x128xbf16, #tpu.memory_space<vmem>>, %arg12: memref<1x128xf32, #tpu.memory_space<vmem>>, %arg13: memref<128x128xbf16, #tpu.memory_space<vmem>>, %arg14: memref<1x128xf32, #tpu.memory_space<vmem>>, %arg15: memref<1x256x128xf32, #tpu.memory_space<vmem>>, %arg16: memref<256x1xf32, #tpu.memory_space<vmem>>, %arg17: memref<256x1xf32, #tpu.memory_space<vmem>>, %arg18: memref<256x128xf32, #tpu.memory_space<vmem>>) attributes {dimension_semantics = [#tpu.dimension_semantics<parallel>, #tpu.dimension_semantics<parallel>, #tpu.dimension_semantics<arbitrary>], iteration_bounds = array<i64: 2, 1, 1>, scalar_prefetch = 0 : i64, scratch_operands = 3 : i64, tpu.core_type = #tpu.core_type<tc>, window_params = [{transform_indices = @transform_0, window_bounds = array<i64: 1, 256, 128>}, {transform_indices = @transform_1, window_bounds = array<i64: 1, 256, 128>}, {transform_indices = @transform_2, window_bounds = array<i64: 1, 128, 256>}, {transform_indices = @transform_3, window_bounds = array<i64: 1, 256, 128>}, {pipeline_mode = #tpu.pipeline_mode<synchronous>, transform_indices = @transform_4, window_bounds = array<i64: 128, 128>}, {pipeline_mode = #tpu.pipeline_mode<synchronous>, transform_indices = @transform_5, window_bounds = array<i64: 1, 128>}, {pipeline_mode = #tpu.pipeline_mode<synchronous>, transform_indices = @transform_6, window_bounds = array<i64: 1, 128>}, {pipeline_mode = #tpu.pipeline_mode<synchronous>, transform_indices = @transform_7, window_bounds = array<i64: 1, 128>}, {pipeline_mode = #tpu.pipeline_mode<synchronous>, transform_indices = @transform_8, window_bounds = array<i64: 128, 128>}, {pipeline_mode = #tpu.pipeline_mode<synchronous>, transform_indices = @transform_9, window_bounds = array<i64: 1, 128>}, {pipeline_mode = #tpu.pipeline_mode<synchronous>, transform_indices = @transform_10, window_bounds = array<i64: 128, 128>}, {pipeline_mode = #tpu.pipeline_mode<synchronous>, transform_indices = @transform_11, window_bounds = array<i64: 1, 128>}, {transform_indices = @transform_12, window_bounds = array<i64: 1, 256, 128>}]} {
    %c0_i32 = arith.constant 0 : i32
    %0 = arith.cmpi eq, %arg2, %c0_i32 : i32
    %1 = arith.extui %0 : i1 to i32
    %c0_i32_0 = arith.constant 0 : i32
    %2 = arith.cmpi ne, %1, %c0_i32_0 : i32
    scf.if %2 {
      %cst_26 = arith.constant 0xFF800000 : f32
      %37 = vector.broadcast %cst_26 : f32 to vector<256x1xf32>
      %c0_27 = arith.constant 0 : index
      %c0_28 = arith.constant 0 : index
      %38 = vector.load %arg16[%c0_27, %c0_28] : memref<256x1xf32, #tpu.memory_space<vmem>>, vector<256x1xf32>
      tpu.vector_store %arg16[%c0_27, %c0_28], %37 {strides = array<i32>} : memref<256x1xf32, #tpu.memory_space<vmem>>, vector<256x1xf32>,
      %cst_29 = arith.constant 0.000000e+00 : f32
      %39 = vector.broadcast %cst_29 : f32 to vector<256x1xf32>
      %c0_30 = arith.constant 0 : index
      %c0_31 = arith.constant 0 : index
      %40 = vector.load %arg17[%c0_30, %c0_31] : memref<256x1xf32, #tpu.memory_space<vmem>>, vector<256x1xf32>
      tpu.vector_store %arg17[%c0_30, %c0_31], %39 {strides = array<i32>} : memref<256x1xf32, #tpu.memory_space<vmem>>, vector<256x1xf32>,
      %cst_32 = arith.constant 0.000000e+00 : f32
      %41 = vector.broadcast %cst_32 : f32 to vector<256x128xf32>
      %c0_33 = arith.constant 0 : index
      %c0_34 = arith.constant 0 : index
      %42 = vector.load %arg18[%c0_33, %c0_34] : memref<256x128xf32, #tpu.memory_space<vmem>>, vector<256x128xf32>
      tpu.vector_store %arg18[%c0_33, %c0_34], %41 {strides = array<i32>} : memref<256x128xf32, #tpu.memory_space<vmem>>, vector<256x128xf32>,
    } else {
    }
    %c0 = arith.constant 0 : index
    %c0_1 = arith.constant 0 : index
    %c0_2 = arith.constant 0 : index
    %3 = vector.load %arg4[%c0, %c0_1, %c0_2] : memref<1x256x128xbf16, #tpu.memory_space<vmem>>, vector<1x256x128xbf16>
    %4 = vector.shape_cast %3 : vector<1x256x128xbf16> to vector<256x128xbf16>
    %c0_3 = arith.constant 0 : index
    %c0_4 = arith.constant 0 : index
    %c0_5 = arith.constant 0 : index
    %5 = vector.load %arg5[%c0_3, %c0_4, %c0_5] : memref<1x128x256xbf16, #tpu.memory_space<vmem>>, vector<1x128x256xbf16>
    %6 = vector.shape_cast %5 : vector<1x128x256xbf16> to vector<128x256xbf16>
    %cst = arith.constant dense<0.000000e+00> : vector<256x256xf32>
    %7 = tpu.matmul %4, %6, %cst {dimension_numbers = #tpu.dot_dimension_numbers<[1], [0], [0], [1], [0, 0, 1, 1], [], []>} : vector<256x128xbf16>, vector<128x256xbf16>, vector<256x256xf32> -> vector<256x256xf32>
    %c0_6 = arith.constant 0 : index
    %c0_7 = arith.constant 0 : index
    %8 = vector.load %arg16[%c0_6, %c0_7] : memref<256x1xf32, #tpu.memory_space<vmem>>, vector<256x1xf32>
    %cst_8 = arith.constant dense<0xFF800000> : vector<256xf32>
    %9 = vector.multi_reduction <maximumf>, %7, %cst_8 [1] : vector<256x256xf32> to vector<256xf32>
    %10 = vector.shape_cast %9 : vector<256xf32> to vector<256x1xf32>
    %11 = arith.maximumf %8, %10 : vector<256x1xf32>
    %12 = arith.subf %8, %11 : vector<256x1xf32>
    %13 = math.exp %12 : vector<256x1xf32>
    %14 = vector.broadcast %11 : vector<256x1xf32> to vector<256x256xf32>
    %15 = arith.subf %7, %14 : vector<256x256xf32>
    %16 = arith.truncf %15 : vector<256x256xf32> to vector<256x256xbf16>
    %17 = math.exp %16 : vector<256x256xbf16>
    %c0_9 = arith.constant 0 : index
    %c0_10 = arith.constant 0 : index
    %18 = vector.load %arg17[%c0_9, %c0_10] : memref<256x1xf32, #tpu.memory_space<vmem>>, vector<256x1xf32>
    %19 = arith.mulf %13, %18 : vector<256x1xf32>
    %20 = arith.extf %17 : vector<256x256xbf16> to vector<256x256xf32>
    %cst_11 = arith.constant dense<0.000000e+00> : vector<256xf32>
    %21 = vector.multi_reduction <add>, %20, %cst_11 [1] : vector<256x256xf32> to vector<256xf32>
    %22 = vector.shape_cast %21 : vector<256xf32> to vector<256x1xf32>
    %23 = arith.addf %19, %22 : vector<256x1xf32>
    %c0_12 = arith.constant 0 : index
    %c0_13 = arith.constant 0 : index
    %24 = vector.load %arg17[%c0_12, %c0_13] : memref<256x1xf32, #tpu.memory_space<vmem>>, vector<256x1xf32>
    tpu.vector_store %arg17[%c0_12, %c0_13], %23 {strides = array<i32>} : memref<256x1xf32, #tpu.memory_space<vmem>>, vector<256x1xf32>,
    %c0_14 = arith.constant 0 : index
    %c0_15 = arith.constant 0 : index
    %25 = vector.load %arg18[%c0_14, %c0_15] : memref<256x128xf32, #tpu.memory_space<vmem>>, vector<256x128xf32>
    %26 = vector.broadcast %13 : vector<256x1xf32> to vector<256x128xf32>
    %27 = arith.mulf %26, %25 : vector<256x128xf32>
    %c0_16 = arith.constant 0 : index
    %c0_17 = arith.constant 0 : index
    %c0_18 = arith.constant 0 : index
    %28 = vector.load %arg6[%c0_16, %c0_17, %c0_18] : memref<1x256x128xbf16, #tpu.memory_space<vmem>>, vector<1x256x128xbf16>
    %29 = vector.shape_cast %28 : vector<1x256x128xbf16> to vector<256x128xbf16>
    %cst_19 = arith.constant dense<0.000000e+00> : vector<256x128xf32>
    %30 = tpu.matmul %17, %29, %cst_19 {dimension_numbers = #tpu.dot_dimension_numbers<[1], [0], [0], [1], [0, 0, 1, 1], [], []>} : vector<256x256xbf16>, vector<256x128xbf16>, vector<256x128xf32> -> vector<256x128xf32>
    %31 = arith.addf %27, %30 : vector<256x128xf32>
    %c0_20 = arith.constant 0 : index
    %c0_21 = arith.constant 0 : index
    %32 = vector.load %arg18[%c0_20, %c0_21] : memref<256x128xf32, #tpu.memory_space<vmem>>, vector<256x128xf32>
    tpu.vector_store %arg18[%c0_20, %c0_21], %31 {strides = array<i32>} : memref<256x128xf32, #tpu.memory_space<vmem>>, vector<256x128xf32>,
    %c0_22 = arith.constant 0 : index
    %c0_23 = arith.constant 0 : index
    %33 = vector.load %arg16[%c0_22, %c0_23] : memref<256x1xf32, #tpu.memory_space<vmem>>, vector<256x1xf32>
    tpu.vector_store %arg16[%c0_22, %c0_23], %11 {strides = array<i32>} : memref<256x1xf32, #tpu.memory_space<vmem>>, vector<256x1xf32>,
    %c0_i32_24 = arith.constant 0 : i32
    %34 = arith.cmpi eq, %arg2, %c0_i32_24 : i32
    %35 = arith.extui %34 : i1 to i32
    %c0_i32_25 = arith.constant 0 : i32
    %36 = arith.cmpi ne, %35, %c0_i32_25 : i32
    scf.if %36 {
      %c0_26 = arith.constant 0 : index
      %c0_27 = arith.constant 0 : index
      %c0_28 = arith.constant 0 : index
      %37 = vector.load %arg3[%c0_26, %c0_27, %c0_28] : memref<1x256x128xf32, #tpu.memory_space<vmem>>, vector<1x256x128xf32>
      %38 = vector.shape_cast %37 : vector<1x256x128xf32> to vector<256x128xf32>
      %c0_29 = arith.constant 0 : index
      %c0_30 = arith.constant 0 : index
      %39 = vector.load %arg18[%c0_29, %c0_30] : memref<256x128xf32, #tpu.memory_space<vmem>>, vector<256x128xf32>
      %c0_31 = arith.constant 0 : index
      %c0_32 = arith.constant 0 : index
      %40 = vector.load %arg17[%c0_31, %c0_32] : memref<256x1xf32, #tpu.memory_space<vmem>>, vector<256x1xf32>
      %41 = tpu.reciprocal %40 {approx = true} : vector<256x1xf32> -> vector<256x1xf32>
      %42 = vector.broadcast %41 : vector<256x1xf32> to vector<256x128xf32>
      %43 = arith.mulf %39, %42 : vector<256x128xf32>
      %44 = arith.truncf %43 : vector<256x128xf32> to vector<256x128xbf16>
      %c0_33 = arith.constant 0 : index
      %c0_34 = arith.constant 0 : index
      %45 = vector.load %arg7[%c0_33, %c0_34] : memref<128x128xbf16, #tpu.memory_space<vmem>>, vector<128x128xbf16>
      %cst_35 = arith.constant dense<0.000000e+00> : vector<256x128xf32>
      %46 = tpu.matmul %44, %45, %cst_35 {dimension_numbers = #tpu.dot_dimension_numbers<[1], [0], [0], [1], [0, 0, 1, 1], [], []>} : vector<256x128xbf16>, vector<128x128xbf16>, vector<256x128xf32> -> vector<256x128xf32>
      %c0_36 = arith.constant 0 : index
      %c0_37 = arith.constant 0 : index
      %47 = vector.load %arg8[%c0_36, %c0_37] : memref<1x128xf32, #tpu.memory_space<vmem>>, vector<1x128xf32>
      %48 = vector.shape_cast %47 : vector<1x128xf32> to vector<128xf32>
      %49 = vector.shape_cast %48 : vector<128xf32> to vector<1x128xf32>
      %50 = vector.broadcast %49 : vector<1x128xf32> to vector<256x128xf32>
      %51 = arith.addf %46, %50 : vector<256x128xf32>
      %52 = arith.addf %38, %51 : vector<256x128xf32>
      %c0_38 = arith.constant 0 : index
      %c0_39 = arith.constant 0 : index
      %53 = vector.load %arg9[%c0_38, %c0_39] : memref<1x128xf32, #tpu.memory_space<vmem>>, vector<1x128xf32>
      %54 = vector.shape_cast %53 : vector<1x128xf32> to vector<128xf32>
      %c0_40 = arith.constant 0 : index
      %c0_41 = arith.constant 0 : index
      %55 = vector.load %arg10[%c0_40, %c0_41] : memref<1x128xf32, #tpu.memory_space<vmem>>, vector<1x128xf32>
      %56 = vector.shape_cast %55 : vector<1x128xf32> to vector<128xf32>
      %cst_42 = arith.constant dense<0.000000e+00> : vector<256xf32>
      %57 = vector.multi_reduction <add>, %52, %cst_42 [1] : vector<256x128xf32> to vector<256xf32>
      %58 = vector.shape_cast %57 : vector<256xf32> to vector<256x1xf32>
      %59 = arith.mulf %52, %52 : vector<256x128xf32>
      %cst_43 = arith.constant dense<0.000000e+00> : vector<256xf32>
      %60 = vector.multi_reduction <add>, %59, %cst_43 [1] : vector<256x128xf32> to vector<256xf32>
      %61 = vector.shape_cast %60 : vector<256xf32> to vector<256x1xf32>
      %cst_44 = arith.constant 2.500000e-01 : f32
      %62 = vector.broadcast %cst_44 : f32 to vector<256x1xf32>
      %63 = arith.mulf %58, %62 : vector<256x1xf32>
      %cst_45 = arith.constant 2.500000e-01 : f32
      %64 = vector.broadcast %cst_45 : f32 to vector<256x1xf32>
      %65 = arith.mulf %61, %64 : vector<256x1xf32>
      %66 = arith.mulf %63, %63 : vector<256x1xf32>
      %67 = arith.subf %65, %66 : vector<256x1xf32>
      %cst_46 = arith.constant 0.000000e+00 : f32
      %68 = vector.broadcast %cst_46 : f32 to vector<256x1xf32>
      %69 = arith.maximumf %67, %68 : vector<256x1xf32>
      %70 = vector.broadcast %63 : vector<256x1xf32> to vector<256x128xf32>
      %71 = arith.subf %52, %70 : vector<256x128xf32>
      %cst_47 = arith.constant 9.99999974E-6 : f32
      %72 = vector.broadcast %cst_47 : f32 to vector<256x1xf32>
      %73 = arith.addf %69, %72 : vector<256x1xf32>
      %74 = math.rsqrt %73 : vector<256x1xf32>
      %75 = vector.broadcast %74 : vector<256x1xf32> to vector<256x128xf32>
      %76 = arith.mulf %71, %75 : vector<256x128xf32>
      %77 = vector.shape_cast %54 : vector<128xf32> to vector<1x128xf32>
      %78 = vector.broadcast %77 : vector<1x128xf32> to vector<256x128xf32>
      %79 = arith.mulf %76, %78 : vector<256x128xf32>
      %80 = vector.shape_cast %56 : vector<128xf32> to vector<1x128xf32>
      %81 = vector.broadcast %80 : vector<1x128xf32> to vector<256x128xf32>
      %82 = arith.addf %79, %81 : vector<256x128xf32>
      %83 = arith.truncf %82 : vector<256x128xf32> to vector<256x128xbf16>
      %c0_48 = arith.constant 0 : index
      %c0_49 = arith.constant 0 : index
      %84 = vector.load %arg11[%c0_48, %c0_49] : memref<128x128xbf16, #tpu.memory_space<vmem>>, vector<128x128xbf16>
      %cst_50 = arith.constant dense<0.000000e+00> : vector<256x128xf32>
      %85 = tpu.matmul %83, %84, %cst_50 {dimension_numbers = #tpu.dot_dimension_numbers<[1], [0], [0], [1], [0, 0, 1, 1], [], []>} : vector<256x128xbf16>, vector<128x128xbf16>, vector<256x128xf32> -> vector<256x128xf32>
      %c0_51 = arith.constant 0 : index
      %c0_52 = arith.constant 0 : index
      %86 = vector.load %arg12[%c0_51, %c0_52] : memref<1x128xf32, #tpu.memory_space<vmem>>, vector<1x128xf32>
      %87 = vector.shape_cast %86 : vector<1x128xf32> to vector<128xf32>
      %88 = vector.shape_cast %87 : vector<128xf32> to vector<1x128xf32>
      %89 = vector.broadcast %88 : vector<1x128xf32> to vector<256x128xf32>
      %90 = arith.addf %85, %89 : vector<256x128xf32>
      %cst_53 = arith.constant 5.000000e-01 : f32
      %91 = vector.broadcast %cst_53 : f32 to vector<256x128xf32>
      %92 = arith.mulf %91, %90 : vector<256x128xf32>
      %cst_54 = arith.constant 0.707106769 : f32
      %93 = vector.broadcast %cst_54 : f32 to vector<256x128xf32>
      %94 = arith.mulf %90, %93 : vector<256x128xf32>
      %cst_55 = arith.constant 0.000000e+00 : f32
      %95 = vector.broadcast %cst_55 : f32 to vector<256x128xf32>
      %96 = arith.cmpf oge, %94, %95 : vector<256x128xf32>
      %cst_56 = arith.constant 1.000000e+00 : f32
      %cst_57 = arith.constant -1.000000e+00 : f32
      %97 = vector.broadcast %cst_56 : f32 to vector<256x128xf32>
      %98 = vector.broadcast %cst_57 : f32 to vector<256x128xf32>
      %99 = arith.select %96, %97, %98 : vector<256x128xi1>, vector<256x128xf32>
      %100 = math.absf %94 : vector<256x128xf32>
      %cst_58 = arith.constant 0.327591091 : f32
      %101 = vector.broadcast %cst_58 : f32 to vector<256x128xf32>
      %102 = arith.mulf %101, %100 : vector<256x128xf32>
      %cst_59 = arith.constant 1.000000e+00 : f32
      %103 = vector.broadcast %cst_59 : f32 to vector<256x128xf32>
      %104 = arith.addf %103, %102 : vector<256x128xf32>
      %cst_60 = arith.constant 1.000000e+00 : f32
      %105 = vector.broadcast %cst_60 : f32 to vector<256x128xf32>
      %106 = arith.divf %105, %104 : vector<256x128xf32>
      %cst_61 = arith.constant 1.06140542 : f32
      %107 = vector.broadcast %cst_61 : f32 to vector<256x128xf32>
      %108 = arith.mulf %107, %106 : vector<256x128xf32>
      %cst_62 = arith.constant -1.45315206 : f32
      %109 = vector.broadcast %cst_62 : f32 to vector<256x128xf32>
      %110 = arith.addf %108, %109 : vector<256x128xf32>
      %111 = arith.mulf %110, %106 : vector<256x128xf32>
      %cst_63 = arith.constant 1.42141378 : f32
      %112 = vector.broadcast %cst_63 : f32 to vector<256x128xf32>
      %113 = arith.addf %111, %112 : vector<256x128xf32>
      %114 = arith.mulf %113, %106 : vector<256x128xf32>
      %cst_64 = arith.constant -0.284496725 : f32
      %115 = vector.broadcast %cst_64 : f32 to vector<256x128xf32>
      %116 = arith.addf %114, %115 : vector<256x128xf32>
      %117 = arith.mulf %116, %106 : vector<256x128xf32>
      %cst_65 = arith.constant 0.254829586 : f32
      %118 = vector.broadcast %cst_65 : f32 to vector<256x128xf32>
      %119 = arith.addf %117, %118 : vector<256x128xf32>
      %120 = arith.mulf %119, %106 : vector<256x128xf32>
      %cst_66 = arith.constant 0.000000e+00 : f32
      %121 = vector.broadcast %cst_66 : f32 to vector<256x128xf32>
      %122 = arith.subf %121, %100 : vector<256x128xf32>
      %123 = arith.mulf %122, %100 : vector<256x128xf32>
      %124 = math.exp %123 : vector<256x128xf32>
      %125 = arith.mulf %120, %124 : vector<256x128xf32>
      %cst_67 = arith.constant 1.000000e+00 : f32
      %126 = vector.broadcast %cst_67 : f32 to vector<256x128xf32>
      %127 = arith.subf %126, %125 : vector<256x128xf32>
      %128 = arith.mulf %99, %127 : vector<256x128xf32>
      %cst_68 = arith.constant 1.000000e+00 : f32
      %129 = vector.broadcast %cst_68 : f32 to vector<256x128xf32>
      %130 = arith.addf %129, %128 : vector<256x128xf32>
      %131 = arith.mulf %92, %130 : vector<256x128xf32>
      %132 = arith.truncf %131 : vector<256x128xf32> to vector<256x128xbf16>
      %c0_69 = arith.constant 0 : index
      %c0_70 = arith.constant 0 : index
      %133 = vector.load %arg13[%c0_69, %c0_70] : memref<128x128xbf16, #tpu.memory_space<vmem>>, vector<128x128xbf16>
      %cst_71 = arith.constant dense<0.000000e+00> : vector<256x128xf32>
      %134 = tpu.matmul %132, %133, %cst_71 {dimension_numbers = #tpu.dot_dimension_numbers<[1], [0], [0], [1], [0, 0, 1, 1], [], []>} : vector<256x128xbf16>, vector<128x128xbf16>, vector<256x128xf32> -> vector<256x128xf32>
      %c0_72 = arith.constant 0 : index
      %c0_73 = arith.constant 0 : index
      %135 = vector.load %arg14[%c0_72, %c0_73] : memref<1x128xf32, #tpu.memory_space<vmem>>, vector<1x128xf32>
      %136 = vector.shape_cast %135 : vector<1x128xf32> to vector<128xf32>
      %137 = vector.shape_cast %136 : vector<128xf32> to vector<1x128xf32>
      %138 = vector.broadcast %137 : vector<1x128xf32> to vector<256x128xf32>
      %139 = arith.addf %134, %138 : vector<256x128xf32>
      %140 = arith.addf %52, %139 : vector<256x128xf32>
      %c0_74 = arith.constant 0 : index
      %c0_75 = arith.constant 0 : index
      %c0_76 = arith.constant 0 : index
      %141 = vector.load %arg15[%c0_74, %c0_75, %c0_76] : memref<1x256x128xf32, #tpu.memory_space<vmem>>, vector<1x256x128xf32>
      %142 = vector.shape_cast %141 : vector<1x256x128xf32> to vector<256x128xf32>
      %143 = vector.shape_cast %140 : vector<256x128xf32> to vector<1x256x128xf32>
      tpu.vector_store %arg15[%c0_74, %c0_75, %c0_76], %143 {strides = array<i32>} : memref<1x256x128xf32, #tpu.memory_space<vmem>>, vector<1x256x128xf32>,
    } else {
    }
    return
  }
  func.func @transform_0(%arg0: i32, %arg1: i32, %arg2: i32) -> (i32, i32, i32) {
    %c0_i32 = arith.constant 0 : i32
    %c0_i32_0 = arith.constant 0 : i32
    return %arg0, %arg1, %c0_i32 : i32, i32, i32
  }
  func.func @transform_1(%arg0: i32, %arg1: i32, %arg2: i32) -> (i32, i32, i32) {
    %c0_i32 = arith.constant 0 : i32
    %c0_i32_0 = arith.constant 0 : i32
    return %arg0, %arg1, %c0_i32 : i32, i32, i32
  }
  func.func @transform_2(%arg0: i32, %arg1: i32, %arg2: i32) -> (i32, i32, i32) {
    %c0_i32 = arith.constant 0 : i32
    %c0_i32_0 = arith.constant 0 : i32
    return %arg0, %c0_i32, %arg2 : i32, i32, i32
  }
  func.func @transform_3(%arg0: i32, %arg1: i32, %arg2: i32) -> (i32, i32, i32) {
    %c0_i32 = arith.constant 0 : i32
    %c0_i32_0 = arith.constant 0 : i32
    return %arg0, %arg2, %c0_i32 : i32, i32, i32
  }
  func.func @transform_4(%arg0: i32, %arg1: i32, %arg2: i32) -> (i32, i32) {
    %c0_i32 = arith.constant 0 : i32
    %c0_i32_0 = arith.constant 0 : i32
    %c0_i32_1 = arith.constant 0 : i32
    return %c0_i32, %c0_i32_0 : i32, i32
  }
  func.func @transform_5(%arg0: i32, %arg1: i32, %arg2: i32) -> (i32, i32) {
    %c0_i32 = arith.constant 0 : i32
    %c0_i32_0 = arith.constant 0 : i32
    %c0_i32_1 = arith.constant 0 : i32
    return %c0_i32, %c0_i32_0 : i32, i32
  }
  func.func @transform_6(%arg0: i32, %arg1: i32, %arg2: i32) -> (i32, i32) {
    %c0_i32 = arith.constant 0 : i32
    %c0_i32_0 = arith.constant 0 : i32
    %c0_i32_1 = arith.constant 0 : i32
    return %c0_i32, %c0_i32_0 : i32, i32
  }
  func.func @transform_7(%arg0: i32, %arg1: i32, %arg2: i32) -> (i32, i32) {
    %c0_i32 = arith.constant 0 : i32
    %c0_i32_0 = arith.constant 0 : i32
    %c0_i32_1 = arith.constant 0 : i32
    return %c0_i32, %c0_i32_0 : i32, i32
  }
  func.func @transform_8(%arg0: i32, %arg1: i32, %arg2: i32) -> (i32, i32) {
    %c0_i32 = arith.constant 0 : i32
    %c0_i32_0 = arith.constant 0 : i32
    %c0_i32_1 = arith.constant 0 : i32
    return %c0_i32, %c0_i32_0 : i32, i32
  }
  func.func @transform_9(%arg0: i32, %arg1: i32, %arg2: i32) -> (i32, i32) {
    %c0_i32 = arith.constant 0 : i32
    %c0_i32_0 = arith.constant 0 : i32
    %c0_i32_1 = arith.constant 0 : i32
    return %c0_i32, %c0_i32_0 : i32, i32
  }
  func.func @transform_10(%arg0: i32, %arg1: i32, %arg2: i32) -> (i32, i32) {
    %c0_i32 = arith.constant 0 : i32
    %c0_i32_0 = arith.constant 0 : i32
    %c0_i32_1 = arith.constant 0 : i32
    return %c0_i32, %c0_i32_0 : i32, i32
  }
  func.func @transform_11(%arg0: i32, %arg1: i32, %arg2: i32) -> (i32, i32) {
    %c0_i32 = arith.constant 0 : i32
    %c0_i32_0 = arith.constant 0 : i32
    %c0_i32_1 = arith.constant 0 : i32
    return %c0_i32, %c0_i32_0 : i32, i32
  }
  func.func @transform_12(%arg0: i32, %arg1: i32, %arg2: i32) -> (i32, i32, i32) {
    %c0_i32 = arith.constant 0 : i32
    %c0_i32_0 = arith.constant 0 : i32
    return %arg0, %arg1, %c0_i32 : i32, i32, i32
  }
}

</mosaic_0001>

<bundles_post_ra>
// kernel: mix_transformer_block.2
= control target key start
LH: loop header
LB: loop body
LE: loop exit
PB: predicated region body
PF: predicated region fallthrough
CT: control target
= control target key end

     0   :  { %s2741_s24 = smov 0   ;;  %s2743_s25 = smov 0   ;;  %s4276_s0 = inlined_call_operand.vmem [shape: f32[2,256,128], index: 0, kind: input, shape index: {}]   ;;  %s4277_s1 = inlined_call_operand.vmem [shape: f32[1,128], index: 1, kind: input, shape index: {}]   ;;  %s4278_s2 = inlined_call_operand.vmem [shape: f32[1,128], index: 2, kind: input, shape index: {}]   ;;  %s4279_s3 = inlined_call_operand.vmem [shape: bf16[128,384], index: 3, kind: input, shape index: {}]   ;;  %s4280_s4 = inlined_call_operand.vmem [shape: f32[1,384], index: 4, kind: input, shape index: {}]   ;;  %s4281_s5 = inlined_call_operand.vmem [shape: bf16[2,256,128], index: 5, kind: output, shape index: {0}]   ;;  %s4282_s6 = inlined_call_operand.vmem [shape: bf16[2,128,256], index: 6, kind: output, shape index: {1}]   ;;  %s4283_s7 = inlined_call_operand.vmem [shape: bf16[2,256,128], index: 7, kind: output, shape index: {2}]  }
   0x1   :  { %s2745_s26 = smov 0  }
   0x2 LB: > { %s30_s27 = sadd.s32 1, %s2695_s25  ;;  %p2103_p0 = scmp.ge.s32.totalorder %s2699_s26, 1  ;;  %s2699_s26 = sphi %s2745_s26, %s18_s26   ;;  %s2695_s25 = sphi %s2743_s25, %s4339_s25   ;;  %s2691_s24 = sphi %s2741_s24, %s4338_s24  }
   0x3   : > { %p32_p1 = scmp.ge.s32.totalorder %s30_s27, 2  ;;  %p267_p2 = scmp.lt.s32.totalorder %s2699_s26, 3 }
   0x5   : > { %s4341_s27 = smov (%p32_p1, %s30_s27), 0  ;;  %p268_p3 = pnand %p2103_p0, %p267_p2 }
   0x6   : > { %p326_p4 = scmp.lt.s32.totalorder (!%p268_p3), %s2691_s24, 1 }
   0x7   : > { %271 = sbr.rel (%p268_p3) target bundleno = 725 (0x2d5), region = 40 }
   0xc   : > { %s4343_s24 = smov (!%p326_p4, %s2691_s24), 1  ;;  %v2198_v39 = vld [vmem:[%s4279_s3 + $0xa8] sm:$0xf]  ;;  %v2236_v40 = vld [vmem:[%s4279_s3 + $0xb0] sm:$0xf0] }
   0xd   : > { %s2210_s28 = sshll.u32 %s4343_s24, 8  ;;  %v2235_v41 = vld [vmem:[%s4279_s3 + $0xac] sm:$0xf]  ;;  %v2199_v42 = vor.u32 %v2236_v40, %v2198_v39  ;;  %v2200_v43 = vld [vmem:[%s4279_s3 + $0xb4] sm:$0xf0]  ;;  %s3962_s29 = sshll.u32 %s4343_s24, 7 }
   0xe   : > { %s2765_s8 = scalar_lea.vmem %s4276_s0, %s2210_s28  ;;  %v2206_v44 = vld [vmem:[%s4279_s3 + $0xb0] sm:$0xf]  ;;  %v2237_v45 = vld [vmem:[%s4279_s3 + $0xb8] sm:$0xf0]  ;;  %v2861_v46 = vor.u32 %v2235_v41, %v2200_v43  ;;  %v2232_v50 = vld [vmem:[%s4279_s3 + $0x94] sm:$0xf]  ;;  %s3979_s9 = scalar_lea.vmem %s4281_s5, %s3962_s29 }
   0xf   : > { %v2768_v0 = vld [vmem:[%s2765_s8 + $0x10] sm:$0xff]  ;;  %v2771_v1 = vld [vmem:[%s2765_s8] sm:$0xff]  ;;  %v2778_v3 = vld [vmem:[%s2765_s8 + $0x8] sm:$0xff]  ;;  %v2863_v47 = vor.u32 %v2237_v45, %v2206_v44  ;;  %1389 = vmatpush.bf16.msra.mxu0 %v2199_v42  ;;  %2428 = vmatpush.bf16.msra.mxu3 %v2199_v42  ;;  %s4012_s12 = scalar_lea.vmem %s4283_s7, %s3962_s29  ;;  %s4249_s14 = scalar_lea.vmem %s4282_s6, %s3962_s29 }
  0x10   : > { %403 = vadd.xlane.f32.xlu2 %v2768_v0  ;;  %399 = vadd.xlane.f32.xlu0 %v2771_v1  ;;  %v463_v2 = vmul.f32 %v2771_v1, %v2771_v1  ;;  %v2781_v4 = vld [vmem:[%s2765_s8 + $0x18] sm:$0xff]  ;;  %v464_v5 = vmul.f32 %v2778_v3, %v2778_v3  ;;  %v465_v6 = vmul.f32 %v2768_v0, %v2768_v0  ;;  %v2790_v7 = vld [vmem:[%s2765_s8 + $0x20] sm:$0xff]  ;;  %v2796_v9 = vld [vmem:[%s2765_s8 + $0x28] sm:$0xff] }
  0x11   : > { %v466_v8 = vmul.f32 %v2781_v4, %v2781_v4  ;;  %v468_v10 = vmul.f32 %v2796_v9, %v2796_v9  ;;  %v467_v11 = vmul.f32 %v2790_v7, %v2790_v7  ;;  %v2804_v12 = vld [vmem:[%s2765_s8 + $0x30] sm:$0xff]  ;;  %v2809_v14 = vld [vmem:[%s2765_s8 + $0x38] sm:$0xff]  ;;  %v2816_v16 = vld [vmem:[%s2765_s8 + $0x48] sm:$0xff]  ;;  %1478 = vmatpush.bf16.msra.mxu1 %v2861_v46  ;;  %1567 = vmatpush.bf16.msra.mxu2 %v2863_v47 }
  0x12   : > { %495 = vadd.xlane.f32.xlu1 %v463_v2  ;;  %v469_v13 = vmul.f32 %v2804_v12, %v2804_v12  ;;  %v470_v15 = vmul.f32 %v2809_v14, %v2809_v14  ;;  %v373_v17 = vld [vmem:[%s2765_s8 + $0x40] sm:$0xff]  ;;  %v472_v20 = vmul.f32 %v2816_v16, %v2816_v16  ;;  %v376_v21 = vld [vmem:[%s2765_s8 + $0x58] sm:$0xff]  ;;  %v2828_v22 = vld [vmem:[%s2765_s8 + $0xc8] sm:$0xff] }
  0x13   : > { %v471_v18 = vmul.f32 %v373_v17, %v373_v17  ;;  %v2821_v19 = vld [vmem:[%s2765_s8 + $0xc0] sm:$0xff]  ;;  %v375_v23 = vld [vmem:[%s2765_s8 + $0x50] sm:$0xff]  ;;  %v488_v26 = vmul.f32 %v2828_v22, %v2828_v22  ;;  %v474_v27 = vmul.f32 %v376_v21, %v376_v21  ;;  %v392_v28 = vld [vmem:[%s2765_s8 + $0xd8] sm:$0xff] }
  0x14   : > { %v473_v24 = vmul.f32 %v375_v23, %v375_v23  ;;  %v487_v25 = vmul.f32 %v2821_v19, %v2821_v19  ;;  %v391_v29 = vld [vmem:[%s2765_s8 + $0xd0] sm:$0xff]  ;;  %v377_v31 = vld [vmem:[%s2765_s8 + $0x60] sm:$0xff]  ;;  %v378_v32 = vld [vmem:[%s2765_s8 + $0x68] sm:$0xff]  ;;  %v490_v34 = vmul.f32 %v392_v28, %v392_v28 }
  0x15   : > { %v489_v30 = vmul.f32 %v391_v29, %v391_v29  ;;  %v476_v33 = vmul.f32 %v378_v32, %v378_v32  ;;  %v475_v35 = vmul.f32 %v377_v31, %v377_v31  ;;  %v379_v36 = vld [vmem:[%s2765_s8 + $0x70] sm:$0xff]  ;;  %v393_v37 = vld [vmem:[%s2765_s8 + $0xe0] sm:$0xff]  ;;  %v394_v38 = vld [vmem:[%s2765_s8 + $0xe8] sm:$0xff] }
  0x16   : > { %v2186_v48 = vld [vmem:[%s4279_s3 + $0x90] sm:$0xf]  ;;  %v2233_v49 = vld [vmem:[%s4279_s3 + $0x98] sm:$0xf0]  ;;  %v492_v51 = vmul.f32 %v394_v38, %v394_v38  ;;  %v2188_v53 = vld [vmem:[%s4279_s3 + $0x9c] sm:$0xf0]  ;;  %v491_v59 = vmul.f32 %v393_v37, %v393_v37 }
  0x17   : > { %v2187_v52 = vor.u32 %v2233_v49, %v2186_v48  ;;  %v2194_v54 = vld [vmem:[%s4279_s3 + $0x98] sm:$0xf]  ;;  %v2234_v55 = vld [vmem:[%s4279_s3 + $0xa0] sm:$0xf0]  ;;  %v2886_v57 = vor.u32 %v2232_v50, %v2188_v53  ;;  %v2229_v62 = vld [vmem:[%s4279_s3 + $0x7c] sm:$0xf] }
  0x18   : > { %405 = vadd.xlane.f32.xlu2 %v2781_v4  ;;  %401 = vadd.xlane.f32.xlu0 %v2778_v3  ;;  %v380_v56 = vld [vmem:[%s2765_s8 + $0x78] sm:$0xff]  ;;  %v2888_v58 = vor.u32 %v2234_v55, %v2194_v54  ;;  %v2230_v61 = vld [vmem:[%s4279_s3 + $0x80] sm:$0xf0]  ;;  %v2176_v2 = vld [vmem:[%s4279_s3 + $0x84] sm:$0xf0] }
  0x19   : > { %1390 = vmatpush.bf16.msra.mxu0 %v2187_v52  ;;  %1479 = vmatpush.bf16.msra.mxu1 %v2886_v57  ;;  %v2174_v60 = vld [vmem:[%s4279_s3 + $0x78] sm:$0xf]  ;;  %v2138_v42 = vld [vmem:[%s4279_s3 + $0x30] sm:$0xf]  ;;  %v2221_v43 = vld [vmem:[%s4279_s3 + $0x38] sm:$0xf0] }
  0x1a   : > { %497 = vadd.xlane.f32.xlu1 %v464_v5  ;;  %1568 = vmatpush.bf16.msra.mxu2 %v2888_v58  ;;  %v2175_v63 = vor.u32 %v2230_v61, %v2174_v60  ;;  %v2182_v5 = vld [vmem:[%s4279_s3 + $0x80] sm:$0xf]  ;;  %v396_v41 = vld [vmem:[%s2765_s8 + $0xf8] sm:$0xff]  ;;  %v2139_v45 = vor.u32 %v2221_v43, %v2138_v42  ;;  %v2220_v48 = vld [vmem:[%s4279_s3 + $0x34] sm:$0xf] }
  0x1b   : > { %2429 = vmatpush.bf16.msra.mxu3 %v2187_v52  ;;  %v2140_v49 = vld [vmem:[%s4279_s3 + $0x3c] sm:$0xf0]  ;;  %v2146_v50 = vld [vmem:[%s4279_s3 + $0x38] sm:$0xf]  ;;  %v2222_v52 = vld [vmem:[%s4279_s3 + $0x40] sm:$0xf0] }
  0x1c   : > { %v381_v54 = vld [vmem:[%s2765_s8 + $0x80] sm:$0xff]  ;;  %v2997_v55 = vor.u32 %v2220_v48, %v2140_v49  ;;  %v2217_v61 = vld [vmem:[%s4279_s3 + $0x1c] sm:$0xf]  ;;  %v2216_v42 = vld [vmem:[%s4279_s3 + $0x10] sm:$0xf0] }
  0x1d   : > { %1391 = vmatpush.bf16.msra.mxu0 %v2175_v63  ;;  %v2218_v60 = vld [vmem:[%s4279_s3 + $0x20] sm:$0xf0] }
  0x1f   : > { %2430 = vmatpush.bf16.msra.mxu3 %v2175_v63 }
  0x20   : > { %407 = vadd.xlane.f32.xlu2 %v2790_v7  ;;  %499 = vadd.xlane.f32.xlu0 %v465_v6  ;;  %v2231_v6 = vld [vmem:[%s4279_s3 + $0x88] sm:$0xf0] }
  0x22   : > { %501 = vadd.xlane.f32.xlu1 %v466_v8  ;;  %v2910_v8 = vor.u32 %v2229_v62, %v2176_v2  ;;  %v2128_v2 = vld [vmem:[%s4279_s3 + $0x24] sm:$0xf0] }
  0x24   : > { %1480 = vmatpush.bf16.msra.mxu1 %v2910_v8 }
  0x28   : > { %505 = vadd.xlane.f32.xlu2 %v468_v10  ;;  %409 = vadd.xlane.f32.xlu0 %v2796_v9  ;;  %v2912_v10 = vor.u32 %v2231_v6, %v2182_v5  ;;  %v2134_v5 = vld [vmem:[%s4279_s3 + $0x20] sm:$0xf]  ;;  %v3019_v6 = vor.u32 %v2217_v61, %v2128_v2 }
  0x2a   : > { %503 = vadd.xlane.f32.xlu1 %v467_v11  ;;  %1569 = vmatpush.bf16.msra.mxu2 %v2912_v10  ;;  %v2162_v11 = vld [vmem:[%s4279_s3 + $0x60] sm:$0xf] }
  0x30   : > { %507 = vadd.xlane.f32.xlu2 %v469_v13  ;;  %411 = vadd.xlane.f32.xlu0 %v2804_v12  ;;  %v2227_v13 = vld [vmem:[%s4279_s3 + $0x68] sm:$0xf0] }
  0x32   : > { %413 = vadd.xlane.f32.xlu1 %v2809_v14 }
  0x38   : > { %417 = vadd.xlane.f32.xlu2 %v2816_v16  ;;  %509 = vadd.xlane.f32.xlu0 %v470_v15  ;;  %v2226_v15 = vld [vmem:[%s4279_s3 + $0x64] sm:$0xf] }
  0x3a   : > { %415 = vadd.xlane.f32.xlu1 %v373_v17  ;;  %v477_v17 = vmul.f32 %v379_v36, %v379_v36 }
  0x40   : > { %447 = vadd.xlane.f32.xlu2 %v2821_v19  ;;  %511 = vadd.xlane.f32.xlu0 %v471_v18  ;;  %v2163_v18 = vor.u32 %v2227_v13, %v2162_v11  ;;  %v2219_v11 = vld [vmem:[%s4279_s3 + $0x28] sm:$0xf0] }
  0x42   : > { %513 = vadd.xlane.f32.xlu1 %v472_v20  ;;  %v2164_v20 = vld [vmem:[%s4279_s3 + $0x6c] sm:$0xf0]  ;;  %1392 = vmatpush.bf16.msra.mxu0 %v2163_v18 }
  0x43   : > { %2431 = vmatpush.bf16.msra.mxu3 %v2163_v18  ;;  %v3024_v18 = vor.u32 %v2219_v11, %v2134_v5 }
  0x48   : > { %421 = vadd.xlane.f32.xlu2 %v376_v21  ;;  %449 = vadd.xlane.f32.xlu0 %v2828_v22  ;;  %v2170_v21 = vld [vmem:[%s4279_s3 + $0x68] sm:$0xf] }
  0x4a   : > { %419 = vadd.xlane.f32.xlu1 %v375_v23  ;;  %v2228_v23 = vld [vmem:[%s4279_s3 + $0x70] sm:$0xf0] }
  0x50   : > { %515 = vadd.xlane.f32.xlu2 %v473_v24  ;;  %543 = vadd.xlane.f32.xlu0 %v487_v25  ;;  %v2935_v24 = vld [vmem:[%s2765_s8 + $0xf0] sm:$0xff]  ;;  %v2937_v25 = vor.u32 %v2226_v15, %v2164_v20 }
  0x52   : > { %545 = vadd.xlane.f32.xlu1 %v488_v26  ;;  %v2939_v26 = vor.u32 %v2228_v23, %v2170_v21  ;;  %1481 = vmatpush.bf16.msra.mxu1 %v2937_v25  ;;  %v479_v21 = vmul.f32 %v381_v54, %v381_v54  ;;  %v493_v23 = vmul.f32 %v2935_v24, %v2935_v24 }
  0x54   : > { %1570 = vmatpush.bf16.msra.mxu2 %v2939_v26 }
  0x58   : > { %453 = vadd.xlane.f32.xlu2 %v392_v28  ;;  %517 = vadd.xlane.f32.xlu0 %v474_v27  ;;  %v478_v27 = vmul.f32 %v380_v56, %v380_v56  ;;  %v2150_v28 = vld [vmem:[%s4279_s3 + $0x48] sm:$0xf] }
  0x5a   : > { %451 = vadd.xlane.f32.xlu1 %v391_v29  ;;  %v2224_v29 = vld [vmem:[%s4279_s3 + $0x50] sm:$0xf0] }
  0x60   : > { %547 = vadd.xlane.f32.xlu2 %v489_v30  ;;  %423 = vadd.xlane.f32.xlu0 %v377_v31  ;;  %v2223_v30 = vld [vmem:[%s4279_s3 + $0x4c] sm:$0xf]  ;;  %v2151_v31 = vor.u32 %v2224_v29, %v2150_v28 }
  0x61   : > { %v2215_v28 = vld [vmem:[%s4279_s3 + $0x8] sm:$0xf0] }
  0x62   : > { %425 = vadd.xlane.f32.xlu1 %v378_v32  ;;  %v2152_v32 = vld [vmem:[%s4279_s3 + $0x54] sm:$0xf0]  ;;  %1393 = vmatpush.bf16.msra.mxu0 %v2151_v31 }
  0x63   : > { %2432 = vmatpush.bf16.msra.mxu3 %v2151_v31 }
  0x66   : > { %1394 = vmatpush.bf16.msra.mxu0 %v2139_v45 }
  0x67   : > { %2433 = vmatpush.bf16.msra.mxu3 %v2139_v45 }
  0x68   : > { %521 = vadd.xlane.f32.xlu2 %v476_v33  ;;  %549 = vadd.xlane.f32.xlu0 %v490_v34  ;;  %v2158_v33 = vld [vmem:[%s4279_s3 + $0x50] sm:$0xf]  ;;  %v2959_v34 = vor.u32 %v2223_v30, %v2152_v32 }
  0x69   : > { %v2116_v32 = vld [vmem:[%s4279_s3 + $0xc] sm:$0xf0] }
  0x6a   : > { %519 = vadd.xlane.f32.xlu1 %v475_v35  ;;  %v2225_v35 = vld [vmem:[%s4279_s3 + $0x58] sm:$0xf0]  ;;  %1482 = vmatpush.bf16.msra.mxu1 %v2959_v34 }
  0x6b   : > { %v2969_v39 = vor.u32 %v2225_v35, %v2158_v33  ;;  %v494_v35 = vmul.f32 %v396_v41, %v396_v41 }
  0x6d   : > { %1571 = vmatpush.bf16.msra.mxu2 %v2969_v39 }
  0x6e   : > { %1483 = vmatpush.bf16.msra.mxu1 %v2997_v55 }
  0x70   : > { %427 = vadd.xlane.f32.xlu2 %v379_v36  ;;  %455 = vadd.xlane.f32.xlu0 %v393_v37 }
  0x72   : > { %457 = vadd.xlane.f32.xlu1 %v394_v38  ;;  %v2967_v38 = vld [vmem:[%s2765_s8 + $0x88] sm:$0xff]  ;;  %1484 = vmatpush.bf16.msra.mxu1 %v3019_v6 }
  0x78   : > { %553 = vadd.xlane.f32.xlu2 %v492_v51  ;;  %429 = vadd.xlane.f32.xlu0 %v380_v56  ;;  %v2999_v56 = vor.u32 %v2222_v52, %v2146_v50 }
  0x7a   : > { %551 = vadd.xlane.f32.xlu1 %v491_v59  ;;  %v2126_v59 = vld [vmem:[%s4279_s3 + $0x18] sm:$0xf]  ;;  %1572 = vmatpush.bf16.msra.mxu2 %v2999_v56 }
  0x7b   : > { %v2127_v63 = vor.u32 %v2218_v60, %v2126_v59 }
  0x7d   : > { %1395 = vmatpush.bf16.msra.mxu0 %v2127_v63  ;;  %2434 = vmatpush.bf16.msra.mxu3 %v2127_v63  ;;  %v384_v63 = vld [vmem:[%s2765_s8 + $0x98] sm:$0xff] }
  0x7e   : > { %1573 = vmatpush.bf16.msra.mxu2 %v3024_v18 }
  0x80   : > { %459 = vadd.xlane.f32.xlu2 %v2935_v24  ;;  %523 = vadd.xlane.f32.xlu0 %v477_v17  ;;  %v2214_v24 = vld [vmem:[%s4279_s3 + $0x4] sm:$0xf] }
  0x82   : > { %525 = vadd.xlane.f32.xlu1 %v478_v27  ;;  %v2114_v27 = vld [vmem:[%s4279_s3] sm:$0xf] }
  0x83   : > { %v2964_v36 = vpop.xlane.xlu2 %403  ;;  %v400_v37 = vpop.xlane.xlu0 %399  ;;  %v2115_v31 = vor.u32 %v2215_v28, %v2114_v27 }
  0x84   : > { %v2971_v40 = vmul.f32 0.25, %v400_v37  ;;  %v2122_v37 = vld [vmem:[%s4279_s3 + $0x8] sm:$0xf] }
  0x85   : > { %v496_v44 = vpop.xlane.xlu1 %495  ;;  %1396 = vmatpush.bf16.msra.mxu0 %v2115_v31  ;;  %v3057_v45 = vor.u32 %v2216_v42, %v2122_v37  ;;  %2435 = vmatpush.bf16.msra.mxu3 %v2115_v31  ;;  %v385_v42 = vld [vmem:[%s2765_s8 + $0xa0] sm:$0xff] }
  0x86   : > { %v623_v51 = vmul.f32 %v2971_v40, %v2971_v40  ;;  %v591_v53 = vmul.f32 0.25, %v496_v44  ;;  %v3055_v44 = vor.u32 %v2214_v24, %v2116_v32 }
  0x87   : > { %1574 = vmatpush.bf16.msra.mxu2 %v3057_v45 }
  0x88   : > { %433 = vadd.xlane.f32.xlu2 %v2967_v38  ;;  %461 = vadd.xlane.f32.xlu0 %v396_v41  ;;  %v655_v62 = vsub.f32 %v591_v53, %v623_v51  ;;  %v3060_v41 = vmul.f32 0.25, %v2964_v36 }
  0x89   : > { %1485 = vmatpush.bf16.msra.mxu1 %v3055_v44  ;;  %2436 = vmatpush.bf16.msrb.mxu3 %v2861_v46  ;;  %v383_v46 = vld [vmem:[%s2765_s8 + $0x90] sm:$0xff] }
  0x8a   : > { %431 = vadd.xlane.f32.xlu1 %v381_v54  ;;  %v687_v13 = vmax.f32 %v655_v62, 0.0  ;;  %v480_v54 = vmul.f32 %v2967_v38, %v2967_v38  ;;  %v625_v59 = vmul.f32 %v3060_v41, %v3060_v41  ;;  %v481_v32 = vmul.f32 %v383_v46, %v383_v46 }
  0x8b   : > { %v406_v15 = vpop.xlane.xlu2 %405  ;;  %v402_v17 = vpop.xlane.xlu0 %401 }
  0x8c   : > { %v3026_v20 = vmul.f32 0.25, %v402_v17  ;;  %v3036_v29 = vadd.f32 1e-05, %v687_v13  ;;  %v3062_v48 = vmul.f32 0.25, %v406_v15 }
  0x8d   : > { %v498_v30 = vpop.xlane.xlu1 %497  ;;  %2437 = vmatpush.bf16.msrb.mxu3 %v2886_v57 }
  0x8e   : > { %v624_v33 = vmul.f32 %v3026_v20, %v3026_v20  ;;  %2590 = vrsqrt.f32 %v3036_v29  ;;  %v592_v43 = vmul.f32 0.25, %v498_v30  ;;  %v626_v60 = vmul.f32 %v3062_v48, %v3062_v48 }
  0x8f   : > { %vm789_vm1 = vweird.f32 %v3036_v29 }
  0x90   : > { %527 = vadd.xlane.f32.xlu2 %v479_v21  ;;  %555 = vadd.xlane.f32.xlu0 %v493_v23  ;;  %v656_v49 = vsub.f32 %v592_v43, %v624_v33 }
  0x91   : > { %2438 = vmatpush.bf16.msrb.mxu3 %v2910_v8 }
  0x92   : > { %557 = vadd.xlane.f32.xlu1 %v494_v35  ;;  %v688_v50 = vmax.f32 %v656_v49, 0.0 }
  0x93   : > { %v408_v51 = vpop.xlane.xlu2 %407  ;;  %v500_v52 = vpop.xlane.xlu0 %499 }
  0x94   : > { %v593_v53 = vmul.f32 0.25, %v500_v52  ;;  %v3069_v36 = vpop.eup %2590  ;;  %v3075_v61 = vadd.f32 1e-05, %v688_v50  ;;  %v3083_v13 = vmul.f32 0.25, %v408_v51  ;;  %v482_v51 = vmul.f32 %v384_v63, %v384_v63 }
  0x95   : > { %v502_v62 = vpop.xlane.xlu1 %501  ;;  %v784_v2 = vmul.f32 %v3069_v36, %v3036_v29  ;;  %2439 = vmatpush.bf16.msrb.mxu3 %v2937_v25  ;;  %vm790_vm0 = vweird.f32 %v3069_v36 }
  0x96   : > { %2592 = vrsqrt.f32 %v3075_v61  ;;  %v657_v38 = vsub.f32 %v593_v53, %v625_v59  ;;  %v594_v5 = vmul.f32 0.25, %v502_v62  ;;  %v627_v35 = vmul.f32 %v3083_v13, %v3083_v13  ;;  %v386_v59 = vld [vmem:[%s2765_s8 + $0xa8] sm:$0xff]  ;;  %vm3120_vm2 = vmor %vm789_vm1, %vm790_vm0 }
  0x97   : > { %v785_v11 = vmul.f32 %v3069_v36, %v784_v2  ;;  %vm799_vm4 = vweird.f32 %v3075_v61 }
  0x98   : > { %529 = vadd.xlane.f32.xlu0 %v480_v54  ;;  %437 = vadd.xlane.f32.xlu2 %v384_v63  ;;  %v689_v15 = vmax.f32 %v657_v38, 0.0  ;;  %v658_v17 = vsub.f32 %v594_v5, %v626_v60 }
  0x99   : > { %v786_v21 = vmul.f32 0.5, %v785_v11  ;;  %v484_v11 = vmul.f32 %v386_v59, %v386_v59  ;;  %2440 = vmatpush.bf16.msrb.mxu3 %v2959_v34 }
  0x9a   : > { %435 = vadd.xlane.f32.xlu1 %v383_v46  ;;  %v3086_v23 = vadd.f32 1e-05, %v689_v15  ;;  %v690_v27 = vmax.f32 %v658_v17, 0.0  ;;  %v483_v15 = vmul.f32 %v385_v42, %v385_v42 }
  0x9b   : > { %v506_v28 = vpop.xlane.xlu2 %505  ;;  %v410_v30 = vpop.xlane.xlu0 %409  ;;  %v787_v43 = vsub.f32 1.5, %v786_v21 }
  0x9c   : > { %v596_v31 = vmul.f32 0.25, %v506_v28  ;;  %v3088_v24 = vmul.f32 0.25, %v410_v30  ;;  %v3090_v33 = vpop.eup %2592  ;;  %2594 = vrsqrt.f32 %v3086_v23  ;;  %v3095_v57 = vadd.f32 1e-05, %v690_v27 }
  0x9d   : > { %v504_v37 = vpop.xlane.xlu1 %503  ;;  %v794_v49 = vmul.f32 %v3090_v33, %v3075_v61  ;;  %v788_v8 = vmul.f32 %v3069_v36, %v787_v43  ;;  %vm800_vm3 = vweird.f32 %v3090_v33  ;;  %v387_v61 = vld [vmem:[%s2765_s8 + $0xb0] sm:$0xff]  ;;  %2441 = vmatpush.bf16.msrb.mxu3 %v2997_v55  ;;  %vm809_vm9 = vweird.f32 %v3086_v23 }
  0x9e   : > { %v628_v50 = vmul.f32 %v3088_v24, %v3088_v24  ;;  %2596 = vrsqrt.f32 %v3095_v57  ;;  %v595_v52 = vmul.f32 0.25, %v504_v37  ;;  %vm801_vm5 = vmor %vm799_vm4, %vm800_vm3  ;;  %vm819_vm7 = vweird.f32 %v3095_v57 }
  0x9f   : > { %v795_v53 = vmul.f32 %v3090_v33, %v794_v49  ;;  %v792_v43 = vsel %vm3120_vm2, %v3069_v36, %v788_v8  ;;  %v719_v49 = vsub.f32 %v2771_v1, %v2971_v40  ;;  %v3152_v1 = vld [vmem:[%s4277_s1] ss:$0 sm:$0xff] }
  0xa0   : > { %v660_v54 = vsub.f32 %v596_v31, %v628_v50  ;;  %531 = vadd.xlane.f32.xlu0 %v481_v32  ;;  %439 = vadd.xlane.f32.xlu2 %v385_v42  ;;  %v659_v60 = vsub.f32 %v595_v52, %v627_v35  ;;  %v720_v50 = vsub.f32 %v2778_v3, %v3026_v20 }
  0xa1   : > { %v796_v62 = vmul.f32 0.5, %v795_v53  ;;  %v1103_v20 = vmul.f32 %v792_v43, %v719_v49  ;;  %2442 = vmatpush.bf16.msrb.mxu3 %v3019_v6 }
  0xa2   : > { %v692_v2 = vmax.f32 %v660_v54, 0.0  ;;  %533 = vadd.xlane.f32.xlu1 %v482_v51  ;;  %v3109_v63 = vpop.eup %2594  ;;  %v691_v38 = vmax.f32 %v659_v60, 0.0 }
  0xa3   : > { %v508_v5 = vpop.xlane.xlu2 %507  ;;  %v412_v46 = vpop.xlane.xlu0 %411  ;;  %v797_v17 = vsub.f32 1.5, %v796_v62  ;;  %v804_v25 = vmul.f32 %v3109_v63, %v3086_v23  ;;  %v1138_v55 = vmul.f32 %v3152_v1, %v1103_v20  ;;  %vm810_vm8 = vweird.f32 %v3109_v63 }
  0xa4   : > { %v3114_v21 = vadd.f32 1e-05, %v692_v2  ;;  %v3116_v27 = vpop.eup %2596  ;;  %v3125_v30 = vadd.f32 1e-05, %v691_v38  ;;  %v597_v31 = vmul.f32 0.25, %v508_v5  ;;  %v3127_v29 = vmul.f32 0.25, %v412_v46  ;;  %vm3215_vm11 = vmor %vm809_vm9, %vm810_vm8 }
  0xa5   : > { %v414_v32 = vpop.xlane.xlu1 %413  ;;  %v798_v35 = vmul.f32 %v3090_v33, %v797_v17  ;;  %v805_v37 = vmul.f32 %v3109_v63, %v804_v25  ;;  %v814_v42 = vmul.f32 %v3116_v27, %v3095_v57  ;;  %v485_v5 = vmul.f32 %v387_v61, %v387_v61  ;;  %v3170_v17 = vld [vmem:[%s4278_s2] ss:$0 sm:$0xff]  ;;  %2443 = vmatpush.bf16.msrb.mxu3 %v3055_v44 }
  0xa6   : > { %2598 = vrsqrt.f32 %v3114_v21  ;;  %v629_v34 = vmul.f32 %v3127_v29, %v3127_v29  ;;  %v3154_v36 = vmul.f32 0.25, %v414_v32  ;;  %vm820_vm6 = vweird.f32 %v3116_v27 }
  0xa7   : > { %v815_v51 = vmul.f32 %v3116_v27, %v814_v42  ;;  %2600 = vrsqrt.f32 %v3125_v30  ;;  %v802_v3 = vsel %vm801_vm5, %v3090_v33, %v798_v35  ;;  %v806_v52 = vmul.f32 0.5, %v805_v37  ;;  %vm3196_vm10 = vmor %vm819_vm7, %vm820_vm6 }
  0xa8   : > { %441 = vadd.xlane.f32.xlu0 %v386_v59  ;;  %537 = vadd.xlane.f32.xlu2 %v484_v11  ;;  %v661_v40 = vsub.f32 %v597_v31, %v629_v34  ;;  %v1104_v54 = vmul.f32 %v802_v3, %v720_v50  ;;  %v630_v2 = vmul.f32 %v3154_v36, %v3154_v36  ;;  %v388_v31 = vld [vmem:[%s2765_s8 + $0xb8] sm:$0xff]  ;;  %vm839_vm14 = vweird.f32 %v3114_v21 }
  0xa9   : > { %v816_v53 = vmul.f32 0.5, %v815_v51  ;;  %v807_v28 = vsub.f32 1.5, %v806_v52  ;;  %v1173_v6 = vadd.f32 %v3170_v17, %v1138_v55  ;;  %v486_v34 = vmul.f32 %v388_v31, %v388_v31 }
  0xaa   : > { %535 = vadd.xlane.f32.xlu1 %v483_v15  ;;  %v693_v59 = vmax.f32 %v661_v40, 0.0  ;;  %v1139_v15 = vmul.f32 %v3152_v1, %v1104_v54  ;;  %vm829_vm0 = vweird.f32 %v3125_v30 }
  0xab   : > { %v418_v60 = vpop.xlane.xlu2 %417  ;;  %v510_v8 = vpop.xlane.xlu0 %509  ;;  %v817_v62 = vsub.f32 1.5, %v816_v53  ;;  %v808_v50 = vmul.f32 %v3109_v63, %v807_v28 }
  0xac   : > { %v598_v38 = vmul.f32 0.25, %v510_v8  ;;  %v3161_v46 = vpop.eup %2598  ;;  %v3163_v33 = vadd.f32 1e-05, %v693_v59  ;;  %v1174_v49 = vadd.f32 %v3170_v17, %v1139_v15  ;;  %v3191_v51 = vmul.f32 0.25, %v418_v60 }
  0xad   : > { %v416_v11 = vpop.xlane.xlu1 %415  ;;  %v3173_v25 = vpop.eup %2600  ;;  %v834_v32 = vmul.f32 %v3161_v46, %v3114_v21  ;;  %v818_v37 = vmul.f32 %v3116_v27, %v817_v62  ;;  %v722_v8 = vsub.f32 %v2781_v4, %v3062_v48  ;;  %v812_v4 = vsel %vm3215_vm11, %v3109_v63, %v808_v50 }
  0xae   : > { %v824_v35 = vmul.f32 %v3173_v25, %v3125_v30  ;;  %2602 = vrsqrt.f32 %v3163_v33  ;;  %v662_v42 = vsub.f32 %v598_v38, %v630_v2  ;;  %v3183_v43 = vmul.f32 0.25, %v416_v11 }
  0xaf   : > { %v1205_v3 = vpack.c.bf16 %v1174_v49, %v1173_v6  ;;  %v822_v23 = vsel %vm3196_vm10, %v3116_v27, %v818_v37  ;;  %v632_v27 = vmul.f32 %v3191_v51, %v3191_v51  ;;  %v721_v48 = vsub.f32 %v2768_v0, %v3060_v41 }
  0xb0   : > { %443 = vadd.xlane.f32.xlu0 %v387_v61  ;;  %539 = vadd.xlane.f32.xlu2 %v485_v5  ;;  %v694_v40 = vmax.f32 %v662_v42, 0.0  ;;  %v835_v61 = vmul.f32 %v3161_v46, %v834_v32  ;;  %v825_v44 = vmul.f32 %v3173_v25, %v824_v35  ;;  %v631_v54 = vmul.f32 %v3183_v43, %v3183_v43 }
  0xb1   : > { %1397 = vmatmul.bf16.vlgmr.msra.gmra.mxu0 %v1205_v3  ;;  %1486 = vmatmul.bf16.vlgmr.msra.gmra.mxu1 %v1205_v3  ;;  %v1106_v55 = vmul.f32 %v822_v23, %v722_v8  ;;  %v1105_v32 = vmul.f32 %v812_v4, %v721_v48  ;;  %vm840_vm12 = vweird.f32 %v3161_v46  ;;  %vm830_vm13 = vweird.f32 %v3173_v25 }
  0xb2   : > { %445 = vadd.xlane.f32.xlu1 %v388_v31  ;;  %v3202_v53 = vadd.f32 1e-05, %v694_v40  ;;  %1575 = vmatmul.bf16.vlgmr.msra.gmra.mxu2 %v1205_v3  ;;  %v836_v5 = vmul.f32 0.5, %v835_v61  ;;  %v826_v11 = vmul.f32 0.5, %v825_v44  ;;  %vm3250_vm15 = vmor %vm839_vm14, %vm840_vm12  ;;  %vm849_vm3 = vweird.f32 %v3163_v33 }
  0xb3   : > { %v448_v20 = vpop.xlane.xlu2 %447  ;;  %v512_v52 = vpop.xlane.xlu0 %511  ;;  %v1141_v63 = vmul.f32 %v3152_v1, %v1106_v55  ;;  %v1140_v44 = vmul.f32 %v3152_v1, %v1105_v32  ;;  %vm3258_vm1 = vmor %vm829_vm0, %vm830_vm13  ;;  %v725_v62 = vsub.f32 %v2804_v12, %v3127_v29 }
  0xb4   : > { %v599_v59 = vmul.f32 0.25, %v512_v52  ;;  %v3209_v60 = vpop.eup %2602  ;;  %2604 = vrsqrt.f32 %v3202_v53  ;;  %v837_v42 = vsub.f32 1.5, %v836_v5  ;;  %v827_v6 = vsub.f32 1.5, %v826_v11 }
  0xb5   : > { %v514_v2 = vpop.xlane.xlu1 %513  ;;  %v844_v38 = vmul.f32 %v3209_v60, %v3163_v33  ;;  %v3239_v3 = vmul.f32 0.25, %v448_v20  ;;  %vm850_vm2 = vweird.f32 %v3209_v60  ;;  %vm859_vm5 = vweird.f32 %v3202_v53 }
  0xb6   : > { %v663_v15 = vsub.f32 %v599_v59, %v631_v54  ;;  %v600_v28 = vmul.f32 0.25, %v514_v2  ;;  %v838_v52 = vmul.f32 %v3161_v46, %v837_v42  ;;  %v828_v54 = vmul.f32 %v3173_v25, %v827_v6  ;;  %vm3290_vm4 = vmor %vm849_vm3, %vm850_vm2 }
  0xb7   : > { %v845_v31 = vmul.f32 %v3209_v60, %v844_v38  ;;  %v1176_v59 = vadd.f32 %v3170_v17, %v1141_v63  ;;  %v1175_v38 = vadd.f32 %v3170_v17, %v1140_v44  ;;  %v647_v21 = vmul.f32 %v3239_v3, %v3239_v3 }
  0xb8   : > { %541 = vadd.xlane.f32.xlu0 %v486_v34  ;;  %v695_v35 = vmax.f32 %v663_v15, 0.0  ;;  %v664_v37 = vsub.f32 %v600_v28, %v632_v27  ;;  %v842_v48 = vsel %vm3250_vm15, %v3161_v46, %v838_v52  ;;  %v832_v15 = vsel %vm3258_vm1, %v3173_v25, %v828_v54 }
  0xb9   : > { %v846_v57 = vmul.f32 0.5, %v845_v31  ;;  %v1206_v5 = vpack.c.bf16 %v1176_v59, %v1175_v38  ;;  %v724_v46 = vsub.f32 %v2796_v9, %v3088_v24 }
  0xba   : > { %v3231_v50 = vpop.eup %2604  ;;  %v3233_v0 = vadd.f32 1e-05, %v695_v35  ;;  %v696_v41 = vmax.f32 %v664_v37, 0.0  ;;  %v723_v35 = vsub.f32 %v2790_v7, %v3083_v13 }
  0xbb   : > { %v422_v49 = vpop.xlane.xlu2 %421  ;;  %v450_v40 = vpop.xlane.xlu0 %449  ;;  %v854_v34 = vmul.f32 %v3231_v50, %v3202_v53  ;;  %v847_v20 = vsub.f32 1.5, %v846_v57  ;;  %v1108_v7 = vmul.f32 %v842_v48, %v724_v46  ;;  %vm860_vm6 = vweird.f32 %v3231_v50 }
  0xbc   : > { %2606 = vrsqrt.f32 %v3233_v0  ;;  %v3248_v8 = vadd.f32 1e-05, %v696_v41  ;;  %v3264_v4 = vmul.f32 0.25, %v450_v40  ;;  %v1107_v9 = vmul.f32 %v832_v15, %v723_v35  ;;  %vm3325_vm7 = vmor %vm859_vm5, %vm860_vm6 }
  0xbd   : > { %v420_v61 = vpop.xlane.xlu1 %419  ;;  %v855_v23 = vmul.f32 %v3231_v50, %v854_v34  ;;  %v848_v37 = vmul.f32 %v3209_v60, %v847_v20  ;;  %v3286_v24 = vmul.f32 0.25, %v422_v49  ;;  %vm869_vm11 = vweird.f32 %v3233_v0 }
  0xbe   : > { %v3255_v2 = vmul.f32 0.25, %v420_v61  ;;  %2608 = vrsqrt.f32 %v3248_v8  ;;  %v648_v25 = vmul.f32 %v3264_v4, %v3264_v4  ;;  %v1142_v27 = vmul.f32 %v3152_v1, %v1107_v9 }
  0xbf   : > { %v856_v28 = vmul.f32 0.5, %v855_v23  ;;  %v852_v33 = vsel %vm3290_vm4, %v3209_v60, %v848_v37  ;;  %v1143_v23 = vmul.f32 %v3152_v1, %v1108_v7  ;;  %v634_v60 = vmul.f32 %v3286_v24, %v3286_v24 }
  0xc0   : > { %v633_v30 = vmul.f32 %v3255_v2, %v3255_v2  ;;  %v726_v37 = vsub.f32 %v2809_v14, %v3154_v36  ;;  %v728_v7 = vsub.f32 %v2816_v16, %v3191_v51  ;;  %vm879_vm2 = vweird.f32 %v3248_v8 }
  0xc1   : > { %1402 = vmatmul.bf16.gmra.mxu0 %v1206_v5  ;;  %1491 = vmatmul.bf16.gmra.mxu1 %v1206_v5  ;;  %v857_v13 = vsub.f32 1.5, %v856_v28 }
  0xc2   : > { %v3281_v6 = vpop.eup %2606  ;;  %1580 = vmatmul.bf16.gmra.mxu2 %v1206_v5 }
  0xc3   : > { %v516_v11 = vpop.xlane.xlu2 %515  ;;  %v544_v55 = vpop.xlane.xlu0 %543  ;;  %v864_v44 = vmul.f32 %v3281_v6, %v3233_v0  ;;  %vm870_vm8 = vweird.f32 %v3281_v6 }
  0xc4   : > { %v601_v31 = vmul.f32 0.25, %v516_v11  ;;  %v615_v32 = vmul.f32 0.25, %v544_v55  ;;  %v3296_v52 = vpop.eup %2608  ;;  %vm3423_vm1 = vmor %vm869_vm11, %vm870_vm8 }
  0xc5   : > { %v546_v42 = vpop.xlane.xlu1 %545  ;;  %v865_v5 = vmul.f32 %v3281_v6, %v864_v44  ;;  %v874_v12 = vmul.f32 %v3296_v52, %v3248_v8  ;;  %vm880_vm9 = vweird.f32 %v3296_v52 }
  0xc6   : > { %v665_v40 = vsub.f32 %v601_v31, %v633_v30  ;;  %v679_v63 = vsub.f32 %v615_v32, %v647_v21  ;;  %v616_v41 = vmul.f32 0.25, %v546_v42  ;;  %v858_v21 = vmul.f32 %v3231_v50, %v857_v13  ;;  %vm3433_vm3 = vmor %vm879_vm2, %vm880_vm9 }
  0xc7   : > { %v1109_v30 = vmul.f32 %v852_v33, %v725_v62  ;;  %v1177_v31 = vadd.f32 %v3170_v17, %v1142_v27  ;;  %v1178_v32 = vadd.f32 %v3170_v17, %v1143_v23  ;;  %v866_v42 = vmul.f32 0.5, %v865_v5 }
  0xc8   : > { %v711_v57 = vmax.f32 %v679_v63, 0.0  ;;  %v680_v34 = vsub.f32 %v616_v41, %v648_v25  ;;  %v697_v54 = vmax.f32 %v665_v40, 0.0  ;;  %v862_v46 = vsel %vm3325_vm7, %v3231_v50, %v858_v21 }
  0xc9   : > { %v875_v25 = vmul.f32 %v3296_v52, %v874_v12  ;;  %v1144_v53 = vmul.f32 %v3152_v1, %v1109_v30  ;;  %v1207_v50 = vpack.c.bf16 %v1178_v32, %v1177_v31  ;;  %v1110_v14 = vmul.f32 %v862_v46, %v726_v37 }
  0xca   : > { %v3301_v49 = vadd.f32 1e-05, %v711_v57  ;;  %v712_v59 = vmax.f32 %v680_v34, 0.0  ;;  %v3318_v11 = vadd.f32 1e-05, %v697_v54  ;;  %v743_v57 = vsub.f32 %v2821_v19, %v3239_v3 }
  0xcb   : > { %v454_v20 = vpop.xlane.xlu2 %453  ;;  %v518_v38 = vpop.xlane.xlu0 %517  ;;  %v867_v33 = vsub.f32 1.5, %v866_v42  ;;  %v876_v54 = vmul.f32 0.5, %v875_v25  ;;  %v1179_v21 = vadd.f32 %v3170_v17, %v1144_v53 }
  0xcc   : > { %v3312_v48 = vadd.f32 1e-05, %v712_v59  ;;  %2610 = vrsqrt.f32 %v3301_v49  ;;  %v602_v55 = vmul.f32 0.25, %v518_v38  ;;  %v744_v59 = vsub.f32 %v2828_v22, %v3264_v4 }
  0xcd   : > { %v452_v29 = vpop.xlane.xlu1 %451  ;;  %vm1029_vm10 = vweird.f32 %v3301_v49  ;;  %v1145_v4 = vmul.f32 %v3152_v1, %v1110_v14  ;;  %v3368_v5 = vmul.f32 0.25, %v454_v20  ;;  %v877_v28 = vsub.f32 1.5, %v876_v54 }
  0xce   : > { %2612 = vrsqrt.f32 %v3312_v48  ;;  %v3321_v15 = vmul.f32 0.25, %v452_v29  ;;  %v666_v35 = vsub.f32 %v602_v55, %v634_v60  ;;  %v3373_v55 = vmul.f32 %v3281_v6, %v867_v33 }
  0xcf   : > { %2614 = vrsqrt.f32 %v3318_v11  ;;  %vm1039_vm13 = vweird.f32 %v3312_v48  ;;  %v1180_v54 = vadd.f32 %v3170_v17, %v1145_v4  ;;  %vm889_vm4 = vweird.f32 %v3318_v11 }
  0xd0   : > { %v698_v40 = vmax.f32 %v666_v35, 0.0  ;;  %v649_v63 = vmul.f32 %v3321_v15, %v3321_v15  ;;  %v872_v8 = vsel %vm3423_vm1, %v3281_v6, %v3373_v55 }
  0xd1   : > { %1407 = vmatmul.bf16.gmra.mxu0 %v1207_v50  ;;  %1496 = vmatmul.bf16.gmra.mxu1 %v1207_v50  ;;  %v1208_v3 = vpack.c.bf16 %v1180_v54, %v1179_v21 }
  0xd2   : > { %v3341_v41 = vpop.eup %2610  ;;  %v3351_v61 = vadd.f32 1e-05, %v698_v40  ;;  %1585 = vmatmul.bf16.gmra.mxu2 %v1207_v50  ;;  %v650_v50 = vmul.f32 %v3368_v5, %v3368_v5 }
  0xd3   : > { %v548_v9 = vpop.xlane.xlu2 %547  ;;  %v424_v13 = vpop.xlane.xlu0 %423  ;;  %v1024_v34 = vmul.f32 %v3341_v41, %v3301_v49  ;;  %vm1030_vm12 = vweird.f32 %v3341_v41 }
  0xd4   : > { %v3345_v36 = vpop.eup %2612  ;;  %v617_v44 = vmul.f32 0.25, %v548_v9  ;;  %2616 = vrsqrt.f32 %v3351_v61  ;;  %v3378_v46 = vmul.f32 0.25, %v424_v13  ;;  %vm3396_vm15 = vmor %vm1029_vm10, %vm1030_vm12  ;;  %vm899_vm6 = vweird.f32 %v3351_v61 }
  0xd5   : > { %v1034_v23 = vmul.f32 %v3345_v36, %v3312_v48  ;;  %v426_v62 = vpop.xlane.xlu1 %425  ;;  %v1025_v38 = vmul.f32 %v3341_v41, %v1024_v34  ;;  %v3365_v60 = vpop.eup %2614  ;;  %vm1040_vm14 = vweird.f32 %v3345_v36 }
  0xd6   : > { %v681_v27 = vsub.f32 %v617_v44, %v649_v63  ;;  %v3370_v29 = vmul.f32 0.25, %v426_v62  ;;  %v884_v20 = vmul.f32 %v3365_v60, %v3318_v11  ;;  %vm1041_vm0 = vmor %vm1039_vm13, %vm1040_vm14  ;;  %v635_v49 = vmul.f32 %v3378_v46, %v3378_v46 }
  0xd7   : > { %v1035_v22 = vmul.f32 %v3345_v36, %v1034_v23  ;;  %v1026_v30 = vmul.f32 0.5, %v1025_v38  ;;  %vm890_vm5 = vweird.f32 %v3365_v60 }
  0xd8   : > { %v713_v12 = vmax.f32 %v681_v27, 0.0  ;;  %v636_v37 = vmul.f32 %v3370_v29, %v3370_v29  ;;  %v878_v27 = vmul.f32 %v3296_v52, %v877_v28  ;;  %vm3516_vm10 = vmor %vm889_vm4, %vm890_vm5 }
  0xd9   : > { %v1036_v31 = vmul.f32 0.5, %v1035_v22  ;;  %v1027_v32 = vsub.f32 1.5, %v1026_v30  ;;  %v885_v22 = vmul.f32 %v3365_v60, %v884_v20 }
  0xda   : > { %v3376_v35 = vadd.f32 1e-05, %v713_v12  ;;  %v3386_v40 = vpop.eup %2616 }
  0xdb   : > { %v1037_v42 = vsub.f32 1.5, %v1036_v31  ;;  %v522_v25 = vpop.xlane.xlu2 %521  ;;  %v550_v53 = vpop.xlane.xlu0 %549  ;;  %v1028_v63 = vmul.f32 %v3341_v41, %v1027_v32  ;;  %v894_v34 = vmul.f32 %v3386_v40, %v3351_v61  ;;  %vm900_vm8 = vweird.f32 %v3386_v40 }
  0xdc   : > { %2618 = vrsqrt.f32 %v3376_v35  ;;  %v604_v9 = vmul.f32 0.25, %v522_v25  ;;  %v618_v44 = vmul.f32 0.25, %v550_v53  ;;  %vm1049_vm9 = vweird.f32 %v3376_v35  ;;  %vm3541_vm12 = vmor %vm899_vm6, %vm900_vm8 }
  0xdd   : > { %v1038_v14 = vmul.f32 %v3345_v36, %v1037_v42  ;;  %v520_v33 = vpop.xlane.xlu1 %519  ;;  %v1032_v38 = vsel %vm3396_vm15, %v3341_v41, %v1028_v63 }
  0xde   : > { %v668_v23 = vsub.f32 %v604_v9, %v636_v37  ;;  %v603_v62 = vmul.f32 0.25, %v520_v33  ;;  %v682_v30 = vsub.f32 %v618_v44, %v650_v50  ;;  %v1127_v48 = vmul.f32 %v1032_v38, %v743_v57  ;;  %v2654_v37 = vld [vmem:[%s2765_s8 + $0x40] sm:$0xff] }
  0xdf   : > { %v1042_v12 = vsel %vm1041_vm0, %v3345_v36, %v1038_v14  ;;  %v727_v42 = vsub.f32 %v2654_v37, %v3183_v43  ;;  %v895_v36 = vmul.f32 %v3386_v40, %v894_v34  ;;  %v886_v57 = vmul.f32 0.5, %v885_v22 }
  0xe0   : > { %v700_v4 = vmax.f32 %v668_v23, 0.0  ;;  %v667_v31 = vsub.f32 %v603_v62, %v635_v49  ;;  %v1128_v32 = vmul.f32 %v1042_v12, %v744_v59  ;;  %v714_v28 = vmax.f32 %v682_v30, 0.0  ;;  %v3471_v62 = vld [vmem:[%s2765_s8 + $0x50] sm:$0xff]  ;;  %v3479_v30 = vld [vmem:[%s2765_s8 + $0xd8] sm:$0xff] }
  0xe1   : > { %v882_v50 = vsel %vm3433_vm3, %v3296_v52, %v878_v27  ;;  %v1162_v6 = vmul.f32 %v3152_v1, %v1127_v48  ;;  %v896_v9 = vmul.f32 0.5, %v895_v36  ;;  %1412 = vmatmul.bf16.gmra.mxu0 %v1208_v3  ;;  %1501 = vmatmul.bf16.gmra.mxu1 %v1208_v3  ;;  %v1111_v34 = vmul.f32 %v872_v8, %v727_v42  ;;  %v3460_v52 = vld [vmem:[%s2765_s8 + $0x58] sm:$0xff] }
  0xe2   : > { %v3429_v20 = vpop.eup %2618  ;;  %v3437_v43 = vadd.f32 1e-05, %v700_v4  ;;  %v699_v0 = vmax.f32 %v667_v31, 0.0  ;;  %v3445_v25 = vadd.f32 1e-05, %v714_v28  ;;  %v1163_v55 = vmul.f32 %v3152_v1, %v1128_v32  ;;  %1590 = vmatmul.bf16.gmra.mxu2 %v1208_v3 }
  0xe3   : > { %v1044_v59 = vmul.f32 %v3429_v20, %v3376_v35  ;;  %v3447_v53 = vpop.xlane.xlu2 %427  ;;  %v456_v63 = vpop.xlane.xlu0 %455  ;;  %v730_v44 = vsub.f32 %v3460_v52, %v3286_v24  ;;  %v887_v33 = vsub.f32 1.5, %v886_v57  ;;  %v1112_v23 = vmul.f32 %v882_v50, %v728_v7  ;;  %v2658_v7 = vld [vmem:[%s2765_s8 + $0xd0] sm:$0xff]  ;;  %v3593_v52 = vld [vmem:[%s2765_s8 + $0x60] sm:$0xff] }
  0xe4   : > { %2620 = vrsqrt.f32 %v3437_v43  ;;  %v3453_v21 = vadd.f32 1e-05, %v699_v0  ;;  %v729_v38 = vsub.f32 %v3471_v62, %v3255_v2  ;;  %v1197_v27 = vadd.f32 %v3170_v17, %v1162_v6 }
  0xe5   : > { %v1045_v13 = vmul.f32 %v3429_v20, %v1044_v59  ;;  %2622 = vrsqrt.f32 %v3445_v25  ;;  %v458_v14 = vpop.xlane.xlu1 %457  ;;  %v1198_v22 = vadd.f32 %v3170_v17, %v1163_v55  ;;  %v746_v12 = vsub.f32 %v3479_v30, %v3368_v5 }
  0xe6   : > { %2624 = vrsqrt.f32 %v3453_v21  ;;  %v3465_v49 = vmul.f32 0.25, %v458_v14  ;;  %v897_v4 = vsub.f32 1.5, %v896_v9  ;;  %v1146_v16 = vmul.f32 %v3152_v1, %v1111_v34 }
  0xe7   : > { %v1046_v54 = vmul.f32 0.5, %v1045_v13  ;;  %v745_v48 = vsub.f32 %v2658_v7, %v3321_v15  ;;  %v3491_v37 = vpack.c.bf16 %v1198_v22, %v1197_v27  ;;  %v888_v41 = vmul.f32 %v3365_v60, %v887_v33 }
  0xe8   : > { %v652_v32 = vmul.f32 %v3465_v49, %v3465_v49  ;;  %v3497_v36 = vmul.f32 0.25, %v456_v63  ;;  %v1147_v0 = vmul.f32 %v3152_v1, %v1112_v23  ;;  %vm1050_vm7 = vweird.f32 %v3429_v20 }
  0xe9   : > { %v1047_v31 = vsub.f32 1.5, %v1046_v54  ;;  %1457 = vmatmul.bf16.vlgmr.msra.gmra.mxu3 %v3491_v37  ;;  %v898_v59 = vmul.f32 %v3386_v40, %v897_v4  ;;  %v1181_v50 = vadd.f32 %v3170_v17, %v1146_v16  ;;  %vm3527_vm11 = vmor %vm1049_vm9, %vm1050_vm7  ;;  %v892_v33 = vsel %vm3516_vm10, %v3365_v60, %v888_v41 }
  0xea   : > { %v3484_v51 = vpop.eup %2620  ;;  %2444 = vmatpush.bf16.msra.mxu3 %v2863_v47  ;;  %v651_v11 = vmul.f32 %v3497_v36, %v3497_v36  ;;  %v1182_v34 = vadd.f32 %v3170_v17, %v1147_v0  ;;  %v3546_v27 = vmul.f32 0.25, %v3447_v53  ;;  %vm1059_vm14 = vweird.f32 %v3445_v25 }
  0xeb   : > { %v3493_v42 = vpop.eup %2622  ;;  %v554_v28 = vpop.xlane.xlu2 %553  ;;  %v1048_v15 = vmul.f32 %v3429_v20, %v1047_v31  ;;  %v914_v55 = vmul.f32 %v3484_v51, %v3437_v43  ;;  %v902_v61 = vsel %vm3541_vm12, %v3386_v40, %v898_v59  ;;  %vm919_vm0 = vweird.f32 %v3437_v43 }
  0xec   : > { %v430_v19 = vpop.xlane.xlu0 %429  ;;  %v3500_v3 = vpop.eup %2624  ;;  %v1054_v8 = vmul.f32 %v3493_v42, %v3445_v25  ;;  %v620_v57 = vmul.f32 0.25, %v554_v28  ;;  %vm1060_vm13 = vweird.f32 %v3493_v42  ;;  %vm909_vm1 = vweird.f32 %v3453_v21 }
  0xed   : > { %v552_v63 = vpop.xlane.xlu1 %551  ;;  %v904_v35 = vmul.f32 %v3500_v3, %v3453_v21  ;;  %v1052_v4 = vsel %vm3527_vm11, %v3429_v20, %v1048_v15  ;;  %v3552_v60 = vmul.f32 0.25, %v430_v19  ;;  %v915_v16 = vmul.f32 %v3484_v51, %v914_v55  ;;  %vm3572_vm15 = vmor %vm1059_vm14, %vm1060_vm13 }
  0xee   : > { %v1055_v9 = vmul.f32 %v3493_v42, %v1054_v8  ;;  %v684_v13 = vsub.f32 %v620_v57, %v652_v32  ;;  %v619_v14 = vmul.f32 0.25, %v552_v63  ;;  %2445 = vmatpush.bf16.msra.mxu3 %v2888_v58  ;;  %v1209_v20 = vpack.c.bf16 %v1182_v34, %v1181_v50 }
  0xef   : > { %v905_v7 = vmul.f32 %v3500_v3, %v904_v35  ;;  %v1129_v19 = vmul.f32 %v1052_v4, %v745_v48  ;;  %v1113_v15 = vmul.f32 %v892_v33, %v729_v38  ;;  %v637_v58 = vmul.f32 %v3546_v27, %v3546_v27  ;;  %v3598_v35 = vld [vmem:[%s2765_s8 + $0x68] sm:$0xff] }
  0xf0   : > { %v1056_v23 = vmul.f32 0.5, %v1055_v9  ;;  %v716_v22 = vmax.f32 %v684_v13, 0.0  ;;  %v683_v31 = vsub.f32 %v619_v14, %v651_v11  ;;  %v638_v48 = vmul.f32 %v3552_v60, %v3552_v60 }
  0xf1   : > { %1417 = vmatmul.bf16.gmra.mxu0 %v1209_v20  ;;  %1506 = vmatmul.bf16.gmra.mxu1 %v1209_v20  ;;  %v1114_v38 = vmul.f32 %v902_v61, %v730_v44  ;;  %v916_v57 = vmul.f32 0.5, %v915_v16  ;;  %v906_v59 = vmul.f32 0.5, %v905_v7  ;;  %v1164_v24 = vmul.f32 %v3152_v1, %v1129_v19 }
  0xf2   : > { %v1057_v53 = vsub.f32 1.5, %v1056_v23  ;;  %v3560_v32 = vadd.f32 1e-05, %v716_v22  ;;  %v715_v41 = vmax.f32 %v683_v31, 0.0  ;;  %1595 = vmatmul.bf16.gmra.mxu2 %v1209_v20  ;;  %2446 = vmatpush.bf16.msra.mxu3 %v2912_v10  ;;  %v731_v44 = vsub.f32 %v3593_v52, %v3378_v46 }
  0xf3   : > { %v460_v28 = vpop.xlane.xlu2 %459  ;;  %v732_v10 = vsub.f32 %v3598_v35, %v3370_v29  ;;  %v1149_v47 = vmul.f32 %v3152_v1, %v1114_v38  ;;  %v917_v30 = vsub.f32 1.5, %v916_v57  ;;  %v1148_v14 = vmul.f32 %v3152_v1, %v1113_v15 }
  0xf4   : > { %v524_v0 = vpop.xlane.xlu0 %523  ;;  %v1058_v40 = vmul.f32 %v3493_v42, %v1057_v53  ;;  %2626 = vrsqrt.f32 %v3560_v32  ;;  %v3578_v2 = vadd.f32 1e-05, %v715_v41  ;;  %v1199_v22 = vadd.f32 %v3170_v17, %v1164_v24 }
  0xf5   : > { %v605_v25 = vmul.f32 0.25, %v524_v0  ;;  %v526_v62 = vpop.xlane.xlu1 %525  ;;  %vm910_vm2 = vweird.f32 %v3500_v3  ;;  %v1184_v7 = vadd.f32 %v3170_v17, %v1149_v47  ;;  %v3631_v0 = vmul.f32 0.25, %v460_v28 }
  0xf6   : > { %v606_v63 = vmul.f32 0.25, %v526_v62  ;;  %v1062_v50 = vsel %vm3572_vm15, %v3493_v42, %v1058_v40  ;;  %2628 = vrsqrt.f32 %v3578_v2  ;;  %2447 = vmatpush.bf16.msra.mxu3 %v2939_v26  ;;  %v918_v19 = vmul.f32 %v3484_v51, %v917_v30  ;;  %vm3650_vm4 = vmor %vm909_vm1, %vm910_vm2 }
  0xf7   : > { %v669_v6 = vsub.f32 %v605_v25, %v637_v58  ;;  %v1130_v55 = vmul.f32 %v1062_v50, %v746_v12  ;;  %v907_v12 = vsub.f32 1.5, %v906_v59  ;;  %vm920_vm3 = vweird.f32 %v3484_v51  ;;  %v2661_v58 = vld [vmem:[%s2765_s8 + $0xe0] sm:$0xff] }
  0xf8   : > { %v670_v9 = vsub.f32 %v606_v63, %v638_v48  ;;  %v1183_v40 = vadd.f32 %v3170_v17, %v1148_v14  ;;  %v747_v8 = vsub.f32 %v2661_v58, %v3497_v36  ;;  %v2662_v48 = vld [vmem:[%s2765_s8 + $0xe8] sm:$0xff]  ;;  %vm1079_vm5 = vweird.f32 %v3560_v32  ;;  %vm3661_vm6 = vmor %vm919_vm0, %vm920_vm3 }
  0xf9   : > { %v701_v42 = vmax.f32 %v669_v6, 0.0  ;;  %v1165_v13 = vmul.f32 %v3152_v1, %v1130_v55  ;;  %v908_v41 = vmul.f32 %v3500_v3, %v907_v12  ;;  %v748_v28 = vsub.f32 %v2662_v48, %v3465_v49 }
  0xfa   : > { %v3604_v5 = vpop.eup %2626  ;;  %v702_v11 = vmax.f32 %v670_v9, 0.0  ;;  %2448 = vmatpush.bf16.msra.mxu3 %v2969_v39  ;;  %v1210_v36 = vpack.c.bf16 %v1184_v7, %v1183_v40  ;;  %v653_v21 = vmul.f32 %v3631_v0, %v3631_v0  ;;  %vm1069_vm8 = vweird.f32 %v3578_v2 }
  0xfb   : > { %v1074_v34 = vmul.f32 %v3604_v5, %v3560_v32  ;;  %v3610_v33 = vadd.f32 1e-05, %v701_v42  ;;  %v3612_v54 = vpop.xlane.xlu2 %433  ;;  %v1200_v4 = vadd.f32 %v3170_v17, %v1165_v13  ;;  %v912_v50 = vsel %vm3650_vm4, %v3500_v3, %v908_v41 }
  0xfc   : > { %v462_v23 = vpop.xlane.xlu0 %461  ;;  %v3619_v31 = vadd.f32 1e-05, %v702_v11  ;;  %v3621_v26 = vpop.eup %2628  ;;  %vm1080_vm7 = vweird.f32 %v3604_v5  ;;  %v922_v9 = vsel %vm3661_vm6, %v3484_v51, %v918_v19  ;;  %v1115_v51 = vmul.f32 %v912_v50, %v731_v44 }
  0xfd   : > { %v1075_v61 = vmul.f32 %v3604_v5, %v1074_v34  ;;  %2630 = vrsqrt.f32 %v3610_v33  ;;  %v432_v16 = vpop.xlane.xlu1 %431  ;;  %v3625_v53 = vpack.c.bf16 %v1200_v4, %v1199_v22  ;;  %v1064_v20 = vmul.f32 %v3621_v26, %v3578_v2  ;;  %vm3697_vm10 = vmor %vm1079_vm5, %vm1080_vm7 }
  0xfe   : > { %2632 = vrsqrt.f32 %v3619_v31  ;;  %v3644_v62 = vmul.f32 0.25, %v432_v16  ;;  %v3655_v57 = vmul.f32 0.25, %v462_v23  ;;  %2449 = vmatpush.bf16.msra.mxu3 %v2999_v56  ;;  %vm1070_vm9 = vweird.f32 %v3621_v26 }
  0xff   : > { %v1076_v15 = vmul.f32 0.5, %v1075_v61  ;;  %1462 = vmatmul.bf16.gmra.mxu3 %v3625_v53  ;;  %v1065_v25 = vmul.f32 %v3621_v26, %v1064_v20  ;;  %vm1071_vm11 = vmor %vm1069_vm8, %vm1070_vm9  ;;  %v1116_v52 = vmul.f32 %v922_v9, %v732_v10  ;;  %v3716_v61 = vmul.f32 0.25, %v3612_v54 }
 0x100   : > { %v639_v63 = vmul.f32 %v3644_v62, %v3644_v62  ;;  %v654_v30 = vmul.f32 %v3655_v57, %v3655_v57  ;;  %v1150_v54 = vmul.f32 %v3152_v1, %v1115_v51  ;;  %vm939_vm14 = vweird.f32 %v3619_v31 }
 0x101   : > { %v1077_v38 = vsub.f32 1.5, %v1076_v15  ;;  %v1066_v59 = vmul.f32 0.5, %v1065_v25  ;;  %1422 = vmatmul.bf16.gmra.mxu0 %v1210_v36  ;;  %1511 = vmatmul.bf16.gmra.mxu1 %v1210_v36  ;;  %v1151_v39 = vmul.f32 %v3152_v1, %v1116_v52  ;;  %vm929_vm0 = vweird.f32 %v3610_v33 }
 0x102   : > { %1600 = vmatmul.bf16.gmra.mxu2 %v1210_v36  ;;  %2450 = vmatpush.bf16.msra.mxu3 %v3024_v18 }
 0x103   : > { %v3673_v6 = vpop.eup %2630  ;;  %v1078_v43 = vmul.f32 %v3604_v5, %v1077_v38  ;;  %v528_v55 = vpop.xlane.xlu2 %527  ;;  %v1067_v13 = vsub.f32 1.5, %v1066_v59  ;;  %v1185_v59 = vadd.f32 %v3170_v17, %v1150_v54 }
 0x104   : > { %v556_v24 = vpop.xlane.xlu0 %555  ;;  %v3681_v42 = vpop.eup %2632  ;;  %v924_v56 = vmul.f32 %v3673_v6, %v3610_v33  ;;  %v607_v3 = vmul.f32 0.25, %v528_v55  ;;  %vm930_vm13 = vweird.f32 %v3673_v6 }
 0x105   : > { %v934_v47 = vmul.f32 %v3681_v42, %v3619_v31  ;;  %v621_v12 = vmul.f32 0.25, %v556_v24  ;;  %v558_v11 = vpop.xlane.xlu1 %557  ;;  %v1068_v34 = vmul.f32 %v3621_v26, %v1067_v13  ;;  %v1082_v44 = vsel %vm3697_vm10, %v3604_v5, %v1078_v43  ;;  %vm3779_vm1 = vmor %vm929_vm0, %vm930_vm13 }
 0x106   : > { %v925_v23 = vmul.f32 %v3673_v6, %v924_v56  ;;  %v671_v22 = vsub.f32 %v607_v3, %v639_v63  ;;  %v622_v4 = vmul.f32 0.25, %v558_v11  ;;  %v1132_v19 = vmul.f32 %v1082_v44, %v748_v28  ;;  %2451 = vmatpush.bf16.msra.mxu3 %v3057_v45 }
 0x107   : > { %v935_v46 = vmul.f32 %v3681_v42, %v934_v47  ;;  %v685_v32 = vsub.f32 %v621_v12, %v653_v21  ;;  %v1072_v7 = vsel %vm1071_vm11, %v3621_v26, %v1068_v34  ;;  %v640_v28 = vmul.f32 %v3716_v61, %v3716_v61  ;;  %v2663_v47 = vld [vmem:[%s2765_s8 + $0x70] sm:$0xff] }
 0x108   : > { %v703_v18 = vmax.f32 %v671_v22, 0.0  ;;  %v686_v16 = vsub.f32 %v622_v4, %v654_v30  ;;  %v1131_v20 = vmul.f32 %v1072_v7, %v747_v8  ;;  %v926_v15 = vmul.f32 0.5, %v925_v23  ;;  %v2664_v4 = vld [vmem:[%s2765_s8 + $0x78] sm:$0xff]  ;;  %v2665_v7 = vld [vmem:[%s2765_s8 + $0xf0] sm:$0xff] }
 0x109   : > { %v936_v2 = vmul.f32 0.5, %v935_v46  ;;  %v717_v41 = vmax.f32 %v685_v32, 0.0  ;;  %v1167_v26 = vmul.f32 %v3152_v1, %v1132_v19  ;;  %vm940_vm12 = vweird.f32 %v3681_v42 }
 0x10a   : > { %v3719_v40 = vadd.f32 1e-05, %v703_v18  ;;  %v718_v29 = vmax.f32 %v686_v16, 0.0  ;;  %v1166_v58 = vmul.f32 %v3152_v1, %v1131_v20  ;;  %v927_v38 = vsub.f32 1.5, %v926_v15  ;;  %vm3758_vm15 = vmor %vm939_vm14, %vm940_vm12 }
 0x10b   : > { %v3722_v35 = vadd.f32 1e-05, %v717_v41  ;;  %v438_v5 = vpop.xlane.xlu2 %437  ;;  %v937_v48 = vsub.f32 1.5, %v936_v2  ;;  %v1202_v63 = vadd.f32 %v3170_v17, %v1167_v26  ;;  %v1186_v1 = vadd.f32 %v3170_v17, %v1151_v39 }
 0x10c   : > { %v530_v10 = vpop.xlane.xlu0 %529  ;;  %2634 = vrsqrt.f32 %v3719_v40  ;;  %v3728_v8 = vadd.f32 1e-05, %v718_v29  ;;  %v1201_v21 = vadd.f32 %v3170_v17, %v1166_v58  ;;  %v3742_v55 = vmul.f32 0.25, %v438_v5 }
 0x10d   : > { %2636 = vrsqrt.f32 %v3722_v35  ;;  %v608_v45 = vmul.f32 0.25, %v530_v10  ;;  %v436_v25 = vpop.xlane.xlu1 %435  ;;  %v938_v50 = vmul.f32 %v3681_v42, %v937_v48  ;;  %v928_v13 = vmul.f32 %v3673_v6, %v927_v38  ;;  %v3809_v38 = vld [vmem:[%s4277_s1] ss:$0 sm:$0xff] }
 0x10e   : > { %2638 = vrsqrt.f32 %v3728_v8  ;;  %v3735_v36 = vmul.f32 0.25, %v436_v25  ;;  %v3745_v24 = vpack.c.bf16 %v1202_v63, %v1201_v21  ;;  %v733_v30 = vsub.f32 %v2663_v47, %v3546_v27 }
 0x10f   : > { %v672_v49 = vsub.f32 %v608_v45, %v640_v28  ;;  %v1211_v51 = vpack.c.bf16 %v1186_v1, %v1185_v59  ;;  %v942_v22 = vsel %vm3758_vm15, %v3681_v42, %v938_v50  ;;  %v734_v46 = vsub.f32 %v2664_v4, %v3552_v60 }
 0x110   : > { %v641_v56 = vmul.f32 %v3735_v36, %v3735_v36  ;;  %1467 = vmatmul.bf16.gmra.mxu3 %v3745_v24  ;;  %v642_v52 = vmul.f32 %v3742_v55, %v3742_v55  ;;  %v932_v16 = vsel %vm3779_vm1, %v3673_v6, %v928_v13  ;;  %v749_v2 = vsub.f32 %v2665_v7, %v3631_v0 }
 0x111   : > { %v704_v43 = vmax.f32 %v672_v49, 0.0  ;;  %1427 = vmatmul.bf16.gmra.mxu0 %v1211_v51  ;;  %1516 = vmatmul.bf16.gmra.mxu1 %v1211_v51  ;;  %v1118_v19 = vmul.f32 %v942_v22, %v734_v46  ;;  %vm1089_vm2 = vweird.f32 %v3722_v35  ;;  %vm1099_vm3 = vweird.f32 %v3728_v8 }
 0x112   : > { %v3747_v9 = vpop.eup %2634  ;;  %1605 = vmatmul.bf16.gmra.mxu2 %v1211_v51  ;;  %v1117_v58 = vmul.f32 %v932_v16, %v733_v30  ;;  %vm949_vm9 = vweird.f32 %v3719_v40 }
 0x113   : > { %v3754_v3 = vpop.eup %2636  ;;  %v944_v12 = vmul.f32 %v3747_v9, %v3719_v40  ;;  %v3764_v11 = vadd.f32 1e-05, %v704_v43  ;;  %v440_v14 = vpop.xlane.xlu2 %439  ;;  %v1153_v49 = vmul.f32 %v3809_v38, %v1118_v19  ;;  %vm950_vm8 = vweird.f32 %v3747_v9 }
 0x114   : > { %v532_v31 = vpop.xlane.xlu0 %531  ;;  %v3767_v34 = vpop.eup %2638  ;;  %v1084_v27 = vmul.f32 %v3754_v3, %v3722_v35  ;;  %v3797_v10 = vmul.f32 0.25, %v440_v14  ;;  %vm1090_vm4 = vweird.f32 %v3754_v3  ;;  %vm3866_vm11 = vmor %vm949_vm9, %vm950_vm8 }
 0x115   : > { %v609_v23 = vmul.f32 0.25, %v532_v31  ;;  %v1094_v33 = vmul.f32 %v3767_v34, %v3728_v8  ;;  %2640 = vrsqrt.f32 %v3764_v11  ;;  %v534_v42 = vpop.xlane.xlu1 %533  ;;  %v945_v44 = vmul.f32 %v3747_v9, %v944_v12  ;;  %vm3828_vm6 = vmor %vm1089_vm2, %vm1090_vm4  ;;  %v2667_v31 = vld [vmem:[%s2765_s8 + $0xf8] sm:$0xff] }
 0x116   : > { %v1085_v60 = vmul.f32 %v3754_v3, %v1084_v27  ;;  %v610_v20 = vmul.f32 0.25, %v534_v42  ;;  %vm1100_vm5 = vweird.f32 %v3767_v34  ;;  %v643_v63 = vmul.f32 %v3797_v10, %v3797_v10  ;;  %v3845_v27 = vld [vmem:[%s4278_s2] ss:$0 sm:$0xff] }
 0x117   : > { %v673_v18 = vsub.f32 %v609_v23, %v641_v56  ;;  %v1095_v41 = vmul.f32 %v3767_v34, %v1094_v33  ;;  %v946_v26 = vmul.f32 0.5, %v945_v44  ;;  %v1152_v56 = vmul.f32 %v3809_v38, %v1117_v58  ;;  %vm1101_vm7 = vmor %vm1099_vm3, %vm1100_vm5 }
 0x118   : > { %v1086_v15 = vmul.f32 0.5, %v1085_v60  ;;  %v674_v54 = vsub.f32 %v610_v20, %v642_v52  ;;  %v750_v14 = vsub.f32 %v2667_v31, %v3655_v57  ;;  %v1188_v23 = vadd.f32 %v3845_v27, %v1153_v49 }
 0x119   : > { %v705_v29 = vmax.f32 %v673_v18, 0.0  ;;  %v1096_v5 = vmul.f32 0.5, %v1095_v41  ;;  %v947_v47 = vsub.f32 1.5, %v946_v26  ;;  %v1187_v32 = vadd.f32 %v3845_v27, %v1152_v56 }
 0x11a   : > { %v1087_v6 = vsub.f32 1.5, %v1086_v15  ;;  %v706_v45 = vmax.f32 %v674_v54, 0.0  ;;  %vm959_vm12 = vweird.f32 %v3764_v11 }
 0x11b   : > { %v3801_v0 = vadd.f32 1e-05, %v705_v29  ;;  %v3803_v48 = vpop.eup %2640  ;;  %v1097_v28 = vsub.f32 1.5, %v1096_v5  ;;  %v538_v39 = vpop.xlane.xlu2 %537  ;;  %v948_v44 = vmul.f32 %v3747_v9, %v947_v47 }
 0x11c   : > { %v442_v25 = vpop.xlane.xlu0 %441  ;;  %v1088_v59 = vmul.f32 %v3754_v3, %v1087_v6  ;;  %v954_v21 = vmul.f32 %v3803_v48, %v3764_v11  ;;  %v3819_v43 = vadd.f32 1e-05, %v706_v45  ;;  %v612_v12 = vmul.f32 0.25, %v538_v39  ;;  %v2669_v45 = vld [vmem:[%s2765_s8 + $0x88] sm:$0xff]  ;;  %v2670_v39 = vld [vmem:[%s2765_s8 + $0x80] sm:$0xff] }
 0x11d   : > { %2642 = vrsqrt.f32 %v3801_v0  ;;  %v1098_v50 = vmul.f32 %v3767_v34, %v1097_v28  ;;  %v3821_v1 = vmul.f32 0.25, %v442_v25  ;;  %v536_v13 = vpop.xlane.xlu1 %535  ;;  %vm960_vm10 = vweird.f32 %v3803_v48 }
 0x11e   : > { %v955_v17 = vmul.f32 %v3803_v48, %v954_v21  ;;  %v611_v51 = vmul.f32 0.25, %v536_v13  ;;  %2644 = vrsqrt.f32 %v3819_v43  ;;  %v1092_v57 = vsel %vm3828_vm6, %v3754_v3, %v1088_v59  ;;  %vm961_vm13 = vmor %vm959_vm12, %vm960_vm10 }
 0x11f   : > { %v644_v35 = vmul.f32 %v3821_v1, %v3821_v1  ;;  %v1102_v8 = vsel %vm1101_vm7, %v3767_v34, %v1098_v50  ;;  %v1133_v33 = vmul.f32 %v1092_v57, %v749_v2  ;;  %v1212_v3 = vpack.c.bf16 %v1188_v23, %v1187_v32 }
 0x120   : > { %v956_v22 = vmul.f32 0.5, %v955_v17  ;;  %v675_v4 = vsub.f32 %v611_v51, %v643_v63  ;;  %v1134_v52 = vmul.f32 %v1102_v8, %v750_v14  ;;  %v952_v28 = vsel %vm3866_vm11, %v3747_v9, %v948_v44 }
 0x121   : > { %v676_v46 = vsub.f32 %v612_v12, %v644_v35  ;;  %v1168_v2 = vmul.f32 %v3809_v38, %v1133_v33  ;;  %1432 = vmatmul.bf16.gmra.mxu0 %v1212_v3  ;;  %1521 = vmatmul.bf16.gmra.mxu1 %v1212_v3  ;;  %v736_v25 = vsub.f32 %v2669_v45, %v3716_v61  ;;  %vm979_vm14 = vweird.f32 %v3819_v43 }
 0x122   : > { %v957_v60 = vsub.f32 1.5, %v956_v22  ;;  %v707_v18 = vmax.f32 %v675_v4, 0.0  ;;  %v1169_v5 = vmul.f32 %v3809_v38, %v1134_v52  ;;  %1610 = vmatmul.bf16.gmra.mxu2 %v1212_v3  ;;  %v735_v49 = vsub.f32 %v2670_v39, %v3644_v62 }
 0x123   : > { %v3853_v42 = vpop.eup %2642  ;;  %v708_v7 = vmax.f32 %v676_v46, 0.0  ;;  %v540_v6 = vpop.xlane.xlu2 %539  ;;  %v1203_v21 = vadd.f32 %v3845_v27, %v1168_v2  ;;  %vm969_vm2 = vweird.f32 %v3801_v0 }
 0x124   : > { %v964_v16 = vmul.f32 %v3853_v42, %v3801_v0  ;;  %v444_v41 = vpop.xlane.xlu0 %443  ;;  %v3861_v34 = vadd.f32 1e-05, %v707_v18  ;;  %v3864_v20 = vpop.eup %2644  ;;  %v958_v15 = vmul.f32 %v3803_v48, %v957_v60  ;;  %v1204_v63 = vadd.f32 %v3845_v27, %v1169_v5 }
 0x125   : > { %v3871_v29 = vadd.f32 1e-05, %v708_v7  ;;  %v3873_v40 = vmul.f32 0.25, %v444_v41  ;;  %v446_v54 = vpop.xlane.xlu1 %445  ;;  %v974_v26 = vmul.f32 %v3864_v20, %v3819_v43  ;;  %v613_v50 = vmul.f32 0.25, %v540_v6  ;;  %v3924_v43 = vld [vmem:[%s4280_s4] sm:$0x7] }
 0x126   : > { %v965_v58 = vmul.f32 %v3853_v42, %v964_v16  ;;  %2646 = vrsqrt.f32 %v3861_v34  ;;  %v3894_v9 = vmul.f32 0.25, %v446_v54  ;;  %v962_v62 = vsel %vm961_vm13, %v3803_v48, %v958_v15  ;;  %v2671_v54 = vld [vmem:[%s2765_s8 + $0x98] sm:$0xff] }
 0x127   : > { %2648 = vrsqrt.f32 %v3871_v29  ;;  %v975_v59 = vmul.f32 %v3864_v20, %v974_v26  ;;  %v645_v61 = vmul.f32 %v3873_v40, %v3873_v40  ;;  %v1119_v11 = vmul.f32 %v952_v28, %v735_v49 }
 0x128   : > { %v966_v13 = vmul.f32 0.5, %v965_v58  ;;  %v3899_v47 = vpack.c.bf16 %v1204_v63, %v1203_v21  ;;  %v646_v30 = vmul.f32 %v3894_v9, %v3894_v9  ;;  %v1120_v12 = vmul.f32 %v962_v62, %v736_v25 }
 0x129   : > { %v976_v56 = vmul.f32 0.5, %v975_v59  ;;  %v677_v23 = vsub.f32 %v613_v50, %v645_v61  ;;  %v1154_v48 = vmul.f32 %v3809_v38, %v1119_v11  ;;  %vm980_vm15 = vweird.f32 %v3864_v20 }
 0x12a   : > { %1472 = vmatmul.bf16.gmra.mxu3 %v3899_v47  ;;  %v1155_v22 = vmul.f32 %v3809_v38, %v1120_v12  ;;  %v967_v4 = vsub.f32 1.5, %v966_v13  ;;  %vm970_vm0 = vweird.f32 %v3853_v42  ;;  %vm3928_vm1 = vmor %vm979_vm14, %vm980_vm15  ;;  %v738_v58 = vsub.f32 %v2671_v54, %v3742_v55 }
 0x12b   : > { %v977_v31 = vsub.f32 1.5, %v976_v56  ;;  %v709_v44 = vmax.f32 %v677_v23, 0.0  ;;  %v1189_v60 = vadd.f32 %v3845_v27, %v1154_v48  ;;  %vm3942_vm3 = vmor %vm969_vm2, %vm970_vm0  ;;  %v3949_v28 = vperm.slane %v3924_v43, 0 }
 0x12c   : > { %v542_v17 = vpop.xlane.xlu0 %541  ;;  %v3903_v51 = vpop.eup %2646  ;;  %v1190_v8 = vadd.f32 %v3845_v27, %v1155_v22  ;;  %v968_v18 = vmul.f32 %v3853_v42, %v967_v4  ;;  %vm999_vm4 = vweird.f32 %v3871_v29  ;;  %vm989_vm6 = vweird.f32 %v3861_v34  ;;  %v2675_v22 = vld [vmem:[%s2765_s8 + $0xb8] sm:$0xff] }
 0x12d   : > { %v614_v14 = vmul.f32 0.25, %v542_v17  ;;  %v3906_v35 = vpop.eup %2648  ;;  %v978_v46 = vmul.f32 %v3864_v20, %v977_v31  ;;  %v984_v33 = vmul.f32 %v3903_v51, %v3861_v34  ;;  %v3946_v6 = vadd.f32 1e-05, %v709_v44 }
 0x12e   : > { %v994_v32 = vmul.f32 %v3906_v35, %v3871_v29  ;;  %v1398_v16 = vpop.f32.mrf.mxu0  ;;  %v3926_v7 = vpop.f32.mrf.mxu1  ;;  %v1213_v2 = vpack.c.bf16 %v1190_v8, %v1189_v60  ;;  %v972_v0 = vsel %vm3942_vm3, %v3853_v42, %v968_v18  ;;  %vm1000_vm5 = vweird.f32 %v3906_v35 }
 0x12f   : > { %v678_v57 = vsub.f32 %v614_v14, %v646_v30  ;;  %v985_v15 = vmul.f32 %v3903_v51, %v984_v33  ;;  %v982_v5 = vsel %vm3928_vm1, %v3864_v20, %v978_v46  ;;  %v2672_v20 = vld [vmem:[%s2765_s8 + $0x90] sm:$0xff]  ;;  %v1399_v49 = vadd.f32 %v1398_v16, %v3949_v28  ;;  %vm3990_vm8 = vmor %vm999_vm4, %vm1000_vm5 }
 0x130   : > { %v995_v19 = vmul.f32 %v3906_v35, %v994_v32  ;;  %v737_v55 = vsub.f32 %v2672_v20, %v3735_v36  ;;  %v1122_v45 = vmul.f32 %v982_v5, %v738_v58  ;;  %v3973_v17 = vperm.slane %v3924_v43, 2 }
 0x131   : > { %v710_v52 = vmax.f32 %v678_v57, 0.0  ;;  %1437 = vmatmul.bf16.gmra.mxu0 %v1213_v2  ;;  %1526 = vmatmul.bf16.gmra.mxu1 %v1213_v2  ;;  %v986_v39 = vmul.f32 0.5, %v985_v15  ;;  %v1656_v13 = vmul.f32 0.5, %v1399_v49  ;;  %vm990_vm7 = vweird.f32 %v3903_v51  ;;  %v2674_v15 = vld [vmem:[%s2765_s8 + $0xa8] sm:$0xff] }
 0x132   : > { %1615 = vmatmul.bf16.gmra.mxu2 %v1213_v2  ;;  %v996_v25 = vmul.f32 0.5, %v995_v19  ;;  %v1121_v21 = vmul.f32 %v972_v0, %v737_v55  ;;  %v1157_v36 = vmul.f32 %v3809_v38, %v1122_v45  ;;  %vm4004_vm9 = vmor %vm989_vm6, %vm990_vm7  ;;  %v2673_v2 = vld [vmem:[%s2765_s8 + $0xa0] sm:$0xff]  ;;  %v740_v5 = vsub.f32 %v2674_v15, %v3821_v1 }
 0x133   : > { %v3932_v41 = vadd.f32 1e-05, %v710_v52  ;;  %v987_v62 = vsub.f32 1.5, %v986_v39  ;;  %v739_v19 = vsub.f32 %v2673_v2, %v3797_v10  ;;  %vm1009_vm12 = vweird.f32 %v3946_v6 }
 0x134   : > { %v997_v50 = vsub.f32 1.5, %v996_v25  ;;  %v1156_v30 = vmul.f32 %v3809_v38, %v1121_v21  ;;  %v1192_v14 = vadd.f32 %v3845_v27, %v1157_v36 }
 0x135   : > { %2650 = vrsqrt.f32 %v3932_v41  ;;  %v1576_v59 = vpop.f32.mrf.mxu2  ;;  %v988_v23 = vmul.f32 %v3903_v51, %v987_v62  ;;  %vm1019_vm10 = vweird.f32 %v3932_v41 }
 0x136   : > { %2652 = vrsqrt.f32 %v3946_v6  ;;  %v1400_v63 = vpop.f32.mrf.mxu0  ;;  %v3959_v61 = vpop.f32.mrf.mxu1  ;;  %v998_v29 = vmul.f32 %v3906_v35, %v997_v50  ;;  %v1191_v57 = vadd.f32 %v3845_v27, %v1156_v30  ;;  %v1577_v46 = vadd.f32 %v1576_v59, %v3973_v17 }
 0x137   : > { %v1401_v42 = vadd.f32 %v1400_v63, %v3949_v28  ;;  %v992_v3 = vsel %vm4004_vm9, %v3903_v51, %v988_v23 }
 0x138   : > { %v1214_v60 = vpack.c.bf16 %v1192_v14, %v1191_v57  ;;  %v1002_v34 = vsel %vm3990_vm8, %v3906_v35, %v998_v29  ;;  %v1123_v58 = vmul.f32 %v992_v3, %v739_v19 }
 0x139   : > { %v1657_v56 = vmul.f32 0.5, %v1401_v42  ;;  %v1124_v26 = vmul.f32 %v1002_v34, %v740_v5 }
 0x13a   : > { %1546 = vmatmul.bf16.vlgmr.msrb.gmra.mxu3 %v3491_v37  ;;  %v1158_v1 = vmul.f32 %v3809_v38, %v1123_v58 }
 0x13b   : > { %v3967_v11 = vpop.eup %2650  ;;  %v2241_v31 = vpack.c.bf16 %v1657_v56, %v1656_v13  ;;  %v1159_v25 = vmul.f32 %v3809_v38, %v1124_v26 }
 0x13c   : > { %v3981_v12 = vpop.eup %2652  ;;  %v1014_v48 = vmul.f32 %v3967_v11, %v3932_v41  ;;  %vm1020_vm11 = vweird.f32 %v3967_v11  ;;  %v1193_v42 = vadd.f32 %v3845_v27, %v1158_v1 }
 0x13d   : > { %2242 = vst [vmem:[%s3979_s9] sm:$0xff] %v2241_v31   ;;  %v1578_v4 = vpop.f32.mrf.mxu2  ;;  %v1004_v8 = vmul.f32 %v3981_v12, %v3946_v6  ;;  %v1194_v36 = vadd.f32 %v3845_v27, %v1159_v25  ;;  %vm1010_vm13 = vweird.f32 %v3981_v12  ;;  %vm4041_vm14 = vmor %vm1019_vm10, %vm1020_vm11 }
 0x13e   : > { %v1579_v32 = vadd.f32 %v1578_v4, %v3973_v17  ;;  %v1403_v33 = vpop.f32.mrf.mxu0  ;;  %v4000_v52 = vpop.f32.mrf.mxu1  ;;  %v1015_v18 = vmul.f32 %v3967_v11, %v1014_v48  ;;  %vm4051_vm15 = vmor %vm1009_vm12, %vm1010_vm13  ;;  %v742_v4 = vsub.f32 %v2675_v22, %v3894_v9 }
 0x13f   : > { %v1005_v54 = vmul.f32 %v3981_v12, %v1004_v8  ;;  %v1404_v51 = vadd.f32 %v1403_v33, %v3949_v28  ;;  %v1215_v29 = vpack.c.bf16 %v1194_v36, %v1193_v42  ;;  %v2676_v8 = vld [vmem:[%s2765_s8 + $0xb0] sm:$0xff] }
 0x140   : > { %v2321_v16 = vpack.c.bf16 %v1579_v32, %v1577_v46  ;;  %v1016_v0 = vmul.f32 0.5, %v1015_v18  ;;  %v741_v46 = vsub.f32 %v2676_v8, %v3873_v40 }
 0x141   : > { %1442 = vmatmul.bf16.gmra.mxu0 %v1214_v60  ;;  %1531 = vmatmul.bf16.gmra.mxu1 %v1214_v60  ;;  %v1006_v55 = vmul.f32 0.5, %v1005_v54  ;;  %v1658_v49 = vmul.f32 0.5, %v1404_v51 }
 0x142   : > { %2322 = vst [vmem:[%s4012_s12] sm:$0xff] %v2321_v16   ;;  %1620 = vmatmul.bf16.gmra.mxu2 %v1214_v60  ;;  %v1017_v39 = vsub.f32 1.5, %v1016_v0 }
 0x143   : > { %v1007_v21 = vsub.f32 1.5, %v1006_v55 }
 0x144   : > { %v1018_v50 = vmul.f32 %v3967_v11, %v1017_v39 }
 0x145   : > { %v1581_v20 = vpop.f32.mrf.mxu2  ;;  %v1008_v13 = vmul.f32 %v3981_v12, %v1007_v21 }
 0x146   : > { %v1405_v35 = vpop.f32.mrf.mxu0  ;;  %v4028_v45 = vpop.f32.mrf.mxu1  ;;  %v1582_v56 = vadd.f32 %v1581_v20, %v3973_v17  ;;  %v1022_v23 = vsel %vm4041_vm14, %v3967_v11, %v1018_v50 }
 0x147   : > { %v1406_v10 = vadd.f32 %v1405_v35, %v3949_v28  ;;  %v1012_v57 = vsel %vm4051_vm15, %v3981_v12, %v1008_v13  ;;  %v1126_v32 = vmul.f32 %v1022_v23, %v742_v4 }
 0x148   : > { %v1125_v44 = vmul.f32 %v1012_v57, %v741_v46 }
 0x149   : > { %v1659_v59 = vmul.f32 0.5, %v1406_v10  ;;  %v1161_v16 = vmul.f32 %v3809_v38, %v1126_v32 }
 0x14a   : > { %1551 = vmatmul.bf16.gmra.mxu3 %v3625_v53  ;;  %v1160_v34 = vmul.f32 %v3809_v38, %v1125_v44 }
 0x14b   : > { %v2246_v63 = vpack.c.bf16 %v1659_v59, %v1658_v49  ;;  %v1196_v2 = vadd.f32 %v3845_v27, %v1161_v16 }
 0x14c   : > { %v1195_v15 = vadd.f32 %v3845_v27, %v1160_v34 }
 0x14d   : > { %2398 = vst [vmem:[%s3979_s9 + $0x8] sm:$0xff] %v2246_v63   ;;  %v1583_v41 = vpop.f32.mrf.mxu2 }
 0x14e   : > { %v1584_v30 = vadd.f32 %v1583_v41, %v3973_v17  ;;  %v1408_v31 = vpop.f32.mrf.mxu0  ;;  %v4049_v6 = vpop.f32.mrf.mxu1  ;;  %v1216_v0 = vpack.c.bf16 %v1196_v2, %v1195_v15 }
 0x14f   : > { %v1409_v33 = vadd.f32 %v1408_v31, %v3949_v28 }
 0x150   : > { %v2326_v48 = vpack.c.bf16 %v1584_v30, %v1582_v56 }
 0x151   : > { %1447 = vmatmul.bf16.gmra.mxu0 %v1215_v29  ;;  %1536 = vmatmul.bf16.gmra.mxu1 %v1215_v29  ;;  %v1660_v12 = vmul.f32 0.5, %v1409_v33 }
 0x152   : > { %2413 = vst [vmem:[%s4012_s12 + $0x8] sm:$0xff] %v2326_v48   ;;  %1625 = vmatmul.bf16.gmra.mxu2 %v1215_v29 }
 0x155   : > { %v1586_v11 = vpop.f32.mrf.mxu2 }
 0x156   : > { %v1410_v60 = vpop.f32.mrf.mxu0  ;;  %v4067_v18 = vpop.f32.mrf.mxu1  ;;  %v1587_v5 = vadd.f32 %v1586_v11, %v3973_v17 }
 0x157   : > { %v1411_v9 = vadd.f32 %v1410_v60, %v3949_v28 }
 0x159   : > { %v1661_v3 = vmul.f32 0.5, %v1411_v9 }
 0x15a   : > { %1556 = vmatmul.bf16.gmra.mxu3 %v3745_v24 }
 0x15b   : > { %v2251_v40 = vpack.c.bf16 %v1661_v3, %v1660_v12 }
 0x15d   : > { %2399 = vst [vmem:[%s3979_s9 + $0x10] sm:$0xff] %v2251_v40   ;;  %v1588_v19 = vpop.f32.mrf.mxu2 }
 0x15e   : > { %v1589_v54 = vadd.f32 %v1588_v19, %v3973_v17  ;;  %v1413_v58 = vpop.f32.mrf.mxu0  ;;  %v4078_v26 = vpop.f32.mrf.mxu1 }
 0x15f   : > { %v1414_v38 = vadd.f32 %v1413_v58, %v3949_v28 }
 0x160   : > { %v2331_v51 = vpack.c.bf16 %v1589_v54, %v1587_v5 }
 0x161   : > { %1452 = vmatmul.bf16.gmra.mxu0 %v1216_v0  ;;  %1541 = vmatmul.bf16.gmra.mxu1 %v1216_v0  ;;  %v1662_v10 = vmul.f32 0.5, %v1414_v38 }
 0x162   : > { %2414 = vst [vmem:[%s4012_s12 + $0x10] sm:$0xff] %v2331_v51   ;;  %1630 = vmatmul.bf16.gmra.mxu2 %v1216_v0 }
 0x165   : > { %v1591_v20 = vpop.f32.mrf.mxu2 }
 0x166   : > { %v1415_v55 = vpop.f32.mrf.mxu0  ;;  %v4082_v27 = vpop.f32.mrf.mxu1  ;;  %v1592_v59 = vadd.f32 %v1591_v20, %v3973_v17 }
 0x167   : > { %v1416_v35 = vadd.f32 %v1415_v55, %v3949_v28 }
 0x169   : > { %v1663_v1 = vmul.f32 0.5, %v1416_v35 }
 0x16a   : > { %1561 = vmatmul.bf16.gmra.mxu3 %v3899_v47 }
 0x16b   : > { %v2256_v25 = vpack.c.bf16 %v1663_v1, %v1662_v10 }
 0x16c   : > { %v1458_v39 = vpop.f32.mrf.mxu3 }
 0x16d   : > { %2400 = vst [vmem:[%s3979_s9 + $0x18] sm:$0xff] %v2256_v25   ;;  %v1593_v49 = vpop.f32.mrf.mxu2  ;;  %v1459_v50 = vadd.f32 %v1458_v39, %v3949_v28 }
 0x16e   : > { %v1594_v21 = vadd.f32 %v1593_v49, %v3973_v17  ;;  %v1418_v63 = vpop.f32.mrf.mxu0  ;;  %v4089_v42 = vpop.f32.mrf.mxu1 }
 0x16f   : > { %v1419_v13 = vadd.f32 %v1418_v63, %v3949_v28  ;;  %v1680_v30 = vmul.f32 0.5, %v1459_v50 }
 0x170   : > { %v2336_v36 = vpack.c.bf16 %v1594_v21, %v1592_v59 }
 0x171   : > { %v1664_v22 = vmul.f32 0.5, %v1419_v13 }
 0x172   : > { %2415 = vst [vmem:[%s4012_s12 + $0x18] sm:$0xff] %v2336_v36  }
 0x174   : > { %v1460_v62 = vpop.f32.mrf.mxu3 }
 0x175   : > { %v1461_v41 = vadd.f32 %v1460_v62, %v3949_v28  ;;  %v1596_v56 = vpop.f32.mrf.mxu2 }
 0x176   : > { %v1420_v14 = vpop.f32.mrf.mxu0  ;;  %v4095_v29 = vpop.f32.mrf.mxu1  ;;  %v1597_v46 = vadd.f32 %v1596_v56, %v3973_v17 }
 0x177   : > { %v1681_v31 = vmul.f32 0.5, %v1461_v41  ;;  %v1421_v23 = vadd.f32 %v1420_v14, %v3949_v28 }
 0x179   : > { %v2301_v48 = vpack.c.bf16 %v1681_v31, %v1680_v30  ;;  %v1665_v4 = vmul.f32 0.5, %v1421_v23 }
 0x17a   : > { %1635 = vmatmul.bf16.vlgmr.msra.gmra.mxu3 %v3491_v37 }
 0x17b   : > { %2409 = vst [vmem:[%s3979_s9 + $0x60] sm:$0xff] %v2301_v48   ;;  %v2261_v57 = vpack.c.bf16 %v1665_v4, %v1664_v22 }
 0x17d   : > { %2401 = vst [vmem:[%s3979_s9 + $0x20] sm:$0xff] %v2261_v57   ;;  %v1598_v8 = vpop.f32.mrf.mxu2 }
 0x17e   : > { %v1599_v32 = vadd.f32 %v1598_v8, %v3973_v17  ;;  %v1423_v33 = vpop.f32.mrf.mxu0  ;;  %v4103_v11 = vpop.f32.mrf.mxu1 }
 0x17f   : > { %v1424_v9 = vadd.f32 %v1423_v33, %v3949_v28 }
 0x180   : > { %v2341_v60 = vpack.c.bf16 %v1599_v32, %v1597_v46 }
 0x181   : > { %v1666_v19 = vmul.f32 0.5, %v1424_v9 }
 0x182   : > { %v1463_v44 = vpop.f32.mrf.mxu3  ;;  %2416 = vst [vmem:[%s4012_s12 + $0x20] sm:$0xff] %v2341_v60   ;;  %v4140_v60 = vperm.slane %v3924_v43, 1 }
 0x183   : > { %v1464_v16 = vadd.f32 %v1463_v44, %v3949_v28 }
 0x185   : > { %v1601_v37 = vpop.f32.mrf.mxu2  ;;  %v1682_v5 = vmul.f32 0.5, %v1464_v16 }
 0x186   : > { %v1425_v12 = vpop.f32.mrf.mxu0  ;;  %v4108_v3 = vpop.f32.mrf.mxu1  ;;  %v1602_v38 = vadd.f32 %v1601_v37, %v3973_v17 }
 0x187   : > { %v1426_v34 = vadd.f32 %v1425_v12, %v3949_v28 }
 0x189   : > { %v1667_v15 = vmul.f32 0.5, %v1426_v34 }
 0x18a   : > { %v1465_v40 = vpop.f32.mrf.mxu3  ;;  %1640 = vmatmul.bf16.gmra.mxu3 %v3625_v53 }
 0x18b   : > { %v1466_v2 = vadd.f32 %v1465_v40, %v3949_v28  ;;  %v2266_v58 = vpack.c.bf16 %v1667_v15, %v1666_v19  ;;  %v1488_v19 = vadd.f32 %v3926_v7, %v4140_v60 }
 0x18d   : > { %v1683_v54 = vmul.f32 0.5, %v1466_v2  ;;  %2402 = vst [vmem:[%s3979_s9 + $0x28] sm:$0xff] %v2266_v58   ;;  %v1603_v51 = vpop.f32.mrf.mxu2 }
 0x18e   : > { %v1604_v20 = vadd.f32 %v1603_v51, %v3973_v17  ;;  %v1428_v55 = vpop.f32.mrf.mxu0  ;;  %v4117_v35 = vpop.f32.mrf.mxu1 }
 0x18f   : > { %v2306_v0 = vpack.c.bf16 %v1683_v54, %v1682_v5  ;;  %v1429_v1 = vadd.f32 %v1428_v55, %v3949_v28 }
 0x190   : > { %v2346_v53 = vpack.c.bf16 %v1604_v20, %v1602_v38 }
 0x191   : > { %2410 = vst [vmem:[%s3979_s9 + $0x68] sm:$0xff] %v2306_v0   ;;  %v1668_v21 = vmul.f32 0.5, %v1429_v1 }
 0x192   : > { %2417 = vst [vmem:[%s4012_s12 + $0x28] sm:$0xff] %v2346_v53   ;;  %v1490_v53 = vadd.f32 %v3959_v61, %v4140_v60 }
 0x193   : > { %v1468_v10 = vpop.f32.mrf.mxu3 }
 0x194   : > { %v1469_v63 = vadd.f32 %v1468_v10, %v3949_v28 }
 0x195   : > { %v1606_v25 = vpop.f32.mrf.mxu2 }
 0x196   : > { %v1430_v39 = vpop.f32.mrf.mxu0  ;;  %v4121_v49 = vpop.f32.mrf.mxu1  ;;  %v1684_v13 = vmul.f32 0.5, %v1469_v63  ;;  %v1607_v31 = vadd.f32 %v1606_v25, %v3973_v17 }
 0x197   : > { %v1431_v59 = vadd.f32 %v1430_v39, %v3949_v28 }
 0x199   : > { %v1669_v36 = vmul.f32 0.5, %v1431_v59 }
 0x19a   : > { %1645 = vmatmul.bf16.gmra.mxu3 %v3745_v24 }
 0x19b   : > { %v1470_v50 = vpop.f32.mrf.mxu3  ;;  %v2271_v62 = vpack.c.bf16 %v1669_v36, %v1668_v21 }
 0x19c   : > { %v1471_v41 = vadd.f32 %v1470_v50, %v3949_v28 }
 0x19d   : > { %2403 = vst [vmem:[%s3979_s9 + $0x30] sm:$0xff] %v2271_v62   ;;  %v1608_v30 = vpop.f32.mrf.mxu2 }
 0x19e   : > { %v1685_v56 = vmul.f32 0.5, %v1471_v41  ;;  %v1609_v14 = vadd.f32 %v1608_v30, %v3973_v17  ;;  %v1433_v23 = vpop.f32.mrf.mxu0  ;;  %v4130_v24 = vpop.f32.mrf.mxu1 }
 0x19f   : > { %v1434_v4 = vadd.f32 %v1433_v23, %v3949_v28 }
 0x1a0   : > { %v2311_v48 = vpack.c.bf16 %v1685_v56, %v1684_v13  ;;  %v2351_v22 = vpack.c.bf16 %v1609_v14, %v1607_v31  ;;  %v1493_v56 = vadd.f32 %v4000_v52, %v4140_v60 }
 0x1a1   : > { %v1670_v33 = vmul.f32 0.5, %v1434_v4 }
 0x1a2   : > { %2411 = vst [vmem:[%s3979_s9 + $0x70] sm:$0xff] %v2311_v48  }
 0x1a3   : > { %2418 = vst [vmem:[%s4012_s12 + $0x30] sm:$0xff] %v2351_v22  }
 0x1a5   : > { %v1611_v57 = vpop.f32.mrf.mxu2 }
 0x1a6   : > { %v1435_v8 = vpop.f32.mrf.mxu0  ;;  %v4135_v46 = vpop.f32.mrf.mxu1  ;;  %v1612_v12 = vadd.f32 %v1611_v57, %v3973_v17 }
 0x1a7   : > { %v1436_v32 = vadd.f32 %v1435_v8, %v3949_v28  ;;  %v1495_v8 = vadd.f32 %v4028_v45, %v4140_v60 }
 0x1a9   : > { %v1671_v44 = vmul.f32 0.5, %v1436_v32 }
 0x1aa   : > { %1650 = vmatmul.bf16.gmra.mxu3 %v3899_v47 }
 0x1ab   : > { %v2276_v9 = vpack.c.bf16 %v1671_v44, %v1670_v33 }
 0x1ad   : > { %v1473_v37 = vpop.f32.mrf.mxu3  ;;  %2404 = vst [vmem:[%s3979_s9 + $0x38] sm:$0xff] %v2276_v9   ;;  %v1613_v16 = vpop.f32.mrf.mxu2 }
 0x1ae   : > { %v1614_v34 = vadd.f32 %v1613_v16, %v3973_v17  ;;  %v1438_v40 = vpop.f32.mrf.mxu0  ;;  %v1527_v2 = vpop.f32.mrf.mxu1  ;;  %v1474_v43 = vadd.f32 %v1473_v37, %v3949_v28 }
 0x1af   : > { %v1528_v47 = vadd.f32 %v1527_v2, %v4140_v60  ;;  %v1439_v0 = vadd.f32 %v1438_v40, %v3949_v28 }
 0x1b0   : > { %v2356_v15 = vpack.c.bf16 %v1614_v34, %v1612_v12  ;;  %v1686_v38 = vmul.f32 0.5, %v1474_v43 }
 0x1b1   : > { %v2476_v5 = vpack.i.bf16 %v1528_v47, %v1488_v19  ;;  %v1672_v39 = vmul.f32 0.5, %v1439_v0  ;;  %v1498_v19 = vadd.f32 %v4049_v6, %v4140_v60 }
 0x1b2   : > { %2419 = vst [vmem:[%s4012_s12 + $0x38] sm:$0xff] %v2356_v15  }
 0x1b3   : > { %2477 = vxpose.xlu1.b32.start [1/16] %v2476_v5, 128 }
 0x1b5   : > { %v1475_v54 = vpop.f32.mrf.mxu3  ;;  %v1616_v51 = vpop.f32.mrf.mxu2 }
 0x1b6   : > { %v1476_v58 = vadd.f32 %v1475_v54, %v3949_v28  ;;  %v1440_v55 = vpop.f32.mrf.mxu0  ;;  %v1529_v7 = vpop.f32.mrf.mxu1  ;;  %v1617_v62 = vadd.f32 %v1616_v51, %v3973_v17 }
 0x1b7   : > { %v1441_v10 = vadd.f32 %v1440_v55, %v3949_v28  ;;  %v1530_v1 = vadd.f32 %v1529_v7, %v4140_v60 }
 0x1b8   : > { %v1687_v20 = vmul.f32 0.5, %v1476_v58 }
 0x1b9   : > { %v1673_v59 = vmul.f32 0.5, %v1441_v10  ;;  %v2478_v21 = vpack.i.bf16 %v1530_v1, %v1490_v53 }
 0x1ba   : > { %v2316_v25 = vpack.c.bf16 %v1687_v20, %v1686_v38  ;;  %v1500_v38 = vadd.f32 %v4067_v18, %v4140_v60  ;;  %v1503_v18 = vadd.f32 %v4078_v26, %v4140_v60 }
 0x1bb   : > { %v2281_v63 = vpack.c.bf16 %v1673_v59, %v1672_v39  ;;  %2479 = vxpose.xlu1.b32.cont [2/16] %v2478_v21, 128 }
 0x1bc   : > { %2412 = vst [vmem:[%s3979_s9 + $0x78] sm:$0xff] %v2316_v25  }
 0x1bd   : > { %v4157_v36 = vpop.f32.mrf.mxu3  ;;  %2405 = vst [vmem:[%s3979_s9 + $0x40] sm:$0xff] %v2281_v63   ;;  %v1618_v50 = vpop.f32.mrf.mxu2 }
 0x1be   : > { %v1619_v61 = vadd.f32 %v1618_v50, %v3973_v17  ;;  %v1443_v41 = vpop.f32.mrf.mxu0  ;;  %v1532_v13 = vpop.f32.mrf.mxu1 }
 0x1bf   : > { %v1533_v30 = vadd.f32 %v1532_v13, %v4140_v60  ;;  %v1444_v48 = vadd.f32 %v1443_v41, %v3949_v28 }
 0x1c0   : > { %v2361_v31 = vpack.c.bf16 %v1619_v61, %v1617_v62 }
 0x1c1   : > { %v2480_v14 = vpack.i.bf16 %v1533_v30, %v1493_v56  ;;  %v1674_v33 = vmul.f32 0.5, %v1444_v48 }
 0x1c2   : > { %2420 = vst [vmem:[%s4012_s12 + $0x40] sm:$0xff] %v2361_v31  }
 0x1c3   : > { %2481 = vxpose.xlu1.b32.cont [3/16] %v2480_v14, 128  ;;  %v1505_v14 = vadd.f32 %v4082_v27, %v4140_v60 }
 0x1c5   : > { %v4166_v23 = vpop.f32.mrf.mxu3  ;;  %v1621_v22 = vpop.f32.mrf.mxu2 }
 0x1c6   : > { %v1445_v4 = vpop.f32.mrf.mxu0  ;;  %v1534_v57 = vpop.f32.mrf.mxu1  ;;  %v1622_v34 = vadd.f32 %v1621_v22, %v3973_v17 }
 0x1c7   : > { %v1446_v32 = vadd.f32 %v1445_v4, %v3949_v28  ;;  %v1535_v52 = vadd.f32 %v1534_v57, %v4140_v60 }
 0x1c9   : > { %v1675_v44 = vmul.f32 0.5, %v1446_v32  ;;  %v2482_v9 = vpack.i.bf16 %v1535_v52, %v1495_v8  ;;  %v1548_v52 = vadd.f32 %v4157_v36, %v4140_v60  ;;  %v1510_v36 = vadd.f32 %v4095_v29, %v4140_v60 }
 0x1cb   : > { %v2286_v37 = vpack.c.bf16 %v1675_v44, %v1674_v33  ;;  %2483 = vxpose.xlu1.b32.cont [4/16] %v2482_v9, 128 }
 0x1cd   : > { %v4173_v16 = vpop.f32.mrf.mxu3  ;;  %2406 = vst [vmem:[%s3979_s9 + $0x48] sm:$0xff] %v2286_v37   ;;  %v1623_v12 = vpop.f32.mrf.mxu2 }
 0x1ce   : > { %v1624_v40 = vadd.f32 %v1623_v12, %v3973_v17  ;;  %v1448_v2 = vpop.f32.mrf.mxu0  ;;  %v1537_v45 = vpop.f32.mrf.mxu1 }
 0x1cf   : > { %v1538_v47 = vadd.f32 %v1537_v45, %v4140_v60  ;;  %v1449_v54 = vadd.f32 %v1448_v2, %v3949_v28  ;;  %v1553_v45 = vadd.f32 %v4173_v16, %v4140_v60 }
 0x1d0   : > { %v2366_v15 = vpack.c.bf16 %v1624_v40, %v1622_v34  ;;  %v1550_v34 = vadd.f32 %v4166_v23, %v4140_v60 }
 0x1d1   : > { %v2484_v5 = vpack.i.bf16 %v1538_v47, %v1498_v19  ;;  %v1676_v55 = vmul.f32 0.5, %v1449_v54  ;;  %v1515_v54 = vadd.f32 %v4108_v3, %v4140_v60  ;;  %v1520_v3 = vadd.f32 %v4121_v49, %v4140_v60 }
 0x1d2   : > { %2421 = vst [vmem:[%s4012_s12 + $0x48] sm:$0xff] %v2366_v15   ;;  %v2494_v40 = vpack.i.bf16 %v1550_v34, %v1510_v36 }
 0x1d3   : > { %2485 = vxpose.xlu1.b32.cont [5/16] %v2484_v5, 128 }
 0x1d5   : > { %v4182_v43 = vpop.f32.mrf.mxu3  ;;  %v1626_v58 = vpop.f32.mrf.mxu2 }
 0x1d6   : > { %v1450_v0 = vpop.f32.mrf.mxu0  ;;  %v1539_v51 = vpop.f32.mrf.mxu1  ;;  %v1627_v39 = vadd.f32 %v1626_v58, %v3973_v17  ;;  %v1555_v23 = vadd.f32 %v4182_v43, %v4140_v60 }
 0x1d7   : > { %v1451_v20 = vadd.f32 %v1450_v0, %v3949_v28  ;;  %v1540_v6 = vadd.f32 %v1539_v51, %v4140_v60  ;;  %v1518_v0 = vadd.f32 %v4117_v35, %v4140_v60 }
 0x1d8   : > { %v2498_v16 = vpack.i.bf16 %v1555_v23, %v1515_v54 }
 0x1d9   : > { %v1677_v7 = vmul.f32 0.5, %v1451_v20  ;;  %v2486_v53 = vpack.i.bf16 %v1540_v6, %v1500_v38 }
 0x1db   : > { %v2291_v10 = vpack.c.bf16 %v1677_v7, %v1676_v55  ;;  %2487 = vxpose.xlu1.b32.cont [6/16] %v2486_v53, 128 }
 0x1dd   : > { %v1557_v1 = vpop.f32.mrf.mxu3  ;;  %2407 = vst [vmem:[%s3979_s9 + $0x50] sm:$0xff] %v2291_v10   ;;  %v1628_v25 = vpop.f32.mrf.mxu2  ;;  %v1523_v10 = vadd.f32 %v4130_v24, %v4140_v60 }
 0x1de   : > { %v1629_v59 = vadd.f32 %v1628_v25, %v3973_v17  ;;  %v1453_v21 = vpop.f32.mrf.mxu0  ;;  %v1542_v63 = vpop.f32.mrf.mxu1 }
 0x1df   : > { %v1543_v50 = vadd.f32 %v1542_v63, %v4140_v60  ;;  %v1454_v13 = vadd.f32 %v1453_v21, %v3949_v28  ;;  %v1525_v63 = vadd.f32 %v4135_v46, %v4140_v60 }
 0x1e0   : > { %v2371_v62 = vpack.c.bf16 %v1629_v59, %v1627_v39 }
 0x1e1   : > { %v2488_v61 = vpack.i.bf16 %v1543_v50, %v1503_v18  ;;  %v1678_v22 = vmul.f32 0.5, %v1454_v13 }
 0x1e2   : > { %2422 = vst [vmem:[%s4012_s12 + $0x50] sm:$0xff] %v2371_v62  }
 0x1e3   : > { %2489 = vxpose.xlu1.b32.cont [7/16] %v2488_v61, 128 }
 0x1e5   : > { %v1559_v41 = vpop.f32.mrf.mxu3  ;;  %v1631_v56 = vpop.f32.mrf.mxu2 }
 0x1e6   : > { %v1455_v30 = vpop.f32.mrf.mxu0  ;;  %v1544_v31 = vpop.f32.mrf.mxu1  ;;  %v1632_v44 = vadd.f32 %v1631_v56, %v3973_v17  ;;  %v1560_v6 = vadd.f32 %v1559_v41, %v4140_v60 }
 0x1e7   : > { %v1456_v48 = vadd.f32 %v1455_v30, %v3949_v28  ;;  %v1545_v26 = vadd.f32 %v1544_v31, %v4140_v60  ;;  %v1508_v28 = vadd.f32 %v4089_v42, %v4140_v60  ;;  %v1513_v42 = vadd.f32 %v4103_v11, %v4140_v60 }
 0x1e8   : > { %v1558_v11 = vadd.f32 %v1557_v1, %v4140_v60  ;;  %v2502_v7 = vpack.i.bf16 %v1560_v6, %v1520_v3 }
 0x1e9   : > { %v1679_v4 = vmul.f32 0.5, %v1456_v48  ;;  %v2490_v57 = vpack.i.bf16 %v1545_v26, %v1505_v14  ;;  %v2492_v37 = vpack.i.bf16 %v1548_v52, %v1508_v28  ;;  %v2496_v19 = vpack.i.bf16 %v1553_v45, %v1513_v42 }
 0x1ea   : > { %v2500_v51 = vpack.i.bf16 %v1558_v11, %v1518_v0 }
 0x1eb   : > { %v2296_v8 = vpack.c.bf16 %v1679_v4, %v1678_v22  ;;  %2491 = vxpose.xlu1.b32.cont [8/16] %v2490_v57, 128 }
 0x1ed   : > { %v1562_v32 = vpop.f32.mrf.mxu3  ;;  %2408 = vst [vmem:[%s3979_s9 + $0x58] sm:$0xff] %v2296_v8   ;;  %v1633_v33 = vpop.f32.mrf.mxu2 }
 0x1ee   : > { %v1634_v27 = vadd.f32 %v1633_v33, %v3973_v17  ;;  %v1563_v35 = vadd.f32 %v1562_v32, %v4140_v60 }
 0x1f0   : > { %v2376_v9 = vpack.c.bf16 %v1634_v27, %v1632_v44  ;;  %v2504_v1 = vpack.i.bf16 %v1563_v35, %v1523_v10 }
 0x1f2   : > { %2423 = vst [vmem:[%s4012_s12 + $0x58] sm:$0xff] %v2376_v9  }
 0x1f3   : > { %2493 = vxpose.xlu1.b32.cont [9/16] %v2492_v37, 128 }
 0x1f5   : > { %v1564_v12 = vpop.f32.mrf.mxu3 }
 0x1f6   : > { %v1565_v49 = vadd.f32 %v1564_v12, %v4140_v60 }
 0x1f8   : > { %v2506_v18 = vpack.i.bf16 %v1565_v49, %v1525_v63 }
 0x1fb   : > { %2495 = vxpose.xlu1.b32.cont [10/16] %v2494_v40, 128 }
 0x1fd   : > { %v1636_v2 = vpop.f32.mrf.mxu3 }
 0x1fe   : > { %v1637_v15 = vadd.f32 %v1636_v2, %v3973_v17 }
 0x203   : > { %2497 = vxpose.xlu1.b32.cont [11/16] %v2496_v19, 128 }
 0x205   : > { %v1638_v47 = vpop.f32.mrf.mxu3 }
 0x206   : > { %v1639_v5 = vadd.f32 %v1638_v47, %v3973_v17 }
 0x208   : > { %v2381_v29 = vpack.c.bf16 %v1639_v5, %v1637_v15 }
 0x20a   : > { %2424 = vst [vmem:[%s4012_s12 + $0x60] sm:$0xff] %v2381_v29  }
 0x20b   : > { %2499 = vxpose.xlu1.b32.cont [12/16] %v2498_v16, 128 }
 0x20d   : > { %v1641_v58 = vpop.f32.mrf.mxu3 }
 0x20e   : > { %v1642_v20 = vadd.f32 %v1641_v58, %v3973_v17 }
 0x213   : > { %2501 = vxpose.xlu1.b32.cont [13/16] %v2500_v51, 128 }
 0x215   : > { %v1643_v38 = vpop.f32.mrf.mxu3 }
 0x216   : > { %v1644_v43 = vadd.f32 %v1643_v38, %v3973_v17 }
 0x218   : > { %v2386_v55 = vpack.c.bf16 %v1644_v43, %v1642_v20 }
 0x21a   : > { %2425 = vst [vmem:[%s4012_s12 + $0x68] sm:$0xff] %v2386_v55  }
 0x21b   : > { %2503 = vxpose.xlu1.b32.cont [14/16] %v2502_v7, 128 }
 0x21d   : > { %v1646_v53 = vpop.f32.mrf.mxu3 }
 0x21e   : > { %v1647_v39 = vadd.f32 %v1646_v53, %v3973_v17 }
 0x223   : > { %2505 = vxpose.xlu1.b32.cont [15/16] %v2504_v1, 128 }
 0x225   : > { %v1648_v25 = vpop.f32.mrf.mxu3 }
 0x226   : > { %v1649_v59 = vadd.f32 %v1648_v25, %v3973_v17 }
 0x228   : > { %v2391_v21 = vpack.c.bf16 %v1649_v59, %v1647_v39 }
 0x22a   : > { %2426 = vst [vmem:[%s4012_s12 + $0x70] sm:$0xff] %v2391_v21  }
 0x22b   : > { %2507 = vxpose.xlu1.b32.end [16/16] %v2506_v18, 128 }
 0x22d   : > { %v1651_v50 = vpop.f32.mrf.mxu3 }
 0x22e   : > { %v1652_v62 = vadd.f32 %v1651_v50, %v3973_v17 }
 0x235   : > { %v1653_v24 = vpop.f32.mrf.mxu3 }
 0x236   : > { %v1654_v61 = vadd.f32 %v1653_v24, %v3973_v17 }
 0x238   : > { %v2396_v41 = vpack.c.bf16 %v1654_v61, %v1652_v62 }
 0x23a   : > { %2427 = vst [vmem:[%s4012_s12 + $0x78] sm:$0xff] %v2396_v41  }
 0x257   : > { %v2508_v13 = vpop.trf.xlu1 }
 0x258   : > { %v2512_v56 = vunpack.i.h.bf16 %v2508_v13  ;;  %v2509_v30 = vunpack.i.l.bf16 %v2508_v13 }
 0x25a   : > { %v1816_v46 = vpack.c.bf16 %v2512_v56, %v2509_v30 }
 0x25c   : > { %1832 = vst [vmem:[%s4249_s14] sm:$0xff] %v1816_v46 }
 0x25f   : > { %v2513_v60 = vpop.trf.xlu1 }
 0x260   : > { %v2517_v31 = vunpack.i.h.bf16 %v2513_v60  ;;  %v2514_v14 = vunpack.i.l.bf16 %v2513_v60 }
 0x262   : > { %v1817_v17 = vpack.c.bf16 %v2517_v31, %v2514_v14 }
 0x264   : > { %1833 = vst [vmem:[%s4249_s14 + $0x8] sm:$0xff] %v1817_v17 }
 0x267   : > { %v2518_v48 = vpop.trf.xlu1 }
 0x268   : > { %v2522_v26 = vunpack.i.h.bf16 %v2518_v48  ;;  %v2519_v22 = vunpack.i.l.bf16 %v2518_v48 }
 0x26a   : > { %v1818_v4 = vpack.c.bf16 %v2522_v26, %v2519_v22 }
 0x26c   : > { %1834 = vst [vmem:[%s4249_s14 + $0x10] sm:$0xff] %v1818_v4 }
 0x26f   : > { %v2523_v57 = vpop.trf.xlu1 }
 0x270   : > { %v2527_v8 = vunpack.i.h.bf16 %v2523_v57  ;;  %v2524_v32 = vunpack.i.l.bf16 %v2523_v57 }
 0x272   : > { %v1819_v52 = vpack.c.bf16 %v2527_v8, %v2524_v32 }
 0x274   : > { %1835 = vst [vmem:[%s4249_s14 + $0x18] sm:$0xff] %v1819_v52 }
 0x277   : > { %v2528_v33 = vpop.trf.xlu1 }
 0x278   : > { %v2532_v44 = vunpack.i.h.bf16 %v2528_v33  ;;  %v2529_v27 = vunpack.i.l.bf16 %v2528_v33 }
 0x27a   : > { %v1820_v28 = vpack.c.bf16 %v2532_v44, %v2529_v27 }
 0x27c   : > { %1836 = vst [vmem:[%s4249_s14 + $0x20] sm:$0xff] %v1820_v28 }
 0x27f   : > { %v2533_v9 = vpop.trf.xlu1 }
 0x280   : > { %v2537_v37 = vunpack.i.h.bf16 %v2533_v9  ;;  %v2534_v12 = vunpack.i.l.bf16 %v2533_v9 }
 0x282   : > { %v1821_v34 = vpack.c.bf16 %v2537_v37, %v2534_v12 }
 0x284   : > { %1837 = vst [vmem:[%s4249_s14 + $0x28] sm:$0xff] %v1821_v34 }
 0x287   : > { %v2538_v36 = vpop.trf.xlu1 }
 0x288   : > { %v2542_v40 = vunpack.i.h.bf16 %v2538_v36  ;;  %v2539_v2 = vunpack.i.l.bf16 %v2538_v36 }
 0x28a   : > { %v1822_v45 = vpack.c.bf16 %v2542_v40, %v2539_v2 }
 0x28c   : > { %1838 = vst [vmem:[%s4249_s14 + $0x30] sm:$0xff] %v1822_v45 }
 0x28f   : > { %v2543_v42 = vpop.trf.xlu1 }
 0x290   : > { %v2547_v19 = vunpack.i.h.bf16 %v2543_v42  ;;  %v2544_v47 = vunpack.i.l.bf16 %v2543_v42 }
 0x292   : > { %v1823_v15 = vpack.c.bf16 %v2547_v19, %v2544_v47 }
 0x294   : > { %1839 = vst [vmem:[%s4249_s14 + $0x38] sm:$0xff] %v1823_v15 }
 0x297   : > { %v2548_v5 = vpop.trf.xlu1 }
 0x298   : > { %v2552_v23 = vunpack.i.h.bf16 %v2548_v5  ;;  %v2549_v29 = vunpack.i.l.bf16 %v2548_v5 }
 0x29a   : > { %v1824_v54 = vpack.c.bf16 %v2552_v23, %v2549_v29 }
 0x29c   : > { %1840 = vst [vmem:[%s4249_s14 + $0x40] sm:$0xff] %v1824_v54 }
 0x29f   : > { %v2553_v16 = vpop.trf.xlu1 }
 0x2a0   : > { %v2557_v58 = vunpack.i.h.bf16 %v2553_v16  ;;  %v2554_v11 = vunpack.i.l.bf16 %v2553_v16 }
 0x2a2   : > { %v1825_v0 = vpack.c.bf16 %v2557_v58, %v2554_v11 }
 0x2a4   : > { %1841 = vst [vmem:[%s4249_s14 + $0x48] sm:$0xff] %v1825_v0 }
 0x2a7   : > { %v2558_v51 = vpop.trf.xlu1 }
 0x2a8   : > { %v2562_v38 = vunpack.i.h.bf16 %v2558_v51  ;;  %v2559_v20 = vunpack.i.l.bf16 %v2558_v51 }
 0x2aa   : > { %v1826_v43 = vpack.c.bf16 %v2562_v38, %v2559_v20 }
 0x2ac   : > { %1842 = vst [vmem:[%s4249_s14 + $0x50] sm:$0xff] %v1826_v43 }
 0x2af   : > { %v2563_v6 = vpop.trf.xlu1 }
 0x2b0   : > { %v2567_v55 = vunpack.i.h.bf16 %v2563_v6  ;;  %v2564_v3 = vunpack.i.l.bf16 %v2563_v6 }
 0x2b2   : > { %v1827_v7 = vpack.c.bf16 %v2567_v55, %v2564_v3 }
 0x2b4   : > { %1843 = vst [vmem:[%s4249_s14 + $0x58] sm:$0xff] %v1827_v7 }
 0x2b7   : > { %v2568_v53 = vpop.trf.xlu1 }
 0x2b8   : > { %v2572_v35 = vunpack.i.h.bf16 %v2568_v53  ;;  %v2569_v10 = vunpack.i.l.bf16 %v2568_v53 }
 0x2ba   : > { %v1828_v1 = vpack.c.bf16 %v2572_v35, %v2569_v10 }
 0x2bc   : > { %1844 = vst [vmem:[%s4249_s14 + $0x60] sm:$0xff] %v1828_v1 }
 0x2bf   : > { %v2573_v25 = vpop.trf.xlu1 }
 0x2c0   : > { %v2577_v39 = vunpack.i.h.bf16 %v2573_v25  ;;  %v2574_v59 = vunpack.i.l.bf16 %v2573_v25 }
 0x2c2   : > { %v1829_v49 = vpack.c.bf16 %v2577_v39, %v2574_v59 }
 0x2c4   : > { %1845 = vst [vmem:[%s4249_s14 + $0x68] sm:$0xff] %v1829_v49 }
 0x2c7   : > { %v2578_v21 = vpop.trf.xlu1 }
 0x2c8   : > { %v2582_v63 = vunpack.i.h.bf16 %v2578_v21  ;;  %v2579_v18 = vunpack.i.l.bf16 %v2578_v21 }
 0x2ca   : > { %v1830_v50 = vpack.c.bf16 %v2582_v63, %v2579_v18 }
 0x2cc   : > { %1846 = vst [vmem:[%s4249_s14 + $0x70] sm:$0xff] %v1830_v50 }
 0x2cf   : > { %v2583_v24 = vpop.trf.xlu1 }
 0x2d0   : > { %v2587_v62 = vunpack.i.h.bf16 %v2583_v24  ;;  %v2584_v61 = vunpack.i.l.bf16 %v2583_v24 }
 0x2d2   : > { %v1831_v41 = vpack.c.bf16 %v2587_v62, %v2584_v61 }
 0x2d4   : > { %1847 = vst [vmem:[%s4249_s14 + $0x78] sm:$0xff] %v1831_v41 }
 0x2d5 PF: > { %s18_s26 = sadd.s32 1, %s2699_s26   ;;  %s4338_s24 = smov %s2695_s25 }
 0x2d6   : > { %p15_p5 = scmp.ge.s32.totalorder %s18_s26, 4   ;;  %s4339_s25 = smov %s4341_s27 }
 0x2d8   :  { %17 = sbr.rel (!%p15_p5) target bundleno = 2 (0x2), region = 94 }

// kernel: mix_transformer_block.3
= control target key start
LH: loop header
LB: loop body
LE: loop exit
PB: predicated region body
PF: predicated region fallthrough
CT: control target
= control target key end

     0   :  { %s6883_s21 = smov 0   ;;  %s6885_s22 = smov 0   ;;  %s10366_s0 = inlined_call_operand.vmem [shape: f32[2,256,128], index: 0, kind: input, shape index: {}]   ;;  %s10367_s1 = inlined_call_operand.vmem [shape: bf16[2,256,128], index: 1, kind: input, shape index: {}]   ;;  %s10368_s2 = inlined_call_operand.vmem [shape: bf16[2,128,256], index: 2, kind: input, shape index: {}]   ;;  %s10369_s3 = inlined_call_operand.vmem [shape: bf16[2,256,128], index: 3, kind: input, shape index: {}]   ;;  %s10370_s4 = inlined_call_operand.vmem [shape: bf16[128,128], index: 4, kind: input, shape index: {}]   ;;  %s10371_s5 = inlined_call_operand.vmem [shape: f32[1,128], index: 5, kind: input, shape index: {}]   ;;  %s10372_s6 = inlined_call_operand.vmem [shape: f32[1,128], index: 6, kind: input, shape index: {}]   ;;  %s10373_s7 = inlined_call_operand.vmem [shape: f32[1,128], index: 7, kind: input, shape index: {}]   ;;  %s10374_s8 = inlined_call_operand.vmem [shape: bf16[128,128], index: 8, kind: input, shape index: {}]   ;;  %s10375_s9 = inlined_call_operand.vmem [shape: f32[1,128], index: 9, kind: input, shape index: {}]   ;;  %s10376_s10 = inlined_call_operand.vmem [shape: bf16[128,128], index: 10, kind: input, shape index: {}]   ;;  %s10377_s11 = inlined_call_operand.vmem [shape: f32[1,128], index: 11, kind: input, shape index: {}]   ;;  %s10378_s12 = inlined_call_operand.vmem [shape: f32[2,256,128], index: 12, kind: output, shape index: {}]  }
   0x1   :  { %s6887_s23 = smov 0  }
   0x2 LB: > { %s41_s24 = sadd.s32 1, %s6808_s22  ;;  %p5896_p0 = scmp.ge.s32.totalorder %s6812_s23, 1  ;;  %s6812_s23 = sphi %s6887_s23, %s22_s23   ;;  %s6808_s22 = sphi %s6885_s22, %s10755_s22   ;;  %s6804_s21 = sphi %s6883_s21, %s10754_s21  }
   0x3   : > { %p43_p1 = scmp.ge.s32.totalorder %s41_s24, 2  ;;  %p441_p2 = scmp.lt.s32.totalorder %s6812_s23, 3 }
   0x5   : > { %s10757_s24 = smov (%p43_p1, %s41_s24), 0  ;;  %p442_p3 = pnand %p5896_p0, %p441_p2 }
   0x7   : > { %445 = sbr.rel (%p442_p3) target bundleno = 2196 (0x894), region = 68 }
   0xc   : > { %p519_p4 = scmp.lt.s32.totalorder %s6804_s21, 1  ;;  %vm572_vm0 = vcmask 7168  }
   0xe   : > { %s10759_s21 = smov (!%p519_p4, %s6804_s21), 1 }
   0xf   : > { %s6904_s25 = sshll.u32 %s10759_s21, 7  ;;  %s6197_s19 = sshll.u32 %s10759_s21, 8 }
  0x10   : > { %s6910_s28 = scalar_lea.vmem %s10368_s2, %s6904_s25  ;;  %s6954_s13 = scalar_lea.vmem %s10367_s1, %s6904_s25 }
  0x11   : > { %v6029_v0 = vld [vmem:[%s6910_s28 + $0x70] sm:$0xf]  ;;  %v6233_v1 = vld [vmem:[%s6910_s28 + $0x74] sm:$0xf0]  ;;  %v6232_v2 = vld [vmem:[%s6910_s28 + $0x74] sm:$0xf]  ;;  %s7392_s16 = scalar_lea.vmem %s10369_s3, %s6904_s25  ;;  %s8117_s26 = scalar_lea.vmem %s10366_s0, %s6197_s19 }
  0x12   : > { %v6030_v3 = vor.u32 %v6233_v1, %v6029_v0  ;;  %v6031_v4 = vld [vmem:[%s6910_s28 + $0x78] sm:$0xf0]  ;;  %v6021_v5 = vld [vmem:[%s6910_s28 + $0x60] sm:$0xf]  ;;  %v6231_v6 = vld [vmem:[%s6910_s28 + $0x64] sm:$0xf0]  ;;  %s8766_s20 = scalar_lea.vmem %s10378_s12, %s6197_s19 }
  0x13   : > { %v6918_v7 = vor.u32 %v6232_v2, %v6031_v4  ;;  %v6230_v8 = vld [vmem:[%s6910_s28 + $0x64] sm:$0xf]  ;;  %v6023_v9 = vld [vmem:[%s6910_s28 + $0x68] sm:$0xf0]  ;;  %v6022_v10 = vor.u32 %v6231_v6, %v6021_v5  ;;  %v6013_v12 = vld [vmem:[%s6910_s28 + $0x50] sm:$0xf] }
  0x14   : > { %893 = vmatpush.bf16.msra.mxu0 %v6030_v3  ;;  %6274 = vmatpush.bf16.msra.mxu3 %v6030_v3  ;;  %v6923_v11 = vor.u32 %v6230_v8, %v6023_v9  ;;  %v6229_v13 = vld [vmem:[%s6910_s28 + $0x54] sm:$0xf0]  ;;  %v6228_v14 = vld [vmem:[%s6910_s28 + $0x54] sm:$0xf]  ;;  %v6015_v15 = vld [vmem:[%s6910_s28 + $0x58] sm:$0xf0] }
  0x15   : > { %982 = vmatpush.bf16.msra.mxu1 %v6918_v7  ;;  %v6014_v16 = vor.u32 %v6229_v13, %v6013_v12  ;;  %v6018_v17 = vor.u32 %v6228_v14, %v6015_v15  ;;  %v6005_v18 = vld [vmem:[%s6910_s28 + $0x40] sm:$0xf]  ;;  %v6227_v19 = vld [vmem:[%s6910_s28 + $0x44] sm:$0xf0]  ;;  %v6226_v20 = vld [vmem:[%s6910_s28 + $0x44] sm:$0xf] }
  0x16   : > { %v6007_v21 = vld [vmem:[%s6910_s28 + $0x48] sm:$0xf0]  ;;  %v6006_v22 = vor.u32 %v6227_v19, %v6005_v18  ;;  %v5997_v24 = vld [vmem:[%s6910_s28 + $0x30] sm:$0xf]  ;;  %v6225_v25 = vld [vmem:[%s6910_s28 + $0x34] sm:$0xf0] }
  0x17   : > { %v6010_v23 = vor.u32 %v6226_v20, %v6007_v21  ;;  %v6224_v26 = vld [vmem:[%s6910_s28 + $0x34] sm:$0xf]  ;;  %v5999_v27 = vld [vmem:[%s6910_s28 + $0x38] sm:$0xf0]  ;;  %v5998_v28 = vor.u32 %v6225_v25, %v5997_v24  ;;  %v5989_v30 = vld [vmem:[%s6910_s28 + $0x20] sm:$0xf] }
  0x18   : > { %894 = vmatpush.bf16.msra.mxu0 %v6022_v10  ;;  %6275 = vmatpush.bf16.msra.mxu3 %v6022_v10  ;;  %v6002_v29 = vor.u32 %v6224_v26, %v5999_v27  ;;  %v6223_v31 = vld [vmem:[%s6910_s28 + $0x24] sm:$0xf0]  ;;  %v6222_v32 = vld [vmem:[%s6910_s28 + $0x24] sm:$0xf]  ;;  %v5991_v33 = vld [vmem:[%s6910_s28 + $0x28] sm:$0xf0] }
  0x19   : > { %983 = vmatpush.bf16.msra.mxu1 %v6923_v11  ;;  %v5990_v34 = vor.u32 %v6223_v31, %v5989_v30  ;;  %v5994_v35 = vor.u32 %v6222_v32, %v5991_v33  ;;  %v5981_v36 = vld [vmem:[%s6910_s28 + $0x10] sm:$0xf]  ;;  %v6221_v37 = vld [vmem:[%s6910_s28 + $0x14] sm:$0xf0]  ;;  %v6220_v38 = vld [vmem:[%s6910_s28 + $0x14] sm:$0xf] }
  0x1a   : > { %v5983_v39 = vld [vmem:[%s6910_s28 + $0x18] sm:$0xf0]  ;;  %v5982_v40 = vor.u32 %v6221_v37, %v5981_v36  ;;  %v5973_v42 = vld [vmem:[%s6910_s28] sm:$0xf]  ;;  %v6219_v43 = vld [vmem:[%s6910_s28 + $0x4] sm:$0xf0] }
  0x1b   : > { %v5986_v41 = vor.u32 %v6220_v38, %v5983_v39  ;;  %v6218_v44 = vld [vmem:[%s6910_s28 + $0x4] sm:$0xf]  ;;  %v5975_v45 = vld [vmem:[%s6910_s28 + $0x8] sm:$0xf0]  ;;  %v5974_v46 = vor.u32 %v6219_v43, %v5973_v42  ;;  %v6204_v52 = vld [vmem:[%s6954_s13 + $0x10] sm:$0xff] }
  0x1c   : > { %895 = vmatpush.bf16.msra.mxu0 %v6014_v16  ;;  %6276 = vmatpush.bf16.msra.mxu3 %v6014_v16  ;;  %v5978_v47 = vor.u32 %v6218_v44, %v5975_v45  ;;  %v6202_v48 = vld [vmem:[%s6954_s13] sm:$0xff]  ;;  %v6203_v50 = vld [vmem:[%s6954_s13 + $0x8] sm:$0xff]  ;;  %v6216_v53 = vld [vmem:[%s6954_s13 + $0x70] sm:$0xff] }
  0x1d   : > { %984 = vmatpush.bf16.msra.mxu1 %v6018_v17  ;;  %v6214_v49 = vld [vmem:[%s6954_s13 + $0x60] sm:$0xff]  ;;  %v6215_v51 = vld [vmem:[%s6954_s13 + $0x68] sm:$0xff]  ;;  %v6205_v54 = vld [vmem:[%s6954_s13 + $0x18] sm:$0xff] }
  0x1e   : > { %v6217_v55 = vld [vmem:[%s6954_s13 + $0x78] sm:$0xff]  ;;  %v6206_v56 = vld [vmem:[%s6954_s13 + $0x20] sm:$0xff]  ;;  %v6207_v57 = vld [vmem:[%s6954_s13 + $0x28] sm:$0xff] }
  0x1f   : > { %v6208_v58 = vld [vmem:[%s6954_s13 + $0x30] sm:$0xff]  ;;  %v6209_v59 = vld [vmem:[%s6954_s13 + $0x38] sm:$0xff]  ;;  %v6210_v60 = vld [vmem:[%s6954_s13 + $0x40] sm:$0xff] }
  0x20   : > { %896 = vmatpush.bf16.msra.mxu0 %v6006_v22  ;;  %6277 = vmatpush.bf16.msra.mxu3 %v6006_v22  ;;  %v6211_v6 = vld [vmem:[%s6954_s13 + $0x48] sm:$0xff]  ;;  %v6212_v15 = vld [vmem:[%s6954_s13 + $0x50] sm:$0xff] }
  0x21   : > { %985 = vmatpush.bf16.msra.mxu1 %v6010_v23 }
  0x24   : > { %897 = vmatpush.bf16.msra.mxu0 %v5998_v28  ;;  %6278 = vmatpush.bf16.msra.mxu3 %v5998_v28 }
  0x25   : > { %986 = vmatpush.bf16.msra.mxu1 %v6002_v29 }
  0x28   : > { %898 = vmatpush.bf16.msra.mxu0 %v5990_v34  ;;  %6279 = vmatpush.bf16.msra.mxu3 %v5990_v34 }
  0x29   : > { %987 = vmatpush.bf16.msra.mxu1 %v5994_v35 }
  0x2c   : > { %899 = vmatpush.bf16.msra.mxu0 %v5982_v40  ;;  %6280 = vmatpush.bf16.msra.mxu3 %v5982_v40 }
  0x2d   : > { %988 = vmatpush.bf16.msra.mxu1 %v5986_v41 }
  0x30   : > { %900 = vmatpush.bf16.msra.mxu0 %v5974_v46  ;;  %6281 = vmatpush.bf16.msra.mxu3 %v5974_v46 }
  0x31   : > { %989 = vmatpush.bf16.msra.mxu1 %v5978_v47 }
  0x33   : > { %901 = vmatmul.bf16.vlgmr.msra.gmra.mxu0 %v6202_v48  ;;  %961 = vmatmul.bf16.vlgmr.msra.gmra.mxu3 %v6214_v49 }
  0x34   : > { %6282 = vmatpush.bf16.msrb.mxu3 %v6918_v7  ;;  %990 = vmatmul.bf16.vlgmr.msra.gmra.mxu1 %v6202_v48 }
  0x38   : > { %6283 = vmatpush.bf16.msrb.mxu3 %v6923_v11 }
  0x3c   : > { %6284 = vmatpush.bf16.msrb.mxu3 %v6018_v17 }
  0x40   : > { %6285 = vmatpush.bf16.msrb.mxu3 %v6010_v23 }
  0x43   : > { %906 = vmatmul.bf16.gmra.mxu0 %v6203_v50  ;;  %966 = vmatmul.bf16.gmra.mxu3 %v6215_v51 }
  0x44   : > { %6286 = vmatpush.bf16.msrb.mxu3 %v6002_v29  ;;  %995 = vmatmul.bf16.gmra.mxu1 %v6203_v50 }
  0x48   : > { %6287 = vmatpush.bf16.msrb.mxu3 %v5994_v35 }
  0x4c   : > { %6288 = vmatpush.bf16.msrb.mxu3 %v5986_v41  ;;  %v6814_v41 = vmov -inf  }
  0x4d   : > { %573 = vst.msk [vmem:[#allocation2] sm:$0xff] %vm572_vm0, %v6814_v41 }
  0x4e   : > { %574 = vst.msk [vmem:[#allocation2 + $0x8] sm:$0xff] %vm572_vm0, %v6814_v41 }
  0x4f   : > { %575 = vst.msk [vmem:[#allocation2 + $0x10] sm:$0xff] %vm572_vm0, %v6814_v41 }
  0x50   : > { %6289 = vmatpush.bf16.msrb.mxu3 %v5978_v47  ;;  %576 = vst.msk [vmem:[#allocation2 + $0x18] sm:$0xff] %vm572_vm0, %v6814_v41 }
  0x51   : > { %577 = vst.msk [vmem:[#allocation2 + $0x20] sm:$0xff] %vm572_vm0, %v6814_v41 }
  0x52   : > { %578 = vst.msk [vmem:[#allocation2 + $0x28] sm:$0xff] %vm572_vm0, %v6814_v41 }
  0x53   : > { %911 = vmatmul.bf16.gmra.mxu0 %v6204_v52  ;;  %971 = vmatmul.bf16.gmra.mxu3 %v6216_v53  ;;  %579 = vst.msk [vmem:[#allocation2 + $0x30] sm:$0xff] %vm572_vm0, %v6814_v41 }
  0x54   : > { %1000 = vmatmul.bf16.gmra.mxu1 %v6204_v52  ;;  %580 = vst.msk [vmem:[#allocation2 + $0x38] sm:$0xff] %vm572_vm0, %v6814_v41 }
  0x55   : > { %581 = vst.msk [vmem:[#allocation2 + $0x40] sm:$0xff] %vm572_vm0, %v6814_v41 }
  0x56   : > { %582 = vst.msk [vmem:[#allocation2 + $0x48] sm:$0xff] %vm572_vm0, %v6814_v41 }
  0x57   : > { %583 = vst.msk [vmem:[#allocation2 + $0x50] sm:$0xff] %vm572_vm0, %v6814_v41 }
  0x58   : > { %584 = vst.msk [vmem:[#allocation2 + $0x58] sm:$0xff] %vm572_vm0, %v6814_v41 }
  0x59   : > { %585 = vst.msk [vmem:[#allocation2 + $0x60] sm:$0xff] %vm572_vm0, %v6814_v41 }
  0x5a   : > { %586 = vst.msk [vmem:[#allocation2 + $0x68] sm:$0xff] %vm572_vm0, %v6814_v41 }
  0x5b   : > { %587 = vst.msk [vmem:[#allocation2 + $0x70] sm:$0xff] %vm572_vm0, %v6814_v41 }
  0x5c   : > { %588 = vst.msk [vmem:[#allocation2 + $0x78] sm:$0xff] %vm572_vm0, %v6814_v41 }
  0x5d   : > { %589 = vst.msk [vmem:[#allocation2 + $0x80] sm:$0xff] %vm572_vm0, %v6814_v41 }
  0x5e   : > { %590 = vst.msk [vmem:[#allocation2 + $0x88] sm:$0xff] %vm572_vm0, %v6814_v41 }
  0x5f   : > { %591 = vst.msk [vmem:[#allocation2 + $0x90] sm:$0xff] %vm572_vm0, %v6814_v41 }
  0x60   : > { %592 = vst.msk [vmem:[#allocation2 + $0x98] sm:$0xff] %vm572_vm0, %v6814_v41 }
  0x61   : > { %593 = vst.msk [vmem:[#allocation2 + $0xa0] sm:$0xff] %vm572_vm0, %v6814_v41 }
  0x62   : > { %594 = vst.msk [vmem:[#allocation2 + $0xa8] sm:$0xff] %vm572_vm0, %v6814_v41 }
  0x63   : > { %916 = vmatmul.bf16.gmra.mxu0 %v6205_v54  ;;  %976 = vmatmul.bf16.gmra.mxu3 %v6217_v55  ;;  %595 = vst.msk [vmem:[#allocation2 + $0xb0] sm:$0xff] %vm572_vm0, %v6814_v41 }
  0x64   : > { %1005 = vmatmul.bf16.gmra.mxu1 %v6205_v54  ;;  %596 = vst.msk [vmem:[#allocation2 + $0xb8] sm:$0xff] %vm572_vm0, %v6814_v41 }
  0x65   : > { %597 = vst.msk [vmem:[#allocation2 + $0xc0] sm:$0xff] %vm572_vm0, %v6814_v41 }
  0x66   : > { %598 = vst.msk [vmem:[#allocation2 + $0xc8] sm:$0xff] %vm572_vm0, %v6814_v41 }
  0x67   : > { %599 = vst.msk [vmem:[#allocation2 + $0xd0] sm:$0xff] %vm572_vm0, %v6814_v41 }
  0x68   : > { %600 = vst.msk [vmem:[#allocation2 + $0xd8] sm:$0xff] %vm572_vm0, %v6814_v41 }
  0x69   : > { %601 = vst.msk [vmem:[#allocation2 + $0xe0] sm:$0xff] %vm572_vm0, %v6814_v41 }
  0x6a   : > { %602 = vst.msk [vmem:[#allocation2 + $0xe8] sm:$0xff] %vm572_vm0, %v6814_v41 }
  0x6b   : > { %603 = vst.msk [vmem:[#allocation2 + $0xf0] sm:$0xff] %vm572_vm0, %v6814_v41 }
  0x6c   : > { %604 = vst.msk [vmem:[#allocation2 + $0xf8] sm:$0xff] %vm572_vm0, %v6814_v41 }
  0x73   : > { %921 = vmatmul.bf16.gmra.mxu0 %v6206_v56  ;;  %1050 = vmatmul.bf16.vlgmr.msrb.gmra.mxu3 %v6214_v49 }
  0x74   : > { %1010 = vmatmul.bf16.gmra.mxu1 %v6206_v56 }
  0x83   : > { %926 = vmatmul.bf16.gmra.mxu0 %v6207_v57  ;;  %1055 = vmatmul.bf16.gmra.mxu3 %v6215_v51 }
  0x84   : > { %1015 = vmatmul.bf16.gmra.mxu1 %v6207_v57 }
  0x93   : > { %931 = vmatmul.bf16.gmra.mxu0 %v6208_v58  ;;  %1060 = vmatmul.bf16.gmra.mxu3 %v6216_v53 }
  0x94   : > { %1020 = vmatmul.bf16.gmra.mxu1 %v6208_v58 }
  0xa3   : > { %936 = vmatmul.bf16.gmra.mxu0 %v6209_v59  ;;  %1065 = vmatmul.bf16.gmra.mxu3 %v6217_v55 }
  0xa4   : > { %1025 = vmatmul.bf16.gmra.mxu1 %v6209_v59 }
  0xb0   : > { %v6971_v61 = vpop.f32.mrf.mxu0 }
  0xb1   : > { %v6973_v62 = vpop.f32.mrf.mxu1 }
  0xb2   : > { %v1103_v63 = vmax.f32 %v6971_v61, %v6973_v62 }
  0xb3   : > { %941 = vmatmul.bf16.gmra.mxu0 %v6210_v60 }
  0xb4   : > { %1030 = vmatmul.bf16.gmra.mxu1 %v6210_v60  ;;  %1104 = vmax.xlane.f32.xlu1 %v1103_v63  ;;  %v6815_v60 = vmov 0  }
  0xb5   : > { %6327 = vset.pattern.permute.xlu1 %v6815_v60  ;;  %6326 = vset.pattern.permute.xlu2 %v6815_v60 }
  0xb6   : > { %v6977_v0 = vpop.f32.mrf.mxu3  ;;  %6328 = vset.pattern.permute.xlu0 %v6815_v60 }
  0xb8   : > { %v6979_v1 = vpop.f32.mrf.mxu0 }
  0xb9   : > { %v6981_v2 = vpop.f32.mrf.mxu1 }
  0xba   : > { %v1106_v3 = vmax.f32 %v6979_v1, %v6981_v2 }
  0xbc   : > { %1107 = vmax.xlane.f32.xlu0 %v1106_v3 }
  0xbe   : > { %v6985_v4 = vpop.f32.mrf.mxu3 }
  0xc0   : > { %v6987_v5 = vpop.f32.mrf.mxu0 }
  0xc1   : > { %v6990_v7 = vpop.f32.mrf.mxu1 }
  0xc2   : > { %v1109_v8 = vmax.f32 %v6987_v5, %v6990_v7 }
  0xc3   : > { %946 = vmatmul.bf16.gmra.mxu0 %v6211_v6 }
  0xc4   : > { %1110 = vmax.xlane.f32.xlu2 %v1109_v8  ;;  %1035 = vmatmul.bf16.gmra.mxu1 %v6211_v6  ;;  %v6816_v8 = vmov 0.0  }
  0xc5   : > { %605 = vst.msk [vmem:[#allocation3] sm:$0xff] %vm572_vm0, %v6816_v8 }
  0xc6   : > { %v6994_v9 = vpop.f32.mrf.mxu3  ;;  %606 = vst.msk [vmem:[#allocation3 + $0x8] sm:$0xff] %vm572_vm0, %v6816_v8 }
  0xc7   : > { %607 = vst.msk [vmem:[#allocation3 + $0x10] sm:$0xff] %vm572_vm0, %v6816_v8 }
  0xc8   : > { %v6996_v10 = vpop.f32.mrf.mxu0  ;;  %608 = vst.msk [vmem:[#allocation3 + $0x18] sm:$0xff] %vm572_vm0, %v6816_v8 }
  0xc9   : > { %v6998_v11 = vpop.f32.mrf.mxu1  ;;  %609 = vst.msk [vmem:[#allocation3 + $0x20] sm:$0xff] %vm572_vm0, %v6816_v8 }
  0xca   : > { %v1112_v12 = vmax.f32 %v6996_v10, %v6998_v11  ;;  %610 = vst.msk [vmem:[#allocation3 + $0x28] sm:$0xff] %vm572_vm0, %v6816_v8 }
  0xcb   : > { %611 = vst.msk [vmem:[#allocation3 + $0x30] sm:$0xff] %vm572_vm0, %v6816_v8 }
  0xcc   : > { %1113 = vmax.xlane.f32.xlu1 %v1112_v12  ;;  %612 = vst.msk [vmem:[#allocation3 + $0x38] sm:$0xff] %vm572_vm0, %v6816_v8 }
  0xcd   : > { %613 = vst.msk [vmem:[#allocation3 + $0x40] sm:$0xff] %vm572_vm0, %v6816_v8 }
  0xce   : > { %v7002_v13 = vpop.f32.mrf.mxu3  ;;  %614 = vst.msk [vmem:[#allocation3 + $0x48] sm:$0xff] %vm572_vm0, %v6816_v8 }
  0xcf   : > { %615 = vst.msk [vmem:[#allocation3 + $0x50] sm:$0xff] %vm572_vm0, %v6816_v8 }
  0xd0   : > { %v7004_v14 = vpop.f32.mrf.mxu0  ;;  %616 = vst.msk [vmem:[#allocation3 + $0x58] sm:$0xff] %vm572_vm0, %v6816_v8 }
  0xd1   : > { %v7007_v16 = vpop.f32.mrf.mxu1  ;;  %617 = vst.msk [vmem:[#allocation3 + $0x60] sm:$0xff] %vm572_vm0, %v6816_v8 }
  0xd2   : > { %v1115_v17 = vmax.f32 %v7004_v14, %v7007_v16  ;;  %618 = vst.msk [vmem:[#allocation3 + $0x68] sm:$0xff] %vm572_vm0, %v6816_v8 }
  0xd3   : > { %951 = vmatmul.bf16.gmra.mxu0 %v6212_v15  ;;  %619 = vst.msk [vmem:[#allocation3 + $0x70] sm:$0xff] %vm572_vm0, %v6816_v8 }
  0xd4   : > { %1116 = vmax.xlane.f32.xlu2 %v1115_v17  ;;  %1040 = vmatmul.bf16.gmra.mxu1 %v6212_v15  ;;  %v7177_v17 = vld [vmem:[#allocation2] sm:$0xff]  ;;  %620 = vst.msk [vmem:[#allocation3 + $0x78] sm:$0xff] %vm572_vm0, %v6816_v8 }
  0xd5   : > { %621 = vst.msk [vmem:[#allocation3 + $0x80] sm:$0xff] %vm572_vm0, %v6816_v8 }
  0xd6   : > { %v7011_v18 = vpop.f32.mrf.mxu3  ;;  %622 = vst.msk [vmem:[#allocation3 + $0x88] sm:$0xff] %vm572_vm0, %v6816_v8 }
  0xd7   : > { %623 = vst.msk [vmem:[#allocation3 + $0x90] sm:$0xff] %vm572_vm0, %v6816_v8 }
  0xd8   : > { %v7013_v19 = vpop.f32.mrf.mxu0  ;;  %624 = vst.msk [vmem:[#allocation3 + $0x98] sm:$0xff] %vm572_vm0, %v6816_v8 }
  0xd9   : > { %v7015_v20 = vpop.f32.mrf.mxu1  ;;  %625 = vst.msk [vmem:[#allocation3 + $0xa0] sm:$0xff] %vm572_vm0, %v6816_v8 }
  0xda   : > { %v1118_v21 = vmax.f32 %v7013_v19, %v7015_v20  ;;  %626 = vst.msk [vmem:[#allocation3 + $0xa8] sm:$0xff] %vm572_vm0, %v6816_v8 }
  0xdb   : > { %627 = vst.msk [vmem:[#allocation3 + $0xb0] sm:$0xff] %vm572_vm0, %v6816_v8 }
  0xdc   : > { %1119 = vmax.xlane.f32.xlu0 %v1118_v21  ;;  %628 = vst.msk [vmem:[#allocation3 + $0xb8] sm:$0xff] %vm572_vm0, %v6816_v8 }
  0xdd   : > { %629 = vst.msk [vmem:[#allocation3 + $0xc0] sm:$0xff] %vm572_vm0, %v6816_v8 }
  0xde   : > { %v7019_v22 = vpop.f32.mrf.mxu3  ;;  %630 = vst.msk [vmem:[#allocation3 + $0xc8] sm:$0xff] %vm572_vm0, %v6816_v8 }
  0xdf   : > { %631 = vst.msk [vmem:[#allocation3 + $0xd0] sm:$0xff] %vm572_vm0, %v6816_v8 }
  0xe0   : > { %v7021_v23 = vpop.f32.mrf.mxu0  ;;  %632 = vst.msk [vmem:[#allocation3 + $0xd8] sm:$0xff] %vm572_vm0, %v6816_v8 }
  0xe1   : > { %v7023_v24 = vpop.f32.mrf.mxu1  ;;  %633 = vst.msk [vmem:[#allocation3 + $0xe0] sm:$0xff] %vm572_vm0, %v6816_v8 }
  0xe2   : > { %v1121_v25 = vmax.f32 %v7021_v23, %v7023_v24  ;;  %634 = vst.msk [vmem:[#allocation3 + $0xe8] sm:$0xff] %vm572_vm0, %v6816_v8 }
  0xe3   : > { %635 = vst.msk [vmem:[#allocation3 + $0xf0] sm:$0xff] %vm572_vm0, %v6816_v8 }
  0xe4   : > { %1122 = vmax.xlane.f32.xlu1 %v1121_v25  ;;  %636 = vst.msk [vmem:[#allocation3 + $0xf8] sm:$0xff] %vm572_vm0, %v6816_v8 }
  0xe6   : > { %v7027_v26 = vpop.f32.mrf.mxu3 }
  0xe8   : > { %v7029_v27 = vpop.f32.mrf.mxu0 }
  0xe9   : > { %v7031_v28 = vpop.f32.mrf.mxu1 }
  0xea   : > { %v1124_v29 = vmax.f32 %v7029_v27, %v7031_v28 }
  0xec   : > { %1125 = vmax.xlane.f32.xlu2 %v1124_v29 }
  0xee   : > { %v7035_v30 = vpop.f32.mrf.mxu3 }
  0xf0   : > { %v7037_v31 = vpop.f32.mrf.mxu0 }
  0xf1   : > { %v7039_v32 = vpop.f32.mrf.mxu1 }
  0xf2   : > { %v1127_v33 = vmax.f32 %v7037_v31, %v7039_v32 }
  0xf4   : > { %1128 = vmax.xlane.f32.xlu0 %v1127_v33 }
  0xf6   : > { %v7043_v34 = vpop.f32.mrf.mxu3 }
  0xf7   : > { %10481 = vst [vmem:[#allocation5_spill] sm:$0xff] %v7043_v34  ;;  %v1175_v37 = vmax.f32 %v6977_v0, %v7043_v34 }
  0xf8   : > { %v7045_v35 = vpop.f32.mrf.mxu0 }
  0xf9   : > { %v7047_v36 = vpop.f32.mrf.mxu1 }
  0xfa   : > { %v1130_v38 = vmax.f32 %v7045_v35, %v7047_v36 }
  0xfc   : > { %1176 = vmax.xlane.f32.xlu0 %v1175_v37  ;;  %1131 = vmax.xlane.f32.xlu2 %v1130_v38 }
  0xfe   : > { %v7053_v39 = vpop.f32.mrf.mxu3 }
  0xff   : > { %10482 = vst [vmem:[#allocation6_spill] sm:$0xff] %v7053_v39  ;;  %v1178_v43 = vmax.f32 %v6985_v4, %v7053_v39 }
 0x100   : > { %v7055_v40 = vpop.f32.mrf.mxu0 }
 0x101   : > { %10483 = vst [vmem:[#allocation7_spill] sm:$0xff] %v7055_v40  ;;  %v7059_v42 = vpop.f32.mrf.mxu1 }
 0x102   : > { %10484 = vst [vmem:[#allocation8_spill] sm:$0xff] %v7059_v42  ;;  %v1133_v44 = vmax.f32 %v7055_v40, %v7059_v42 }
 0x104   : > { %1179 = vmax.xlane.f32.xlu0 %v1178_v43  ;;  %1134 = vmax.xlane.f32.xlu1 %v1133_v44  ;;  %v7208_v43 = vld [vmem:[#allocation2 + $0x8] sm:$0xff] }
 0x106   : > { %v7075_v45 = vpop.f32.mrf.mxu3 }
 0x107   : > { %10485 = vst [vmem:[#allocation9_spill] sm:$0xff] %v7075_v45  ;;  %v1181_v48 = vmax.f32 %v6994_v9, %v7075_v45 }
 0x108   : > { %v7081_v46 = vpop.f32.mrf.mxu0 }
 0x109   : > { %10486 = vst [vmem:[#allocation10_spill] sm:$0xff] %v7081_v46  ;;  %v7085_v47 = vpop.f32.mrf.mxu1 }
 0x10a   : > { %10487 = vst [vmem:[#allocation11_spill] sm:$0xff] %v7085_v47  ;;  %v1136_v49 = vmax.f32 %v7081_v46, %v7085_v47 }
 0x10c   : > { %1182 = vmax.xlane.f32.xlu1 %v1181_v48  ;;  %1137 = vmax.xlane.f32.xlu2 %v1136_v49 }
 0x10e   : > { %v7101_v50 = vpop.f32.mrf.mxu3 }
 0x10f   : > { %10488 = vst [vmem:[#allocation12_spill] sm:$0xff] %v7101_v50  ;;  %v1184_v53 = vmax.f32 %v7002_v13, %v7101_v50 }
 0x110   : > { %v7107_v51 = vpop.f32.mrf.mxu0 }
 0x111   : > { %10489 = vst [vmem:[#allocation13_spill] sm:$0xff] %v7107_v51  ;;  %v7111_v52 = vpop.f32.mrf.mxu1 }
 0x112   : > { %10490 = vst [vmem:[#allocation14_spill] sm:$0xff] %v7111_v52  ;;  %v1139_v58 = vmax.f32 %v7107_v51, %v7111_v52  ;;  %v7346_v52 = vld [vmem:[#allocation2 + $0xc0] sm:$0xff] }
 0x113   : > { %10517 = vst [vmem:[#allocation41_spill] sm:$0xff] %v7346_v52 }
 0x114   : > { %1185 = vmax.xlane.f32.xlu1 %v1184_v53 }
 0x116   : > { %v7125_v54 = vpop.f32.mrf.mxu3 }
 0x117   : > { %10491 = vst [vmem:[#allocation15_spill] sm:$0xff] %v7125_v54  ;;  %v1187_v55 = vmax.f32 %v7011_v18, %v7125_v54 }
 0x118   : > { %v7133_v56 = vpop.f32.mrf.mxu0 }
 0x119   : > { %10492 = vst [vmem:[#allocation16_spill] sm:$0xff] %v7133_v56  ;;  %v7137_v57 = vpop.f32.mrf.mxu1  ;;  %1188 = vmax.xlane.f32.xlu2 %v1187_v55 }
 0x11a   : > { %10493 = vst [vmem:[#allocation17_spill] sm:$0xff] %v7137_v57  ;;  %v1142_v59 = vmax.f32 %v7133_v56, %v7137_v57  ;;  %v7424_v57 = vld [vmem:[#allocation2 + $0x60] sm:$0xff]  ;;  %v7426_v56 = vld [vmem:[#allocation2 + $0x68] sm:$0xff] }
 0x11b   : > { %10531 = vst [vmem:[#allocation55_spill] sm:$0xff] %v7424_v57 }
 0x11c   : > { %1140 = vmax.xlane.f32.xlu1 %v1139_v58  ;;  %1143 = vmax.xlane.f32.xlu0 %v1142_v59  ;;  %v7237_v59 = vld [vmem:[#allocation2 + $0x10] sm:$0xff]  ;;  %10532 = vst [vmem:[#allocation56_spill] sm:$0xff] %v7426_v56 }
 0x11e   : > { %v7153_v63 = vpop.f32.mrf.mxu3 }
 0x11f   : > { %10494 = vst [vmem:[#allocation18_spill] sm:$0xff] %v7153_v63  ;;  %v1190_v3 = vmax.f32 %v7019_v22, %v7153_v63 }
 0x120   : > { %v7161_v6 = vpop.f32.mrf.mxu0 }
 0x121   : > { %10495 = vst [vmem:[#allocation19_spill] sm:$0xff] %v7161_v6  ;;  %v7165_v12 = vpop.f32.mrf.mxu1  ;;  %1191 = vmax.xlane.f32.xlu2 %v1190_v3 }
 0x122   : > { %10496 = vst [vmem:[#allocation20_spill] sm:$0xff] %v7165_v12  ;;  %v1145_v15 = vmax.f32 %v7161_v6, %v7165_v12  ;;  %v7316_v6 = vld [vmem:[#allocation2 + $0x38] sm:$0xff] }
 0x123   : > { %10509 = vst [vmem:[#allocation33_spill] sm:$0xff] %v7316_v6 }
 0x124   : > { %1146 = vmax.xlane.f32.xlu1 %v1145_v15 }
 0x126   : > { %v7181_v21 = vpop.f32.mrf.mxu3 }
 0x127   : > { %10497 = vst [vmem:[#allocation21_spill] sm:$0xff] %v7181_v21  ;;  %v1105_v25 = vpop.xlane.xlu1 %1104  ;;  %v1193_v29 = vmax.f32 %v7027_v26, %v7181_v21 }
 0x128   : > { %v7190_v33 = vmax.f32 %v7177_v17, %v1105_v25  ;;  %v7192_v37 = vpop.f32.mrf.mxu0  ;;  %v7261_v25 = vld [vmem:[#allocation2 + $0x18] sm:$0xff] }
 0x129   : > { %10498 = vst [vmem:[#allocation22_spill] sm:$0xff] %v7192_v37  ;;  %v7196_v38 = vpop.f32.mrf.mxu1  ;;  %1194 = vmax.xlane.f32.xlu2 %v1193_v29 }
 0x12a   : > { %10499 = vst [vmem:[#allocation23_spill] sm:$0xff] %v7196_v38  ;;  %v1148_v63 = vmax.f32 %v7192_v37, %v7196_v38 }
 0x12b   : > { %2690 = vst.msk [vmem:[#allocation2] sm:$0xff] %vm572_vm0, %v7190_v33 }
 0x12e   : > { %v7344_v39 = vpop.f32.mrf.mxu3 }
 0x12f   : > { %v1108_v44 = vpop.xlane.xlu0 %1107  ;;  %10516 = vst [vmem:[#allocation40_spill] sm:$0xff] %v7344_v39  ;;  %v1196_v37 = vmax.f32 %v7035_v30, %v7344_v39 }
 0x130   : > { %v7217_v48 = vmax.f32 %v7208_v43, %v1108_v44  ;;  %v7219_v49 = vpop.f32.mrf.mxu0 }
 0x131   : > { %10500 = vst [vmem:[#allocation24_spill] sm:$0xff] %v7219_v49  ;;  %v7223_v53 = vpop.f32.mrf.mxu1 }
 0x132   : > { %10501 = vst [vmem:[#allocation25_spill] sm:$0xff] %v7223_v53  ;;  %v1151_v58 = vmax.f32 %v7219_v49, %v7223_v53  ;;  %v6213_v49 = vld [vmem:[%s6954_s13 + $0x58] sm:$0xff] }
 0x133   : > { %2691 = vst.msk [vmem:[#allocation2 + $0x8] sm:$0xff] %vm572_vm0, %v7217_v48  ;;  %956 = vmatmul.bf16.gmra.mxu0 %v6213_v49  ;;  %1045 = vmatmul.bf16.gmra.mxu1 %v6213_v49  ;;  %v7329_v49 = vld [vmem:[#allocation2 + $0x40] sm:$0xff] }
 0x134   : > { %1152 = vmax.xlane.f32.xlu0 %v1151_v58  ;;  %v7293_v58 = vld [vmem:[#allocation2 + $0x28] sm:$0xff]  ;;  %10513 = vst [vmem:[#allocation37_spill] sm:$0xff] %v7329_v49 }
 0x135   : > { %10503 = vst [vmem:[#allocation27_spill] sm:$0xff] %v7293_v58 }
 0x137   : > { %v1111_v60 = vpop.xlane.xlu2 %1110 }
 0x138   : > { %v7246_v3 = vmax.f32 %v7237_v59, %v1111_v60  ;;  %v7283_v60 = vld [vmem:[#allocation2 + $0x20] sm:$0xff]  ;;  %v7291_v55 = vpop.f32.mrf.mxu0 }
 0x139   : > { %10502 = vst [vmem:[#allocation26_spill] sm:$0xff] %v7291_v55  ;;  %v7295_v41 = vpop.f32.mrf.mxu1 }
 0x13a   : > { %2692 = vst.msk [vmem:[#allocation2 + $0x10] sm:$0xff] %vm572_vm0, %v7246_v3 }
 0x13b   : > { %10504 = vst [vmem:[#allocation28_spill] sm:$0xff] %v7295_v41 }
 0x13d   : > { %1334 = vperm.xlu1 %6327, %v7217_v48  }
 0x13f   : > { %v1114_v29 = vpop.xlane.xlu1 %1113 }
 0x140   : > { %v7270_v44 = vmax.f32 %v7261_v25, %v1114_v29  ;;  %v7304_v45 = vpop.f32.mrf.mxu0 }
 0x141   : > { %1329 = vperm.xlu2 %6326, %v7190_v33   ;;  %10506 = vst [vmem:[#allocation30_spill] sm:$0xff] %v7304_v45  ;;  %v7306_v53 = vpop.f32.mrf.mxu1 }
 0x142   : > { %2693 = vst.msk [vmem:[#allocation2 + $0x18] sm:$0xff] %vm572_vm0, %v7270_v44  ;;  %v1157_v39 = vmax.f32 %v7304_v45, %v7306_v53  ;;  %v6240_v45 = vld [vmem:[%s7392_s16 + $0x30] sm:$0xff] }
 0x143   : > { %10507 = vst [vmem:[#allocation31_spill] sm:$0xff] %v7306_v53 }
 0x147   : > { %v1117_v29 = vpop.xlane.xlu2 %1116 }
 0x148   : > { %v7286_v15 = vmax.f32 %v7283_v60, %v1117_v29  ;;  %1339 = vperm.xlu0 %6328, %v7246_v3   ;;  %v7302_v29 = vld [vmem:[#allocation2 + $0x30] sm:$0xff]  ;;  %v7323_v40 = vpop.f32.mrf.mxu0 }
 0x149   : > { %10505 = vst [vmem:[#allocation29_spill] sm:$0xff] %v7302_v29  ;;  %v7321_v42 = vpop.f32.mrf.mxu1 }
 0x14a   : > { %2694 = vst.msk [vmem:[#allocation2 + $0x20] sm:$0xff] %vm572_vm0, %v7286_v15 }
 0x14b   : > { %10511 = vst [vmem:[#allocation35_spill] sm:$0xff] %v7321_v42 }
 0x14c   : > { %10512 = vst [vmem:[#allocation36_spill] sm:$0xff] %v7323_v40 }
 0x14f   : > { %v1120_v21 = vpop.xlane.xlu0 %1119 }
 0x150   : > { %v7298_v8 = vmax.f32 %v7293_v58, %v1120_v21  ;;  %v1154_v21 = vmax.f32 %v7291_v55, %v7295_v41  ;;  %v7342_v34 = vpop.f32.mrf.mxu0  ;;  %v7348_v41 = vld [vmem:[#allocation2 + $0x48] sm:$0xff] }
 0x151   : > { %10515 = vst [vmem:[#allocation39_spill] sm:$0xff] %v7342_v34 }
 0x152   : > { %2695 = vst.msk [vmem:[#allocation2 + $0x28] sm:$0xff] %vm572_vm0, %v7298_v8 }
 0x153   : > { %10518 = vst [vmem:[#allocation42_spill] sm:$0xff] %v7348_v41 }
 0x157   : > { %v1123_v50 = vpop.xlane.xlu1 %1122 }
 0x158   : > { %v7310_v12 = vmax.f32 %v7302_v29, %v1123_v50  ;;  %v7340_v50 = vpop.f32.mrf.mxu1 }
 0x159   : > { %10514 = vst [vmem:[#allocation38_spill] sm:$0xff] %v7340_v50 }
 0x15a   : > { %10508 = vst [vmem:[#allocation32_spill] sm:$0xff] %v7310_v12 }
 0x15b   : > { %2696 = vst.msk [vmem:[#allocation2 + $0x30] sm:$0xff] %vm572_vm0, %v7310_v12 }
 0x15f   : > { %v1126_v47 = vpop.xlane.xlu2 %1125 }
 0x160   : > { %v7319_v46 = vmax.f32 %v7316_v6, %v1126_v47 }
 0x162   : > { %10510 = vst [vmem:[#allocation34_spill] sm:$0xff] %v7319_v46 }
 0x163   : > { %2697 = vst.msk [vmem:[#allocation2 + $0x38] sm:$0xff] %vm572_vm0, %v7319_v46 }
 0x167   : > { %v1129_v54 = vpop.xlane.xlu0 %1128  ;;  %1155 = vmax.xlane.f32.xlu1 %v1154_v21 }
 0x168   : > { %v7334_v47 = vmax.f32 %v7329_v49, %v1129_v54  ;;  %v1163_v54 = vmax.f32 %v7342_v34, %v7340_v50 }
 0x16a   : > { %2698 = vst.msk [vmem:[#allocation2 + $0x40] sm:$0xff] %vm572_vm0, %v7334_v47  ;;  %1149 = vmax.xlane.f32.xlu2 %v1148_v63 }
 0x16f   : > { %v1177_v21 = vpop.xlane.xlu0 %1176  ;;  %v1132_v55 = vpop.xlane.xlu2 %1131 }
 0x170   : > { %v7353_v38 = vmax.f32 %v7346_v52, %v1177_v21  ;;  %v7356_v63 = vmax.f32 %v7348_v41, %v1132_v55  ;;  %v7368_v55 = vld [vmem:[#allocation2 + $0xc8] sm:$0xff]  ;;  %v7370_v21 = vld [vmem:[#allocation2 + $0x50] sm:$0xff]  ;;  %v6238_v41 = vld [vmem:[%s7392_s16 + $0x20] sm:$0xff] }
 0x171   : > { %10521 = vst [vmem:[#allocation45_spill] sm:$0xff] %v7368_v55 }
 0x172   : > { %10519 = vst [vmem:[#allocation43_spill] sm:$0xff] %v7353_v38  ;;  %1164 = vmax.xlane.f32.xlu0 %v1163_v54  ;;  %1197 = vmax.xlane.f32.xlu2 %v1196_v37  ;;  %v7384_v37 = vld [vmem:[#allocation2 + $0xd0] sm:$0xff]  ;;  %v7386_v54 = vld [vmem:[#allocation2 + $0x58] sm:$0xff] }
 0x173   : > { %10520 = vst [vmem:[#allocation44_spill] sm:$0xff] %v7356_v63 }
 0x174   : > { %2714 = vst.msk [vmem:[#allocation2 + $0xc0] sm:$0xff] %vm572_vm0, %v7353_v38 }
 0x175   : > { %2699 = vst.msk [vmem:[#allocation2 + $0x48] sm:$0xff] %vm572_vm0, %v7356_v63 }
 0x176   : > { %10522 = vst [vmem:[#allocation46_spill] sm:$0xff] %v7370_v21 }
 0x177   : > { %v1180_v49 = vpop.xlane.xlu0 %1179  ;;  %v1135_v52 = vpop.xlane.xlu1 %1134  ;;  %10524 = vst [vmem:[#allocation48_spill] sm:$0xff] %v7384_v37 }
 0x178   : > { %v7375_v34 = vmax.f32 %v7368_v55, %v1180_v49  ;;  %v7378_v50 = vmax.f32 %v7370_v21, %v1135_v52  ;;  %10525 = vst [vmem:[#allocation49_spill] sm:$0xff] %v7386_v54  ;;  %v6241_v21 = vld [vmem:[%s7392_s16 + $0x38] sm:$0xff] }
 0x179   : > { %2448 = vmatpush.bf16.msra.mxu2 %v6241_v21  ;;  %6290 = vmatpush.bf16.msra.mxu3 %v6241_v21 }
 0x17a   : > { %10523 = vst [vmem:[#allocation47_spill] sm:$0xff] %v7375_v34  ;;  %1158 = vmax.xlane.f32.xlu2 %v1157_v39 }
 0x17b   : > { %2715 = vst.msk [vmem:[#allocation2 + $0xc8] sm:$0xff] %vm572_vm0, %v7375_v34 }
 0x17c   : > { %2700 = vst.msk [vmem:[#allocation2 + $0x50] sm:$0xff] %vm572_vm0, %v7378_v50 }
 0x17d   : > { %2449 = vmatpush.bf16.msra.mxu2 %v6240_v45  ;;  %6291 = vmatpush.bf16.msra.mxu3 %v6240_v45  ;;  %v7444_v45 = vld [vmem:[#allocation2 + $0xe8] sm:$0xff] }
 0x17e   : > { %10534 = vst [vmem:[#allocation58_spill] sm:$0xff] %v7444_v45 }
 0x17f   : > { %v1183_v52 = vpop.xlane.xlu1 %1182  ;;  %v1138_v49 = vpop.xlane.xlu2 %1137 }
 0x180   : > { %v7395_v55 = vmax.f32 %v7384_v37, %v1183_v52  ;;  %v7398_v39 = vmax.f32 %v7386_v54, %v1138_v49  ;;  %1344 = vperm.xlu1 %6327, %v7270_v44   ;;  %v7408_v52 = vld [vmem:[#allocation2 + $0xd8] sm:$0xff]  ;;  %v6239_v54 = vld [vmem:[%s7392_s16 + $0x28] sm:$0xff]  ;;  %v7418_v37 = vld [vmem:[#allocation2 + $0xe0] sm:$0xff] }
 0x181   : > { %10527 = vst [vmem:[#allocation51_spill] sm:$0xff] %v7408_v52  ;;  %2450 = vmatpush.bf16.msra.mxu2 %v6239_v54  ;;  %6292 = vmatpush.bf16.msra.mxu3 %v6239_v54 }
 0x182   : > { %10526 = vst [vmem:[#allocation50_spill] sm:$0xff] %v7395_v55 }
 0x183   : > { %2716 = vst.msk [vmem:[#allocation2 + $0xd0] sm:$0xff] %vm572_vm0, %v7395_v55 }
 0x184   : > { %2701 = vst.msk [vmem:[#allocation2 + $0x58] sm:$0xff] %vm572_vm0, %v7398_v39 }
 0x185   : > { %10529 = vst [vmem:[#allocation53_spill] sm:$0xff] %v7418_v37  ;;  %2451 = vmatpush.bf16.msra.mxu2 %v6238_v41  ;;  %6293 = vmatpush.bf16.msra.mxu3 %v6238_v41  ;;  %v6237_v41 = vld [vmem:[%s7392_s16 + $0x18] sm:$0xff] }
 0x186   : > { %1359 = vperm.xlu0 %6328, %v7310_v12  }
 0x187   : > { %v1186_v49 = vpop.xlane.xlu1 %1185 }
 0x188   : > { %v7414_v53 = vmax.f32 %v7408_v52, %v1186_v49 }
 0x189   : > { %2452 = vmatpush.bf16.msra.mxu2 %v6237_v41  ;;  %6294 = vmatpush.bf16.msra.mxu3 %v6237_v41  ;;  %v7466_v41 = vld [vmem:[#allocation2 + $0xf0] sm:$0xff] }
 0x18a   : > { %10528 = vst [vmem:[#allocation52_spill] sm:$0xff] %v7414_v53 }
 0x18b   : > { %2717 = vst.msk [vmem:[#allocation2 + $0xd8] sm:$0xff] %vm572_vm0, %v7414_v53 }
 0x18c   : > { %v1189_v21 = vpop.xlane.xlu2 %1188  ;;  %10538 = vst [vmem:[#allocation62_spill] sm:$0xff] %v7466_v41 }
 0x18d   : > { %v7422_v51 = vmax.f32 %v7418_v37, %v1189_v21  ;;  %v7452_v37 = vld [vmem:[#allocation2 + $0x70] sm:$0xff] }
 0x18e   : > { %1364 = vperm.xlu0 %6328, %v7319_v46   ;;  %10536 = vst [vmem:[#allocation60_spill] sm:$0xff] %v7452_v37 }
 0x18f   : > { %10530 = vst [vmem:[#allocation54_spill] sm:$0xff] %v7422_v51  ;;  %v1141_v49 = vpop.xlane.xlu1 %1140  ;;  %v1144_v52 = vpop.xlane.xlu0 %1143 }
 0x190   : > { %2718 = vst.msk [vmem:[#allocation2 + $0xe0] sm:$0xff] %vm572_vm0, %v7422_v51  ;;  %v7434_v54 = vmax.f32 %v7424_v57, %v1141_v49  ;;  %v7437_v21 = vmax.f32 %v7426_v56, %v1144_v52  ;;  %v6236_v57 = vld [vmem:[%s7392_s16 + $0x10] sm:$0xff] }
 0x191   : > { %2453 = vmatpush.bf16.msra.mxu2 %v6236_v57  ;;  %6295 = vmatpush.bf16.msra.mxu3 %v6236_v57  ;;  %v7479_v57 = vld [vmem:[#allocation2 + $0x80] sm:$0xff] }
 0x192   : > { %10533 = vst [vmem:[#allocation57_spill] sm:$0xff] %v7434_v54  ;;  %1349 = vperm.xlu2 %6326, %v7286_v15  }
 0x193   : > { %2702 = vst.msk [vmem:[#allocation2 + $0x60] sm:$0xff] %vm572_vm0, %v7434_v54 }
 0x194   : > { %2703 = vst.msk [vmem:[#allocation2 + $0x68] sm:$0xff] %vm572_vm0, %v7437_v21  ;;  %v1192_v49 = vpop.xlane.xlu2 %1191 }
 0x195   : > { %v7450_v52 = vmax.f32 %v7444_v45, %v1192_v49  ;;  %v6235_v49 = vld [vmem:[%s7392_s16 + $0x8] sm:$0xff]  ;;  %v6234_v45 = vld [vmem:[%s7392_s16] sm:$0xff]  ;;  %10540 = vst [vmem:[#allocation64_spill] sm:$0xff] %v7479_v57 }
 0x196   : > { %1449 = vperm.xlu0 %6328, %v7353_v38   ;;  %2454 = vmatpush.bf16.msra.mxu2 %v6235_v49 }
 0x197   : > { %10535 = vst [vmem:[#allocation59_spill] sm:$0xff] %v7450_v52  ;;  %v1147_v56 = vpop.xlane.xlu1 %1146  ;;  %6296 = vmatpush.bf16.msra.mxu3 %v6235_v49 }
 0x198   : > { %2719 = vst.msk [vmem:[#allocation2 + $0xe8] sm:$0xff] %vm572_vm0, %v7450_v52  ;;  %v7461_v6 = vmax.f32 %v7452_v37, %v1147_v56 }
 0x19a   : > { %10537 = vst [vmem:[#allocation61_spill] sm:$0xff] %v7461_v6  ;;  %1374 = vperm.xlu2 %6326, %v7356_v63   ;;  %2455 = vmatpush.bf16.msra.mxu2 %v6234_v45 }
 0x19b   : > { %2704 = vst.msk [vmem:[#allocation2 + $0x70] sm:$0xff] %vm572_vm0, %v7461_v6  ;;  %6297 = vmatpush.bf16.msra.mxu3 %v6234_v45 }
 0x19c   : > { %v1195_v38 = vpop.xlane.xlu2 %1194 }
 0x19d   : > { %v7470_v46 = vmax.f32 %v7466_v41, %v1195_v38  ;;  %v1160_v38 = vmax.f32 %v7323_v40, %v7321_v42 }
 0x19f   : > { %10539 = vst [vmem:[#allocation63_spill] sm:$0xff] %v7470_v46  ;;  %1479 = vperm.xlu0 %6328, %v7470_v46  }
 0x1a0   : > { %2720 = vst.msk [vmem:[#allocation2 + $0xf0] sm:$0xff] %vm572_vm0, %v7470_v46 }
 0x1a2   : > { %1459 = vperm.xlu2 %6326, %v7395_v55  }
 0x1a4   : > { %v1330_v56 = vpop.permute.xlu2 %1329 }
 0x1a5   : > { %v1487_v45 = vsub.f32 %v6971_v61, %v1330_v56  ;;  %v1488_v41 = vsub.f32 %v6973_v62, %v1330_v56 }
 0x1a7   : > { %v1153_v37 = vpop.xlane.xlu0 %1152 }
 0x1a8   : > { %v7484_v49 = vmax.f32 %v7479_v57, %v1153_v37 }
 0x1aa   : > { %1161 = vmax.xlane.f32.xlu1 %v1160_v38  ;;  %1389 = vperm.xlu2 %6326, %v7434_v54   ;;  %2706 = vst.msk [vmem:[#allocation2 + $0x80] sm:$0xff] %vm572_vm0, %v7484_v49 }
 0x1af   : > { %v1335_v46 = vpop.permute.xlu1 %1334 }
 0x1b0   : > { %v1489_v55 = vsub.f32 %v6979_v1, %v1335_v46  ;;  %v1490_v63 = vsub.f32 %v6981_v2, %v1335_v46 }
 0x1b2   : > { %v1551_v42 = vpack.c.bf16 %v1489_v55, %v1487_v45  ;;  %v1552_v40 = vpack.c.bf16 %v1490_v63, %v1488_v41  ;;  %1469 = vperm.xlu2 %6326, %v7422_v51   ;;  %v7504_v41 = vld [vmem:[#allocation2 + $0x88] sm:$0xff]  ;;  %v7546_v51 = vld [vmem:[#allocation2 + $0x90] sm:$0xff] }
 0x1b3   : > { %10544 = vst [vmem:[#allocation68_spill] sm:$0xff] %v7504_v41 }
 0x1b4   : > { %v1583_v37 = vunpack.c.l.bf16 %v1551_v42  ;;  %v1584_v38 = vunpack.c.l.bf16 %v1552_v40  ;;  %v1585_v57 = vunpack.c.h.bf16 %v1551_v42  ;;  %v1586_v54 = vunpack.c.h.bf16 %v1552_v40  ;;  %10552 = vst [vmem:[#allocation76_spill] sm:$0xff] %v7546_v51 }
 0x1b6   : > { %v1647_v12 = vmul.f32 1.442695, %v1583_v37  ;;  %v1649_v29 = vmul.f32 1.442695, %v1584_v38  ;;  %v1651_v6 = vmul.f32 1.442695, %v1585_v57 }
 0x1b7   : > { %v1653_v58 = vmul.f32 1.442695, %v1586_v54  ;;  %v7502_v54 = vpop.f32.mrf.mxu1  ;;  %v7513_v38 = vld [vmem:[#allocation2 + $0x78] sm:$0xff] }
 0x1b8   : > { %6334 = vpow2.f32 %v1647_v12  ;;  %10543 = vst [vmem:[#allocation67_spill] sm:$0xff] %v7502_v54 }
 0x1b9   : > { %6336 = vpow2.f32 %v1649_v29  ;;  %10546 = vst [vmem:[#allocation70_spill] sm:$0xff] %v7513_v38 }
 0x1ba   : > { %6338 = vpow2.f32 %v1651_v6  ;;  %1474 = vperm.xlu2 %6326, %v7450_v52  }
 0x1bb   : > { %6340 = vpow2.f32 %v1653_v58  ;;  %v7500_v58 = vpop.f32.mrf.mxu0 }
 0x1bc   : > { %10542 = vst [vmem:[#allocation66_spill] sm:$0xff] %v7500_v58 }
 0x1be   : > { %v6335_v61 = vpop.eup %6334 }
 0x1bf   : > { %v6337_v62 = vpop.eup %6336  ;;  %v7508_v57 = vpop.f32.mrf.mxu1 }
 0x1c0   : > { %v6339_v1 = vpop.eup %6338 }
 0x1c1   : > { %v6341_v2 = vpop.eup %6340  ;;  %v1775_v46 = vpack.c.bf16 %v6339_v1, %v6335_v61  ;;  %v1340_v61 = vpop.permute.xlu0 %1339 }
 0x1c2   : > { %v7495_v63 = vpack.c.bf16 %v6341_v2, %v6337_v62 }
 0x1c3   : > { %2456 = vmatmul.bf16.vlgmr.msra.gmra.mxu2 %v1775_v46  ;;  %1354 = vperm.xlu1 %6327, %v7298_v8   ;;  %v1871_v40 = vunpack.c.l.bf16 %v1775_v46  ;;  %v1873_v12 = vunpack.c.h.bf16 %v1775_v46  ;;  %v7506_v56 = vpop.f32.mrf.mxu0 }
 0x1c4   : > { %10541 = vst [vmem:[#allocation65_spill] sm:$0xff] %v7495_v63  ;;  %v1872_v42 = vunpack.c.l.bf16 %v7495_v63  ;;  %v1874_v6 = vunpack.c.h.bf16 %v7495_v63 }
 0x1c6   : > { %v1935_v55 = vadd.f32 %v1872_v42, %v1871_v40  ;;  %v1938_v29 = vadd.f32 %v1874_v6, %v1873_v12  ;;  %v7528_v42 = vld [vmem:[#allocation2 + $0xf8] sm:$0xff] }
 0x1c7   : > { %v7524_v46 = vpop.f32.mrf.mxu1  ;;  %10549 = vst [vmem:[#allocation73_spill] sm:$0xff] %v7528_v42 }
 0x1c8   : > { %10548 = vst [vmem:[#allocation72_spill] sm:$0xff] %v7524_v46 }
 0x1c9   : > { %1936 = vadd.xlane.f32.xlu0 %v1935_v55  ;;  %v7530_v55 = vld [vmem:[#allocation2 + $0xa0] sm:$0xff] }
 0x1ca   : > { %10550 = vst [vmem:[#allocation74_spill] sm:$0xff] %v7530_v55 }
 0x1cb   : > { %v7522_v2 = vpop.f32.mrf.mxu0 }
 0x1cc   : > { %10547 = vst [vmem:[#allocation71_spill] sm:$0xff] %v7522_v2  ;;  %v1172_v40 = vmax.f32 %v7522_v2, %v7524_v46 }
 0x1d1   : > { %1939 = vadd.xlane.f32.xlu0 %v1938_v29 }
 0x1da   : > { %v1156_v45 = vpop.xlane.xlu1 %1155 }
 0x1db   : > { %v7511_v37 = vmax.f32 %v7504_v41, %v1156_v45 }
 0x1dd   : > { %10545 = vst [vmem:[#allocation69_spill] sm:$0xff] %v7511_v37  ;;  %v1150_v62 = vpop.xlane.xlu2 %1149 }
 0x1de   : > { %2707 = vst.msk [vmem:[#allocation2 + $0x88] sm:$0xff] %vm572_vm0, %v7511_v37  ;;  %v7518_v1 = vmax.f32 %v7513_v38, %v1150_v62  ;;  %v1491_v62 = vsub.f32 %v6987_v5, %v1340_v61 }
 0x1e0   : > { %2705 = vst.msk [vmem:[#allocation2 + $0x78] sm:$0xff] %vm572_vm0, %v7518_v1 }
 0x1e3   : > { %1173 = vmax.xlane.f32.xlu2 %v1172_v40  ;;  %v1166_v40 = vmax.f32 %v7500_v58, %v7502_v54 }
 0x1e5   : > { %v1198_v12 = vpop.xlane.xlu2 %1197  ;;  %v1165_v6 = vpop.xlane.xlu0 %1164 }
 0x1e6   : > { %v7533_v29 = vmax.f32 %v7528_v42, %v1198_v12  ;;  %v7536_v45 = vmax.f32 %v7530_v55, %v1165_v6  ;;  %v1492_v42 = vsub.f32 %v6990_v7, %v1340_v61 }
 0x1e8   : > { %10551 = vst [vmem:[#allocation75_spill] sm:$0xff] %v7533_v29 }
 0x1e9   : > { %2721 = vst.msk [vmem:[#allocation2 + $0xf8] sm:$0xff] %vm572_vm0, %v7533_v29 }
 0x1ea   : > { %2710 = vst.msk [vmem:[#allocation2 + $0xa0] sm:$0xff] %vm572_vm0, %v7536_v45 }
 0x1ed   : > { %1167 = vmax.xlane.f32.xlu1 %v1166_v40  ;;  %v1159_v12 = vpop.xlane.xlu2 %1158 }
 0x1ee   : > { %v7549_v41 = vmax.f32 %v7546_v51, %v1159_v12 }
 0x1f0   : > { %10553 = vst [vmem:[#allocation77_spill] sm:$0xff] %v7549_v41 }
 0x1f1   : > { %2708 = vst.msk [vmem:[#allocation2 + $0x90] sm:$0xff] %vm572_vm0, %v7549_v41 }
 0x1f2   : > { %v1345_v6 = vpop.permute.xlu1 %1344 }
 0x1f3   : > { %v1493_v52 = vsub.f32 %v6996_v10, %v1345_v6  ;;  %v1494_v55 = vsub.f32 %v6998_v11, %v1345_v6 }
 0x1f5   : > { %v1553_v38 = vpack.c.bf16 %v1493_v52, %v1491_v62  ;;  %v1554_v46 = vpack.c.bf16 %v1494_v55, %v1492_v42 }
 0x1f7   : > { %v1587_v2 = vunpack.c.l.bf16 %v1553_v38  ;;  %v1588_v40 = vunpack.c.l.bf16 %v1554_v46  ;;  %v1589_v54 = vunpack.c.h.bf16 %v1553_v38  ;;  %v1590_v58 = vunpack.c.h.bf16 %v1554_v46 }
 0x1f9   : > { %v1655_v12 = vmul.f32 1.442695, %v1587_v2  ;;  %v1657_v51 = vmul.f32 1.442695, %v1588_v40  ;;  %v1659_v63 = vmul.f32 1.442695, %v1589_v54  ;;  %v10554_v40 = vsub.f32 %v7177_v17, %v7190_v33 }
 0x1fa   : > { %v1661_v37 = vmul.f32 1.442695, %v1590_v58 }
 0x1fb   : > { %6342 = vpow2.f32 %v1655_v12  ;;  %v1263_v12 = vmul.f32 1.442695, %v10554_v40 }
 0x1fc   : > { %6344 = vpow2.f32 %v1657_v51  ;;  %v1360_v51 = vpop.permute.xlu0 %1359 }
 0x1fd   : > { %6346 = vpow2.f32 %v1659_v63  ;;  %v7567_v63 = vld [vmem:[#allocation2 + $0x98] sm:$0xff] }
 0x1fe   : > { %6348 = vpow2.f32 %v1661_v37  ;;  %v1350_v37 = vpop.permute.xlu2 %1349 }
 0x1ff   : > { %6350 = vpow2.f32 %v1263_v12  ;;  %v1495_v17 = vsub.f32 %v7004_v14, %v1350_v37  ;;  %v1807_v12 = vld [vmem:[#allocation3] sm:$0xff] }
 0x201   : > { %v6343_v5 = vpop.eup %6342 }
 0x202   : > { %v6345_v7 = vpop.eup %6344 }
 0x203   : > { %v6347_v61 = vpop.eup %6346 }
 0x204   : > { %v6349_v10 = vpop.eup %6348  ;;  %v7557_v41 = vpack.c.bf16 %v6347_v61, %v6343_v5  ;;  %v1365_v46 = vpop.permute.xlu0 %1364  ;;  %v1499_v5 = vsub.f32 %v7021_v23, %v1360_v51  ;;  %v1496_v23 = vsub.f32 %v7007_v16, %v1350_v37 }
 0x205   : > { %v7561_v11 = vpack.c.bf16 %v6349_v10, %v6345_v7  ;;  %v1501_v55 = vsub.f32 %v7029_v27, %v1365_v46  ;;  %v1502_v6 = vsub.f32 %v7031_v28, %v1365_v46  ;;  %v1500_v7 = vsub.f32 %v7023_v24, %v1360_v51  ;;  %v7597_v51 = vpop.eup %6350 }
 0x206   : > { %2461 = vmatmul.bf16.gmra.mxu2 %v7557_v41  ;;  %1369 = vperm.xlu1 %6327, %v7334_v47   ;;  %v1877_v52 = vunpack.c.h.bf16 %v7557_v41  ;;  %v7575_v42 = vpop.permute.xlu2 %1374  ;;  %v10555_v27 = vsub.f32 %v7208_v43, %v7217_v48 }
 0x207   : > { %v1878_v58 = vunpack.c.h.bf16 %v7561_v11  ;;  %v1557_v61 = vpack.c.bf16 %v1501_v55, %v1499_v5 }
 0x208   : > { %v1265_v28 = vmul.f32 1.442695, %v10555_v27 }
 0x209   : > { %v1944_v54 = vadd.f32 %v1878_v58, %v1877_v52  ;;  %v1558_v52 = vpack.c.bf16 %v1502_v6, %v1500_v7  ;;  %v1595_v58 = vunpack.c.l.bf16 %v1557_v61  ;;  %v1597_v5 = vunpack.c.h.bf16 %v1557_v61 }
 0x20a   : > { %6352 = vpow2.f32 %v1265_v28 }
 0x20b   : > { %1945 = vadd.xlane.f32.xlu2 %v1944_v54  ;;  %v1671_v55 = vmul.f32 1.442695, %v1595_v58  ;;  %v1598_v16 = vunpack.c.h.bf16 %v1558_v52  ;;  %v1675_v28 = vmul.f32 1.442695, %v1597_v5 }
 0x20c   : > { %v7578_v62 = vpop.permute.xlu0 %1449 }
 0x20d   : > { %6354 = vpow2.f32 %v1671_v55 }
 0x20e   : > { %1454 = vperm.xlu1 %6327, %v7375_v34   ;;  %v7586_v10 = vpop.permute.xlu2 %1459  ;;  %v7623_v34 = vld [vmem:[#allocation2 + $0xb8] sm:$0xff] }
 0x20f   : > { %10556 = vst [vmem:[#allocation78_spill] sm:$0xff] %v7623_v34 }
 0x210   : > { %v7602_v61 = vpop.eup %6352 }
 0x214   : > { %v7588_v54 = vpop.permute.xlu0 %1479 }
 0x216   : > { %1464 = vperm.xlu1 %6327, %v7414_v53   ;;  %v7599_v48 = vpop.permute.xlu2 %1389 }
 0x21d   : > { %v1162_v38 = vpop.xlane.xlu1 %1161 }
 0x21e   : > { %v7570_v2 = vmax.f32 %v7567_v63, %v1162_v38  ;;  %1484 = vperm.xlu1 %6327, %v7533_v29   ;;  %v1596_v38 = vunpack.c.l.bf16 %v1558_v52  ;;  %v1808_v52 = vld [vmem:[#allocation3 + $0x8] sm:$0xff] }
 0x21f   : > { %v1840_v55 = vmul.f32 %v7602_v61, %v1808_v52 }
 0x220   : > { %2709 = vst.msk [vmem:[#allocation2 + $0x98] sm:$0xff] %vm572_vm0, %v7570_v2  ;;  %v1673_v43 = vmul.f32 1.442695, %v1596_v38  ;;  %v1677_v38 = vmul.f32 1.442695, %v1598_v16 }
 0x222   : > { %6356 = vpow2.f32 %v1673_v43 }
 0x235   : > { %v1355_v46 = vpop.permute.xlu1 %1354 }
 0x236   : > { %v1497_v24 = vsub.f32 %v7013_v19, %v1355_v46  ;;  %v1498_v33 = vsub.f32 %v7015_v20, %v1355_v46  ;;  %v1839_v19 = vmul.f32 %v7597_v51, %v1807_v12  ;;  %v1169_v12 = vmax.f32 %v7506_v56, %v7508_v57 }
 0x238   : > { %v1555_v6 = vpack.c.bf16 %v1497_v24, %v1495_v17  ;;  %v1556_v40 = vpack.c.bf16 %v1498_v33, %v1496_v23  ;;  %v6355_v24 = vpop.eup %6354 }
 0x239   : > { %v6357_v33 = vpop.eup %6356 }
 0x23a   : > { %v1591_v7 = vunpack.c.l.bf16 %v1555_v6  ;;  %v1592_v27 = vunpack.c.l.bf16 %v1556_v40  ;;  %v1593_v14 = vunpack.c.h.bf16 %v1555_v6  ;;  %v1594_v29 = vunpack.c.h.bf16 %v1556_v40 }
 0x23c   : > { %v1663_v20 = vmul.f32 1.442695, %v1591_v7  ;;  %v1665_v37 = vmul.f32 1.442695, %v1592_v27  ;;  %v1667_v46 = vmul.f32 1.442695, %v1593_v14  ;;  %v1937_v58 = vpop.xlane.xlu0 %1936 }
 0x23d   : > { %v1669_v17 = vmul.f32 1.442695, %v1594_v29  ;;  %v2031_v23 = vadd.f32 %v1937_v58, %v1839_v19  ;;  %v7606_v29 = vpop.permute.xlu2 %1469 }
 0x23e   : > { %6358 = vpow2.f32 %v1663_v20 }
 0x23f   : > { %6360 = vpow2.f32 %v1665_v37  ;;  %2064 = vst.msk [vmem:[#allocation3] sm:$0xff] %vm572_vm0, %v2031_v23  ;;  %v1875_v23 = vunpack.c.l.bf16 %v7557_v41 }
 0x240   : > { %6362 = vpow2.f32 %v1667_v46 }
 0x241   : > { %6364 = vpow2.f32 %v1669_v17 }
 0x242   : > { %6366 = vpow2.f32 %v1675_v28  ;;  %v1876_v28 = vunpack.c.l.bf16 %v7561_v11 }
 0x243   : > { %6368 = vpow2.f32 %v1677_v38 }
 0x244   : > { %v6359_v6 = vpop.eup %6358  ;;  %v1940_v40 = vpop.xlane.xlu0 %1939 }
 0x245   : > { %v6361_v5 = vpop.eup %6360  ;;  %v2032_v43 = vadd.f32 %v1940_v40, %v1840_v55  ;;  %v7619_v40 = vpop.permute.xlu2 %1474 }
 0x246   : > { %v6363_v7 = vpop.eup %6362 }
 0x247   : > { %v6365_v27 = vpop.eup %6364  ;;  %2065 = vst.msk [vmem:[#allocation3 + $0x8] sm:$0xff] %vm572_vm0, %v2032_v43  ;;  %v1779_v14 = vpack.c.bf16 %v6363_v7, %v6359_v6 }
 0x248   : > { %v6367_v16 = vpop.eup %6366  ;;  %1170 = vmax.xlane.f32.xlu1 %v1169_v12  ;;  %v7611_v19 = vpack.c.bf16 %v6365_v27, %v6361_v5  ;;  %v1941_v12 = vadd.f32 %v1876_v28, %v1875_v23  ;;  %v1505_v28 = vsub.f32 %v7045_v35, %v7575_v42 }
 0x249   : > { %v6369_v20 = vpop.eup %6368  ;;  %2466 = vmatmul.bf16.gmra.mxu2 %v1779_v14  ;;  %v1879_v37 = vunpack.c.l.bf16 %v1779_v14  ;;  %v1881_v46 = vunpack.c.h.bf16 %v1779_v14  ;;  %v1781_v55 = vpack.c.bf16 %v6367_v16, %v6355_v24  ;;  %v7630_v16 = vld [vmem:[#allocation2 + $0xa8] sm:$0xff] }
 0x24a   : > { %v1880_v58 = vunpack.c.l.bf16 %v7611_v19  ;;  %v1882_v17 = vunpack.c.h.bf16 %v7611_v19  ;;  %v7617_v6 = vpack.c.bf16 %v6369_v20, %v6357_v33 }
 0x24b   : > { %v1885_v5 = vunpack.c.h.bf16 %v1781_v55  ;;  %v1883_v7 = vunpack.c.l.bf16 %v1781_v55 }
 0x24c   : > { %v1947_v38 = vadd.f32 %v1880_v58, %v1879_v37  ;;  %v1950_v52 = vadd.f32 %v1882_v17, %v1881_v46  ;;  %v1886_v43 = vunpack.c.h.bf16 %v7617_v6  ;;  %v1884_v27 = vunpack.c.l.bf16 %v7617_v6 }
 0x24d   : > { %v10558_v58 = vsub.f32 %v7261_v25, %v7270_v44 }
 0x24e   : > { %1948 = vadd.xlane.f32.xlu0 %v1947_v38  ;;  %1951 = vadd.xlane.f32.xlu2 %v1950_v52  ;;  %v1956_v41 = vadd.f32 %v1886_v43, %v1885_v5  ;;  %v1953_v14 = vadd.f32 %v1884_v27, %v1883_v7  ;;  %v1506_v38 = vsub.f32 %v7047_v36, %v7575_v42  ;;  %v1810_v5 = vld [vmem:[#allocation3 + $0x18] sm:$0xff] }
 0x24f   : > { %v1269_v17 = vmul.f32 1.442695, %v10558_v58  ;;  %v1535_v58 = vsub.f32 %v6977_v0, %v7578_v62 }
 0x250   : > { %1942 = vadd.xlane.f32.xlu1 %v1941_v12 }
 0x251   : > { %6370 = vpow2.f32 %v1269_v17 }
 0x256   : > { %1957 = vadd.xlane.f32.xlu0 %v1956_v41  ;;  %1954 = vadd.xlane.f32.xlu2 %v1953_v14  ;;  %v1174_v24 = vpop.xlane.xlu2 %1173 }
 0x257   : > { %v7626_v33 = vmax.f32 %v7623_v34, %v1174_v24  ;;  %v7651_v12 = vpop.eup %6370 }
 0x258   : > { %v1842_v35 = vmul.f32 %v7651_v12, %v1810_v5 }
 0x259   : > { %10557 = vst [vmem:[#allocation79_spill] sm:$0xff] %v7626_v33  ;;  %2471 = vmatmul.bf16.gmra.mxu2 %v1781_v55 }
 0x25a   : > { %2713 = vst.msk [vmem:[#allocation2 + $0xb8] sm:$0xff] %vm572_vm0, %v7626_v33 }
 0x260   : > { %v1168_v20 = vpop.xlane.xlu1 %1167 }
 0x261   : > { %v7633_v37 = vmax.f32 %v7630_v16, %v1168_v20 }
 0x263   : > { %2711 = vst.msk [vmem:[#allocation2 + $0xa8] sm:$0xff] %vm572_vm0, %v7633_v37 }
 0x269   : > { %1394 = vperm.xlu1 %6327, %v7437_v21  }
 0x271   : > { %1409 = vperm.xlu1 %6327, %v7484_v49  }
 0x278   : > { %v1370_v23 = vpop.permute.xlu1 %1369 }
 0x279   : > { %v1503_v52 = vsub.f32 %v7037_v31, %v1370_v23  ;;  %v1504_v55 = vsub.f32 %v7039_v32, %v1370_v23  ;;  %1424 = vperm.xlu1 %6327, %v7570_v2  }
 0x27b   : > { %v1559_v25 = vpack.c.bf16 %v1505_v28, %v1503_v52  ;;  %v1560_v44 = vpack.c.bf16 %v1506_v38, %v1504_v55 }
 0x27d   : > { %v1599_v43 = vunpack.c.l.bf16 %v1559_v25  ;;  %v1600_v7 = vunpack.c.l.bf16 %v1560_v44  ;;  %v1601_v27 = vunpack.c.h.bf16 %v1559_v25  ;;  %v1602_v41 = vunpack.c.h.bf16 %v1560_v44 }
 0x27e   : > { %v1946_v42 = vpop.xlane.xlu2 %1945 }
 0x27f   : > { %v1679_v14 = vmul.f32 1.442695, %v1599_v43  ;;  %v1681_v24 = vmul.f32 1.442695, %v1600_v7  ;;  %v1683_v36 = vmul.f32 1.442695, %v1601_v27  ;;  %v2034_v20 = vadd.f32 %v1946_v42, %v1842_v35 }
 0x280   : > { %v1685_v31 = vmul.f32 1.442695, %v1602_v41  ;;  %v7654_v32 = vpop.permute.xlu1 %1454  ;;  %v1539_v43 = vsub.f32 %v6994_v9, %v7586_v10 }
 0x281   : > { %6372 = vpow2.f32 %v1679_v14  ;;  %v1537_v17 = vsub.f32 %v6985_v4, %v7654_v32  ;;  %2130 = vperm.xlu1 %6327, %v7597_v51   ;;  %2067 = vst.msk [vmem:[#allocation3 + $0x18] sm:$0xff] %vm572_vm0, %v2034_v20 }
 0x282   : > { %6374 = vpow2.f32 %v1681_v24  ;;  %v10559_v24 = vsub.f32 %v7237_v59, %v7246_v3 }
 0x283   : > { %6376 = vpow2.f32 %v1683_v36  ;;  %v1575_v23 = vpack.c.bf16 %v1537_v17, %v1535_v58 }
 0x284   : > { %6378 = vpow2.f32 %v1685_v31  ;;  %v1267_v36 = vmul.f32 1.442695, %v10559_v24 }
 0x285   : > { %v1631_v28 = vunpack.c.l.bf16 %v1575_v23  ;;  %v1633_v38 = vunpack.c.h.bf16 %v1575_v23 }
 0x287   : > { %v6373_v52 = vpop.eup %6372  ;;  %v1743_v55 = vmul.f32 1.442695, %v1631_v28  ;;  %v1747_v25 = vmul.f32 1.442695, %v1633_v38  ;;  %v6249_v38 = vld [vmem:[%s7392_s16 + $0x78] sm:$0xff] }
 0x288   : > { %v6375_v44 = vpop.eup %6374  ;;  %v7662_v5 = vpop.permute.xlu1 %1464  ;;  %2537 = vmatpush.bf16.msrb.mxu3 %v6249_v38 }
 0x289   : > { %v6377_v0 = vpop.eup %6376  ;;  %6380 = vpow2.f32 %v1743_v55  ;;  %v1541_v4 = vsub.f32 %v7002_v13, %v7662_v5  ;;  %1429 = vperm.xlu1 %6327, %v7536_v45   ;;  %v1545_v55 = vsub.f32 %v7019_v22, %v7619_v40 }
 0x28a   : > { %v6379_v51 = vpop.eup %6378  ;;  %v1783_v7 = vpack.c.bf16 %v6377_v0, %v6373_v52  ;;  %6382 = vpow2.f32 %v1747_v25  ;;  %v6248_v25 = vld [vmem:[%s7392_s16 + $0x70] sm:$0xff] }
 0x28b   : > { %v7669_v27 = vpack.c.bf16 %v6379_v51, %v6375_v44  ;;  %v1577_v41 = vpack.c.bf16 %v1541_v4, %v1539_v43  ;;  %6384 = vpow2.f32 %v1267_v36  ;;  %v1543_v44 = vsub.f32 %v7011_v18, %v7606_v29  ;;  %v6247_v4 = vld [vmem:[%s7392_s16 + $0x68] sm:$0xff]  ;;  %v6246_v36 = vld [vmem:[%s7392_s16 + $0x60] sm:$0xff]  ;;  %v6245_v18 = vld [vmem:[%s7392_s16 + $0x58] sm:$0xff] }
 0x28c   : > { %2476 = vmatmul.bf16.gmra.mxu2 %v1783_v7  ;;  %v1889_v35 = vunpack.c.h.bf16 %v1783_v7  ;;  %v1887_v14 = vunpack.c.l.bf16 %v1783_v7  ;;  %2538 = vmatpush.bf16.msrb.mxu3 %v6248_v25 }
 0x28d   : > { %v1890_v13 = vunpack.c.h.bf16 %v7669_v27  ;;  %v1888_v42 = vunpack.c.l.bf16 %v7669_v27  ;;  %v1635_v20 = vunpack.c.l.bf16 %v1577_v41  ;;  %v1637_v23 = vunpack.c.h.bf16 %v1577_v41 }
 0x28e   : > { %v1579_v0 = vpack.c.bf16 %v1545_v55, %v1543_v44  ;;  %v10561_v55 = vld [vmem:[#allocation77_spill] sm:$0xff] }
 0x28f   : > { %v6381_v31 = vpop.eup %6380  ;;  %v1962_v9 = vadd.f32 %v1890_v13, %v1889_v35  ;;  %v1959_v58 = vadd.f32 %v1888_v42, %v1887_v14  ;;  %v1751_v3 = vmul.f32 1.442695, %v1635_v20  ;;  %v1755_v28 = vmul.f32 1.442695, %v1637_v23  ;;  %v6244_v20 = vld [vmem:[%s7392_s16 + $0x50] sm:$0xff] }
 0x290   : > { %v6383_v17 = vpop.eup %6382  ;;  %2539 = vmatpush.bf16.msrb.mxu3 %v6247_v4  ;;  %v1639_v7 = vunpack.c.l.bf16 %v1579_v0  ;;  %v1641_v41 = vunpack.c.h.bf16 %v1579_v0  ;;  %v7693_v24 = vpop.permute.xlu1 %1484  ;;  %v1547_v42 = vsub.f32 %v7027_v26, %v7588_v54  ;;  %v10560_v23 = vld [vmem:[#allocation27_spill] sm:$0xff]  ;;  %v6242_v0 = vld [vmem:[%s7392_s16 + $0x40] sm:$0xff] }
 0x291   : > { %1434 = vperm.xlu1 %6327, %v7633_v37   ;;  %1963 = vadd.xlane.f32.xlu0 %v1962_v9  ;;  %v7677_v59 = vpack.c.bf16 %v6383_v17, %v6381_v31  ;;  %v7681_v52 = vpop.eup %6384  ;;  %6386 = vpow2.f32 %v1751_v3  ;;  %v1549_v13 = vsub.f32 %v7035_v30, %v7693_v24  ;;  %v1236_v30 = vsub.f32 %v10560_v23, %v7298_v8  ;;  %v6243_v3 = vld [vmem:[%s7392_s16 + $0x48] sm:$0xff]  ;;  %v2792_v8 = vld [vmem:[#allocation3 + $0x18] sm:$0xff] }
 0x292   : > { %1960 = vadd.xlane.f32.xlu2 %v1959_v58  ;;  %6388 = vpow2.f32 %v1755_v28  ;;  %v1759_v22 = vmul.f32 1.442695, %v1639_v7  ;;  %v1763_v14 = vmul.f32 1.442695, %v1641_v41  ;;  %v1235_v58 = vsub.f32 %v7283_v60, %v7286_v15  ;;  %v10562_v60 = vld [vmem:[#allocation61_spill] sm:$0xff]  ;;  %v10564_v7 = vld [vmem:[#allocation32_spill] sm:$0xff] }
 0x293   : > { %2516 = vmatmul.bf16.vlgmr.msra.gmra.mxu3 %v7677_v59  ;;  %v1581_v31 = vpack.c.bf16 %v1549_v13, %v1547_v42  ;;  %v1273_v44 = vmul.f32 1.442695, %v1236_v30  ;;  %v10569_v30 = vld [vmem:[#allocation69_spill] sm:$0xff] }
 0x294   : > { %2540 = vmatpush.bf16.msrb.mxu3 %v6246_v36  ;;  %6390 = vpow2.f32 %v1759_v22  ;;  %v1271_v38 = vmul.f32 1.442695, %v1235_v58  ;;  %v10567_v36 = vld [vmem:[#allocation34_spill] sm:$0xff]  ;;  %v1811_v58 = vld [vmem:[#allocation3 + $0x20] sm:$0xff] }
 0x295   : > { %6392 = vpow2.f32 %v1763_v14  ;;  %v1643_v28 = vunpack.c.l.bf16 %v1581_v31  ;;  %v1645_v26 = vunpack.c.h.bf16 %v1581_v31  ;;  %v10566_v14 = vld [vmem:[#allocation33_spill] sm:$0xff] }
 0x296   : > { %6394 = vpow2.f32 %v1271_v38 }
 0x297   : > { %v6387_v51 = vpop.eup %6386  ;;  %v1767_v4 = vmul.f32 1.442695, %v1643_v28  ;;  %v1771_v15 = vmul.f32 1.442695, %v1645_v26  ;;  %6396 = vpow2.f32 %v1273_v44  ;;  %v1809_v28 = vld [vmem:[#allocation3 + $0x10] sm:$0xff] }
 0x298   : > { %v6389_v43 = vpop.eup %6388  ;;  %2541 = vmatpush.bf16.msrb.mxu3 %v6245_v18  ;;  %v10568_v18 = vsub.f32 %v10566_v14, %v10567_v36 }
 0x299   : > { %2140 = vperm.xlu1 %6327, %v7681_v52   ;;  %v7690_v35 = vpack.c.bf16 %v6389_v43, %v6387_v51  ;;  %6398 = vpow2.f32 %v1767_v4  ;;  %v7716_v51 = vld [vmem:[#allocation2 + $0xb0] sm:$0xff]  ;;  %v10563_v43 = vld [vmem:[#allocation29_spill] sm:$0xff] }
 0x29a   : > { %v6391_v9 = vpop.eup %6390  ;;  %6400 = vpow2.f32 %v1771_v15  ;;  %v10565_v41 = vsub.f32 %v10563_v43, %v10564_v7  ;;  %v1277_v13 = vmul.f32 1.442695, %v10568_v18  ;;  %v1841_v7 = vmul.f32 %v7681_v52, %v1809_v28  ;;  %v2790_v18 = vld [vmem:[#allocation3 + $0x8] sm:$0xff] }
 0x29b   : > { %v6393_v17 = vpop.eup %6392  ;;  %6402 = vrcp.f32 %v2792_v8 }
 0x29c   : > { %2542 = vmatpush.bf16.msrb.mxu3 %v6244_v20  ;;  %v7711_v25 = vpack.c.bf16 %v6393_v17, %v6391_v9  ;;  %v1275_v22 = vmul.f32 1.442695, %v10565_v41  ;;  %v6395_v31 = vpop.eup %6394  ;;  %v1812_v17 = vld [vmem:[#allocation3 + $0x28] sm:$0xff] }
 0x29d   : > { %v6397_v9 = vpop.eup %6396  ;;  %v1843_v26 = vmul.f32 %v6395_v31, %v1811_v58  ;;  %v1813_v58 = vld [vmem:[#allocation3 + $0x30] sm:$0xff] }
 0x29e   : > { %6404 = vpow2.f32 %v1275_v22  ;;  %v1844_v38 = vmul.f32 %v6397_v9, %v1812_v17  ;;  %v2789_v22 = vld [vmem:[#allocation3] sm:$0xff] }
 0x29f   : > { %v6399_v23 = vpop.eup %6398  ;;  %6406 = vpow2.f32 %v1277_v13 }
 0x2a0   : > { %2543 = vmatpush.bf16.msrb.mxu3 %v6243_v3  ;;  %v6401_v3 = vpop.eup %6400  ;;  %6408 = vrcp.f32 %v2789_v22  ;;  %v10573_v22 = vld [vmem:[#allocation17_spill] sm:$0xff] }
 0x2a1   : > { %v6403_v44 = vpop.eup %6402  ;;  %v7734_v43 = vpack.c.bf16 %v6401_v3, %v6399_v23  ;;  %6410 = vrcp.f32 %v2790_v18 }
 0x2a3   : > { %2521 = vmatmul.bf16.gmra.mxu3 %v7690_v35  ;;  %10570 = vst [vmem:[#allocation27_spill] sm:$0xff] %v7734_v43 }
 0x2a4   : > { %2544 = vmatpush.bf16.msrb.mxu3 %v6242_v0  ;;  %v7737_v14 = vpop.eup %6404 }
 0x2a5   : > { %1379 = vperm.xlu0 %6328, %v7378_v50   ;;  %v7741_v13 = vpop.eup %6406  ;;  %v1845_v17 = vmul.f32 %v7737_v14, %v1813_v58 }
 0x2aa   : > { %1404 = vperm.xlu2 %6326, %v7518_v1  }
 0x2ad   : > { %1384 = vperm.xlu0 %6328, %v7398_v39  }
 0x2b2   : > { %1419 = vperm.xlu2 %6326, %v10561_v55  }
 0x2b3   : > { %2526 = vmatmul.bf16.gmra.mxu3 %v7711_v25 }
 0x2b5   : > { %1399 = vperm.xlu0 %6328, %v10562_v60  }
 0x2ba   : > { %2145 = vperm.xlu2 %6326, %v7651_v12  }
 0x2bb   : > { %v1171_v42 = vpop.xlane.xlu1 %1170 }
 0x2bc   : > { %v7726_v20 = vmax.f32 %v7716_v51, %v1171_v42  ;;  %v1814_v42 = vld [vmem:[#allocation3 + $0x38] sm:$0xff] }
 0x2bd   : > { %1414 = vperm.xlu0 %6328, %v10569_v30   ;;  %v1846_v52 = vmul.f32 %v7741_v13, %v1814_v42  ;;  %v10574_v42 = vld [vmem:[#allocation13_spill] sm:$0xff] }
 0x2be   : > { %2712 = vst.msk [vmem:[#allocation2 + $0xb0] sm:$0xff] %vm572_vm0, %v7726_v20  ;;  %1439 = vperm.xlu1 %6327, %v7726_v20   ;;  %v1511_v58 = vsub.f32 %v10574_v42, %v7599_v48 }
 0x2c1   : > { %v1949_v0 = vpop.xlane.xlu0 %1948  ;;  %v1952_v4 = vpop.xlane.xlu2 %1951 }
 0x2c2   : > { %v2035_v15 = vadd.f32 %v1949_v0, %v1843_v26  ;;  %2870 = vperm.xlu2 %6326, %v6403_v44   ;;  %v2036_v8 = vadd.f32 %v1952_v4, %v1844_v38  ;;  %v6409_v38 = vpop.eup %6408 }
 0x2c3   : > { %v1943_v41 = vpop.xlane.xlu1 %1942  ;;  %2531 = vmatmul.bf16.gmra.mxu3 %v7734_v43  ;;  %v6411_v44 = vpop.eup %6410 }
 0x2c4   : > { %2068 = vst.msk [vmem:[#allocation3 + $0x20] sm:$0xff] %vm572_vm0, %v2035_v15  ;;  %v2033_v36 = vadd.f32 %v1943_v41, %v1841_v7  ;;  %v10572_v7 = vld [vmem:[#allocation16_spill] sm:$0xff] }
 0x2c5   : > { %2069 = vst.msk [vmem:[#allocation3 + $0x28] sm:$0xff] %vm572_vm0, %v2036_v8  ;;  %2135 = vperm.xlu0 %6328, %v7602_v61   ;;  %v10571_v61 = vld [vmem:[#allocation65_spill] sm:$0xff] }
 0x2c6   : > { %2066 = vst.msk [vmem:[#allocation3 + $0x10] sm:$0xff] %vm572_vm0, %v2033_v36  ;;  %1444 = vperm.xlu1 %6327, %v7626_v33  }
 0x2c9   : > { %v1958_v23 = vpop.xlane.xlu0 %1957  ;;  %v1955_v3 = vpop.xlane.xlu2 %1954 }
 0x2ca   : > { %v2038_v28 = vadd.f32 %v1958_v23, %v1846_v52  ;;  %v2037_v26 = vadd.f32 %v1955_v3, %v1845_v17  ;;  %v10576_v23 = vld [vmem:[#allocation37_spill] sm:$0xff] }
 0x2cb   : > { %v2793_v4 = vld [vmem:[#allocation3 + $0x20] sm:$0xff]  ;;  %v1239_v3 = vsub.f32 %v10576_v23, %v7334_v47 }
 0x2cc   : > { %2071 = vst.msk [vmem:[#allocation3 + $0x38] sm:$0xff] %vm572_vm0, %v2038_v28  ;;  %6412 = vrcp.f32 %v2793_v4 }
 0x2cd   : > { %2070 = vst.msk [vmem:[#allocation3 + $0x30] sm:$0xff] %vm572_vm0, %v2037_v26  ;;  %2855 = vperm.xlu0 %6328, %v6409_v38   ;;  %v1279_v38 = vmul.f32 1.442695, %v1239_v3 }
 0x2ce   : > { %2860 = vperm.xlu1 %6327, %v6411_v44  }
 0x2cf   : > { %6414 = vpow2.f32 %v1279_v38 }
 0x2d2   : > { %v6413_v8 = vpop.eup %6412 }
 0x2d3   : > { %2545 = vmatmul.bf16.vlgmr.msrb.gmra.mxu3 %v10571_v61  ;;  %v10577_v61 = vld [vmem:[#allocation42_spill] sm:$0xff] }
 0x2d5   : > { %2150 = vperm.xlu0 %6328, %v6395_v31   ;;  %v10575_v31 = vld [vmem:[#allocation14_spill] sm:$0xff]  ;;  %v7774_v42 = vpop.eup %6414 }
 0x2d6   : > { %v1512_v52 = vsub.f32 %v10575_v31, %v7599_v48  ;;  %10580 = vst [vmem:[#allocation77_spill] sm:$0xff] %v7774_v42 }
 0x2db   : > { %v1395_v0 = vpop.permute.xlu1 %1394 }
 0x2dc   : > { %v1513_v41 = vsub.f32 %v10572_v7, %v1395_v0  ;;  %v1514_v36 = vsub.f32 %v10573_v22, %v1395_v0  ;;  %v10578_v0 = vld [vmem:[#allocation44_spill] sm:$0xff] }
 0x2dd   : > { %2155 = vperm.xlu0 %6328, %v6397_v9   ;;  %v10579_v4 = vsub.f32 %v10577_v61, %v10578_v0 }
 0x2de   : > { %v1563_v9 = vpack.c.bf16 %v1513_v41, %v1511_v58  ;;  %v1564_v17 = vpack.c.bf16 %v1514_v36, %v1512_v52 }
 0x2df   : > { %v1281_v48 = vmul.f32 1.442695, %v10579_v4 }
 0x2e0   : > { %v1607_v28 = vunpack.c.l.bf16 %v1563_v9  ;;  %v1608_v26 = vunpack.c.l.bf16 %v1564_v17  ;;  %v1609_v44 = vunpack.c.h.bf16 %v1563_v9  ;;  %v1816_v9 = vld [vmem:[#allocation3 + $0x48] sm:$0xff] }
 0x2e1   : > { %6416 = vpow2.f32 %v1281_v48 }
 0x2e2   : > { %v1695_v41 = vmul.f32 1.442695, %v1607_v28  ;;  %v1697_v22 = vmul.f32 1.442695, %v1608_v26  ;;  %v1699_v36 = vmul.f32 1.442695, %v1609_v44 }
 0x2e3   : > { %v7752_v15 = vpop.permute.xlu1 %1409  ;;  %2550 = vmatmul.bf16.gmra.mxu3 %v7561_v11  ;;  %v6257_v11 = vld [vmem:[%s10370_s4 + $0x38] sm:$0xff] }
 0x2e4   : > { %3129 = vmatpush.bf16.msrb.mxu0 %v6257_v11  ;;  %6418 = vpow2.f32 %v1695_v41 }
 0x2e5   : > { %2875 = vperm.xlu0 %6328, %v6413_v8   ;;  %v1610_v8 = vunpack.c.h.bf16 %v1564_v17  ;;  %6420 = vpow2.f32 %v1697_v22  ;;  %v1815_v17 = vld [vmem:[#allocation3 + $0x40] sm:$0xff]  ;;  %v10582_v22 = vld [vmem:[#allocation66_spill] sm:$0xff] }
 0x2e6   : > { %6422 = vpow2.f32 %v1699_v36  ;;  %v1847_v28 = vmul.f32 %v7774_v42, %v1815_v17 }
 0x2e7   : > { %v1701_v47 = vmul.f32 1.442695, %v1610_v8 }
 0x2e9   : > { %6424 = vpow2.f32 %v1701_v47  ;;  %v10583_v47 = vld [vmem:[#allocation67_spill] sm:$0xff] }
 0x2eb   : > { %v7757_v18 = vpop.permute.xlu1 %1424 }
 0x2f3   : > { %2555 = vmatmul.bf16.gmra.mxu3 %v7611_v19  ;;  %v7772_v7 = vpop.permute.xlu1 %2130  ;;  %v7776_v19 = vpop.eup %6416 }
 0x2f4   : > { %10581 = vst [vmem:[#allocation61_spill] sm:$0xff] %v7776_v19  ;;  %v6419_v31 = vpop.eup %6418  ;;  %v1848_v3 = vmul.f32 %v7776_v19, %v1816_v9 }
 0x2f5   : > { %v6421_v52 = vpop.eup %6420 }
 0x2f6   : > { %v6423_v11 = vpop.eup %6422 }
 0x2f7   : > { %v6425_v23 = vpop.eup %6424  ;;  %v7781_v0 = vpack.c.bf16 %v6423_v11, %v6419_v31 }
 0x2f8   : > { %v7783_v4 = vpack.c.bf16 %v6425_v23, %v6421_v52  ;;  %v10584_v52 = vld [vmem:[#allocation39_spill] sm:$0xff]  ;;  %v10585_v23 = vld [vmem:[#allocation38_spill] sm:$0xff] }
 0x2f9   : > { %v1895_v8 = vunpack.c.l.bf16 %v7781_v0 }
 0x2fa   : > { %v1896_v41 = vunpack.c.l.bf16 %v7783_v4 }
 0x2fb   : > { %v1430_v58 = vpop.permute.xlu1 %1429 }
 0x2fc   : > { %v1527_v17 = vsub.f32 %v10584_v52, %v1430_v58  ;;  %v1971_v11 = vadd.f32 %v1896_v41, %v1895_v8  ;;  %v10588_v52 = vld [vmem:[#allocation36_spill] sm:$0xff]  ;;  %v10589_v41 = vld [vmem:[#allocation35_spill] sm:$0xff] }
 0x2fd   : > { %v1525_v8 = vsub.f32 %v10588_v52, %v7757_v18 }
 0x303   : > { %2560 = vmatmul.bf16.gmra.mxu3 %v7617_v6  ;;  %v1435_v48 = vpop.permute.xlu1 %1434  ;;  %v6256_v6 = vld [vmem:[%s10370_s4 + $0x30] sm:$0xff] }
 0x304   : > { %v1964_v26 = vpop.xlane.xlu0 %1963  ;;  %v1529_v36 = vsub.f32 %v10582_v22, %v1435_v48  ;;  %v1530_v31 = vsub.f32 %v10583_v47, %v1435_v48  ;;  %3130 = vmatpush.bf16.msrb.mxu0 %v6256_v6  ;;  %v10587_v22 = vld [vmem:[#allocation5_spill] sm:$0xff] }
 0x305   : > { %v1961_v38 = vpop.xlane.xlu2 %1960  ;;  %v2040_v44 = vadd.f32 %v1964_v26, %v1848_v3  ;;  %v1528_v3 = vsub.f32 %v10585_v23, %v1430_v58  ;;  %v1536_v48 = vsub.f32 %v10587_v22, %v7578_v62  ;;  %v1526_v58 = vsub.f32 %v10589_v41, %v7757_v18 }
 0x306   : > { %v2039_v61 = vadd.f32 %v1961_v38, %v1847_v28  ;;  %v1571_v28 = vpack.c.bf16 %v1529_v36, %v1527_v17  ;;  %v10586_v38 = vld [vmem:[#allocation6_spill] sm:$0xff] }
 0x307   : > { %2073 = vst.msk [vmem:[#allocation3 + $0x48] sm:$0xff] %vm572_vm0, %v2040_v44  ;;  %v1572_v26 = vpack.c.bf16 %v1530_v31, %v1528_v3  ;;  %v1538_v44 = vsub.f32 %v10586_v38, %v7654_v32  ;;  %v10590_v36 = vld [vmem:[#allocation30_spill] sm:$0xff]  ;;  %v10591_v31 = vld [vmem:[#allocation31_spill] sm:$0xff] }
 0x308   : > { %2072 = vst.msk [vmem:[#allocation3 + $0x40] sm:$0xff] %vm572_vm0, %v2039_v61  ;;  %v1623_v61 = vunpack.c.l.bf16 %v1571_v28  ;;  %v1625_v62 = vunpack.c.h.bf16 %v1571_v28 }
 0x309   : > { %v1624_v47 = vunpack.c.l.bf16 %v1572_v26  ;;  %v1626_v34 = vunpack.c.h.bf16 %v1572_v26 }
 0x30a   : > { %v1727_v23 = vmul.f32 1.442695, %v1623_v61 }
 0x30b   : > { %v1729_v22 = vmul.f32 1.442695, %v1624_v47  ;;  %v1733_v28 = vmul.f32 1.442695, %v1626_v34 }
 0x30c   : > { %6426 = vpow2.f32 %v1727_v23  ;;  %v10598_v23 = vld [vmem:[#allocation10_spill] sm:$0xff] }
 0x30d   : > { %v7794_v9 = vpop.permute.xlu2 %1404  ;;  %6428 = vpow2.f32 %v1729_v22 }
 0x30f   : > { %1972 = vadd.xlane.f32.xlu0 %v1971_v11  ;;  %v1576_v11 = vpack.c.bf16 %v1538_v44, %v1536_v48  ;;  %v10593_v44 = vld [vmem:[#allocation18_spill] sm:$0xff] }
 0x310   : > { %v1546_v61 = vsub.f32 %v10593_v44, %v7619_v40 }
 0x311   : > { %v1632_v43 = vunpack.c.l.bf16 %v1576_v11  ;;  %v1634_v48 = vunpack.c.h.bf16 %v1576_v11  ;;  %v10599_v11 = vld [vmem:[#allocation11_spill] sm:$0xff] }
 0x313   : > { %2565 = vmatmul.bf16.gmra.mxu3 %v7669_v27  ;;  %v1745_v26 = vmul.f32 1.442695, %v1632_v43 }
 0x315   : > { %v1420_v12 = vpop.permute.xlu2 %1419 }
 0x316   : > { %v1523_v6 = vsub.f32 %v10590_v36, %v1420_v12  ;;  %v1524_v17 = vsub.f32 %v10591_v31, %v1420_v12  ;;  %v7809_v32 = vpop.f32.mrf.mxu3  ;;  %v10597_v31 = vld [vmem:[#allocation8_spill] sm:$0xff] }
 0x317   : > { %10592 = vst [vmem:[#allocation29_spill] sm:$0xff] %v7809_v32  ;;  %v1380_v38 = vpop.permute.xlu0 %1379 }
 0x318   : > { %v1569_v27 = vpack.c.bf16 %v1525_v8, %v1523_v6  ;;  %v1570_v3 = vpack.c.bf16 %v1526_v58, %v1524_v17  ;;  %v1731_v8 = vmul.f32 1.442695, %v1625_v62  ;;  %v10595_v58 = vld [vmem:[#allocation15_spill] sm:$0xff]  ;;  %v1508_v17 = vsub.f32 %v10597_v31, %v1380_v38  ;;  %v10601_v31 = vld [vmem:[#allocation22_spill] sm:$0xff] }
 0x319   : > { %v1544_v6 = vsub.f32 %v10595_v58, %v7606_v29  ;;  %v1749_v62 = vmul.f32 1.442695, %v1634_v48 }
 0x31a   : > { %v1619_v46 = vunpack.c.l.bf16 %v1569_v27  ;;  %v1620_v19 = vunpack.c.l.bf16 %v1570_v3  ;;  %v1621_v42 = vunpack.c.h.bf16 %v1569_v27  ;;  %v1622_v52 = vunpack.c.h.bf16 %v1570_v3  ;;  %v6427_v3 = vpop.eup %6426 }
 0x31b   : > { %v1580_v34 = vpack.c.bf16 %v1546_v61, %v1544_v6  ;;  %v6429_v22 = vpop.eup %6428 }
 0x31c   : > { %v1719_v18 = vmul.f32 1.442695, %v1619_v46  ;;  %v1721_v41 = vmul.f32 1.442695, %v1620_v19  ;;  %v1723_v36 = vmul.f32 1.442695, %v1621_v42 }
 0x31d   : > { %v1725_v12 = vmul.f32 1.442695, %v1622_v52  ;;  %v10596_v46 = vld [vmem:[#allocation7_spill] sm:$0xff]  ;;  %v1642_v61 = vunpack.c.h.bf16 %v1580_v34 }
 0x31e   : > { %6430 = vpow2.f32 %v1719_v18  ;;  %v7813_v47 = vpop.f32.mrf.mxu3  ;;  %v1507_v19 = vsub.f32 %v10596_v46, %v1380_v38  ;;  %v6255_v18 = vld [vmem:[%s10370_s4 + $0x28] sm:$0xff]  ;;  %v1640_v46 = vunpack.c.l.bf16 %v1580_v34 }
 0x31f   : > { %6432 = vpow2.f32 %v1721_v41  ;;  %10594 = vst [vmem:[#allocation32_spill] sm:$0xff] %v7813_v47  ;;  %v1385_v42 = vpop.permute.xlu0 %1384  ;;  %3131 = vmatpush.bf16.msrb.mxu0 %v6255_v18 }
 0x320   : > { %6434 = vpow2.f32 %v1723_v36  ;;  %v1509_v40 = vsub.f32 %v10598_v23, %v1385_v42  ;;  %v1510_v27 = vsub.f32 %v10599_v11, %v1385_v42  ;;  %v10602_v23 = vld [vmem:[#allocation23_spill] sm:$0xff]  ;;  %v7832_v11 = vpop.permute.xlu1 %2140 }
 0x321   : > { %6436 = vpow2.f32 %v1725_v12  ;;  %10603 = vst [vmem:[#allocation34_spill] sm:$0xff] %v7832_v11 }
 0x322   : > { %6438 = vpow2.f32 %v1731_v8  ;;  %v1561_v52 = vpack.c.bf16 %v1509_v40, %v1507_v19  ;;  %v1562_v29 = vpack.c.bf16 %v1510_v27, %v1508_v17  ;;  %v1517_v17 = vsub.f32 %v10601_v31, %v7794_v9 }
 0x323   : > { %6440 = vpow2.f32 %v1733_v28  ;;  %v1518_v40 = vsub.f32 %v10602_v23, %v7794_v9  ;;  %v1765_v9 = vmul.f32 1.442695, %v1642_v61 }
 0x324   : > { %v6431_v43 = vpop.eup %6430  ;;  %6442 = vpow2.f32 %v1745_v26  ;;  %v1603_v38 = vunpack.c.l.bf16 %v1561_v52  ;;  %v1604_v36 = vunpack.c.l.bf16 %v1562_v29  ;;  %v1605_v12 = vunpack.c.h.bf16 %v1561_v52 }
 0x325   : > { %v6433_v41 = vpop.eup %6432  ;;  %v1606_v44 = vunpack.c.h.bf16 %v1562_v29  ;;  %6444 = vpow2.f32 %v1749_v62  ;;  %v10604_v29 = vld [vmem:[#allocation19_spill] sm:$0xff] }
 0x326   : > { %v6435_v58 = vpop.eup %6434  ;;  %v1687_v8 = vmul.f32 1.442695, %v1603_v38  ;;  %v1689_v28 = vmul.f32 1.442695, %v1604_v36  ;;  %v1691_v6 = vmul.f32 1.442695, %v1605_v12  ;;  %v7824_v19 = vpop.f32.mrf.mxu3 }
 0x327   : > { %v6437_v48 = vpop.eup %6436  ;;  %10600 = vst [vmem:[#allocation33_spill] sm:$0xff] %v7824_v19  ;;  %v7826_v26 = vpack.c.bf16 %v6435_v58, %v6431_v43  ;;  %v1693_v27 = vmul.f32 1.442695, %v1606_v44  ;;  %v1400_v34 = vpop.permute.xlu0 %1399  ;;  %v10605_v38 = vld [vmem:[#allocation20_spill] sm:$0xff]  ;;  %v1761_v58 = vmul.f32 1.442695, %v1640_v46 }
 0x328   : > { %v6439_v42 = vpop.eup %6438  ;;  %v7834_v62 = vpack.c.bf16 %v6437_v48, %v6433_v41  ;;  %6446 = vpow2.f32 %v1687_v8  ;;  %v1515_v18 = vsub.f32 %v10604_v29, %v1400_v34  ;;  %v1516_v43 = vsub.f32 %v10605_v38, %v1400_v34 }
 0x329   : > { %v6441_v52 = vpop.eup %6440  ;;  %v1907_v36 = vunpack.c.l.bf16 %v7826_v26  ;;  %6448 = vpow2.f32 %v1689_v28  ;;  %v7840_v48 = vpack.c.bf16 %v6439_v42, %v6427_v3 }
 0x32a   : > { %v6443_v12 = vpop.eup %6442  ;;  %v1908_v31 = vunpack.c.l.bf16 %v7834_v62  ;;  %6450 = vpow2.f32 %v1691_v6  ;;  %v1565_v23 = vpack.c.bf16 %v1517_v17, %v1515_v18  ;;  %v1566_v44 = vpack.c.bf16 %v1518_v40, %v1516_v43 }
 0x32b   : > { %v6445_v19 = vpop.eup %6444  ;;  %6452 = vpow2.f32 %v1693_v27  ;;  %v7842_v8 = vpack.c.bf16 %v6441_v52, %v6429_v22  ;;  %v10607_v27 = vld [vmem:[#allocation24_spill] sm:$0xff]  ;;  %v1911_v52 = vunpack.c.l.bf16 %v7840_v48 }
 0x32c   : > { %v1989_v41 = vadd.f32 %v1908_v31, %v1907_v36  ;;  %v1611_v29 = vunpack.c.l.bf16 %v1565_v23  ;;  %v1612_v34 = vunpack.c.l.bf16 %v1566_v44  ;;  %v1613_v38 = vunpack.c.h.bf16 %v1565_v23 }
 0x32d   : > { %v1614_v32 = vunpack.c.h.bf16 %v1566_v44  ;;  %6454 = vpow2.f32 %v1761_v58  ;;  %v1519_v3 = vsub.f32 %v10607_v27, %v7752_v15  ;;  %v1912_v18 = vunpack.c.l.bf16 %v7842_v8  ;;  %v10608_v58 = vld [vmem:[#allocation25_spill] sm:$0xff]  ;;  %v10610_v44 = vld [vmem:[#allocation28_spill] sm:$0xff] }
 0x32e   : > { %1990 = vadd.xlane.f32.xlu0 %v1989_v41  ;;  %v6447_v46 = vpop.eup %6446  ;;  %6456 = vpow2.f32 %v1765_v9  ;;  %v1703_v28 = vmul.f32 1.442695, %v1611_v29  ;;  %v1705_v61 = vmul.f32 1.442695, %v1612_v34  ;;  %v1707_v6 = vmul.f32 1.442695, %v1613_v38  ;;  %v7844_v17 = vpop.f32.mrf.mxu3 }
 0x32f   : > { %10606 = vst [vmem:[#allocation69_spill] sm:$0xff] %v7844_v17  ;;  %v6449_v40 = vpop.eup %6448  ;;  %v1709_v42 = vmul.f32 1.442695, %v1614_v32  ;;  %v1415_v22 = vpop.permute.xlu0 %1414  ;;  %v1520_v31 = vsub.f32 %v10608_v58, %v7752_v15  ;;  %v10609_v9 = vld [vmem:[#allocation26_spill] sm:$0xff]  ;;  %v7854_v38 = vpack.c.bf16 %v6445_v19, %v6443_v12  ;;  %v1995_v11 = vadd.f32 %v1912_v18, %v1911_v52 }
 0x330   : > { %v1440_v43 = vpop.permute.xlu1 %1439  ;;  %v6451_v36 = vpop.eup %6450  ;;  %6458 = vpow2.f32 %v1703_v28  ;;  %v1521_v23 = vsub.f32 %v10609_v9, %v1415_v22  ;;  %v1522_v41 = vsub.f32 %v10610_v44, %v1415_v22  ;;  %v1919_v12 = vunpack.c.l.bf16 %v7677_v59 }
 0x331   : > { %v6453_v29 = vpop.eup %6452  ;;  %6460 = vpow2.f32 %v1705_v61  ;;  %v1785_v34 = vpack.c.bf16 %v6451_v36, %v6447_v46  ;;  %v1920_v61 = vunpack.c.l.bf16 %v7854_v38 }
 0x332   : > { %6462 = vpow2.f32 %v1707_v6  ;;  %v1567_v32 = vpack.c.bf16 %v1521_v23, %v1519_v3  ;;  %v1568_v27 = vpack.c.bf16 %v1522_v41, %v1520_v31  ;;  %v1786_v17 = vpack.c.bf16 %v6453_v29, %v6449_v40  ;;  %v10612_v29 = vld [vmem:[#allocation71_spill] sm:$0xff] }
 0x333   : > { %v6455_v47 = vpop.eup %6454  ;;  %6464 = vpow2.f32 %v1709_v42  ;;  %2481 = vmatmul.bf16.gmra.mxu2 %v1785_v34  ;;  %v1891_v33 = vunpack.c.l.bf16 %v1785_v34  ;;  %v1893_v15 = vunpack.c.h.bf16 %v1785_v34  ;;  %v1531_v31 = vsub.f32 %v7506_v56, %v1440_v43 }
 0x334   : > { %v6457_v28 = vpop.eup %6456  ;;  %v1615_v58 = vunpack.c.l.bf16 %v1567_v32  ;;  %v1616_v9 = vunpack.c.l.bf16 %v1568_v27  ;;  %v1617_v53 = vunpack.c.h.bf16 %v1567_v32  ;;  %v1618_v22 = vunpack.c.h.bf16 %v1568_v27  ;;  %2570 = vmatmul.bf16.gmra.mxu3 %v1786_v17  ;;  %v10613_v32 = vld [vmem:[#allocation72_spill] sm:$0xff] }
 0x335   : > { %v1892_v46 = vunpack.c.l.bf16 %v1786_v17  ;;  %v1894_v19 = vunpack.c.h.bf16 %v1786_v17  ;;  %v1532_v17 = vsub.f32 %v7508_v57, %v1440_v43  ;;  %v2007_v56 = vadd.f32 %v1920_v61, %v1919_v12  ;;  %v6253_v12 = vld [vmem:[%s10370_s4 + $0x18] sm:$0xff] }
 0x336   : > { %1996 = vadd.xlane.f32.xlu0 %v1995_v11  ;;  %v6459_v6 = vpop.eup %6458  ;;  %v1711_v40 = vmul.f32 1.442695, %v1615_v58  ;;  %v1713_v3 = vmul.f32 1.442695, %v1616_v9  ;;  %v1715_v42 = vmul.f32 1.442695, %v1617_v53  ;;  %v7858_v52 = vpop.f32.mrf.mxu3 }
 0x337   : > { %10611 = vst [vmem:[#allocation65_spill] sm:$0xff] %v7858_v52  ;;  %v6461_v18 = vpop.eup %6460  ;;  %v1717_v36 = vmul.f32 1.442695, %v1618_v22  ;;  %v1965_v23 = vadd.f32 %v1892_v46, %v1891_v33  ;;  %v1968_v44 = vadd.f32 %v1894_v19, %v1893_v15  ;;  %v6254_v53 = vld [vmem:[%s10370_s4 + $0x20] sm:$0xff]  ;;  %v7869_v15 = vpack.c.bf16 %v6457_v28, %v6455_v47  ;;  %v10614_v47 = vld [vmem:[#allocation12_spill] sm:$0xff]  ;;  %v10667_v52 = vld [vmem:[#allocation75_spill] sm:$0xff] }
 0x338   : > { %v1445_v41 = vpop.permute.xlu1 %1444  ;;  %v6463_v11 = vpop.eup %6462  ;;  %6466 = vpow2.f32 %v1711_v40  ;;  %3132 = vmatpush.bf16.msrb.mxu0 %v6254_v53  ;;  %v1897_v22 = vunpack.c.h.bf16 %v7781_v0  ;;  %v1898_v46 = vunpack.c.h.bf16 %v7783_v4  ;;  %v1542_v28 = vsub.f32 %v10614_v47, %v7662_v5  ;;  %v6252_v53 = vld [vmem:[%s10370_s4 + $0x10] sm:$0xff] }
 0x339   : > { %v1533_v34 = vsub.f32 %v10612_v29, %v1445_v41  ;;  %v1534_v27 = vsub.f32 %v10613_v32, %v1445_v41  ;;  %v6465_v58 = vpop.eup %6464  ;;  %6468 = vpow2.f32 %v1713_v3  ;;  %1966 = vadd.xlane.f32.xlu1 %v1965_v23  ;;  %1969 = vadd.xlane.f32.xlu2 %v1968_v44  ;;  %v7867_v33 = vpack.c.bf16 %v6463_v11, %v6459_v6 }
 0x33a   : > { %6470 = vpow2.f32 %v1715_v42  ;;  %v7871_v43 = vpack.c.bf16 %v6465_v58, %v6461_v18  ;;  %v10615_v18 = vld [vmem:[#allocation9_spill] sm:$0xff]  ;;  %v1929_v44 = vunpack.c.h.bf16 %v7711_v25  ;;  %v1930_v41 = vunpack.c.h.bf16 %v7869_v15 }
 0x33b   : > { %v1573_v9 = vpack.c.bf16 %v1533_v34, %v1531_v31  ;;  %v1574_v57 = vpack.c.bf16 %v1534_v27, %v1532_v17  ;;  %6472 = vpow2.f32 %v1717_v36  ;;  %v1899_v19 = vunpack.c.l.bf16 %v7867_v33 }
 0x33c   : > { %v1900_v3 = vunpack.c.l.bf16 %v7871_v43  ;;  %v1540_v36 = vsub.f32 %v10615_v18, %v7586_v10  ;;  %3133 = vmatpush.bf16.msrb.mxu0 %v6253_v12  ;;  %v1974_v17 = vadd.f32 %v1898_v46, %v1897_v22  ;;  %v1901_v22 = vunpack.c.h.bf16 %v7867_v33 }
 0x33d   : > { %v1627_v61 = vunpack.c.l.bf16 %v1573_v9  ;;  %v1628_v6 = vunpack.c.l.bf16 %v1574_v57  ;;  %v1629_v40 = vunpack.c.h.bf16 %v1573_v9  ;;  %v1630_v31 = vunpack.c.h.bf16 %v1574_v57 }
 0x33e   : > { %2008 = vadd.xlane.f32.xlu0 %v2007_v56  ;;  %v6467_v42 = vpop.eup %6466  ;;  %v7884_v23 = vpop.f32.mrf.mxu3  ;;  %v1977_v29 = vadd.f32 %v1900_v3, %v1899_v19  ;;  %v1578_v32 = vpack.c.bf16 %v1542_v28, %v1540_v36  ;;  %v2022_v57 = vadd.f32 %v1930_v41, %v1929_v44  ;;  %v1902_v46 = vunpack.c.h.bf16 %v7871_v43 }
 0x33f   : > { %10616 = vst [vmem:[#allocation16_spill] sm:$0xff] %v7884_v23  ;;  %v6469_v11 = vpop.eup %6468  ;;  %v1735_v5 = vmul.f32 1.442695, %v1627_v61  ;;  %v1737_v27 = vmul.f32 1.442695, %v1628_v6  ;;  %v6251_v61 = vld [vmem:[%s10370_s4 + $0x8] sm:$0xff] }
 0x340   : > { %v6471_v34 = vpop.eup %6470  ;;  %v1739_v58 = vmul.f32 1.442695, %v1629_v40  ;;  %v1741_v9 = vmul.f32 1.442695, %v1630_v31  ;;  %3134 = vmatpush.bf16.msrb.mxu0 %v6252_v53  ;;  %v1636_v47 = vunpack.c.l.bf16 %v1578_v32  ;;  %v1638_v6 = vunpack.c.h.bf16 %v1578_v32  ;;  %v10666_v23 = vld [vmem:[#allocation73_spill] sm:$0xff] }
 0x341   : > { %v6473_v10 = vpop.eup %6472  ;;  %1975 = vadd.xlane.f32.xlu2 %v1974_v17  ;;  %1978 = vadd.xlane.f32.xlu1 %v1977_v29  ;;  %v7891_v56 = vpack.c.bf16 %v6471_v34, %v6467_v42  ;;  %6474 = vpow2.f32 %v1735_v5  ;;  %v1980_v3 = vadd.f32 %v1902_v46, %v1901_v22  ;;  %v1909_v5 = vunpack.c.h.bf16 %v7826_v26 }
 0x342   : > { %v7893_v12 = vpack.c.bf16 %v6473_v10, %v6469_v11  ;;  %6476 = vpow2.f32 %v1737_v27  ;;  %v1753_v42 = vmul.f32 1.442695, %v1636_v47  ;;  %v1757_v36 = vmul.f32 1.442695, %v1638_v6 }
 0x343   : > { %2486 = vmatmul.bf16.gmra.mxu2 %v7781_v0  ;;  %v1903_v19 = vunpack.c.l.bf16 %v7891_v56  ;;  %6478 = vpow2.f32 %v1739_v58  ;;  %v1905_v41 = vunpack.c.h.bf16 %v7891_v56  ;;  %v1910_v17 = vunpack.c.h.bf16 %v7834_v62 }
 0x344   : > { %2575 = vmatmul.bf16.gmra.mxu3 %v7783_v4  ;;  %v1904_v28 = vunpack.c.l.bf16 %v7893_v12  ;;  %6480 = vpow2.f32 %v1741_v9  ;;  %3135 = vmatpush.bf16.msrb.mxu0 %v6251_v61  ;;  %v6250_v4 = vld [vmem:[%s10370_s4] sm:$0xff]  ;;  %v1906_v11 = vunpack.c.h.bf16 %v7893_v12  ;;  %v2457_v9 = vpop.f32.mrf.mxu2  ;;  %v1913_v46 = vunpack.c.h.bf16 %v7840_v48 }
 0x345   : > { %6482 = vpow2.f32 %v1753_v42  ;;  %v1992_v27 = vadd.f32 %v1910_v17, %v1909_v5  ;;  %v1925_v42 = vunpack.c.h.bf16 %v7690_v35 }
 0x346   : > { %2023 = vadd.xlane.f32.xlu0 %v2022_v57  ;;  %v1983_v0 = vadd.f32 %v1904_v28, %v1903_v19  ;;  %v7904_v40 = vpop.f32.mrf.mxu3  ;;  %6484 = vpow2.f32 %v1757_v36  ;;  %v1986_v32 = vadd.f32 %v1906_v11, %v1905_v41  ;;  %v2136_v57 = vpop.permute.xlu0 %2135  ;;  %v1914_v19 = vunpack.c.h.bf16 %v7842_v8 }
 0x347   : > { %10617 = vst [vmem:[#allocation17_spill] sm:$0xff] %v7904_v40  ;;  %v6475_v18 = vpop.eup %6474  ;;  %v2289_v5 = vmul.f32 0.0, %v2136_v57 }
 0x348   : > { %v6477_v31 = vpop.eup %6476  ;;  %3136 = vmatpush.bf16.msrb.mxu0 %v6250_v4 }
 0x349   : > { %1981 = vadd.xlane.f32.xlu2 %v1980_v3  ;;  %1984 = vadd.xlane.f32.xlu1 %v1983_v0  ;;  %v6479_v44 = vpop.eup %6478  ;;  %v1998_v0 = vadd.f32 %v1914_v19, %v1913_v46  ;;  %v1921_v46 = vunpack.c.h.bf16 %v7677_v59  ;;  %v1922_v19 = vunpack.c.h.bf16 %v7854_v38 }
 0x34a   : > { %v6481_v29 = vpop.eup %6480  ;;  %v7915_v53 = vpack.c.bf16 %v6479_v44, %v6475_v18 }
 0x34b   : > { %v7917_v10 = vpack.c.bf16 %v6481_v29, %v6477_v31  ;;  %v6483_v58 = vpop.eup %6482 }
 0x34c   : > { %v6485_v22 = vpop.eup %6484  ;;  %v1915_v47 = vunpack.c.l.bf16 %v7915_v53  ;;  %v1917_v18 = vunpack.c.h.bf16 %v7915_v53  ;;  %v2459_v31 = vpop.f32.mrf.mxu2 }
 0x34d   : > { %v1916_v28 = vunpack.c.l.bf16 %v7917_v10  ;;  %v7925_v6 = vpack.c.bf16 %v6485_v22, %v6483_v58  ;;  %v1918_v36 = vunpack.c.h.bf16 %v7917_v10  ;;  %v2861_v58 = vpop.permute.xlu1 %2860 }
 0x34e   : > { %v7913_v34 = vpop.f32.mrf.mxu3  ;;  %v2856_v44 = vpop.permute.xlu0 %2855 }
 0x34f   : > { %10618 = vst [vmem:[#allocation13_spill] sm:$0xff] %v7913_v34  ;;  %v2001_v3 = vadd.f32 %v1916_v28, %v1915_v47  ;;  %v2004_v29 = vadd.f32 %v1918_v36, %v1917_v18 }
 0x351   : > { %1987 = vadd.xlane.f32.xlu2 %v1986_v32  ;;  %1993 = vadd.xlane.f32.xlu1 %v1992_v27 }
 0x353   : > { %2491 = vmatmul.bf16.gmra.mxu2 %v7867_v33  ;;  %v1926_v33 = vunpack.c.h.bf16 %v7925_v6 }
 0x354   : > { %2580 = vmatmul.bf16.gmra.mxu3 %v7871_v43  ;;  %v2288_v43 = vmul.f32 0.0, %v7772_v7  ;;  %v7935_v47 = vpop.f32.mrf.mxu2 }
 0x355   : > { %v2016_v41 = vadd.f32 %v1926_v33, %v1925_v42 }
 0x356   : > { %v2546_v61 = vpop.f32.mrf.mxu3  ;;  %v7938_v57 = vpop.permute.xlu0 %2150 }
 0x357   : > { %v2547_v4 = vadd.f32 %v2546_v61, %v2457_v9  ;;  %v2010_v61 = vadd.f32 %v1922_v19, %v1921_v46 }
 0x359   : > { %1999 = vadd.xlane.f32.xlu2 %v1998_v0  ;;  %2002 = vadd.xlane.f32.xlu1 %v2001_v3  ;;  %v2626_v17 = vadd.f32 %v2547_v4, %v2288_v43  ;;  %v2146_v0 = vpop.permute.xlu2 %2145  ;;  %v1923_v3 = vunpack.c.l.bf16 %v7690_v35  ;;  %v1927_v43 = vunpack.c.l.bf16 %v7711_v25 }
 0x35a   : > { %v2291_v33 = vmul.f32 0.0, %v2146_v0 }
 0x35b   : > { %v3013_v22 = vmul.f32 %v2856_v44, %v2626_v17 }
 0x35c   : > { %v2464_v59 = vpop.f32.mrf.mxu2 }
 0x35e   : > { %v2548_v11 = vpop.f32.mrf.mxu3  ;;  %v7944_v36 = vpop.permute.xlu0 %2155 }
 0x35f   : > { %v2549_v32 = vadd.f32 %v2548_v11, %v2459_v31  ;;  %v10619_v11 = vld [vmem:[#allocation55_spill] sm:$0xff] }
 0x361   : > { %2005 = vadd.xlane.f32.xlu2 %v2004_v29  ;;  %2017 = vadd.xlane.f32.xlu1 %v2016_v41  ;;  %v2627_v27 = vadd.f32 %v2549_v32, %v2289_v5  ;;  %v2871_v44 = vpop.permute.xlu2 %2870  ;;  %v1928_v41 = vunpack.c.l.bf16 %v7869_v15  ;;  %v10620_v5 = vld [vmem:[#allocation57_spill] sm:$0xff] }
 0x362   : > { %v10621_v17 = vsub.f32 %v10619_v11, %v10620_v5 }
 0x363   : > { %v3014_v9 = vmul.f32 %v2861_v58, %v2627_v27  ;;  %2496 = vmatmul.bf16.gmra.mxu2 %v7891_v56  ;;  %v1924_v56 = vunpack.c.l.bf16 %v7925_v6  ;;  %v2019_v32 = vadd.f32 %v1928_v41, %v1927_v43  ;;  %v2794_v27 = vld [vmem:[#allocation3 + $0x28] sm:$0xff] }
 0x364   : > { %2585 = vmatmul.bf16.gmra.mxu3 %v7893_v12  ;;  %v2791_v12 = vld [vmem:[#allocation3 + $0x10] sm:$0xff]  ;;  %v1287_v29 = vmul.f32 1.442695, %v10621_v17  ;;  %v7979_v41 = vpop.f32.mrf.mxu2  ;;  %v10627_v17 = vld [vmem:[#allocation56_spill] sm:$0xff] }
 0x365   : > { %v3045_v7 = vpack.c.bf16 %v3014_v9, %v3013_v22  ;;  %v2013_v4 = vadd.f32 %v1924_v56, %v1923_v3  ;;  %6486 = vrcp.f32 %v2791_v12  ;;  %v10623_v3 = vld [vmem:[#allocation76_spill] sm:$0xff] }
 0x366   : > { %v7940_v28 = vpop.f32.mrf.mxu3  ;;  %6488 = vpow2.f32 %v1287_v29  ;;  %v7955_v22 = vpop.permute.xlu0 %2875  ;;  %v1249_v56 = vsub.f32 %v10623_v3, %v10561_v55  ;;  %v1244_v29 = vsub.f32 %v10627_v17, %v7437_v21  ;;  %v1827_v21 = vld [vmem:[#allocation3 + $0xa0] sm:$0xff] }
 0x367   : > { %3137 = vmatmul.bf16.vlgmr.msrb.gmra.mxu0 %v3045_v7  ;;  %6490 = vrcp.f32 %v2794_v27  ;;  %v2795_v7 = vld [vmem:[#allocation3 + $0x30] sm:$0xff] }
 0x368   : > { %6492 = vrcp.f32 %v2795_v7  ;;  %v10629_v27 = vld [vmem:[#allocation43_spill] sm:$0xff]  ;;  %v1289_v7 = vmul.f32 1.442695, %v1244_v29 }
 0x369   : > { %2011 = vadd.xlane.f32.xlu2 %v2010_v61  ;;  %v10622_v61 = vld [vmem:[#allocation49_spill] sm:$0xff] }
 0x36a   : > { %v1242_v0 = vsub.f32 %v10622_v61, %v7398_v39  ;;  %v10625_v39 = vld [vmem:[#allocation74_spill] sm:$0xff] }
 0x36b   : > { %v6487_v58 = vpop.eup %6486  ;;  %v1251_v55 = vsub.f32 %v10625_v39, %v7536_v45  ;;  %v10635_v39 = vld [vmem:[#allocation64_spill] sm:$0xff] }
 0x36c   : > { %v7957_v25 = vpop.eup %6488 }
 0x36d   : > { %v6491_v9 = vpop.eup %6490 }
 0x36e   : > { %v2553_v42 = vpop.f32.mrf.mxu3 }
 0x36f   : > { %v2554_v18 = vadd.f32 %v2553_v42, %v2464_v59  ;;  %v1285_v59 = vmul.f32 1.442695, %v1242_v0  ;;  %v2796_v42 = vld [vmem:[#allocation3 + $0x38] sm:$0xff] }
 0x370   : > { %6494 = vrcp.f32 %v2796_v42  ;;  %v1818_v42 = vld [vmem:[#allocation3 + $0x58] sm:$0xff] }
 0x371   : > { %2014 = vadd.xlane.f32.xlu2 %v2013_v4  ;;  %v2629_v31 = vadd.f32 %v2554_v18, %v2291_v33  ;;  %v6493_v33 = vpop.eup %6492  ;;  %6496 = vpow2.f32 %v1285_v59 }
 0x373   : > { %2501 = vmatmul.bf16.gmra.mxu2 %v7826_v26  ;;  %v7949_v35 = vmul.f32 %v2871_v44, %v2629_v31  ;;  %v1819_v26 = vld [vmem:[#allocation3 + $0x60] sm:$0xff]  ;;  %v1303_v44 = vmul.f32 1.442695, %v1251_v55  ;;  %v1247_v55 = vsub.f32 %v10635_v39, %v7484_v49 }
 0x374   : > { %2590 = vmatmul.bf16.gmra.mxu3 %v7834_v62  ;;  %v1851_v46 = vmul.f32 %v7957_v25, %v1819_v26  ;;  %v1823_v39 = vld [vmem:[#allocation3 + $0x80] sm:$0xff] }
 0x376   : > { %v6495_v18 = vpop.eup %6494  ;;  %v7977_v43 = vpop.f32.mrf.mxu3 }
 0x377   : > { %v6497_v12 = vpop.eup %6496 }
 0x379   : > { %2020 = vadd.xlane.f32.xlu2 %v2019_v32 }
 0x37a   : > { %2865 = vperm.xlu1 %6327, %v6487_v58  }
 0x37e   : > { %v7997_v61 = vpop.f32.mrf.mxu3 }
 0x382   : > { %2880 = vperm.xlu1 %6327, %v6491_v9   ;;  %v1973_v19 = vpop.xlane.xlu0 %1972  ;;  %v10631_v9 = vld [vmem:[#allocation60_spill] sm:$0xff] }
 0x383   : > { %2506 = vmatmul.bf16.gmra.mxu2 %v7840_v48  ;;  %v2043_v62 = vadd.f32 %v1973_v19, %v1851_v46  ;;  %v1299_v48 = vmul.f32 1.442695, %v1249_v56  ;;  %v1245_v46 = vsub.f32 %v10631_v9, %v10562_v60  ;;  %v1250_v19 = vsub.f32 %v7567_v63, %v7570_v2  ;;  %v7999_v56 = vpop.f32.mrf.mxu2  ;;  %v1817_v2 = vld [vmem:[#allocation3 + $0x50] sm:$0xff]  ;;  %v10636_v9 = vld [vmem:[#allocation68_spill] sm:$0xff] }
 0x384   : > { %2595 = vmatmul.bf16.gmra.mxu3 %v7842_v8  ;;  %v10624_v8 = vld [vmem:[#allocation70_spill] sm:$0xff] }
 0x385   : > { %2076 = vst.msk [vmem:[#allocation3 + $0x60] sm:$0xff] %vm572_vm0, %v2043_v62  ;;  %v1246_v4 = vsub.f32 %v10624_v8, %v7518_v1  ;;  %6498 = vpow2.f32 %v1299_v48  ;;  %v1291_v0 = vmul.f32 1.442695, %v1245_v46  ;;  %v1301_v3 = vmul.f32 1.442695, %v1250_v19  ;;  %v10632_v48 = vld [vmem:[#allocation58_spill] sm:$0xff] }
 0x386   : > { %v8015_v29 = vpop.f32.mrf.mxu3  ;;  %v1248_v46 = vsub.f32 %v10636_v9, %v10569_v30 }
 0x38a   : > { %2165 = vperm.xlu1 %6327, %v7741_v13   ;;  %v1293_v13 = vmul.f32 1.442695, %v1246_v4 }
 0x38b   : > { %v6499_v1 = vpop.eup %6498 }
 0x38c   : > { %6500 = vpow2.f32 %v1293_v13 }
 0x38d   : > { %6502 = vpow2.f32 %v1303_v44 }
 0x391   : > { %2160 = vperm.xlu2 %6326, %v7737_v14   ;;  %v10626_v14 = vld [vmem:[#allocation46_spill] sm:$0xff] }
 0x392   : > { %2885 = vperm.xlu1 %6327, %v6493_v33   ;;  %v1241_v31 = vsub.f32 %v10626_v14, %v7378_v50  ;;  %v7981_v5 = vpop.eup %6500  ;;  %v10628_v50 = vld [vmem:[#allocation41_spill] sm:$0xff] }
 0x393   : > { %2511 = vmatmul.bf16.gmra.mxu2 %v7915_v53  ;;  %v1825_v53 = vld [vmem:[#allocation3 + $0x90] sm:$0xff]  ;;  %v10630_v58 = vsub.f32 %v10628_v50, %v10629_v27  ;;  %v7994_v62 = vpop.eup %6502  ;;  %v1820_v50 = vld [vmem:[#allocation3 + $0x68] sm:$0xff] }
 0x394   : > { %2600 = vmatmul.bf16.gmra.mxu3 %v7917_v10  ;;  %v1283_v10 = vmul.f32 1.442695, %v1241_v31  ;;  %v1857_v11 = vmul.f32 %v6499_v1, %v1825_v53  ;;  %v1859_v60 = vmul.f32 %v7994_v62, %v1827_v21  ;;  %v1831_v53 = vld [vmem:[#allocation3 + $0xc0] sm:$0xff] }
 0x395   : > { %v1311_v26 = vmul.f32 1.442695, %v10630_v58  ;;  %v8022_v58 = vpop.f32.mrf.mxu2 }
 0x396   : > { %6504 = vpow2.f32 %v1283_v10 }
 0x397   : > { %6506 = vpow2.f32 %v1311_v26 }
 0x398   : > { %6508 = vpow2.f32 %v1289_v7 }
 0x399   : > { %2890 = vperm.xlu2 %6326, %v6495_v18   ;;  %6510 = vpow2.f32 %v1291_v0  ;;  %v1850_v18 = vmul.f32 %v6497_v12, %v1818_v42  ;;  %v1297_v42 = vmul.f32 1.442695, %v1248_v46  ;;  %v10641_v46 = vld [vmem:[#allocation52_spill] sm:$0xff] }
 0x39a   : > { %2185 = vperm.xlu1 %6327, %v6497_v12   ;;  %6512 = vpow2.f32 %v1301_v3 }
 0x39c   : > { %v8002_v59 = vpop.eup %6504 }
 0x39d   : > { %v1849_v13 = vmul.f32 %v8002_v59, %v1817_v2  ;;  %v8011_v14 = vpop.eup %6506 }
 0x39e   : > { %v8013_v17 = vpop.eup %6508  ;;  %v1863_v49 = vmul.f32 %v8011_v14, %v1831_v53 }
 0x39f   : > { %v1852_v21 = vmul.f32 %v8013_v17, %v1820_v50 }
 0x3a1   : > { %v1991_v45 = vpop.xlane.xlu0 %1990 }
 0x3a2   : > { %v2049_v32 = vadd.f32 %v1991_v45, %v1857_v11  ;;  %2205 = vperm.xlu1 %6327, %v7981_v5   ;;  %v1295_v45 = vmul.f32 1.442695, %v1247_v55  ;;  %v8039_v55 = vpop.f32.mrf.mxu3 }
 0x3a4   : > { %2082 = vst.msk [vmem:[#allocation3 + $0x90] sm:$0xff] %vm572_vm0, %v2049_v32  ;;  %2605 = vmatmul.bf16.gmra.mxu3 %v7854_v38  ;;  %v10633_v38 = vld [vmem:[#allocation59_spill] sm:$0xff] }
 0x3a5   : > { %v10634_v8 = vsub.f32 %v10632_v48, %v10633_v38  ;;  %v1821_v32 = vld [vmem:[#allocation3 + $0x70] sm:$0xff]  ;;  %v10637_v38 = vld [vmem:[#allocation40_spill] sm:$0xff] }
 0x3a7   : > { %v1321_v4 = vmul.f32 1.442695, %v10634_v8  ;;  %v1550_v8 = vsub.f32 %v10637_v38, %v7693_v24 }
 0x3a9   : > { %v1997_v63 = vpop.xlane.xlu0 %1996  ;;  %6514 = vpow2.f32 %v1321_v4 }
 0x3aa   : > { %v2051_v33 = vadd.f32 %v1997_v63, %v1859_v60  ;;  %2220 = vperm.xlu1 %6327, %v6499_v1   ;;  %v8019_v1 = vpop.eup %6510  ;;  %6516 = vpow2.f32 %v1295_v45  ;;  %v1836_v60 = vld [vmem:[#allocation3 + $0xe8] sm:$0xff] }
 0x3ab   : > { %v6513_v27 = vpop.eup %6512  ;;  %v1853_v19 = vmul.f32 %v8019_v1, %v1821_v32 }
 0x3ac   : > { %2084 = vst.msk [vmem:[#allocation3 + $0xa0] sm:$0xff] %vm572_vm0, %v2051_v33  ;;  %v1967_v31 = vpop.xlane.xlu1 %1966  ;;  %v1970_v44 = vpop.xlane.xlu2 %1969 }
 0x3ad   : > { %v2041_v10 = vadd.f32 %v1967_v31, %v1849_v13  ;;  %v2042_v11 = vadd.f32 %v1970_v44, %v1850_v18  ;;  %v10638_v18 = vld [vmem:[#allocation21_spill] sm:$0xff]  ;;  %v8043_v44 = vpop.f32.mrf.mxu2 }
 0x3ae   : > { %v1548_v31 = vsub.f32 %v10638_v18, %v7588_v54  ;;  %v10640_v54 = vsub.f32 %v7716_v51, %v7726_v20 }
 0x3af   : > { %2074 = vst.msk [vmem:[#allocation3 + $0x50] sm:$0xff] %vm572_vm0, %v2041_v10  ;;  %v8029_v7 = vpop.eup %6514 }
 0x3b0   : > { %2075 = vst.msk [vmem:[#allocation3 + $0x58] sm:$0xff] %vm572_vm0, %v2042_v11  ;;  %v1868_v30 = vmul.f32 %v8029_v7, %v1836_v60  ;;  %v8034_v48 = vpop.eup %6516  ;;  %v1582_v10 = vpack.c.bf16 %v1550_v8, %v1548_v31  ;;  %v1307_v9 = vmul.f32 1.442695, %v10640_v54  ;;  %v10643_v60 = vld [vmem:[#allocation79_spill] sm:$0xff] }
 0x3b1   : > { %v2009_v12 = vpop.xlane.xlu0 %2008  ;;  %v1855_v53 = vmul.f32 %v8034_v48, %v1823_v39 }
 0x3b2   : > { %v2055_v26 = vadd.f32 %v2009_v12, %v1863_v49  ;;  %2225 = vperm.xlu1 %6327, %v6513_v27   ;;  %v10639_v12 = vsub.f32 %v7630_v16, %v7633_v37  ;;  %v1824_v16 = vld [vmem:[#allocation3 + $0x88] sm:$0xff]  ;;  %v1646_v37 = vunpack.c.h.bf16 %v1582_v10 }
 0x3b4   : > { %2088 = vst.msk [vmem:[#allocation3 + $0xc0] sm:$0xff] %vm572_vm0, %v2055_v26  ;;  %v1979_v0 = vpop.xlane.xlu1 %1978  ;;  %v1976_v3 = vpop.xlane.xlu2 %1975  ;;  %2610 = vmatmul.bf16.gmra.mxu3 %v7925_v6  ;;  %v1822_v6 = vld [vmem:[#allocation3 + $0x78] sm:$0xff]  ;;  %v1305_v32 = vmul.f32 1.442695, %v10639_v12  ;;  %v1773_v39 = vmul.f32 1.442695, %v1646_v37 }
 0x3b5   : > { %v2045_v63 = vadd.f32 %v1979_v0, %v1853_v19  ;;  %v2044_v2 = vadd.f32 %v1976_v3, %v1852_v21  ;;  %v1854_v24 = vmul.f32 %v7981_v5, %v1822_v6  ;;  %v10642_v19 = vld [vmem:[#allocation51_spill] sm:$0xff]  ;;  %v1644_v0 = vunpack.c.l.bf16 %v1582_v10  ;;  %v1826_v3 = vld [vmem:[#allocation3 + $0x98] sm:$0xff]  ;;  %v8062_v20 = vpop.f32.mrf.mxu2 }
 0x3b6   : > { %v2799_v33 = vld [vmem:[#allocation3 + $0x50] sm:$0xff]  ;;  %v1258_v21 = vsub.f32 %v10642_v19, %v10641_v46  ;;  %v1834_v37 = vld [vmem:[#allocation3 + $0xd8] sm:$0xff] }
 0x3b7   : > { %2078 = vst.msk [vmem:[#allocation3 + $0x70] sm:$0xff] %vm572_vm0, %v2045_v63  ;;  %6518 = vrcp.f32 %v2799_v33  ;;  %v10644_v63 = vld [vmem:[#allocation78_spill] sm:$0xff]  ;;  %v1858_v33 = vmul.f32 %v6513_v27, %v1826_v3  ;;  %v1769_v38 = vmul.f32 1.442695, %v1644_v0  ;;  %v1829_v27 = vld [vmem:[#allocation3 + $0xb0] sm:$0xff] }
 0x3b8   : > { %2077 = vst.msk [vmem:[#allocation3 + $0x68] sm:$0xff] %vm572_vm0, %v2044_v2  ;;  %6520 = vpow2.f32 %v1297_v42  ;;  %v1254_v2 = vsub.f32 %v10644_v63, %v10643_v60  ;;  %v1317_v51 = vmul.f32 1.442695, %v1258_v21  ;;  %v8064_v42 = vpop.f32.mrf.mxu3  ;;  %v10645_v10 = vld [vmem:[#allocation47_spill] sm:$0xff]  ;;  %v1830_v60 = vld [vmem:[#allocation3 + $0xb8] sm:$0xff] }
 0x3b9   : > { %v2024_v4 = vpop.xlane.xlu0 %2023  ;;  %6522 = vpow2.f32 %v1305_v32 }
 0x3ba   : > { %v2060_v13 = vadd.f32 %v2024_v4, %v1868_v30  ;;  %6524 = vpow2.f32 %v1307_v9  ;;  %v1309_v18 = vmul.f32 1.442695, %v1254_v2 }
 0x3bb   : > { %6526 = vpow2.f32 %v1317_v51 }
 0x3bc   : > { %2093 = vst.msk [vmem:[#allocation3 + $0xe8] sm:$0xff] %vm572_vm0, %v2060_v13  ;;  %v1985_v11 = vpop.xlane.xlu1 %1984  ;;  %v1982_v45 = vpop.xlane.xlu2 %1981  ;;  %6528 = vpow2.f32 %v1769_v38 }
 0x3bd   : > { %v6519_v49 = vpop.eup %6518  ;;  %v2047_v50 = vadd.f32 %v1985_v11, %v1855_v53  ;;  %v2046_v26 = vadd.f32 %v1982_v45, %v1854_v24  ;;  %v1828_v24 = vld [vmem:[#allocation3 + $0xa8] sm:$0xff]  ;;  %6530 = vpow2.f32 %v1773_v39 }
 0x3be   : > { %2905 = vperm.xlu2 %6326, %v6519_v49   ;;  %v8057_v5 = vpop.eup %6520  ;;  %6532 = vpow2.f32 %v1309_v18  ;;  %v10647_v18 = vld [vmem:[#allocation48_spill] sm:$0xff] }
 0x3bf   : > { %2080 = vst.msk [vmem:[#allocation3 + $0x80] sm:$0xff] %vm572_vm0, %v2047_v50  ;;  %v1856_v30 = vmul.f32 %v8057_v5, %v1824_v16  ;;  %v8069_v31 = vpop.eup %6522  ;;  %v2802_v38 = vld [vmem:[#allocation3 + $0x68] sm:$0xff] }
 0x3c0   : > { %2079 = vst.msk [vmem:[#allocation3 + $0x78] sm:$0xff] %vm572_vm0, %v2046_v26  ;;  %v6525_v53 = vpop.eup %6524  ;;  %v1860_v49 = vmul.f32 %v8069_v31, %v1828_v24  ;;  %v8078_v26 = vpop.f32.mrf.mxu2 }
 0x3c1   : > { %v1861_v45 = vmul.f32 %v6525_v53, %v1829_v27  ;;  %v8076_v50 = vpop.eup %6526  ;;  %v8080_v54 = vpop.f32.mrf.mxu3  ;;  %v10648_v27 = vld [vmem:[#allocation50_spill] sm:$0xff] }
 0x3c2   : > { %v6529_v19 = vpop.eup %6528  ;;  %v1866_v2 = vmul.f32 %v8076_v50, %v1834_v37  ;;  %v10649_v24 = vsub.f32 %v10647_v18, %v10648_v27  ;;  %v1833_v37 = vld [vmem:[#allocation3 + $0xd0] sm:$0xff]  ;;  %v1835_v18 = vld [vmem:[#allocation3 + $0xe0] sm:$0xff]  ;;  %v10653_v27 = vld [vmem:[#allocation34_spill] sm:$0xff] }
 0x3c3   : > { %v6531_v3 = vpop.eup %6530 }
 0x3c4   : > { %v1994_v8 = vpop.xlane.xlu1 %1993  ;;  %v1988_v4 = vpop.xlane.xlu2 %1987  ;;  %2615 = vmatmul.bf16.gmra.mxu3 %v7869_v15  ;;  %v10646_v15 = vld [vmem:[#allocation45_spill] sm:$0xff]  ;;  %v8085_v63 = vpack.c.bf16 %v6531_v3, %v6529_v19 }
 0x3c5   : > { %v2050_v6 = vadd.f32 %v1994_v8, %v1858_v33  ;;  %v2048_v13 = vadd.f32 %v1988_v4, %v1856_v30  ;;  %v1256_v11 = vsub.f32 %v10646_v15, %v10645_v10  ;;  %v6533_v16 = vpop.eup %6532  ;;  %v1315_v10 = vmul.f32 1.442695, %v10649_v24 }
 0x3c6   : > { %2190 = vperm.xlu2 %6326, %v7957_v25   ;;  %v2801_v25 = vld [vmem:[#allocation3 + $0x60] sm:$0xff]  ;;  %v1862_v51 = vmul.f32 %v6533_v16, %v1830_v60  ;;  %v2290_v24 = vmul.f32 0.0, %v10653_v27 }
 0x3c7   : > { %2083 = vst.msk [vmem:[#allocation3 + $0x98] sm:$0xff] %vm572_vm0, %v2050_v6  ;;  %v1313_v21 = vmul.f32 1.442695, %v1256_v11  ;;  %6534 = vrcp.f32 %v2801_v25  ;;  %v1832_v11 = vld [vmem:[#allocation3 + $0xc8] sm:$0xff] }
 0x3c8   : > { %2081 = vst.msk [vmem:[#allocation3 + $0x88] sm:$0xff] %vm572_vm0, %v2048_v13  ;;  %v8089_v4 = vpop.f32.mrf.mxu2 }
 0x3c9   : > { %v8091_v39 = vpop.f32.mrf.mxu3 }
 0x3cc   : > { %v2003_v12 = vpop.xlane.xlu1 %2002  ;;  %v2000_v32 = vpop.xlane.xlu2 %1999 }
 0x3cd   : > { %v2053_v9 = vadd.f32 %v2003_v12, %v1861_v45  ;;  %v2052_v46 = vadd.f32 %v2000_v32, %v1860_v49  ;;  %v6535_v33 = vpop.eup %6534  ;;  %v10650_v32 = vld [vmem:[#allocation53_spill] sm:$0xff] }
 0x3ce   : > { %2195 = vperm.xlu2 %6326, %v8013_v17   ;;  %v2808_v0 = vld [vmem:[#allocation3 + $0x98] sm:$0xff] }
 0x3cf   : > { %2086 = vst.msk [vmem:[#allocation3 + $0xb0] sm:$0xff] %vm572_vm0, %v2053_v9  ;;  %6536 = vrcp.f32 %v2808_v0  ;;  %v10651_v9 = vld [vmem:[#allocation54_spill] sm:$0xff] }
 0x3d0   : > { %2085 = vst.msk [vmem:[#allocation3 + $0xa8] sm:$0xff] %vm572_vm0, %v2052_v46  ;;  %6538 = vpow2.f32 %v1313_v21  ;;  %v10652_v46 = vsub.f32 %v10650_v32, %v10651_v9  ;;  %v8105_v21 = vpop.f32.mrf.mxu2 }
 0x3d1   : > { %6540 = vrcp.f32 %v2802_v38  ;;  %v8107_v0 = vpop.f32.mrf.mxu3 }
 0x3d2   : > { %6542 = vpow2.f32 %v1315_v10  ;;  %v1319_v19 = vmul.f32 1.442695, %v10652_v46 }
 0x3d4   : > { %v2018_v30 = vpop.xlane.xlu1 %2017  ;;  %v2006_v17 = vpop.xlane.xlu2 %2005  ;;  %2620 = vmatmul.bf16.gmra.mxu3 %v8085_v63  ;;  %6544 = vpow2.f32 %v1319_v19 }
 0x3d5   : > { %v6537_v8 = vpop.eup %6536  ;;  %v2058_v6 = vadd.f32 %v2018_v30, %v1866_v2  ;;  %v2054_v13 = vadd.f32 %v2006_v17, %v1862_v51  ;;  %v2725_v51 = vld [vmem:[%s8117_s26] sm:$0xff] }
 0x3d6   : > { %2915 = vperm.xlu2 %6326, %v6535_v33   ;;  %2950 = vperm.xlu1 %6327, %v6537_v8   ;;  %v8097_v15 = vpop.eup %6538  ;;  %v2552_v8 = vadd.f32 %v7940_v28, %v7935_v47  ;;  %v10654_v47 = vld [vmem:[#allocation27_spill] sm:$0xff] }
 0x3d7   : > { %2091 = vst.msk [vmem:[#allocation3 + $0xd8] sm:$0xff] %vm572_vm0, %v2058_v6  ;;  %v1864_v45 = vmul.f32 %v8097_v15, %v1832_v11  ;;  %v6541_v25 = vpop.eup %6540  ;;  %v1931_v28 = vunpack.c.l.bf16 %v10654_v47 }
 0x3d8   : > { %2087 = vst.msk [vmem:[#allocation3 + $0xb8] sm:$0xff] %vm572_vm0, %v2054_v13  ;;  %v8110_v3 = vpop.eup %6542  ;;  %v8136_v10 = vpop.f32.mrf.mxu2 }
 0x3d9   : > { %v1865_v60 = vmul.f32 %v8110_v3, %v1833_v37  ;;  %v8138_v11 = vpop.f32.mrf.mxu3 }
 0x3da   : > { %v8133_v13 = vpop.eup %6544 }
 0x3dc   : > { %v2012_v49 = vpop.xlane.xlu2 %2011 }
 0x3dd   : > { %v2056_v12 = vadd.f32 %v2012_v49, %v1864_v45  ;;  %v1932_v45 = vunpack.c.l.bf16 %v8085_v63 }
 0x3de   : > { %2240 = vperm.xlu1 %6327, %v6525_v53   ;;  %2920 = vperm.xlu2 %6326, %v6541_v25   ;;  %v8122_v53 = vld [vmem:[%s10371_s5] ss:$0 sm:$0xff] }
 0x3df   : > { %2089 = vst.msk [vmem:[#allocation3 + $0xc8] sm:$0xff] %vm572_vm0, %v2056_v12  ;;  %v2812_v30 = vld [vmem:[#allocation3 + $0xb8] sm:$0xff]  ;;  %v2811_v12 = vld [vmem:[#allocation3 + $0xb0] sm:$0xff]  ;;  %v2025_v37 = vadd.f32 %v1932_v45, %v1931_v28 }
 0x3e0   : > { %6546 = vrcp.f32 %v2812_v30 }
 0x3e1   : > { %6548 = vrcp.f32 %v2811_v12  ;;  %v2562_v12 = vadd.f32 %v8015_v29, %v8022_v58 }
 0x3e4   : > { %v2015_v2 = vpop.xlane.xlu2 %2014  ;;  %v3138_v33 = vpop.f32.mrf.mxu0 }
 0x3e5   : > { %v2057_v17 = vadd.f32 %v2015_v2, %v1865_v60  ;;  %v3139_v38 = vadd.f32 %v8122_v53, %v3138_v33  ;;  %v8147_v60 = vpop.f32.mrf.mxu2  ;;  %v8149_v2 = vpop.f32.mrf.mxu3  ;;  %v1934_v33 = vunpack.c.h.bf16 %v8085_v63 }
 0x3e6   : > { %2245 = vperm.xlu1 %6327, %v6533_v16   ;;  %2215 = vperm.xlu2 %6326, %v8057_v5   ;;  %v2628_v5 = vadd.f32 %v2552_v8, %v2290_v24  ;;  %v1867_v16 = vmul.f32 %v8133_v13, %v1835_v18  ;;  %v6547_v32 = vpop.eup %6546  ;;  %v2292_v8 = vmul.f32 0.0, %v7938_v57  ;;  %v2293_v18 = vmul.f32 0.0, %v7944_v36 }
 0x3e7   : > { %2090 = vst.msk [vmem:[#allocation3 + $0xd0] sm:$0xff] %vm572_vm0, %v2057_v17  ;;  %v8131_v6 = vadd.f32 %v3139_v38, %v2725_v51  ;;  %v1933_v51 = vunpack.c.h.bf16 %v10654_v47  ;;  %v6549_v17 = vpop.eup %6548  ;;  %v2559_v38 = vadd.f32 %v7997_v61, %v7999_v56 }
 0x3e9   : > { %3252 = vadd.xlane.f32.xlu0 %v8131_v6  ;;  %v2028_v24 = vadd.f32 %v1934_v33, %v1933_v51  ;;  %v2631_v63 = vadd.f32 %v2559_v38, %v2293_v18 }
 0x3ec   : > { %v2866_v49 = vpop.permute.xlu1 %2865  ;;  %v2021_v25 = vpop.xlane.xlu2 %2020 }
 0x3ed   : > { %v3015_v9 = vmul.f32 %v2866_v49, %v2628_v5  ;;  %v2059_v46 = vadd.f32 %v2021_v25, %v1867_v16  ;;  %v3140_v30 = vpop.f32.mrf.mxu0  ;;  %v2726_v5 = vld [vmem:[%s8117_s26 + $0x8] sm:$0xff]  ;;  %v8163_v45 = vpop.f32.mrf.mxu2 }
 0x3ee   : > { %2230 = vperm.xlu2 %6326, %v7994_v62   ;;  %2970 = vperm.xlu1 %6327, %v6547_v32   ;;  %v3141_v27 = vadd.f32 %v8122_v53, %v3140_v30  ;;  %v2564_v32 = vadd.f32 %v8039_v55, %v8043_v44  ;;  %v3316_v44 = vmul.f32 %v8131_v6, %v8131_v6 }
 0x3ef   : > { %v3046_v19 = vpack.c.bf16 %v7949_v35, %v3015_v9  ;;  %2092 = vst.msk [vmem:[#allocation3 + $0xe0] sm:$0xff] %vm572_vm0, %v2059_v46  ;;  %v2557_v35 = vadd.f32 %v7977_v43, %v7979_v41  ;;  %v8166_v41 = vpop.f32.mrf.mxu3 }
 0x3f0   : > { %v8161_v47 = vadd.f32 %v3141_v27, %v2726_v5 }
 0x3f1   : > { %3142 = vmatmul.bf16.gmra.mxu0 %v3046_v19  ;;  %2026 = vadd.xlane.f32.xlu0 %v2025_v37  ;;  %v2630_v16 = vadd.f32 %v2557_v35, %v2292_v8 }
 0x3f2   : > { %10655 = vst [vmem:[#allocation14_spill] sm:$0xff] %v8161_v47  ;;  %v3317_v36 = vmul.f32 %v8161_v47, %v8161_v47 }
 0x3f3   : > { %v3017_v43 = vmul.f32 %v7955_v22, %v2630_v16 }
 0x3f4   : > { %v2881_v62 = vpop.permute.xlu1 %2880  ;;  %v2161_v56 = vpop.permute.xlu2 %2160 }
 0x3f5   : > { %v3018_v28 = vmul.f32 %v2881_v62, %v2631_v63  ;;  %v2294_v49 = vmul.f32 0.0, %v2161_v56  ;;  %v8174_v9 = vpop.f32.mrf.mxu2  ;;  %v2577_v63 = vadd.f32 %v8138_v11, %v8136_v10  ;;  %v10664_v10 = vld [vmem:[#allocation63_spill] sm:$0xff] }
 0x3f6   : > { %2965 = vperm.xlu2 %6326, %v6549_v17  }
 0x3f7   : > { %v3047_v57 = vpack.c.bf16 %v3018_v28, %v3017_v43  ;;  %v8176_v22 = vpop.f32.mrf.mxu3  ;;  %v2632_v37 = vadd.f32 %v2562_v12, %v2294_v49  ;;  %v2579_v49 = vadd.f32 %v8149_v2, %v8147_v60 }
 0x3f9   : > { %2029 = vadd.xlane.f32.xlu0 %v2028_v24 }
 0x3fc   : > { %v2166_v61 = vpop.permute.xlu1 %2165  ;;  %v2891_v33 = vpop.permute.xlu2 %2890 }
 0x3fd   : > { %v2295_v25 = vmul.f32 0.0, %v2166_v61  ;;  %v8178_v17 = vpop.f32.mrf.mxu2 }
 0x3ff   : > { %v2633_v19 = vadd.f32 %v2564_v32, %v2295_v25  ;;  %v8180_v35 = vpop.f32.mrf.mxu3 }
 0x401   : > { %3147 = vmatmul.bf16.gmra.mxu0 %v3047_v57  ;;  %3350 = vadd.xlane.f32.xlu0 %v3317_v36  ;;  %v3020_v30 = vmul.f32 %v2891_v33, %v2633_v19 }
 0x404   : > { %v2886_v46 = vpop.permute.xlu1 %2885 }
 0x405   : > { %v3019_v51 = vmul.f32 %v2886_v46, %v2632_v37  ;;  %v8185_v58 = vpop.f32.mrf.mxu2 }
 0x407   : > { %v3048_v62 = vpack.c.bf16 %v3020_v30, %v3019_v51  ;;  %v8187_v55 = vpop.f32.mrf.mxu3 }
 0x40c   : > { %v8191_v8 = vpop.permute.xlu1 %2185 }
 0x40d   : > { %v8193_v18 = vpop.f32.mrf.mxu2 }
 0x40f   : > { %v8195_v27 = vpop.f32.mrf.mxu3 }
 0x411   : > { %3152 = vmatmul.bf16.gmra.mxu0 %v3048_v62 }
 0x414   : > { %v8197_v16 = vpop.permute.xlu1 %2205 }
 0x415   : > { %v2504_v28 = vpop.f32.mrf.mxu2 }
 0x417   : > { %v2593_v61 = vpop.f32.mrf.mxu3 }
 0x418   : > { %v8182_v29 = vpop.permute.xlu2 %2905  ;;  %3254 = vadd.xlane.f32.xlu1 %v8161_v47  ;;  %v2594_v2 = vadd.f32 %v2593_v61, %v2504_v28 }
 0x41c   : > { %v8205_v25 = vpop.permute.xlu1 %2220 }
 0x41d   : > { %v8209_v19 = vpop.f32.mrf.mxu2 }
 0x41e   : > { %10656 = vst [vmem:[#allocation37_spill] sm:$0xff] %v8209_v19 }
 0x41f   : > { %3348 = vadd.xlane.f32.xlu2 %v3316_v44  ;;  %v8211_v37 = vpop.f32.mrf.mxu3 }
 0x420   : > { %v2191_v38 = vpop.permute.xlu2 %2190  ;;  %10657 = vst [vmem:[#allocation42_spill] sm:$0xff] %v8211_v37 }
 0x421   : > { %v2300_v5 = vmul.f32 0.0, %v2191_v38 }
 0x423   : > { %v2638_v43 = vadd.f32 %v2577_v63, %v2300_v5 }
 0x424   : > { %v2226_v11 = vpop.permute.xlu1 %2225 }
 0x425   : > { %v2307_v33 = vmul.f32 0.0, %v2226_v11  ;;  %v8217_v30 = vpop.f32.mrf.mxu2  ;;  %v10663_v11 = vld [vmem:[#allocation62_spill] sm:$0xff] }
 0x426   : > { %10658 = vst [vmem:[#allocation44_spill] sm:$0xff] %v8217_v30  ;;  %v10665_v34 = vsub.f32 %v10663_v11, %v10664_v10 }
 0x427   : > { %v8219_v60 = vpop.f32.mrf.mxu3  ;;  %v2645_v62 = vadd.f32 %v2594_v2, %v2307_v33 }
 0x428   : > { %v2196_v24 = vpop.permute.xlu2 %2195  ;;  %10659 = vst [vmem:[#allocation66_spill] sm:$0xff] %v8219_v60  ;;  %v1323_v40 = vmul.f32 1.442695, %v10665_v34 }
 0x429   : > { %v2301_v56 = vmul.f32 0.0, %v2196_v24 }
 0x42a   : > { %6550 = vpow2.f32 %v1323_v40 }
 0x42b   : > { %v2639_v12 = vadd.f32 %v2579_v49, %v2301_v56 }
 0x42d   : > { %v2512_v5 = vpop.f32.mrf.mxu2 }
 0x42f   : > { %v2601_v63 = vpop.f32.mrf.mxu3 }
 0x430   : > { %v2916_v57 = vpop.permute.xlu2 %2915 }
 0x431   : > { %v8201_v36 = vmul.f32 %v2916_v57, %v2638_v43  ;;  %v2602_v57 = vadd.f32 %v2601_v63, %v2512_v5  ;;  %v10668_v5 = vsub.f32 %v10666_v23, %v10667_v52  ;;  %v1838_v23 = vld [vmem:[#allocation3 + $0xf8] sm:$0xff] }
 0x433   : > { %v1325_v63 = vmul.f32 1.442695, %v10668_v5 }
 0x435   : > { %v2514_v61 = vpop.f32.mrf.mxu2  ;;  %6552 = vpow2.f32 %v1325_v63 }
 0x437   : > { %v2603_v33 = vpop.f32.mrf.mxu3 }
 0x438   : > { %v2921_v32 = vpop.permute.xlu2 %2920 }
 0x439   : > { %v8207_v46 = vmul.f32 %v2921_v32, %v2639_v12 }
 0x440   : > { %v8215_v51 = vpop.permute.xlu2 %2215 }
 0x448   : > { %v2951_v44 = vpop.permute.xlu1 %2950  ;;  %v8223_v24 = vpop.permute.xlu2 %2230 }
 0x449   : > { %v8221_v38 = vmul.f32 %v2951_v44, %v2645_v62  ;;  %10661 = vst [vmem:[#allocation39_spill] sm:$0xff] %v8223_v24  ;;  %v2604_v44 = vadd.f32 %v2603_v33, %v2514_v61 }
 0x44b   : > { %10660 = vst [vmem:[#allocation67_spill] sm:$0xff] %v8221_v38 }
 0x450   : > { %v2241_v43 = vpop.permute.xlu1 %2240  ;;  %v2966_v12 = vpop.permute.xlu2 %2965 }
 0x451   : > { %v2310_v56 = vmul.f32 0.0, %v2241_v43 }
 0x453   : > { %v2648_v49 = vadd.f32 %v2602_v57, %v2310_v56  ;;  %v8235_v57 = vpop.eup %6550 }
 0x454   : > { %v8243_v52 = vpop.eup %6552 }
 0x455   : > { %v8225_v32 = vmul.f32 %v2966_v12, %v2648_v49  ;;  %v1837_v49 = vld [vmem:[#allocation3 + $0xf0] sm:$0xff] }
 0x456   : > { %v1869_v34 = vmul.f32 %v8235_v57, %v1837_v49  ;;  %v2728_v49 = vld [vmem:[%s8117_s26 + $0x18] sm:$0xff] }
 0x457   : > { %10662 = vst [vmem:[#allocation38_spill] sm:$0xff] %v8225_v32 }
 0x458   : > { %v2246_v28 = vpop.permute.xlu1 %2245 }
 0x459   : > { %v2311_v2 = vmul.f32 0.0, %v2246_v28  ;;  %v1870_v28 = vmul.f32 %v8243_v52, %v1838_v23  ;;  %v6264_v23 = vld [vmem:[%s10374_s8 + $0x30] sm:$0xff] }
 0x45b   : > { %v2649_v43 = vadd.f32 %v2604_v44, %v2311_v2  ;;  %v2727_v2 = vld [vmem:[%s8117_s26 + $0x10] sm:$0xff] }
 0x45c   : > { %v8230_v62 = vpop.xlane.xlu0 %3252 }
 0x45d   : > { %v3412_v40 = vmul.f32 0.25, %v8230_v62 }
 0x45f   : > { %v3476_v30 = vmul.f32 %v3412_v40, %v3412_v40 }
 0x460   : > { %v2971_v56 = vpop.permute.xlu1 %2970 }
 0x461   : > { %v8237_v10 = vmul.f32 %v2971_v56, %v2649_v43  ;;  %v6265_v56 = vld [vmem:[%s10374_s8 + $0x38] sm:$0xff] }
 0x462   : > { %4142 = vmatpush.bf16.msrb.mxu1 %v6265_v56 }
 0x463   : > { %10669 = vst [vmem:[#allocation6_spill] sm:$0xff] %v8237_v10 }
 0x464   : > { %v2027_v12 = vpop.xlane.xlu0 %2026 }
 0x465   : > { %v2061_v11 = vadd.f32 %v2027_v12, %v1869_v34 }
 0x466   : > { %4143 = vmatpush.bf16.msrb.mxu1 %v6264_v23 }
 0x467   : > { %2094 = vst.msk [vmem:[#allocation3 + $0xf0] sm:$0xff] %vm572_vm0, %v2061_v11 }
 0x46c   : > { %v2030_v61 = vpop.xlane.xlu0 %2029 }
 0x46d   : > { %v2062_v33 = vadd.f32 %v2030_v61, %v1870_v28  ;;  %v6263_v61 = vld [vmem:[%s10374_s8 + $0x28] sm:$0xff] }
 0x46e   : > { %v3143_v44 = vpop.f32.mrf.mxu0  ;;  %4144 = vmatpush.bf16.msrb.mxu1 %v6263_v61  ;;  %v6260_v61 = vld [vmem:[%s10374_s8 + $0x10] sm:$0xff] }
 0x46f   : > { %v3144_v5 = vadd.f32 %v8122_v53, %v3143_v44  ;;  %2095 = vst.msk [vmem:[#allocation3 + $0xf8] sm:$0xff] %vm572_vm0, %v2062_v33  ;;  %v2729_v33 = vld [vmem:[%s8117_s26 + $0x20] sm:$0xff] }
 0x471   : > { %v8249_v63 = vadd.f32 %v3144_v5, %v2727_v2 }
 0x473   : > { %3256 = vadd.xlane.f32.xlu0 %v8249_v63  ;;  %v3318_v43 = vmul.f32 %v8249_v63, %v8249_v63 }
 0x475   : > { %3352 = vadd.xlane.f32.xlu2 %v3318_v43  ;;  %v6262_v43 = vld [vmem:[%s10374_s8 + $0x20] sm:$0xff] }
 0x476   : > { %v3145_v34 = vpop.f32.mrf.mxu0  ;;  %4145 = vmatpush.bf16.msrb.mxu1 %v6262_v43 }
 0x477   : > { %v3146_v12 = vadd.f32 %v8122_v53, %v3145_v34  ;;  %v2730_v34 = vld [vmem:[%s8117_s26 + $0x28] sm:$0xff] }
 0x479   : > { %v8259_v11 = vadd.f32 %v3146_v12, %v2728_v49  ;;  %v6261_v49 = vld [vmem:[%s10374_s8 + $0x18] sm:$0xff] }
 0x47a   : > { %4146 = vmatpush.bf16.msrb.mxu1 %v6261_v49 }
 0x47b   : > { %10670 = vst [vmem:[#allocation5_spill] sm:$0xff] %v8259_v11  ;;  %3258 = vadd.xlane.f32.xlu1 %v8259_v11  ;;  %v3319_v28 = vmul.f32 %v8259_v11, %v8259_v11 }
 0x47d   : > { %3354 = vadd.xlane.f32.xlu0 %v3319_v28 }
 0x47e   : > { %v3148_v2 = vpop.f32.mrf.mxu0  ;;  %4147 = vmatpush.bf16.msrb.mxu1 %v6260_v61  ;;  %v6258_v61 = vld [vmem:[%s10374_s8] sm:$0xff] }
 0x47f   : > { %v3149_v44 = vadd.f32 %v8122_v53, %v3148_v2 }
 0x481   : > { %v8272_v5 = vadd.f32 %v3149_v44, %v2729_v33  ;;  %v3351_v33 = vpop.xlane.xlu0 %3350 }
 0x482   : > { %v3445_v49 = vmul.f32 0.25, %v3351_v33 }
 0x483   : > { %v3320_v56 = vmul.f32 %v8272_v5, %v8272_v5 }
 0x485   : > { %3260 = vadd.xlane.f32.xlu0 %v8272_v5  ;;  %3356 = vadd.xlane.f32.xlu2 %v3320_v56  ;;  %v6259_v56 = vld [vmem:[%s10374_s8 + $0x8] sm:$0xff] }
 0x486   : > { %v3150_v12 = vpop.f32.mrf.mxu0  ;;  %4148 = vmatpush.bf16.msrb.mxu1 %v6259_v56 }
 0x487   : > { %v3151_v23 = vadd.f32 %v8122_v53, %v3150_v12  ;;  %v2731_v12 = vld [vmem:[%s8117_s26 + $0x30] sm:$0xff] }
 0x489   : > { %v8285_v28 = vadd.f32 %v3151_v23, %v2730_v34 }
 0x48a   : > { %4149 = vmatpush.bf16.msrb.mxu1 %v6258_v61 }
 0x48b   : > { %3262 = vadd.xlane.f32.xlu1 %v8285_v28  ;;  %v3255_v2 = vpop.xlane.xlu1 %3254  ;;  %v3321_v44 = vmul.f32 %v8285_v28, %v8285_v28 }
 0x48c   : > { %v3413_v43 = vmul.f32 0.25, %v3255_v2 }
 0x48d   : > { %3358 = vadd.xlane.f32.xlu0 %v3321_v44 }
 0x48e   : > { %v3477_v34 = vmul.f32 %v3413_v43, %v3413_v43  ;;  %v3153_v23 = vpop.f32.mrf.mxu0 }
 0x48f   : > { %v3154_v32 = vadd.f32 %v8122_v53, %v3153_v23 }
 0x490   : > { %v3509_v10 = vsub.f32 %v3445_v49, %v3477_v34 }
 0x491   : > { %v8299_v60 = vadd.f32 %v3154_v32, %v2731_v12  ;;  %v2732_v32 = vld [vmem:[%s8117_s26 + $0x38] sm:$0xff] }
 0x492   : > { %v3541_v2 = vmax.f32 %v3509_v10, 0.0  ;;  %v3349_v44 = vpop.xlane.xlu2 %3348 }
 0x493   : > { %v3444_v33 = vmul.f32 0.25, %v3349_v44  ;;  %v3322_v37 = vmul.f32 %v8299_v60, %v8299_v60 }
 0x494   : > { %v3605_v62 = vadd.f32 1e-05, %v3541_v2 }
 0x495   : > { %v3508_v19 = vsub.f32 %v3444_v33, %v3476_v30  ;;  %3360 = vadd.xlane.f32.xlu1 %v3322_v37  ;;  %3264 = vadd.xlane.f32.xlu0 %v8299_v60 }
 0x496   : > { %6554 = vrsqrt.f32 %v3605_v62  ;;  %v3155_v56 = vpop.f32.mrf.mxu0  ;;  %vm3652_vm2 = vweird.f32 %v3605_v62 }
 0x497   : > { %v3540_v49 = vmax.f32 %v3508_v19, 0.0  ;;  %v3156_v34 = vadd.f32 %v8122_v53, %v3155_v56  ;;  %v3573_v56 = vsub.f32 %v8161_v47, %v3413_v43  ;;  %v8324_v43 = vld [vmem:[%s10373_s7] ss:$0 sm:$0xff] }
 0x499   : > { %v3604_v12 = vadd.f32 1e-05, %v3540_v49  ;;  %v8309_v10 = vadd.f32 %v3156_v34, %v2732_v32 }
 0x49b   : > { %6556 = vrsqrt.f32 %v3604_v12  ;;  %3266 = vadd.xlane.f32.xlu2 %v8309_v10  ;;  %v3323_v23 = vmul.f32 %v8309_v10, %v8309_v10  ;;  %vm3642_vm5 = vweird.f32 %v3604_v12 }
 0x49c   : > { %v6555_v61 = vpop.eup %6554 }
 0x49d   : > { %v3647_v30 = vmul.f32 %v6555_v61, %v3605_v62  ;;  %3362 = vadd.xlane.f32.xlu0 %v3323_v23  ;;  %vm3653_vm1 = vweird.f32 %v6555_v61  ;;  %v8318_v23 = vld [vmem:[%s10372_s6] ss:$0 sm:$0xff] }
 0x49e   : > { %vm3654_vm3 = vmor %vm3652_vm2, %vm3653_vm1 }
 0x49f   : > { %v3648_v37 = vmul.f32 %v6555_v61, %v3647_v30 }
 0x4a1   : > { %v6557_v2 = vpop.eup %6556  ;;  %v3649_v44 = vmul.f32 0.5, %v3648_v37  ;;  %v2814_v37 = vld [vmem:[#allocation3 + $0xc8] sm:$0xff] }
 0x4a2   : > { %v3637_v33 = vmul.f32 %v6557_v2, %v3604_v12  ;;  %vm3643_vm4 = vweird.f32 %v6557_v2  ;;  %6558 = vrcp.f32 %v2814_v37  ;;  %v10671_v12 = vld [vmem:[#allocation77_spill] sm:$0xff] }
 0x4a3   : > { %v3650_v24 = vsub.f32 1.5, %v3649_v44  ;;  %v3572_v44 = vsub.f32 %v8131_v6, %v3412_v40  ;;  %vm3644_vm6 = vmor %vm3642_vm5, %vm3643_vm4 }
 0x4a4   : > { %v3638_v19 = vmul.f32 %v6557_v2, %v3637_v33 }
 0x4a5   : > { %v3651_v53 = vmul.f32 %v6555_v61, %v3650_v24 }
 0x4a6   : > { %v3639_v32 = vmul.f32 0.5, %v3638_v19 }
 0x4a7   : > { %v3655_v49 = vsel %vm3654_vm3, %v6555_v61, %v3651_v53 }
 0x4a8   : > { %v3640_v34 = vsub.f32 1.5, %v3639_v32  ;;  %v3957_v30 = vmul.f32 %v3655_v49, %v3573_v56  ;;  %v2797_v32 = vld [vmem:[#allocation3 + $0x40] sm:$0xff]  ;;  %v2818_v49 = vld [vmem:[#allocation3 + $0xe8] sm:$0xff] }
 0x4a9   : > { %v10672_v56 = vld [vmem:[#allocation61_spill] sm:$0xff] }
 0x4aa   : > { %v3641_v38 = vmul.f32 %v6557_v2, %v3640_v34  ;;  %v3992_v62 = vmul.f32 %v8318_v23, %v3957_v30  ;;  %v2798_v34 = vld [vmem:[#allocation3 + $0x48] sm:$0xff] }
 0x4ac   : > { %v3645_v24 = vsel %vm3644_vm6, %v6557_v2, %v3641_v38  ;;  %v4027_v19 = vadd.f32 %v8324_v43, %v3992_v62  ;;  %v2815_v38 = vld [vmem:[#allocation3 + $0xd0] sm:$0xff]  ;;  %v6559_v2 = vpop.eup %6558 }
 0x4ad   : > { %v3956_v61 = vmul.f32 %v3645_v24, %v3572_v44  ;;  %6560 = vrcp.f32 %v2815_v38  ;;  %v2800_v24 = vld [vmem:[#allocation3 + $0x58] sm:$0xff] }
 0x4ae   : > { %2255 = vperm.xlu1 %6327, %v8097_v15   ;;  %6562 = vrcp.f32 %v2797_v32 }
 0x4af   : > { %v3991_v33 = vmul.f32 %v8318_v23, %v3956_v61  ;;  %6564 = vrcp.f32 %v2818_v49  ;;  %v2803_v61 = vld [vmem:[#allocation3 + $0x70] sm:$0xff] }
 0x4b0   : > { %6566 = vrcp.f32 %v2798_v34 }
 0x4b1   : > { %2170 = vperm.xlu0 %6328, %v10671_v12   ;;  %v4026_v40 = vadd.f32 %v8324_v43, %v3991_v33 }
 0x4b3   : > { %2980 = vperm.xlu2 %6326, %v6559_v2   ;;  %v4058_v53 = vpack.c.bf16 %v4027_v19, %v4026_v40  ;;  %v6561_v15 = vpop.eup %6560  ;;  %v2804_v19 = vld [vmem:[#allocation3 + $0x78] sm:$0xff] }
 0x4b4   : > { %v6563_v30 = vpop.eup %6562 }
 0x4b5   : > { %4150 = vmatmul.bf16.vlgmr.msrb.gmra.mxu1 %v4058_v53  ;;  %v6565_v37 = vpop.eup %6564 }
 0x4b6   : > { %2265 = vperm.xlu1 %6327, %v8076_v50   ;;  %v6567_v44 = vpop.eup %6566  ;;  %v2820_v50 = vld [vmem:[#allocation3 + $0xf8] sm:$0xff] }
 0x4b7   : > { %6568 = vrcp.f32 %v2820_v50 }
 0x4b8   : > { %6570 = vrcp.f32 %v2800_v24 }
 0x4b9   : > { %2175 = vperm.xlu0 %6328, %v10672_v56   ;;  %6572 = vrcp.f32 %v2803_v61 }
 0x4ba   : > { %6574 = vrcp.f32 %v2804_v19 }
 0x4bb   : > { %2985 = vperm.xlu2 %6326, %v6561_v15  }
 0x4be   : > { %2270 = vperm.xlu1 %6327, %v8133_v13   ;;  %v6569_v13 = vpop.eup %6568 }
 0x4bf   : > { %v6571_v62 = vpop.eup %6570 }
 0x4c1   : > { %2895 = vperm.xlu0 %6328, %v6563_v30  }
 0x4c3   : > { %2275 = vperm.xlu2 %6326, %v8029_v7  }
 0x4c6   : > { %3000 = vperm.xlu1 %6327, %v6565_v37   ;;  %v2805_v37 = vld [vmem:[#allocation3 + $0x80] sm:$0xff] }
 0x4c9   : > { %2900 = vperm.xlu0 %6328, %v6567_v44  }
 0x4cb   : > { %2280 = vperm.xlu2 %6326, %v8235_v57   ;;  %v6573_v57 = vpop.eup %6572 }
 0x4ce   : > { %2285 = vperm.xlu1 %6327, %v8243_v52  }
 0x4d1   : > { %2180 = vperm.xlu0 %6328, %v8002_v59  }
 0x4d3   : > { %3010 = vperm.xlu2 %6326, %v6569_v13  }
 0x4d9   : > { %2910 = vperm.xlu0 %6328, %v6571_v62  }
 0x4e1   : > { %2200 = vperm.xlu0 %6328, %v8019_v1   ;;  %v6575_v1 = vpop.eup %6574 }
 0x4e6   : > { %v3257_v7 = vpop.xlane.xlu0 %3256 }
 0x4e7   : > { %v8340_v33 = vmul.f32 0.25, %v3257_v7 }
 0x4e8   : > { %v3353_v12 = vpop.xlane.xlu2 %3352 }
 0x4e9   : > { %v3478_v52 = vmul.f32 %v8340_v33, %v8340_v33  ;;  %v3446_v40 = vmul.f32 0.25, %v3353_v12  ;;  %2925 = vperm.xlu0 %6328, %v6573_v57  }
 0x4eb   : > { %v3510_v59 = vsub.f32 %v3446_v40, %v3478_v52 }
 0x4ed   : > { %v3542_v38 = vmax.f32 %v3510_v59, 0.0 }
 0x4ee   : > { %v3259_v2 = vpop.xlane.xlu1 %3258 }
 0x4ef   : > { %v3606_v53 = vadd.f32 1e-05, %v3542_v38  ;;  %v8344_v32 = vmul.f32 0.25, %v3259_v2 }
 0x4f0   : > { %v3355_v56 = vpop.xlane.xlu0 %3354 }
 0x4f1   : > { %6576 = vrsqrt.f32 %v3606_v53  ;;  %v3479_v15 = vmul.f32 %v8344_v32, %v8344_v32  ;;  %2930 = vperm.xlu0 %6328, %v6575_v1   ;;  %v3447_v49 = vmul.f32 0.25, %v3355_v56  ;;  %v2806_v56 = vld [vmem:[#allocation3 + $0x88] sm:$0xff]  ;;  %vm3662_vm8 = vweird.f32 %v3606_v53 }
 0x4f2   : > { %6578 = vrcp.f32 %v2805_v37 }
 0x4f3   : > { %v3511_v34 = vsub.f32 %v3447_v49, %v3479_v15 }
 0x4f5   : > { %v3543_v30 = vmax.f32 %v3511_v34, 0.0 }
 0x4f7   : > { %v6577_v44 = vpop.eup %6576  ;;  %v3607_v24 = vadd.f32 1e-05, %v3543_v30 }
 0x4f8   : > { %v3657_v50 = vmul.f32 %v6577_v44, %v3606_v53  ;;  %v3261_v13 = vpop.xlane.xlu0 %3260  ;;  %v3357_v62 = vpop.xlane.xlu2 %3356  ;;  %vm3663_vm7 = vweird.f32 %v6577_v44 }
 0x4f9   : > { %v8348_v61 = vmul.f32 0.25, %v3261_v13  ;;  %2210 = vperm.xlu0 %6328, %v8034_v48   ;;  %6580 = vrsqrt.f32 %v3607_v24  ;;  %v3448_v57 = vmul.f32 0.25, %v3357_v62  ;;  %v6579_v38 = vpop.eup %6578  ;;  %vm3664_vm9 = vmor %vm3662_vm8, %vm3663_vm7  ;;  %vm3672_vm11 = vweird.f32 %v3607_v24 }
 0x4fa   : > { %v3658_v7 = vmul.f32 %v6577_v44, %v3657_v50  ;;  %6582 = vrcp.f32 %v2806_v56 }
 0x4fb   : > { %v3480_v19 = vmul.f32 %v8348_v61, %v8348_v61 }
 0x4fc   : > { %v3659_v12 = vmul.f32 0.5, %v3658_v7 }
 0x4fd   : > { %v3512_v52 = vsub.f32 %v3448_v57, %v3480_v19  ;;  %v3574_v57 = vsub.f32 %v8249_v63, %v8340_v33 }
 0x4fe   : > { %v3660_v40 = vsub.f32 1.5, %v3659_v12  ;;  %v3263_v59 = vpop.xlane.xlu1 %3262 }
 0x4ff   : > { %v3544_v2 = vmax.f32 %v3512_v52, 0.0  ;;  %v8353_v1 = vmul.f32 0.25, %v3263_v59  ;;  %v6581_v15 = vpop.eup %6580  ;;  %v2807_v52 = vld [vmem:[#allocation3 + $0x90] sm:$0xff] }
 0x500   : > { %v3359_v49 = vpop.xlane.xlu0 %3358  ;;  %v3661_v48 = vmul.f32 %v6577_v44, %v3660_v40  ;;  %v3667_v34 = vmul.f32 %v6581_v15, %v3607_v24  ;;  %vm3673_vm10 = vweird.f32 %v6581_v15  ;;  %v6583_v59 = vpop.eup %6582 }
 0x501   : > { %v3608_v30 = vadd.f32 1e-05, %v3544_v2  ;;  %v3481_v37 = vmul.f32 %v8353_v1, %v8353_v1  ;;  %2935 = vperm.xlu0 %6328, %v6579_v38   ;;  %v3449_v50 = vmul.f32 0.25, %v3359_v49  ;;  %vm3674_vm12 = vmor %vm3672_vm11, %vm3673_vm10 }
 0x502   : > { %v3668_v13 = vmul.f32 %v6581_v15, %v3667_v34  ;;  %v3665_v19 = vsel %vm3664_vm9, %v6577_v44, %v3661_v48  ;;  %v3575_v44 = vsub.f32 %v8259_v11, %v8344_v32 }
 0x503   : > { %6584 = vrsqrt.f32 %v3608_v30  ;;  %v3513_v62 = vsub.f32 %v3449_v50, %v3481_v37  ;;  %v3958_v49 = vmul.f32 %v3665_v19, %v3574_v57  ;;  %vm3682_vm14 = vweird.f32 %v3608_v30 }
 0x504   : > { %v3669_v7 = vmul.f32 0.5, %v3668_v13  ;;  %6586 = vrcp.f32 %v2807_v52 }
 0x505   : > { %v3545_v12 = vmax.f32 %v3513_v62, 0.0 }
 0x506   : > { %v3670_v40 = vsub.f32 1.5, %v3669_v7  ;;  %v3993_v7 = vmul.f32 %v8318_v23, %v3958_v49 }
 0x507   : > { %v3609_v2 = vadd.f32 1e-05, %v3545_v12 }
 0x508   : > { %v3361_v47 = vpop.xlane.xlu1 %3360  ;;  %v3265_v38 = vpop.xlane.xlu0 %3264  ;;  %v3671_v53 = vmul.f32 %v6581_v15, %v3670_v40  ;;  %v4028_v11 = vadd.f32 %v8324_v43, %v3993_v7 }
 0x509   : > { %v6585_v56 = vpop.eup %6584  ;;  %v8359_v34 = vmul.f32 0.25, %v3265_v38  ;;  %2940 = vperm.xlu0 %6328, %v6583_v59   ;;  %6588 = vrsqrt.f32 %v3609_v2  ;;  %v3450_v48 = vmul.f32 0.25, %v3361_v47  ;;  %vm3692_vm1 = vweird.f32 %v3609_v2 }
 0x50a   : > { %v3677_v33 = vmul.f32 %v6585_v56, %v3608_v30  ;;  %v3675_v50 = vsel %vm3674_vm12, %v6581_v15, %v3671_v53  ;;  %v6587_v52 = vpop.eup %6586  ;;  %vm3683_vm13 = vweird.f32 %v6585_v56 }
 0x50b   : > { %v3482_v37 = vmul.f32 %v8359_v34, %v8359_v34  ;;  %v3959_v62 = vmul.f32 %v3675_v50, %v3575_v44  ;;  %vm3684_vm15 = vmor %vm3682_vm14, %vm3683_vm13 }
 0x50c   : > { %v3678_v13 = vmul.f32 %v6585_v56, %v3677_v33 }
 0x50d   : > { %v3514_v24 = vsub.f32 %v3450_v48, %v3482_v37  ;;  %v3994_v12 = vmul.f32 %v8318_v23, %v3959_v62 }
 0x50e   : > { %v3679_v19 = vmul.f32 0.5, %v3678_v13  ;;  %v3267_v57 = vpop.xlane.xlu2 %3266 }
 0x50f   : > { %v3546_v40 = vmax.f32 %v3514_v24, 0.0  ;;  %v8367_v32 = vmul.f32 0.25, %v3267_v57  ;;  %v6589_v59 = vpop.eup %6588  ;;  %v4029_v15 = vadd.f32 %v8324_v43, %v3994_v12  ;;  %v3576_v24 = vsub.f32 %v8272_v5, %v8348_v61  ;;  %v2809_v57 = vld [vmem:[#allocation3 + $0xa0] sm:$0xff] }
 0x510   : > { %v3680_v38 = vsub.f32 1.5, %v3679_v19  ;;  %v3363_v47 = vpop.xlane.xlu0 %3362  ;;  %v3687_v53 = vmul.f32 %v6589_v59, %v3609_v2  ;;  %vm3693_vm0 = vweird.f32 %v6589_v59 }
 0x511   : > { %v3610_v44 = vadd.f32 1e-05, %v3546_v40  ;;  %v3483_v49 = vmul.f32 %v8367_v32, %v8367_v32  ;;  %2945 = vperm.xlu0 %6328, %v6587_v52   ;;  %v3451_v48 = vmul.f32 0.25, %v3363_v47  ;;  %v4059_v37 = vpack.c.bf16 %v4029_v15, %v4028_v11  ;;  %vm3694_vm2 = vmor %vm3692_vm1, %vm3693_vm0 }
 0x512   : > { %v3681_v33 = vmul.f32 %v6585_v56, %v3680_v38  ;;  %v3688_v50 = vmul.f32 %v6589_v59, %v3687_v53  ;;  %v3577_v11 = vsub.f32 %v8285_v28, %v8353_v1 }
 0x513   : > { %6590 = vrsqrt.f32 %v3610_v44  ;;  %v3515_v13 = vsub.f32 %v3451_v48, %v3483_v49  ;;  %4155 = vmatmul.bf16.gmra.mxu1 %v4059_v37  ;;  %v2810_v37 = vld [vmem:[#allocation3 + $0xa8] sm:$0xff]  ;;  %vm3702_vm4 = vweird.f32 %v3610_v44 }
 0x514   : > { %v3689_v62 = vmul.f32 0.5, %v3688_v50  ;;  %v3685_v7 = vsel %vm3684_vm15, %v6585_v56, %v3681_v33  ;;  %6592 = vrcp.f32 %v2809_v57 }
 0x515   : > { %v3547_v19 = vmax.f32 %v3515_v13, 0.0  ;;  %v3960_v52 = vmul.f32 %v3685_v7, %v3576_v24 }
 0x516   : > { %v3690_v12 = vsub.f32 1.5, %v3689_v62 }
 0x517   : > { %v3611_v40 = vadd.f32 1e-05, %v3547_v19  ;;  %v3995_v53 = vmul.f32 %v8318_v23, %v3960_v52 }
 0x518   : > { %v3691_v47 = vmul.f32 %v6589_v59, %v3690_v12  ;;  %v3578_v12 = vsub.f32 %v8299_v60, %v8359_v34  ;;  %v8391_v34 = vld [vmem:[%s10375_s9] ss:$0 sm:$0xff] }
 0x519   : > { %v6591_v38 = vpop.eup %6590  ;;  %2235 = vperm.xlu0 %6328, %v8069_v31   ;;  %6594 = vrsqrt.f32 %v3611_v40  ;;  %v4030_v31 = vadd.f32 %v8324_v43, %v3995_v53  ;;  %vm3712_vm7 = vweird.f32 %v3611_v40 }
 0x51a   : > { %v3697_v30 = vmul.f32 %v6591_v38, %v3610_v44  ;;  %v3695_v56 = vsel %vm3694_vm2, %v6589_v59, %v3691_v47  ;;  %v6593_v48 = vpop.eup %6592  ;;  %vm3703_vm3 = vweird.f32 %v6591_v38  ;;  %6596 = vrcp.f32 %v2810_v37 }
 0x51b   : > { %v3961_v15 = vmul.f32 %v3695_v56, %v3577_v11  ;;  %vm3704_vm5 = vmor %vm3702_vm4, %vm3703_vm3  ;;  %v3579_v56 = vsub.f32 %v8309_v10, %v8367_v32 }
 0x51c   : > { %v3698_v61 = vmul.f32 %v6591_v38, %v3697_v30 }
 0x51d   : > { %v3996_v33 = vmul.f32 %v8318_v23, %v3961_v15 }
 0x51e   : > { %v3699_v49 = vmul.f32 0.5, %v3698_v61 }
 0x51f   : > { %v6595_v2 = vpop.eup %6594  ;;  %v4031_v13 = vadd.f32 %v8324_v43, %v3996_v33 }
 0x520   : > { %v3700_v50 = vsub.f32 1.5, %v3699_v49  ;;  %v3707_v1 = vmul.f32 %v6595_v2, %v3611_v40  ;;  %vm3713_vm6 = vweird.f32 %v6595_v2  ;;  %v6597_v47 = vpop.eup %6596  ;;  %v2813_v49 = vld [vmem:[#allocation3 + $0xc0] sm:$0xff] }
 0x521   : > { %2955 = vperm.xlu0 %6328, %v6593_v48   ;;  %v4060_v59 = vpack.c.bf16 %v4031_v13, %v4030_v31  ;;  %vm3714_vm8 = vmor %vm3712_vm7, %vm3713_vm6  ;;  %6598 = vrcp.f32 %v2813_v49 }
 0x522   : > { %v3701_v62 = vmul.f32 %v6591_v38, %v3700_v50  ;;  %v3708_v7 = vmul.f32 %v6595_v2, %v3707_v1  ;;  %v6273_v50 = vld [vmem:[%s10376_s10 + $0x38] sm:$0xff]  ;;  %v2567_v1 = vadd.f32 %v8064_v42, %v8062_v20 }
 0x523   : > { %v2171_v24 = vpop.permute.xlu0 %2170  ;;  %4160 = vmatmul.bf16.gmra.mxu1 %v4060_v59  ;;  %5595 = vmatpush.bf16.msrb.mxu2 %v6273_v50 }
 0x524   : > { %v3705_v19 = vsel %vm3704_vm5, %v6591_v38, %v3701_v62  ;;  %v3709_v57 = vmul.f32 0.5, %v3708_v7  ;;  %v2296_v31 = vmul.f32 0.0, %v2171_v24  ;;  %v2569_v62 = vadd.f32 %v8080_v54, %v8078_v26  ;;  %v6272_v7 = vld [vmem:[%s10376_s10 + $0x30] sm:$0xff]  ;;  %v6271_v26 = vld [vmem:[%s10376_s10 + $0x28] sm:$0xff] }
 0x525   : > { %v3962_v11 = vmul.f32 %v3705_v19, %v3578_v12 }
 0x526   : > { %v3710_v52 = vsub.f32 1.5, %v3709_v57  ;;  %v2634_v24 = vadd.f32 %v2567_v1, %v2296_v31  ;;  %v2817_v31 = vld [vmem:[#allocation3 + $0xe0] sm:$0xff] }
 0x527   : > { %v3997_v15 = vmul.f32 %v8318_v23, %v3962_v11  ;;  %5596 = vmatpush.bf16.msrb.mxu2 %v6272_v7 }
 0x528   : > { %v3711_v30 = vmul.f32 %v6595_v2, %v3710_v52 }
 0x529   : > { %2960 = vperm.xlu0 %6328, %v6597_v47   ;;  %v4032_v40 = vadd.f32 %v8324_v43, %v3997_v15 }
 0x52a   : > { %v3715_v61 = vsel %vm3714_vm8, %v6595_v2, %v3711_v30  ;;  %v2816_v30 = vld [vmem:[#allocation3 + $0xd8] sm:$0xff] }
 0x52b   : > { %v2176_v44 = vpop.permute.xlu0 %2175  ;;  %v3963_v38 = vmul.f32 %v3715_v61, %v3579_v56  ;;  %5597 = vmatpush.bf16.msrb.mxu2 %v6271_v26 }
 0x52c   : > { %v2297_v13 = vmul.f32 0.0, %v2176_v44  ;;  %v6270_v44 = vld [vmem:[%s10376_s10 + $0x20] sm:$0xff] }
 0x52d   : > { %v3998_v53 = vmul.f32 %v8318_v23, %v3963_v38 }
 0x52e   : > { %v2635_v57 = vadd.f32 %v2569_v62, %v2297_v13 }
 0x52f   : > { %v4033_v33 = vadd.f32 %v8324_v43, %v3998_v53  ;;  %5598 = vmatpush.bf16.msrb.mxu2 %v6270_v44 }
 0x531   : > { %2250 = vperm.xlu0 %6328, %v8011_v14   ;;  %v4061_v48 = vpack.c.bf16 %v4033_v33, %v4032_v40  ;;  %v6599_v14 = vpop.eup %6598  ;;  %v6269_v33 = vld [vmem:[%s10376_s10 + $0x18] sm:$0xff] }
 0x532   : > { %v4151_v32 = vpop.f32.mrf.mxu1 }
 0x533   : > { %v8397_v37 = vadd.f32 %v8391_v34, %v4151_v32  ;;  %v2896_v2 = vpop.permute.xlu0 %2895  ;;  %4165 = vmatmul.bf16.gmra.mxu1 %v4061_v48  ;;  %v2299_v32 = vmul.f32 0.0, %v8191_v8  ;;  %5599 = vmatpush.bf16.msrb.mxu2 %v6269_v33 }
 0x534   : > { %v3021_v20 = vmul.f32 %v2896_v2, %v2634_v24  ;;  %v2574_v2 = vadd.f32 %v8107_v0, %v8105_v21 }
 0x535   : > { %v8400_v23 = vmul.f32 0.70710677, %v8397_v37 }
 0x536   : > { %v2637_v8 = vadd.f32 %v2574_v2, %v2299_v32 }
 0x537   : > { %v8406_v43 = vand.u32 2147483647, %v8400_v23  ;;  %vm4295_vm1 = vcmp.ge.f32.partialorder %v8400_v23, 0.0 }
 0x539   : > { %v4391_v59 = vmul.f32 0.3275911, %v8406_v43  ;;  %2975 = vperm.xlu0 %6328, %v6599_v14  }
 0x53a   : > { %v4153_v19 = vpop.f32.mrf.mxu1 }
 0x53b   : > { %v4423_v12 = vadd.f32 1.0, %v4391_v59  ;;  %v8417_v52 = vadd.f32 %v8391_v34, %v4153_v19  ;;  %v2901_v47 = vpop.permute.xlu0 %2900 }
 0x53c   : > { %v3022_v42 = vmul.f32 %v2901_v47, %v2635_v57 }
 0x53d   : > { %6600 = vrcp.f32 %v4423_v12  ;;  %v8423_v54 = vmul.f32 0.70710677, %v8417_v52  ;;  %v4466_v50 = vand.u32 2147483648, %v4423_v12  ;;  %v4464_v1 = vand.u32 2147483647, %v4423_v12 }
 0x53e   : > { %v3049_v11 = vpack.c.bf16 %v3022_v42, %v3021_v20  ;;  %6602 = vrcp.f32 %v2816_v30  ;;  %vm4460_vm10 = vweird.f32 %v4423_v12  ;;  %v6267_v20 = vld [vmem:[%s10376_s10 + $0x8] sm:$0xff]  ;;  %v2819_v30 = vld [vmem:[#allocation3 + $0xf0] sm:$0xff] }
 0x53f   : > { %v8426_v56 = vand.u32 2147483647, %v8423_v54  ;;  %v4467_v59 = vor.u32 1.1754944e-38, %v4466_v50  ;;  %vm4465_vm12 = vcmp.eq.f32.partialorder %v4464_v1, 8.507059e+37  ;;  %vm4296_vm2 = vcmp.ge.f32.partialorder %v8423_v54, 0.0 }
 0x540   : > { %3157 = vmatmul.bf16.gmra.mxu0 %v3049_v11 }
 0x541   : > { %2260 = vperm.xlu0 %6328, %v8110_v3   ;;  %v4392_v61 = vmul.f32 0.3275911, %v8426_v56  ;;  %v2572_v3 = vadd.f32 %v8091_v39, %v8089_v4  ;;  %v6268_v4 = vld [vmem:[%s10376_s10 + $0x10] sm:$0xff]  ;;  %v5224_v1 = vsub.f32 0.0, %v8426_v56 }
 0x542   : > { %5600 = vmatpush.bf16.msrb.mxu2 %v6268_v4 }
 0x543   : > { %v6601_v15 = vpop.eup %6600  ;;  %v2181_v38 = vpop.permute.xlu0 %2180  ;;  %v4424_v49 = vadd.f32 1.0, %v4392_v61 }
 0x544   : > { %v4456_v53 = vmul.f32 %v6601_v15, %v4423_v12  ;;  %v2298_v40 = vmul.f32 0.0, %v2181_v38  ;;  %v6603_v13 = vpop.eup %6602  ;;  %vm4461_vm9 = vweird.f32 %v6601_v15  ;;  %v5223_v12 = vsub.f32 0.0, %v8406_v43 }
 0x545   : > { %6604 = vrcp.f32 %v4424_v49  ;;  %vm4462_vm11 = vmor %vm4460_vm10, %vm4461_vm9  ;;  %vm4475_vm14 = vweird.f32 %v4424_v49 }
 0x546   : > { %v4457_v48 = vsub.f32 1.0, %v4456_v53  ;;  %v2636_v62 = vadd.f32 %v2572_v3, %v2298_v40  ;;  %6606 = vrcp.f32 %v2817_v31  ;;  %5601 = vmatpush.bf16.msrb.mxu2 %v6267_v20  ;;  %v6266_v53 = vld [vmem:[%s10376_s10] sm:$0xff]  ;;  %v5255_v33 = vmul.f32 %v5223_v12, %v8406_v43 }
 0x547   : > { %6608 = vrcp.f32 %v2819_v30 }
 0x548   : > { %v4458_v14 = vmul.f32 %v6601_v15, %v4457_v48  ;;  %v3023_v24 = vmul.f32 %v8182_v29, %v2636_v62  ;;  %v4479_v29 = vand.u32 2147483647, %v4424_v49 }
 0x549   : > { %2990 = vperm.xlu0 %6328, %v6603_v13   ;;  %v5287_v13 = vmul.f32 1.442695, %v5255_v33 }
 0x54a   : > { %v4459_v39 = vadd.f32 %v6601_v15, %v4458_v14  ;;  %5602 = vmatpush.bf16.msrb.mxu2 %v6266_v53  ;;  %vm4480_vm0 = vcmp.eq.f32.partialorder %v4479_v29, 8.507059e+37 }
 0x54b   : > { %v2911_v21 = vpop.permute.xlu0 %2910  ;;  %v6605_v0 = vpop.eup %6604  ;;  %6610 = vpow2.f32 %v5287_v13 }
 0x54c   : > { %v4463_v7 = vsel %vm4462_vm11, %v6601_v15, %v4459_v39  ;;  %v3024_v19 = vmul.f32 %v2911_v21, %v2637_v8  ;;  %v4471_v47 = vmul.f32 %v6605_v0, %v4424_v49  ;;  %v6607_v44 = vpop.eup %6606  ;;  %v4481_v15 = vand.u32 2147483648, %v4424_v49 }
 0x54d   : > { %v4468_v57 = vsel %vm4465_vm12, %v4467_v59, %v4463_v7  ;;  %vm4476_vm13 = vweird.f32 %v6605_v0  ;;  %v6609_v4 = vpop.eup %6608  ;;  %v5256_v49 = vmul.f32 %v5224_v1, %v8426_v56 }
 0x54e   : > { %v4935_v42 = vmul.f32 1.0614054, %v4468_v57  ;;  %v3050_v26 = vpack.c.bf16 %v3024_v19, %v3023_v24  ;;  %v4472_v11 = vsub.f32 1.0, %v4471_v47  ;;  %vm4477_vm15 = vmor %vm4475_vm14, %vm4476_vm13  ;;  %v4482_v2 = vor.u32 1.1754944e-38, %v4481_v15 }
 0x54f   : > { %v5289_v19 = vmul.f32 1.442695, %v5256_v49 }
 0x550   : > { %v4967_v61 = vadd.f32 -1.4531521, %v4935_v42  ;;  %3162 = vmatmul.bf16.gmra.mxu0 %v3050_v26  ;;  %v4473_v38 = vmul.f32 %v6605_v0, %v4472_v11  ;;  %v10673_v42 = vpack.c.bf16 %v8207_v46, %v8201_v36  ;;  %v2582_v36 = vadd.f32 %v8166_v41, %v8163_v45 }
 0x551   : > { %2995 = vperm.xlu0 %6328, %v6607_v44   ;;  %v6611_v20 = vpop.eup %6610  ;;  %6612 = vpow2.f32 %v5289_v19  ;;  %v2303_v44 = vmul.f32 0.0, %v8197_v16  ;;  %v10465_v46 = vmov -1.0   ;;  %v4231_v45 = vmul.f32 0.5, %v8397_v37 }
 0x552   : > { %v4999_v40 = vmul.f32 %v4967_v61, %v4468_v57  ;;  %v4474_v3 = vadd.f32 %v6605_v0, %v4473_v38  ;;  %v4327_v53 = vsel %vm4295_vm1, 1.0, %v10465_v46  ;;  %v4232_v41 = vmul.f32 0.5, %v8417_v52 }
 0x553   : > { %v2201_v32 = vpop.permute.xlu0 %2200 }
 0x554   : > { %v5031_v48 = vadd.f32 1.4214138, %v4999_v40  ;;  %v4478_v50 = vsel %vm4477_vm15, %v6605_v0, %v4474_v3  ;;  %v2302_v15 = vmul.f32 0.0, %v2201_v32 }
 0x555   : > { %v4483_v14 = vsel %vm4480_vm0, %v4482_v2, %v4478_v50 }
 0x556   : > { %v5063_v31 = vmul.f32 %v5031_v48, %v4468_v57  ;;  %v4936_v62 = vmul.f32 1.0614054, %v4483_v14  ;;  %v2640_v23 = vadd.f32 %v2582_v36, %v2302_v15  ;;  %v10677_v15 = vld [vmem:[#allocation42_spill] sm:$0xff] }
 0x557   : > { %v6613_v29 = vpop.eup %6612  ;;  %v10679_v36 = vld [vmem:[#allocation66_spill] sm:$0xff] }
 0x558   : > { %v5095_v39 = vadd.f32 -0.28449672, %v5063_v31  ;;  %v4968_v8 = vadd.f32 -1.4531521, %v4936_v62 }
 0x559   : > { %3005 = vperm.xlu0 %6328, %v6609_v4   ;;  %v2305_v4 = vmul.f32 0.0, %v8215_v51  ;;  %v8477_v51 = vpop.f32.mrf.mxu3 }
 0x55a   : > { %v5127_v43 = vmul.f32 %v5095_v39, %v4468_v57  ;;  %v5000_v59 = vmul.f32 %v4968_v8, %v4483_v14  ;;  %v2587_v8 = vadd.f32 %v8180_v35, %v8178_v17  ;;  %v10674_v35 = vld [vmem:[#allocation67_spill] sm:$0xff] }
 0x55b   : > { %v2926_v21 = vpop.permute.xlu0 %2925 }
 0x55c   : > { %v5159_v7 = vadd.f32 0.2548296, %v5127_v43  ;;  %v5032_v24 = vadd.f32 1.4214138, %v5000_v59  ;;  %v2589_v43 = vadd.f32 %v8187_v55, %v8185_v58 }
 0x55e   : > { %v5191_v0 = vmul.f32 %v5159_v7, %v4468_v57  ;;  %v5064_v47 = vmul.f32 %v5032_v24, %v4483_v14  ;;  %v2584_v57 = vadd.f32 %v8176_v22, %v8174_v9  ;;  %v4328_v9 = vsel %vm4296_vm2, 1.0, %v10465_v46 }
 0x55f   : > { %v3027_v22 = vmul.f32 %v2926_v21, %v2640_v23  ;;  %v2643_v37 = vadd.f32 %v2589_v43, %v2305_v4  ;;  %v2306_v7 = vmul.f32 0.0, %v8205_v25 }
 0x560   : > { %3167 = vmatmul.bf16.gmra.mxu0 %v10673_v42  ;;  %v5351_v12 = vmul.f32 %v6611_v20, %v5191_v0  ;;  %v5096_v26 = vadd.f32 -0.28449672, %v5064_v47  ;;  %v2641_v40 = vadd.f32 %v2584_v57, %v2303_v44  ;;  %v2592_v0 = vadd.f32 %v8195_v27, %v8193_v18  ;;  %v10676_v57 = vld [vmem:[#allocation37_spill] sm:$0xff] }
 0x561   : > { %v2608_v55 = vpop.f32.mrf.mxu3 }
 0x562   : > { %v5128_v11 = vmul.f32 %v5096_v26, %v4483_v14  ;;  %v5383_v56 = vsub.f32 1.0, %v5351_v12  ;;  %v2644_v19 = vadd.f32 %v2592_v0, %v2306_v7 }
 0x563   : > { %v2931_v30 = vpop.permute.xlu0 %2930 }
 0x564   : > { %v5160_v61 = vadd.f32 0.2548296, %v5128_v11  ;;  %v5415_v33 = vmul.f32 %v5383_v56, %v4327_v53  ;;  %v3028_v3 = vmul.f32 %v2931_v30, %v2641_v40  ;;  %v10675_v11 = vld [vmem:[#allocation39_spill] sm:$0xff]  ;;  %v2256_v56 = vpop.permute.xlu1 %2255 }
 0x565   : > { %v2308_v30 = vmul.f32 0.0, %v10675_v11 }
 0x566   : > { %v5192_v38 = vmul.f32 %v5160_v61, %v4483_v14  ;;  %v5447_v32 = vadd.f32 1.0, %v5415_v33  ;;  %v3052_v31 = vpack.c.bf16 %v3028_v3, %v3027_v22 }
 0x568   : > { %v5352_v16 = vmul.f32 %v6613_v29, %v5192_v38  ;;  %v5479_v14 = vmul.f32 %v5447_v32, %v4231_v45  ;;  %v2597_v38 = vadd.f32 %v10677_v15, %v10676_v57  ;;  %v10678_v29 = vld [vmem:[#allocation44_spill] sm:$0xff] }
 0x569   : > { %v2611_v18 = vpop.f32.mrf.mxu3  ;;  %v2599_v53 = vadd.f32 %v10679_v36, %v10678_v29 }
 0x56a   : > { %v5384_v48 = vsub.f32 1.0, %v5352_v16  ;;  %v2646_v23 = vadd.f32 %v2597_v38, %v2308_v30  ;;  %v10681_v30 = vld [vmem:[#allocation29_spill] sm:$0xff]  ;;  %v2981_v38 = vpop.permute.xlu2 %2980 }
 0x56b   : > { %v2211_v2 = vpop.permute.xlu0 %2210 }
 0x56c   : > { %v5416_v50 = vmul.f32 %v5384_v48, %v4328_v9  ;;  %v2304_v39 = vmul.f32 0.0, %v2211_v2 }
 0x56e   : > { %v5448_v13 = vadd.f32 1.0, %v5416_v50  ;;  %v2642_v49 = vadd.f32 %v2587_v8, %v2304_v39  ;;  %v2313_v39 = vmul.f32 0.0, %v2256_v56  ;;  %v10682_v56 = vld [vmem:[#allocation33_spill] sm:$0xff] }
 0x570   : > { %3172 = vmatmul.bf16.gmra.mxu0 %v3052_v31  ;;  %v5480_v1 = vmul.f32 %v5448_v13, %v4232_v41 }
 0x571   : > { %v2613_v31 = vpop.f32.mrf.mxu3 }
 0x572   : > { %v5511_v62 = vpack.c.bf16 %v5480_v1, %v5479_v14  ;;  %v2266_v14 = vpop.permute.xlu1 %2265 }
 0x573   : > { %v2936_v54 = vpop.permute.xlu0 %2935 }
 0x574   : > { %5603 = vmatmul.bf16.vlgmr.msrb.gmra.mxu2 %v5511_v62  ;;  %v3029_v52 = vmul.f32 %v2936_v54, %v2642_v49 }
 0x57a   : > { %v2271_v29 = vpop.permute.xlu1 %2270 }
 0x57b   : > { %v2941_v59 = vpop.permute.xlu0 %2940 }
 0x57c   : > { %v3030_v21 = vmul.f32 %v2941_v59, %v2643_v37  ;;  %v10680_v59 = vld [vmem:[#allocation32_spill] sm:$0xff] }
 0x57e   : > { %v3053_v24 = vpack.c.bf16 %v3030_v21, %v3029_v52  ;;  %v2609_v52 = vadd.f32 %v2608_v55, %v10680_v59 }
 0x580   : > { %3177 = vmatmul.bf16.gmra.mxu0 %v3053_v24  ;;  %v2651_v0 = vadd.f32 %v2609_v52, %v2313_v39 }
 0x583   : > { %v2946_v47 = vpop.permute.xlu0 %2945 }
 0x584   : > { %v3031_v17 = vmul.f32 %v2946_v47, %v2644_v19 }
 0x586   : > { %v3054_v20 = vpack.c.bf16 %v10674_v35, %v3031_v17 }
 0x58b   : > { %v2236_v58 = vpop.permute.xlu0 %2235 }
 0x58c   : > { %v2309_v44 = vmul.f32 0.0, %v2236_v58  ;;  %v2315_v58 = vmul.f32 0.0, %v2266_v14 }
 0x58e   : > { %v2647_v3 = vadd.f32 %v2599_v53, %v2309_v44  ;;  %v2607_v44 = vadd.f32 %v8477_v51, %v10681_v30 }
 0x590   : > { %3182 = vmatmul.bf16.gmra.mxu0 %v3054_v20  ;;  %v4156_v42 = vpop.f32.mrf.mxu1  ;;  %v2616_v20 = vpop.f32.mrf.mxu3 }
 0x591   : > { %v8481_v12 = vadd.f32 %v8391_v34, %v4156_v42 }
 0x593   : > { %v2956_v25 = vpop.permute.xlu0 %2955  ;;  %v8484_v26 = vmul.f32 0.70710677, %v8481_v12 }
 0x594   : > { %v3033_v2 = vmul.f32 %v2956_v25, %v2646_v23 }
 0x595   : > { %v4361_v27 = vand.u32 2147483647, %v8484_v26  ;;  %vm4297_vm7 = vcmp.ge.f32.partialorder %v8484_v26, 0.0 }
 0x596   : > { %v8554_v14 = vsel %vm4297_vm7, 1.0, %v10465_v46 }
 0x597   : > { %v4393_v61 = vmul.f32 0.3275911, %v4361_v27  ;;  %v5225_v43 = vsub.f32 0.0, %v4361_v27 }
 0x598   : > { %v4158_v40 = vpop.f32.mrf.mxu1 }
 0x599   : > { %v4425_v33 = vadd.f32 1.0, %v4393_v61  ;;  %v8493_v16 = vadd.f32 %v8391_v34, %v4158_v40  ;;  %v5257_v47 = vmul.f32 %v5225_v43, %v4361_v27  ;;  %v8524_v61 = vadd.f32 %v2611_v18, %v10682_v56  ;;  %v10683_v27 = vld [vmem:[#allocation69_spill] sm:$0xff] }
 0x59a   : > { %v2614_v15 = vadd.f32 %v2613_v31, %v10683_v27  ;;  %v10684_v40 = vld [vmem:[#allocation65_spill] sm:$0xff]  ;;  %v8535_v18 = vmul.f32 %v2981_v38, %v2651_v0 }
 0x59b   : > { %v2961_v48 = vpop.permute.xlu0 %2960  ;;  %6614 = vrcp.f32 %v4425_v33  ;;  %v8496_v9 = vmul.f32 0.70710677, %v8493_v16  ;;  %v4496_v49 = vand.u32 2147483648, %v4425_v33  ;;  %v4494_v7 = vand.u32 2147483647, %v4425_v33 }
 0x59c   : > { %v3034_v22 = vmul.f32 %v2961_v48, %v2647_v3  ;;  %vm4490_vm4 = vweird.f32 %v4425_v33  ;;  %v5291_v23 = vmul.f32 1.442695, %v5257_v47 }
 0x59d   : > { %v8499_v32 = vand.u32 2147483647, %v8496_v9  ;;  %v4497_v42 = vor.u32 1.1754944e-38, %v4496_v49  ;;  %vm4495_vm6 = vcmp.eq.f32.partialorder %v4494_v7, 8.507059e+37  ;;  %vm4298_vm12 = vcmp.ge.f32.partialorder %v8496_v9, 0.0 }
 0x59e   : > { %v3055_v50 = vpack.c.bf16 %v3034_v22, %v3033_v2  ;;  %v8541_v2 = vadd.f32 %v2614_v15, %v2315_v58  ;;  %v8543_v22 = vmul.f32 0.0, %v2271_v29 }
 0x59f   : > { %v4394_v45 = vmul.f32 0.3275911, %v8499_v32  ;;  %v5226_v39 = vsub.f32 0.0, %v8499_v32 }
 0x5a0   : > { %3187 = vmatmul.bf16.gmra.mxu0 %v3055_v50  ;;  %v4161_v41 = vpop.f32.mrf.mxu1  ;;  %v8546_v50 = vmul.f32 0.5, %v8481_v12  ;;  %v10685_v12 = vld [vmem:[#allocation6_spill] sm:$0xff] }
 0x5a1   : > { %v6615_v13 = vpop.eup %6614  ;;  %v8503_v1 = vadd.f32 %v8391_v34, %v4161_v41  ;;  %v8505_v62 = vadd.f32 1.0, %v4394_v45 }
 0x5a2   : > { %v4486_v54 = vmul.f32 %v6615_v13, %v4425_v33  ;;  %vm4491_vm3 = vweird.f32 %v6615_v13  ;;  %v8532_v33 = vadd.f32 %v2616_v20, %v10684_v40  ;;  %v5258_v40 = vmul.f32 %v5226_v39, %v8499_v32 }
 0x5a3   : > { %v8508_v4 = vmul.f32 0.70710677, %v8503_v1  ;;  %6616 = vrcp.f32 %v8505_v62  ;;  %v2251_v17 = vpop.permute.xlu0 %2250  ;;  %vm4492_vm5 = vmor %vm4490_vm4, %vm4491_vm3  ;;  %v4511_v45 = vand.u32 2147483648, %v8505_v62  ;;  %vm4505_vm9 = vweird.f32 %v8505_v62 }
 0x5a4   : > { %v4487_v8 = vsub.f32 1.0, %v4486_v54  ;;  %v2312_v47 = vmul.f32 0.0, %v2251_v17 }
 0x5a5   : > { %v8512_v37 = vand.u32 2147483647, %v8508_v4  ;;  %v4512_v0 = vor.u32 1.1754944e-38, %v4511_v45 }
 0x5a6   : > { %v4488_v21 = vmul.f32 %v6615_v13, %v4487_v8  ;;  %v10686_v8 = vld [vmem:[#allocation38_spill] sm:$0xff] }
 0x5a7   : > { %v4395_v24 = vmul.f32 0.3275911, %v8512_v37  ;;  %v10687_v43 = vpack.c.bf16 %v10685_v12, %v10686_v8  ;;  %v5227_v58 = vsub.f32 0.0, %v8512_v37 }
 0x5a8   : > { %v4489_v19 = vadd.f32 %v6615_v13, %v4488_v21  ;;  %v4163_v35 = vpop.f32.mrf.mxu1 }
 0x5a9   : > { %v8516_v25 = vadd.f32 1.0, %v4395_v24  ;;  %v8519_v11 = vadd.f32 %v8391_v34, %v4163_v35  ;;  %v6617_v55 = vpop.eup %6616  ;;  %v5259_v45 = vmul.f32 %v5227_v58, %v8512_v37 }
 0x5aa   : > { %v4493_v57 = vsel %vm4492_vm5, %v6615_v13, %v4489_v19  ;;  %v4501_v53 = vmul.f32 %v6617_v55, %v8505_v62  ;;  %vm4506_vm8 = vweird.f32 %v6617_v55  ;;  %v4509_v13 = vand.u32 2147483647, %v8505_v62 }
 0x5ab   : > { %v8527_v36 = vsel %vm4495_vm6, %v4497_v42, %v4493_v57  ;;  %6618 = vrcp.f32 %v8516_v25  ;;  %v8539_v48 = vmul.f32 0.70710677, %v8519_v11  ;;  %vm4507_vm10 = vmor %vm4505_vm9, %vm4506_vm8  ;;  %v2976_v35 = vpop.permute.xlu0 %2975  ;;  %v4526_v17 = vand.u32 2147483648, %v8516_v25 }
 0x5ac   : > { %v4937_v51 = vmul.f32 1.0614054, %v8527_v36  ;;  %v4502_v3 = vsub.f32 1.0, %v4501_v53  ;;  %6620 = vpow2.f32 %v5291_v23  ;;  %vm4510_vm11 = vcmp.eq.f32.partialorder %v4509_v13, 8.507059e+37 }
 0x5ad   : > { %v8551_v26 = vand.u32 2147483647, %v8539_v48  ;;  %v4524_v29 = vand.u32 2147483647, %v8516_v25  ;;  %vm4520_vm14 = vweird.f32 %v8516_v25  ;;  %v4527_v32 = vor.u32 1.1754944e-38, %v4526_v17 }
 0x5ae   : > { %v4969_v31 = vadd.f32 -1.4531521, %v4937_v51  ;;  %v4503_v41 = vmul.f32 %v6617_v55, %v4502_v3  ;;  %v2650_v51 = vadd.f32 %v2607_v44, %v2312_v47  ;;  %vm4299_vm9 = vcmp.ge.f32.partialorder %v8508_v4, 0.0 }
 0x5af   : > { %v4396_v21 = vmul.f32 0.3275911, %v8551_v26  ;;  %vm4525_vm0 = vcmp.eq.f32.partialorder %v4524_v29, 8.507059e+37 }
 0x5b0   : > { %v5001_v54 = vmul.f32 %v4969_v31, %v8527_v36  ;;  %3192 = vmatmul.bf16.gmra.mxu0 %v10687_v43  ;;  %v4166_v49 = vpop.f32.mrf.mxu1  ;;  %v4504_v52 = vadd.f32 %v6617_v55, %v4503_v41  ;;  %v8592_v41 = vsel %vm4298_vm12, 1.0, %v10465_v46  ;;  %v3037_v12 = vmul.f32 %v2976_v35, %v2650_v51 }
 0x5b1   : > { %v6619_v59 = vpop.eup %6618  ;;  %v8564_v7 = vadd.f32 %v8391_v34, %v4166_v49  ;;  %v8569_v42 = vadd.f32 1.0, %v4396_v21  ;;  %v5293_v49 = vmul.f32 1.442695, %v5258_v40  ;;  %v5228_v35 = vsub.f32 0.0, %v8551_v26 }
 0x5b2   : > { %v5033_v24 = vadd.f32 1.4214138, %v5001_v54  ;;  %v4516_v19 = vmul.f32 %v6619_v59, %v8516_v25  ;;  %v4508_v20 = vsel %vm4507_vm10, %v6617_v55, %v4504_v52  ;;  %v6621_v55 = vpop.eup %6620  ;;  %vm4521_vm13 = vweird.f32 %v6619_v59 }
 0x5b3   : > { %v8572_v30 = vsel %vm4510_vm11, %v4512_v0, %v4508_v20  ;;  %v8575_v57 = vmul.f32 0.70710677, %v8564_v7  ;;  %6622 = vrcp.f32 %v8569_v42  ;;  %vm4522_vm15 = vmor %vm4520_vm14, %vm4521_vm13  ;;  %vm4535_vm2 = vweird.f32 %v8569_v42 }
 0x5b4   : > { %v5065_v62 = vmul.f32 %v5033_v24, %v8527_v36  ;;  %v4517_v56 = vsub.f32 1.0, %v4516_v19  ;;  %v4938_v27 = vmul.f32 1.0614054, %v8572_v30  ;;  %v5295_v24 = vmul.f32 1.442695, %v5259_v45  ;;  %v2261_v19 = vpop.permute.xlu0 %2260 }
 0x5b5   : > { %v8584_v23 = vand.u32 2147483647, %v8575_v57  ;;  %vm4300_vm10 = vcmp.ge.f32.partialorder %v8539_v48, 0.0 }
 0x5b6   : > { %v5097_v15 = vadd.f32 -0.28449672, %v5065_v62  ;;  %v4518_v38 = vmul.f32 %v6619_v59, %v4517_v56  ;;  %v4970_v53 = vadd.f32 -1.4531521, %v4938_v27  ;;  %v3057_v56 = vpack.c.bf16 %v8535_v18, %v3037_v12 }
 0x5b7   : > { %v4397_v44 = vmul.f32 0.3275911, %v8584_v23 }
 0x5b8   : > { %v5129_v3 = vmul.f32 %v5097_v15, %v8527_v36  ;;  %v4519_v31 = vadd.f32 %v6619_v59, %v4518_v38  ;;  %v5002_v13 = vmul.f32 %v4970_v53, %v8572_v30  ;;  %v4168_v8 = vpop.f32.mrf.mxu1  ;;  %v4541_v15 = vand.u32 2147483648, %v8569_v42 }
 0x5b9   : > { %v6623_v43 = vpop.eup %6622  ;;  %v8598_v52 = vadd.f32 1.0, %v4397_v44  ;;  %v8607_v20 = vadd.f32 %v8391_v34, %v4168_v8  ;;  %v5260_v53 = vmul.f32 %v5228_v35, %v8551_v26 }
 0x5ba   : > { %v5161_v54 = vadd.f32 0.2548296, %v5129_v3  ;;  %v4523_v39 = vsel %vm4522_vm15, %v6619_v59, %v4519_v31  ;;  %v5034_v25 = vadd.f32 1.4214138, %v5002_v13  ;;  %v4531_v0 = vmul.f32 %v6623_v43, %v8569_v42 }
 0x5bb   : > { %v8596_v37 = vsel %vm4525_vm0, %v4527_v32, %v4523_v39  ;;  %6624 = vrcp.f32 %v8598_v52  ;;  %vm4536_vm1 = vweird.f32 %v6623_v43  ;;  %v8617_v40 = vmul.f32 0.70710677, %v8607_v20 }
 0x5bc   : > { %v5193_v9 = vmul.f32 %v5161_v54, %v8527_v36  ;;  %v4939_v21 = vmul.f32 1.0614054, %v8596_v37  ;;  %v5066_v59 = vmul.f32 %v5034_v25, %v8572_v30  ;;  %v4532_v62 = vsub.f32 1.0, %v4531_v0  ;;  %vm4537_vm4 = vmor %vm4535_vm2, %vm4536_vm1  ;;  %v2991_v35 = vpop.permute.xlu0 %2990 }
 0x5bd   : > { %v3158_v47 = vpop.f32.mrf.mxu0  ;;  %v4539_v36 = vand.u32 2147483647, %v8569_v42  ;;  %6626 = vpow2.f32 %v5293_v49  ;;  %v2314_v3 = vmul.f32 0.0, %v2261_v19  ;;  %v4542_v32 = vor.u32 1.1754944e-38, %v4541_v15  ;;  %v2986_v42 = vpop.permute.xlu2 %2985  ;;  %v8645_v15 = vld [vmem:[%s10371_s5] ss:$0 sm:$0xff] }
 0x5be   : > { %v4971_v58 = vadd.f32 -1.4531521, %v4939_v21  ;;  %v5353_v27 = vmul.f32 %v6621_v55, %v5193_v9  ;;  %v5098_v17 = vadd.f32 -0.28449672, %v5066_v59  ;;  %6628 = vpow2.f32 %v5295_v24 }
 0x5bf   : > { %v4533_v29 = vmul.f32 %v6623_v43, %v4532_v62  ;;  %vm8619_vm3 = vcmp.eq.f32.partialorder %v4539_v36, 8.507059e+37  ;;  %v8624_v44 = vand.u32 2147483647, %v8617_v40  ;;  %vm4550_vm5 = vweird.f32 %v8598_v52  ;;  %v2733_v36 = vld [vmem:[%s8117_s26 + $0x40] sm:$0xff] }
 0x5c0   : > { %v5003_v38 = vmul.f32 %v4971_v58, %v8596_v37  ;;  %3197 = vmatmul.bf16.gmra.mxu0 %v3057_v56  ;;  %v5130_v34 = vmul.f32 %v5098_v17, %v8572_v30  ;;  %v5385_v45 = vsub.f32 1.0, %v5353_v27  ;;  %v4554_v9 = vand.u32 2147483647, %v8598_v52 }
 0x5c1   : > { %v4534_v55 = vadd.f32 %v6623_v43, %v4533_v29  ;;  %v6625_v31 = vpop.eup %6624  ;;  %v4556_v21 = vand.u32 2147483648, %v8598_v52  ;;  %v2652_v59 = vadd.f32 %v8524_v61, %v2314_v3  ;;  %v2735_v29 = vld [vmem:[%s8117_s26 + $0x50] sm:$0xff]  ;;  %vm4301_vm15 = vcmp.ge.f32.partialorder %v8575_v57, 0.0 }
 0x5c2   : > { %v5035_v18 = vadd.f32 1.4214138, %v5003_v38  ;;  %v5162_v13 = vadd.f32 0.2548296, %v5130_v34  ;;  %v4546_v39 = vmul.f32 %v6625_v31, %v8598_v52  ;;  %v5417_v58 = vmul.f32 %v5385_v45, %v8554_v14  ;;  %v2618_v45 = vpop.f32.mrf.mxu3 }
 0x5c3   : > { %v4538_v54 = vsel %vm4537_vm4, %v6623_v43, %v4534_v55  ;;  %v6627_v8 = vpop.eup %6626  ;;  %vm4551_vm6 = vweird.f32 %v6625_v31  ;;  %v3159_v38 = vadd.f32 %v8645_v15, %v3158_v47  ;;  %vm8648_vm7 = vcmp.eq.f32.partialorder %v4554_v9, 8.507059e+37 }
 0x5c4   : > { %v5067_v26 = vmul.f32 %v5035_v18, %v8596_v37  ;;  %v5194_v25 = vmul.f32 %v5162_v13, %v8572_v30  ;;  %v8632_v49 = vsel %vm8619_vm3, %v4542_v32, %v4538_v54  ;;  %v6629_v24 = vpop.eup %6628  ;;  %v4547_v19 = vsub.f32 1.0, %v4546_v39  ;;  %vm4552_vm8 = vmor %vm4550_vm5, %vm4551_vm6 }
 0x5c5   : > { %v3160_v12 = vpop.f32.mrf.mxu0  ;;  %v4940_v43 = vmul.f32 1.0614054, %v8632_v49  ;;  %v4398_v30 = vmul.f32 0.3275911, %v8624_v44  ;;  %v3040_v34 = vmul.f32 %v2991_v35, %v8541_v2  ;;  %v8656_v3 = vadd.f32 %v3159_v38, %v2733_v36 }
 0x5c6   : > { %v5099_v0 = vadd.f32 -0.28449672, %v5067_v26  ;;  %v5354_v62 = vmul.f32 %v6627_v8, %v5194_v25  ;;  %v4548_v17 = vmul.f32 %v6625_v31, %v4547_v19  ;;  %v5449_v13 = vadd.f32 1.0, %v5417_v58 }
 0x5c7   : > { %v4972_v27 = vadd.f32 -1.4531521, %v4940_v43  ;;  %v8652_v14 = vadd.f32 1.0, %v4398_v30  ;;  %v4557_v47 = vor.u32 1.1754944e-38, %v4556_v21  ;;  %v3039_v39 = vmul.f32 %v2986_v42, %v2652_v59  ;;  %3268 = vadd.xlane.f32.xlu0 %v8656_v3  ;;  %v10692_v21 = vld [vmem:[#allocation16_spill] sm:$0xff]  ;;  %v2276_v43 = vpop.permute.xlu2 %2275 }
 0x5c8   : > { %v5131_v56 = vmul.f32 %v5099_v0, %v8596_v37  ;;  %v5386_v61 = vsub.f32 1.0, %v5354_v62  ;;  %v4549_v51 = vadd.f32 %v6625_v31, %v4548_v17  ;;  %v4234_v25 = vmul.f32 0.5, %v8493_v16  ;;  %v2734_v62 = vld [vmem:[%s8117_s26 + $0x48] sm:$0xff] }
 0x5c9   : > { %v5004_v55 = vmul.f32 %v4972_v27, %v8632_v49  ;;  %6630 = vrcp.f32 %v8652_v14  ;;  %v2619_v0 = vadd.f32 %v2618_v45, %v10692_v21  ;;  %v3058_v42 = vpack.c.bf16 %v3040_v34, %v3039_v39 }
 0x5ca   : > { %v5163_v18 = vadd.f32 0.2548296, %v5131_v56  ;;  %v5418_v32 = vmul.f32 %v5386_v61, %v8592_v41  ;;  %v4553_v54 = vsel %vm4552_vm8, %v6625_v31, %v4549_v51  ;;  %v5297_v41 = vmul.f32 1.442695, %v5260_v53 }
 0x5cb   : > { %v5036_v2 = vadd.f32 1.4214138, %v5004_v55  ;;  %v8668_v52 = vsel %vm8648_vm7, %v4557_v47, %v4553_v54  ;;  %v5481_v19 = vmul.f32 %v5449_v13, %v8546_v50  ;;  %v3324_v16 = vmul.f32 %v8656_v3, %v8656_v3 }
 0x5cc   : > { %v5195_v26 = vmul.f32 %v5163_v18, %v8596_v37  ;;  %v5450_v9 = vadd.f32 1.0, %v5418_v32  ;;  %v4941_v31 = vmul.f32 1.0614054, %v8668_v52  ;;  %v3161_v30 = vadd.f32 %v8645_v15, %v3160_v12 }
 0x5cd   : > { %v3163_v8 = vpop.f32.mrf.mxu0  ;;  %v5068_v37 = vmul.f32 %v5036_v2, %v8632_v49  ;;  %v2317_v56 = vmul.f32 0.0, %v2276_v43  ;;  %6632 = vpow2.f32 %v5297_v41  ;;  %v2654_v50 = vadd.f32 %v8532_v33, %v8543_v22  ;;  %3364 = vadd.xlane.f32.xlu2 %v3324_v16  ;;  %v2736_v33 = vld [vmem:[%s8117_s26 + $0x58] sm:$0xff] }
 0x5ce   : > { %v5482_v59 = vmul.f32 %v5450_v9, %v4234_v25  ;;  %v5355_v53 = vmul.f32 %v6629_v24, %v5195_v26  ;;  %v4973_v58 = vadd.f32 -1.4531521, %v4941_v31  ;;  %v4331_v27 = vsel %vm4299_vm9, 1.0, %v10465_v46  ;;  %v3001_v9 = vpop.permute.xlu1 %3000 }
 0x5cf   : > { %v5100_v35 = vadd.f32 -0.28449672, %v5068_v37  ;;  %v6631_v36 = vpop.eup %6630  ;;  %v5229_v12 = vsub.f32 0.0, %v8584_v23  ;;  %v8687_v61 = vadd.f32 %v3161_v30, %v2734_v62  ;;  %v3164_v34 = vadd.f32 %v8645_v15, %v3163_v8  ;;  %v2996_v8 = vpop.permute.xlu0 %2995 }
 0x5d0   : > { %3202 = vmatmul.bf16.gmra.mxu0 %v3058_v42  ;;  %v5512_v4 = vpack.c.bf16 %v5482_v59, %v5481_v19  ;;  %v5005_v17 = vmul.f32 %v4973_v58, %v8668_v52  ;;  %v4561_v38 = vmul.f32 %v6631_v36, %v8652_v14  ;;  %v5387_v22 = vsub.f32 1.0, %v5355_v53  ;;  %v2621_v19 = vpop.f32.mrf.mxu3 }
 0x5d1   : > { %v5132_v24 = vmul.f32 %v5100_v35, %v8632_v49  ;;  %v4569_v13 = vand.u32 2147483647, %v8652_v14  ;;  %v4571_v32 = vand.u32 2147483648, %v8652_v14  ;;  %3270 = vadd.xlane.f32.xlu1 %v8687_v61  ;;  %v3325_v47 = vmul.f32 %v8687_v61, %v8687_v61 }
 0x5d2   : > { %5608 = vmatmul.bf16.gmra.mxu2 %v5512_v4  ;;  %v5037_v55 = vadd.f32 1.4214138, %v5005_v17  ;;  %v4562_v51 = vsub.f32 1.0, %v4561_v38  ;;  %vm4566_vm11 = vweird.f32 %v6631_v36  ;;  %v5261_v41 = vmul.f32 %v5229_v12, %v8584_v23  ;;  %v2737_v17 = vld [vmem:[%s8117_s26 + $0x60] sm:$0xff] }
 0x5d3   : > { %v5164_v18 = vadd.f32 0.2548296, %v5132_v24  ;;  %v6633_v25 = vpop.eup %6632  ;;  %vm4565_vm12 = vweird.f32 %v8652_v14  ;;  %3366 = vadd.xlane.f32.xlu0 %v3325_v47  ;;  %v8702_v21 = vadd.f32 %v3164_v34, %v2735_v29  ;;  %v5419_v37 = vmul.f32 %v5387_v22, %v4331_v27 }
 0x5d4   : > { %v5069_v54 = vmul.f32 %v5037_v55, %v8668_v52  ;;  %v4563_v39 = vmul.f32 %v6631_v36, %v4562_v51  ;;  %v2655_v59 = vadd.f32 %v2619_v0, %v2317_v56  ;;  %v4332_v16 = vsel %vm4300_vm10, 1.0, %v10465_v46  ;;  %vm4567_vm13 = vmor %vm4565_vm12, %vm4566_vm11 }
 0x5d5   : > { %v3165_v45 = vpop.f32.mrf.mxu0  ;;  %v5196_v2 = vmul.f32 %v5164_v18, %v8632_v49  ;;  %v4572_v23 = vor.u32 1.1754944e-38, %v4571_v32  ;;  %v3041_v14 = vmul.f32 %v2996_v8, %v2654_v50  ;;  %vm4570_vm14 = vcmp.eq.f32.partialorder %v4569_v13, 8.507059e+37 }
 0x5d6   : > { %v3166_v26 = vadd.f32 %v8645_v15, %v3165_v45  ;;  %v5101_v42 = vadd.f32 -0.28449672, %v5069_v54  ;;  %v4564_v49 = vadd.f32 %v6631_v36, %v4563_v39  ;;  %v5299_v62 = vmul.f32 1.442695, %v5261_v41  ;;  %v2286_v13 = vpop.permute.xlu1 %2285 }
 0x5d7   : > { %v5356_v31 = vmul.f32 %v6633_v25, %v5196_v2  ;;  %v5230_v0 = vsub.f32 0.0, %v8624_v44  ;;  %v3326_v48 = vmul.f32 %v8702_v21, %v8702_v21  ;;  %v3042_v56 = vmul.f32 %v3001_v9, %v2655_v59  ;;  %v2738_v9 = vld [vmem:[%s8117_s26 + $0x68] sm:$0xff]  ;;  %v10694_v59 = vld [vmem:[#allocation13_spill] sm:$0xff] }
 0x5d8   : > { %v8704_v43 = vadd.f32 %v3166_v26, %v2736_v33  ;;  %v5133_v35 = vmul.f32 %v5101_v42, %v8668_v52  ;;  %v4568_v58 = vsel %vm4567_vm13, %v6631_v36, %v4564_v49  ;;  %v5451_v4 = vadd.f32 1.0, %v5419_v37  ;;  %v10693_v42 = vld [vmem:[#allocation17_spill] sm:$0xff] }
 0x5d9   : > { %v5388_v53 = vsub.f32 1.0, %v5356_v31  ;;  %v4573_v30 = vsel %vm4570_vm14, %v4572_v23, %v4568_v58  ;;  %v4235_v38 = vmul.f32 0.5, %v8503_v1  ;;  %v4236_v12 = vmul.f32 0.5, %v8519_v11  ;;  %3272 = vadd.xlane.f32.xlu1 %v8702_v21  ;;  %v2281_v11 = vpop.permute.xlu2 %2280 }
 0x5da   : > { %3274 = vadd.xlane.f32.xlu2 %v8704_v43  ;;  %v4942_v24 = vmul.f32 1.0614054, %v4573_v30  ;;  %v5165_v34 = vadd.f32 0.2548296, %v5133_v35  ;;  %v3059_v22 = vpack.c.bf16 %v3042_v56, %v3041_v14  ;;  %6634 = vpow2.f32 %v5299_v62  ;;  %v3006_v14 = vpop.permute.xlu0 %3005 }
 0x5db   : > { %v5420_v27 = vmul.f32 %v5388_v53, %v4332_v16  ;;  %v5262_v18 = vmul.f32 %v5230_v0, %v8624_v44  ;;  %3368 = vadd.xlane.f32.xlu0 %v3326_v48  ;;  %v5483_v51 = vmul.f32 %v5451_v4, %v4235_v38  ;;  %v3327_v32 = vmul.f32 %v8704_v43, %v8704_v43  ;;  %v2623_v44 = vpop.f32.mrf.mxu3 }
 0x5dc   : > { %v4974_v33 = vadd.f32 -1.4531521, %v4942_v24  ;;  %v5197_v47 = vmul.f32 %v5165_v34, %v8668_v52  ;;  %v2318_v39 = vmul.f32 0.0, %v2281_v11  ;;  %v2319_v8 = vmul.f32 0.0, %v2286_v13 }
 0x5dd   : > { %v3168_v50 = vpop.f32.mrf.mxu0  ;;  %v5452_v29 = vadd.f32 1.0, %v5420_v27  ;;  %v5301_v54 = vmul.f32 1.442695, %v5262_v18  ;;  %v2622_v49 = vadd.f32 %v2621_v19, %v10693_v42  ;;  %v2624_v16 = vadd.f32 %v2623_v44, %v10694_v59 }
 0x5de   : > { %v3169_v36 = vadd.f32 %v8645_v15, %v3168_v50  ;;  %v5006_v1 = vmul.f32 %v4974_v33, %v4573_v30  ;;  %v2739_v50 = vld [vmem:[%s8117_s26 + $0x70] sm:$0xff]  ;;  %vm4302_vm0 = vcmp.ge.f32.partialorder %v8617_v40, 0.0  ;;  %v4237_v11 = vmul.f32 0.5, %v8564_v7 }
 0x5df   : > { %v5484_v45 = vmul.f32 %v5452_v29, %v4236_v12  ;;  %6636 = vpow2.f32 %v5301_v54  ;;  %v2657_v35 = vadd.f32 %v2624_v16, %v2319_v8  ;;  %v2656_v62 = vadd.f32 %v2622_v49, %v2318_v39 }
 0x5e0   : > { %v8721_v55 = vadd.f32 %v3169_v36, %v2737_v17  ;;  %3207 = vmatmul.bf16.gmra.mxu0 %v3059_v22  ;;  %v5038_v26 = vadd.f32 1.4214138, %v5006_v1  ;;  %v6635_v37 = vpop.eup %6634  ;;  %v4333_v36 = vsel %vm4301_vm15, 1.0, %v10465_v46  ;;  %v4238_v40 = vmul.f32 0.5, %v8607_v20 }
 0x5e1   : > { %v5513_v2 = vpack.c.bf16 %v5484_v45, %v5483_v51  ;;  %3370 = vadd.xlane.f32.xlu1 %v3327_v32  ;;  %v5357_v23 = vmul.f32 %v6635_v37, %v5197_v47  ;;  %v3043_v4 = vmul.f32 %v3006_v14, %v2656_v62  ;;  %v3011_v27 = vpop.permute.xlu2 %3010  ;;  %v2740_v32 = vld [vmem:[%s8117_s26 + $0x78] sm:$0xff] }
 0x5e2   : > { %3276 = vadd.xlane.f32.xlu2 %v8721_v55  ;;  %v5070_v25 = vmul.f32 %v5038_v26, %v4573_v30  ;;  %v3328_v0 = vmul.f32 %v8721_v55, %v8721_v55  ;;  %v3044_v17 = vmul.f32 %v3011_v27, %v2657_v35  ;;  %v8755_v26 = vld [vmem:[%s10377_s11] ss:$0 sm:$0xff]  ;;  %v2744_v27 = vld [vmem:[%s8117_s26 + $0x98] sm:$0xff] }
 0x5e3   : > { %5613 = vmatmul.bf16.gmra.mxu2 %v5513_v2  ;;  %v5389_v48 = vsub.f32 1.0, %v5357_v23  ;;  %v10696_v23 = vld [vmem:[#allocation14_spill] sm:$0xff] }
 0x5e4   : > { %v5102_v52 = vadd.f32 -0.28449672, %v5070_v25  ;;  %v3060_v33 = vpack.c.bf16 %v3044_v17, %v3043_v4 }
 0x5e5   : > { %v3170_v41 = vpop.f32.mrf.mxu0  ;;  %v6637_v12 = vpop.eup %6636  ;;  %v5421_v34 = vmul.f32 %v5389_v48, %v4333_v36 }
 0x5e6   : > { %v3171_v31 = vadd.f32 %v8645_v15, %v3170_v41  ;;  %v5134_v58 = vmul.f32 %v5102_v52, %v4573_v30  ;;  %v2741_v41 = vld [vmem:[%s8117_s26 + $0x80] sm:$0xff] }
 0x5e7   : > { %v5453_v45 = vadd.f32 1.0, %v5421_v34 }
 0x5e8   : > { %v8731_v53 = vadd.f32 %v3171_v31, %v2738_v9  ;;  %v5166_v56 = vadd.f32 0.2548296, %v5134_v58 }
 0x5e9   : > { %3372 = vadd.xlane.f32.xlu1 %v3328_v0  ;;  %v5485_v44 = vmul.f32 %v5453_v45, %v4237_v11  ;;  %v2743_v0 = vld [vmem:[%s8117_s26 + $0x90] sm:$0xff] }
 0x5ea   : > { %3278 = vadd.xlane.f32.xlu0 %v8731_v53  ;;  %v3329_v19 = vmul.f32 %v8731_v53, %v8731_v53  ;;  %v5198_v24 = vmul.f32 %v5166_v56, %v4573_v30  ;;  %v4334_v30 = vsel %vm4302_vm0, 1.0, %v10465_v46 }
 0x5ec   : > { %3374 = vadd.xlane.f32.xlu2 %v3329_v19  ;;  %v5358_v57 = vmul.f32 %v6637_v12, %v5198_v24  ;;  %v2745_v12 = vld [vmem:[%s8117_s26 + $0xa0] sm:$0xff] }
 0x5ed   : > { %v3173_v38 = vpop.f32.mrf.mxu0 }
 0x5ee   : > { %v3174_v29 = vadd.f32 %v8645_v15, %v3173_v38  ;;  %v5390_v18 = vsub.f32 1.0, %v5358_v57 }
 0x5f0   : > { %v8743_v22 = vadd.f32 %v3174_v29, %v2739_v50  ;;  %3212 = vmatmul.bf16.gmra.mxu0 %v3060_v33  ;;  %v5422_v1 = vmul.f32 %v5390_v18, %v4334_v30  ;;  %v2746_v33 = vld [vmem:[%s8117_s26 + $0xa8] sm:$0xff] }
 0x5f2   : > { %3280 = vadd.xlane.f32.xlu0 %v8743_v22  ;;  %v3330_v51 = vmul.f32 %v8743_v22, %v8743_v22  ;;  %v5454_v13 = vadd.f32 1.0, %v5422_v1  ;;  %v2747_v1 = vld [vmem:[%s8117_s26 + $0xb0] sm:$0xff] }
 0x5f4   : > { %3376 = vadd.xlane.f32.xlu2 %v3330_v51  ;;  %v5486_v54 = vmul.f32 %v5454_v13, %v4238_v40 }
 0x5f5   : > { %v3175_v47 = vpop.f32.mrf.mxu0 }
 0x5f6   : > { %v3176_v2 = vadd.f32 %v8645_v15, %v3175_v47  ;;  %v5514_v25 = vpack.c.bf16 %v5486_v54, %v5485_v44  ;;  %v2748_v47 = vld [vmem:[%s8117_s26 + $0xb8] sm:$0xff] }
 0x5f7   : > { %v5604_v8 = vpop.f32.mrf.mxu2 }
 0x5f8   : > { %v8758_v39 = vadd.f32 %v3176_v2, %v2740_v32  ;;  %v5605_v7 = vadd.f32 %v8755_v26, %v5604_v8  ;;  %5618 = vmatmul.bf16.gmra.mxu2 %v5514_v25  ;;  %v2749_v25 = vld [vmem:[%s8117_s26 + $0xc0] sm:$0xff] }
 0x5fa   : > { %3282 = vadd.xlane.f32.xlu1 %v8758_v39  ;;  %v3331_v20 = vmul.f32 %v8758_v39, %v8758_v39  ;;  %v5684_v9 = vadd.f32 %v5605_v7, %v8131_v6  ;;  %v2742_v6 = vld [vmem:[%s8117_s26 + $0x88] sm:$0xff] }
 0x5fc   : > { %3378 = vadd.xlane.f32.xlu0 %v3331_v20  ;;  %5716 = vst [vmem:[%s8766_s20] sm:$0xff] %v5684_v9 }
 0x5fd   : > { %v3178_v37 = vpop.f32.mrf.mxu0 }
 0x5fe   : > { %v3179_v31 = vadd.f32 %v8645_v15, %v3178_v37 }
 0x5ff   : > { %v5606_v49 = vpop.f32.mrf.mxu2 }
 0x600   : > { %v8775_v42 = vadd.f32 %v3179_v31, %v2741_v41  ;;  %v5607_v59 = vadd.f32 %v8755_v26, %v5606_v49 }
 0x602   : > { %10695 = vst [vmem:[#allocation36_spill] sm:$0xff] %v8775_v42  ;;  %3284 = vadd.xlane.f32.xlu1 %v8775_v42  ;;  %v3332_v16 = vmul.f32 %v8775_v42, %v8775_v42  ;;  %v5685_v52 = vadd.f32 %v5607_v59, %v10696_v23  ;;  %v2750_v23 = vld [vmem:[%s8117_s26 + $0xc8] sm:$0xff] }
 0x604   : > { %3380 = vadd.xlane.f32.xlu0 %v3332_v16  ;;  %5717 = vst [vmem:[%s8766_s20 + $0x8] sm:$0xff] %v5685_v52 }
 0x605   : > { %v3180_v14 = vpop.f32.mrf.mxu0 }
 0x606   : > { %v3181_v35 = vadd.f32 %v8645_v15, %v3180_v14 }
 0x608   : > { %v8785_v58 = vadd.f32 %v3181_v35, %v2742_v6 }
 0x60a   : > { %10697 = vst [vmem:[#allocation35_spill] sm:$0xff] %v8785_v58  ;;  %3286 = vadd.xlane.f32.xlu2 %v8785_v58  ;;  %v3333_v62 = vmul.f32 %v8785_v58, %v8785_v58 }
 0x60c   : > { %3382 = vadd.xlane.f32.xlu1 %v3333_v62 }
 0x60d   : > { %v3183_v19 = vpop.f32.mrf.mxu0 }
 0x60e   : > { %v3184_v48 = vadd.f32 %v8645_v15, %v3183_v19 }
 0x610   : > { %v8792_v56 = vadd.f32 %v3184_v48, %v2743_v0 }
 0x612   : > { %10698 = vst [vmem:[#allocation30_spill] sm:$0xff] %v8792_v56  ;;  %3288 = vadd.xlane.f32.xlu2 %v8792_v56  ;;  %v3334_v4 = vmul.f32 %v8792_v56, %v8792_v56 }
 0x614   : > { %3384 = vadd.xlane.f32.xlu1 %v3334_v4 }
 0x615   : > { %v3185_v24 = vpop.f32.mrf.mxu0 }
 0x616   : > { %v3186_v17 = vadd.f32 %v8645_v15, %v3185_v24 }
 0x618   : > { %v8799_v50 = vadd.f32 %v3186_v17, %v2744_v27 }
 0x61a   : > { %10699 = vst [vmem:[#allocation31_spill] sm:$0xff] %v8799_v50  ;;  %3290 = vadd.xlane.f32.xlu0 %v8799_v50  ;;  %v3335_v38 = vmul.f32 %v8799_v50, %v8799_v50 }
 0x61c   : > { %3386 = vadd.xlane.f32.xlu2 %v3335_v38 }
 0x61d   : > { %v3188_v36 = vpop.f32.mrf.mxu0 }
 0x61e   : > { %v3189_v29 = vadd.f32 %v8645_v15, %v3188_v36  ;;  %v2751_v36 = vld [vmem:[%s8117_s26 + $0xd0] sm:$0xff] }
 0x620   : > { %v8806_v34 = vadd.f32 %v3189_v29, %v2745_v12 }
 0x622   : > { %10700 = vst [vmem:[#allocation18_spill] sm:$0xff] %v8806_v34  ;;  %3292 = vadd.xlane.f32.xlu0 %v8806_v34  ;;  %v3336_v57 = vmul.f32 %v8806_v34, %v8806_v34 }
 0x624   : > { %3388 = vadd.xlane.f32.xlu2 %v3336_v57 }
 0x625   : > { %v3190_v18 = vpop.f32.mrf.mxu0 }
 0x626   : > { %v3191_v30 = vadd.f32 %v8645_v15, %v3190_v18 }
 0x628   : > { %v8813_v51 = vadd.f32 %v3191_v30, %v2746_v33 }
 0x62a   : > { %10701 = vst [vmem:[#allocation15_spill] sm:$0xff] %v8813_v51  ;;  %3294 = vadd.xlane.f32.xlu1 %v8813_v51  ;;  %v3337_v45 = vmul.f32 %v8813_v51, %v8813_v51 }
 0x62c   : > { %3390 = vadd.xlane.f32.xlu0 %v3337_v45 }
 0x62d   : > { %v3193_v11 = vpop.f32.mrf.mxu0 }
 0x62e   : > { %v3194_v40 = vadd.f32 %v8645_v15, %v3193_v11 }
 0x630   : > { %v8820_v13 = vadd.f32 %v3194_v40, %v2747_v1 }
 0x632   : > { %10702 = vst [vmem:[#allocation7_spill] sm:$0xff] %v8820_v13  ;;  %3296 = vadd.xlane.f32.xlu1 %v8820_v13  ;;  %v3338_v32 = vmul.f32 %v8820_v13, %v8820_v13 }
 0x634   : > { %3392 = vadd.xlane.f32.xlu0 %v3338_v32 }
 0x635   : > { %v3195_v2 = vpop.f32.mrf.mxu0 }
 0x636   : > { %v3196_v44 = vadd.f32 %v8645_v15, %v3195_v2 }
 0x638   : > { %v8827_v54 = vadd.f32 %v3196_v44, %v2748_v47 }
 0x63a   : > { %10703 = vst [vmem:[#allocation8_spill] sm:$0xff] %v8827_v54  ;;  %3298 = vadd.xlane.f32.xlu2 %v8827_v54  ;;  %v3339_v8 = vmul.f32 %v8827_v54, %v8827_v54  ;;  %v3269_v9 = vpop.xlane.xlu0 %3268 }
 0x63b   : > { %v8834_v41 = vmul.f32 0.25, %v3269_v9 }
 0x63c   : > { %3394 = vadd.xlane.f32.xlu1 %v3339_v8 }
 0x63d   : > { %v3198_v7 = vpop.f32.mrf.mxu0  ;;  %v3484_v49 = vmul.f32 %v8834_v41, %v8834_v41 }
 0x63e   : > { %v3199_v20 = vadd.f32 %v8645_v15, %v3198_v7 }
 0x640   : > { %v8836_v37 = vadd.f32 %v3199_v20, %v2749_v25  ;;  %v3365_v59 = vpop.xlane.xlu2 %3364  ;;  %v2752_v25 = vld [vmem:[%s8117_s26 + $0xd8] sm:$0xff] }
 0x641   : > { %v3452_v16 = vmul.f32 0.25, %v3365_v59 }
 0x642   : > { %10704 = vst [vmem:[#allocation10_spill] sm:$0xff] %v8836_v37  ;;  %3300 = vadd.xlane.f32.xlu2 %v8836_v37  ;;  %v3340_v31 = vmul.f32 %v8836_v37, %v8836_v37 }
 0x643   : > { %v3516_v14 = vsub.f32 %v3452_v16, %v3484_v49 }
 0x644   : > { %3396 = vadd.xlane.f32.xlu1 %v3340_v31  ;;  %v3271_v35 = vpop.xlane.xlu1 %3270 }
 0x645   : > { %v3200_v52 = vpop.f32.mrf.mxu0  ;;  %v3548_v0 = vmax.f32 %v3516_v14, 0.0  ;;  %v8847_v19 = vmul.f32 0.25, %v3271_v35 }
 0x646   : > { %v3201_v6 = vadd.f32 %v8645_v15, %v3200_v52  ;;  %v3367_v48 = vpop.xlane.xlu0 %3366 }
 0x647   : > { %v3612_v27 = vadd.f32 1e-05, %v3548_v0  ;;  %v3485_v24 = vmul.f32 %v8847_v19, %v8847_v19  ;;  %v3453_v17 = vmul.f32 0.25, %v3367_v48 }
 0x648   : > { %v8845_v62 = vadd.f32 %v3201_v6, %v2750_v23 }
 0x649   : > { %6638 = vrsqrt.f32 %v3612_v27  ;;  %v3517_v12 = vsub.f32 %v3453_v17, %v3485_v24  ;;  %vm3722_vm2 = vweird.f32 %v3612_v27 }
 0x64a   : > { %10705 = vst [vmem:[#allocation11_spill] sm:$0xff] %v8845_v62  ;;  %3302 = vadd.xlane.f32.xlu0 %v8845_v62  ;;  %v3341_v4 = vmul.f32 %v8845_v62, %v8845_v62 }
 0x64b   : > { %v3549_v33 = vmax.f32 %v3517_v12, 0.0 }
 0x64c   : > { %3398 = vadd.xlane.f32.xlu2 %v3341_v4  ;;  %v3273_v18 = vpop.xlane.xlu1 %3272 }
 0x64d   : > { %v3275_v38 = vpop.xlane.xlu2 %3274  ;;  %v3203_v29 = vpop.f32.mrf.mxu0  ;;  %v8858_v45 = vadd.f32 1e-05, %v3549_v33  ;;  %v8860_v1 = vmul.f32 0.25, %v3273_v18  ;;  %v3580_v18 = vsub.f32 %v8656_v3, %v8834_v41 }
 0x64e   : > { %v3204_v57 = vadd.f32 %v8645_v15, %v3203_v29  ;;  %v3369_v11 = vpop.xlane.xlu0 %3368  ;;  %v8868_v2 = vmul.f32 0.25, %v3275_v38 }
 0x64f   : > { %v6639_v32 = vpop.eup %6638  ;;  %6640 = vrsqrt.f32 %v8858_v45  ;;  %v3486_v47 = vmul.f32 %v8860_v1, %v8860_v1  ;;  %v3454_v8 = vmul.f32 0.25, %v3369_v11  ;;  %vm3732_vm5 = vweird.f32 %v8858_v45 }
 0x650   : > { %v8856_v30 = vadd.f32 %v3204_v57, %v2751_v36  ;;  %v3717_v44 = vmul.f32 %v6639_v32, %v3612_v27  ;;  %v3487_v16 = vmul.f32 %v8868_v2, %v8868_v2  ;;  %vm3723_vm1 = vweird.f32 %v6639_v32 }
 0x651   : > { %v3518_v9 = vsub.f32 %v3454_v8, %v3486_v47  ;;  %vm8891_vm3 = vmor %vm3722_vm2, %vm3723_vm1 }
 0x652   : > { %10706 = vst [vmem:[#allocation22_spill] sm:$0xff] %v8856_v30  ;;  %3304 = vadd.xlane.f32.xlu0 %v8856_v30  ;;  %v3342_v40 = vmul.f32 %v8856_v30, %v8856_v30  ;;  %v3718_v20 = vmul.f32 %v6639_v32, %v3717_v44  ;;  %v2753_v44 = vld [vmem:[%s8117_s26 + $0xe0] sm:$0xff] }
 0x653   : > { %v3550_v6 = vmax.f32 %v3518_v9, 0.0 }
 0x654   : > { %3400 = vadd.xlane.f32.xlu2 %v3342_v40  ;;  %v3719_v52 = vmul.f32 0.5, %v3718_v20  ;;  %v3371_v14 = vpop.xlane.xlu1 %3370 }
 0x655   : > { %v3205_v7 = vpop.f32.mrf.mxu0  ;;  %v5609_v49 = vpop.f32.mrf.mxu2  ;;  %v3455_v48 = vmul.f32 0.25, %v3371_v14  ;;  %v8879_v38 = vadd.f32 1e-05, %v3550_v6 }
 0x656   : > { %v3206_v31 = vadd.f32 %v8645_v15, %v3205_v7  ;;  %v3277_v59 = vpop.xlane.xlu2 %3276  ;;  %v5610_v23 = vadd.f32 %v8755_v26, %v5609_v49  ;;  %v6641_v0 = vpop.eup %6640  ;;  %v3720_v24 = vsub.f32 1.5, %v3719_v52 }
 0x657   : > { %v3727_v17 = vmul.f32 %v6641_v0, %v8858_v45  ;;  %v8881_v12 = vmul.f32 0.25, %v3277_v59  ;;  %v3519_v36 = vsub.f32 %v3455_v48, %v3487_v16  ;;  %6642 = vrsqrt.f32 %v8879_v38  ;;  %v8927_v45 = vld [vmem:[%s10372_s6] ss:$0 sm:$0xff] }
 0x658   : > { %v8875_v35 = vadd.f32 %v3206_v31, %v2752_v25  ;;  %v5686_v4 = vadd.f32 %v5610_v23, %v8249_v63  ;;  %v3721_v57 = vmul.f32 %v6639_v32, %v3720_v24  ;;  %vm3733_vm4 = vweird.f32 %v6641_v0 }
 0x659   : > { %v3728_v33 = vmul.f32 %v6641_v0, %v3727_v17  ;;  %v3551_v40 = vmax.f32 %v3519_v36, 0.0  ;;  %v3488_v27 = vmul.f32 %v8881_v12, %v8881_v12  ;;  %vm3734_vm6 = vmor %vm3732_vm5, %vm3733_vm4  ;;  %vm3742_vm8 = vweird.f32 %v8879_v38 }
 0x65a   : > { %10707 = vst [vmem:[#allocation23_spill] sm:$0xff] %v8875_v35  ;;  %3306 = vadd.xlane.f32.xlu1 %v8875_v35  ;;  %v3343_v29 = vmul.f32 %v8875_v35, %v8875_v35  ;;  %v3725_v41 = vsel %vm8891_vm3, %v6639_v32, %v3721_v57  ;;  %v3581_v57 = vsub.f32 %v8687_v61, %v8847_v19 }
 0x65b   : > { %5718 = vst [vmem:[%s8766_s20 + $0x10] sm:$0xff] %v5686_v4  ;;  %v3729_v25 = vmul.f32 0.5, %v3728_v33  ;;  %v8903_v31 = vadd.f32 1e-05, %v3551_v40  ;;  %v3964_v14 = vmul.f32 %v3725_v41, %v3580_v18  ;;  %v10711_v4 = vld [vmem:[#allocation5_spill] sm:$0xff] }
 0x65c   : > { %3402 = vadd.xlane.f32.xlu0 %v3343_v29  ;;  %v3373_v23 = vpop.xlane.xlu1 %3372 }
 0x65d   : > { %v3279_v63 = vpop.xlane.xlu0 %3278  ;;  %v3208_v8 = vpop.f32.mrf.mxu0  ;;  %v3730_v16 = vsub.f32 1.5, %v3729_v25  ;;  %6644 = vrsqrt.f32 %v8903_v31  ;;  %v3456_v48 = vmul.f32 0.25, %v3373_v23  ;;  %v3999_v40 = vmul.f32 %v8927_v45, %v3964_v14  ;;  %v8949_v14 = vld [vmem:[%s10373_s7] ss:$0 sm:$0xff] }
 0x65e   : > { %v8895_v47 = vmul.f32 0.25, %v3279_v63  ;;  %v3209_v7 = vadd.f32 %v8645_v15, %v3208_v8  ;;  %v5611_v20 = vpop.f32.mrf.mxu2  ;;  %v8912_v24 = vpop.eup %6642  ;;  %vm3752_vm11 = vweird.f32 %v8903_v31 }
 0x65f   : > { %v3375_v9 = vpop.xlane.xlu2 %3374  ;;  %v5612_v59 = vadd.f32 %v8755_v26, %v5611_v20  ;;  %v3731_v17 = vmul.f32 %v6641_v0, %v3730_v16  ;;  %v3737_v33 = vmul.f32 %v8912_v24, %v8879_v38  ;;  %v3520_v63 = vsub.f32 %v3456_v48, %v3488_v27  ;;  %v2754_v16 = vld [vmem:[%s8117_s26 + $0xe8] sm:$0xff] }
 0x660   : > { %v3489_v49 = vmul.f32 %v8895_v47, %v8895_v47  ;;  %v8908_v52 = vadd.f32 %v3209_v7, %v2753_v44  ;;  %v3457_v6 = vmul.f32 0.25, %v3375_v9  ;;  %vm3743_vm7 = vweird.f32 %v8912_v24 }
 0x661   : > { %v5687_v32 = vadd.f32 %v5612_v59, %v10711_v4  ;;  %v3735_v11 = vsel %vm3734_vm6, %v6641_v0, %v3731_v17  ;;  %v3738_v19 = vmul.f32 %v8912_v24, %v3737_v33  ;;  %v3552_v8 = vmax.f32 %v3520_v63, 0.0  ;;  %vm8964_vm9 = vmor %vm3742_vm8, %vm3743_vm7 }
 0x662   : > { %10710 = vst [vmem:[#allocation19_spill] sm:$0xff] %v8908_v52  ;;  %v3521_v36 = vsub.f32 %v3457_v6, %v3489_v49  ;;  %3308 = vadd.xlane.f32.xlu1 %v8908_v52  ;;  %v3344_v29 = vmul.f32 %v8908_v52, %v8908_v52  ;;  %v3965_v25 = vmul.f32 %v3735_v11, %v3581_v57 }
 0x663   : > { %5719 = vst [vmem:[%s8766_s20 + $0x18] sm:$0xff] %v5687_v32  ;;  %v8936_v9 = vpop.eup %6644  ;;  %v3739_v41 = vmul.f32 0.5, %v3738_v19  ;;  %v8938_v49 = vadd.f32 1e-05, %v3552_v8  ;;  %v4034_v48 = vadd.f32 %v8949_v14, %v3999_v40 }
 0x664   : > { %v3553_v18 = vmax.f32 %v3521_v36, 0.0  ;;  %3404 = vadd.xlane.f32.xlu0 %v3344_v29  ;;  %v4000_v59 = vmul.f32 %v8927_v45, %v3965_v25  ;;  %v3747_v6 = vmul.f32 %v8936_v9, %v8903_v31  ;;  %vm3753_vm10 = vweird.f32 %v8936_v9 }
 0x665   : > { %v3281_v44 = vpop.xlane.xlu0 %3280  ;;  %v3210_v27 = vpop.f32.mrf.mxu0  ;;  %v3740_v32 = vsub.f32 1.5, %v3739_v41  ;;  %vm8997_vm12 = vmor %vm3752_vm11, %vm3753_vm10  ;;  %vm3762_vm0 = vweird.f32 %v8938_v49 }
 0x666   : > { %v8931_v7 = vmul.f32 0.25, %v3281_v44  ;;  %v8933_v20 = vadd.f32 1e-05, %v3553_v18  ;;  %v3211_v0 = vadd.f32 %v8645_v15, %v3210_v27  ;;  %v5614_v23 = vpop.f32.mrf.mxu2  ;;  %v4035_v17 = vadd.f32 %v8949_v14, %v4000_v59 }
 0x667   : > { %v3377_v4 = vpop.xlane.xlu2 %3376  ;;  %v3748_v29 = vmul.f32 %v8936_v9, %v3747_v6  ;;  %v5615_v33 = vadd.f32 %v8755_v26, %v5614_v23  ;;  %v3741_v63 = vmul.f32 %v8912_v24, %v3740_v32  ;;  %v2755_v23 = vld [vmem:[%s8117_s26 + $0xf0] sm:$0xff] }
 0x668   : > { %6646 = vrsqrt.f32 %v8933_v20  ;;  %v3490_v36 = vmul.f32 %v8931_v7, %v8931_v7  ;;  %v8957_v57 = vadd.f32 %v3211_v0, %v2754_v16  ;;  %v4062_v18 = vpack.c.bf16 %v4035_v17, %v4034_v48 }
 0x669   : > { %6648 = vrsqrt.f32 %v8938_v49  ;;  %v3458_v11 = vmul.f32 0.25, %v3377_v4  ;;  %v3749_v44 = vmul.f32 0.5, %v3748_v29  ;;  %v5688_v19 = vadd.f32 %v5615_v33, %v8272_v5 }
 0x66a   : > { %10712 = vst [vmem:[#allocation20_spill] sm:$0xff] %v8957_v57  ;;  %3310 = vadd.xlane.f32.xlu2 %v8957_v57  ;;  %v3345_v8 = vmul.f32 %v8957_v57, %v8957_v57  ;;  %4170 = vmatmul.bf16.gmra.mxu1 %v4062_v18  ;;  %v3745_v41 = vsel %vm8964_vm9, %v8912_v24, %v3741_v63  ;;  %vm3772_vm13 = vweird.f32 %v8933_v20 }
 0x66b   : > { %v3522_v38 = vsub.f32 %v3458_v11, %v3490_v36  ;;  %v3582_v5 = vsub.f32 %v8702_v21, %v8860_v1  ;;  %v3750_v16 = vsub.f32 1.5, %v3749_v44  ;;  %5720 = vst [vmem:[%s8766_s20 + $0x20] sm:$0xff] %v5688_v19  ;;  %v3583_v44 = vsub.f32 %v8704_v43, %v8868_v2 }
 0x66c   : > { %3406 = vadd.xlane.f32.xlu1 %v3345_v8 }
 0x66d   : > { %v3283_v25 = vpop.xlane.xlu1 %3282  ;;  %v3213_v0 = vpop.f32.mrf.mxu0  ;;  %v3554_v32 = vmax.f32 %v3522_v38, 0.0  ;;  %v3751_v1 = vmul.f32 %v8936_v9, %v3750_v16  ;;  %v3966_v33 = vmul.f32 %v3745_v41, %v3582_v5 }
 0x66e   : > { %v8972_v27 = vmul.f32 0.25, %v3283_v25  ;;  %v8977_v59 = vpop.eup %6646  ;;  %v3214_v6 = vadd.f32 %v8645_v15, %v3213_v0  ;;  %v5616_v17 = vpop.f32.mrf.mxu2 }
 0x66f   : > { %v3379_v48 = vpop.xlane.xlu0 %3378  ;;  %v8985_v4 = vpop.eup %6648  ;;  %v3767_v24 = vmul.f32 %v8977_v59, %v8933_v20  ;;  %v9002_v18 = vadd.f32 1e-05, %v3554_v32  ;;  %v5617_v40 = vadd.f32 %v8755_v26, %v5616_v17  ;;  %v3755_v25 = vsel %vm8997_vm12, %v8936_v9, %v3751_v1 }
 0x670   : > { %v3757_v36 = vmul.f32 %v8985_v4, %v8938_v49  ;;  %v3491_v29 = vmul.f32 %v8972_v27, %v8972_v27  ;;  %v9004_v11 = vadd.f32 %v3214_v6, %v2755_v23  ;;  %v3459_v8 = vmul.f32 0.25, %v3379_v48 }
 0x671   : > { %v3768_v31 = vmul.f32 %v8977_v59, %v3767_v24  ;;  %6650 = vrsqrt.f32 %v9002_v18  ;;  %v5689_v0 = vadd.f32 %v5617_v40, %v8285_v28  ;;  %vm3773_vm14 = vweird.f32 %v8977_v59  ;;  %v2756_v24 = vld [vmem:[%s8117_s26 + $0xf8] sm:$0xff] }
 0x672   : > { %v3758_v19 = vmul.f32 %v8985_v4, %v3757_v36  ;;  %v3523_v5 = vsub.f32 %v3459_v8, %v3491_v29  ;;  %3312 = vadd.xlane.f32.xlu2 %v9004_v11  ;;  %v3967_v2 = vmul.f32 %v3755_v25, %v3583_v44  ;;  %v4001_v9 = vmul.f32 %v8927_v45, %v3966_v33  ;;  %vm9044_vm1 = vmor %vm3772_vm13, %vm3773_vm14 }
 0x673   : > { %v3769_v38 = vmul.f32 0.5, %v3768_v31  ;;  %5721 = vst [vmem:[%s8766_s20 + $0x28] sm:$0xff] %v5689_v0  ;;  %v3346_v6 = vmul.f32 %v9004_v11, %v9004_v11  ;;  %vm3763_vm15 = vweird.f32 %v8985_v4  ;;  %vm3782_vm6 = vweird.f32 %v9002_v18 }
 0x674   : > { %v3759_v41 = vmul.f32 0.5, %v3758_v19  ;;  %v3555_v17 = vmax.f32 %v3523_v5, 0.0  ;;  %v4002_v1 = vmul.f32 %v8927_v45, %v3967_v2  ;;  %vm9049_vm2 = vmor %vm3762_vm0, %vm3763_vm15  ;;  %v3585_v5 = vsub.f32 %v8731_v53, %v8895_v47 }
 0x675   : > { %v3285_v16 = vpop.xlane.xlu1 %3284  ;;  %v3770_v23 = vsub.f32 1.5, %v3769_v38  ;;  %v3215_v32 = vpop.f32.mrf.mxu0  ;;  %3408 = vadd.xlane.f32.xlu1 %v3346_v6  ;;  %v4036_v38 = vadd.f32 %v8949_v14, %v4001_v9  ;;  %v3584_v9 = vsub.f32 %v8721_v55, %v8881_v12 }
 0x676   : > { %v9022_v48 = vmul.f32 0.25, %v3285_v16  ;;  %v3760_v28 = vsub.f32 1.5, %v3759_v41  ;;  %v3216_v36 = vadd.f32 %v8645_v15, %v3215_v32  ;;  %v9032_v44 = vadd.f32 1e-05, %v3555_v17 }
 0x677   : > { %v3381_v29 = vpop.xlane.xlu0 %3380  ;;  %v3771_v63 = vmul.f32 %v8977_v59, %v3770_v23  ;;  %v4037_v19 = vadd.f32 %v8949_v14, %v4002_v1  ;;  %v9037_v25 = vpop.eup %6650 }
 0x678   : > { %v3492_v33 = vmul.f32 %v9022_v48, %v9022_v48  ;;  %v3460_v31 = vmul.f32 0.25, %v3381_v29  ;;  %v3761_v40 = vmul.f32 %v8985_v4, %v3760_v28  ;;  %v9035_v8 = vadd.f32 %v3216_v36, %v2756_v24 }
 0x679   : > { %v3777_v49 = vmul.f32 %v9037_v25, %v9002_v18  ;;  %6652 = vrsqrt.f32 %v9032_v44  ;;  %v3775_v20 = vsel %vm9044_vm1, %v8977_v59, %v3771_v63  ;;  %v4063_v2 = vpack.c.bf16 %v4037_v19, %v4036_v38 }
 0x67a   : > { %v3524_v0 = vsub.f32 %v3460_v31, %v3492_v33  ;;  %3314 = vadd.xlane.f32.xlu0 %v9035_v8  ;;  %v3347_v23 = vmul.f32 %v9035_v8, %v9035_v8  ;;  %v3765_v47 = vsel %vm9049_vm2, %v8985_v4, %v3761_v40  ;;  %v3969_v17 = vmul.f32 %v3775_v20, %v3585_v5 }
 0x67b   : > { %v3778_v6 = vmul.f32 %v9037_v25, %v3777_v49  ;;  %4175 = vmatmul.bf16.gmra.mxu1 %v4063_v2  ;;  %v5619_v32 = vpop.f32.mrf.mxu2  ;;  %v3968_v29 = vmul.f32 %v3765_v47, %v3584_v9  ;;  %vm3783_vm3 = vweird.f32 %v9037_v25  ;;  %vm3792_vm5 = vweird.f32 %v9032_v44 }
 0x67c   : > { %v3556_v16 = vmax.f32 %v3524_v0, 0.0  ;;  %3410 = vadd.xlane.f32.xlu2 %v3347_v23  ;;  %v5620_v1 = vadd.f32 %v8755_v26, %v5619_v32  ;;  %v4004_v19 = vmul.f32 %v8927_v45, %v3969_v17  ;;  %vm9102_vm8 = vmor %vm3782_vm6, %vm3783_vm3 }
 0x67d   : > { %v3287_v24 = vpop.xlane.xlu2 %3286  ;;  %v3779_v63 = vmul.f32 0.5, %v3778_v6  ;;  %v4003_v38 = vmul.f32 %v8927_v45, %v3968_v29 }
 0x67e   : > { %v9070_v28 = vadd.f32 1e-05, %v3556_v16  ;;  %v9072_v59 = vmul.f32 0.25, %v3287_v24  ;;  %v5690_v33 = vadd.f32 %v5620_v1, %v8299_v60  ;;  %v4039_v23 = vadd.f32 %v8949_v14, %v4004_v19 }
 0x67f   : > { %v3383_v36 = vpop.xlane.xlu1 %3382  ;;  %v6653_v4 = vpop.eup %6652  ;;  %v3780_v41 = vsub.f32 1.5, %v3779_v63  ;;  %v4038_v6 = vadd.f32 %v8949_v14, %v4003_v38  ;;  %v3586_v38 = vsub.f32 %v8743_v22, %v8931_v7 }
 0x680   : > { %6654 = vrsqrt.f32 %v9070_v28  ;;  %v3493_v12 = vmul.f32 %v9072_v59, %v9072_v59  ;;  %v3461_v31 = vmul.f32 0.25, %v3383_v36  ;;  %v3787_v40 = vmul.f32 %v6653_v4, %v9032_v44  ;;  %5722 = vst [vmem:[%s8766_s20 + $0x30] sm:$0xff] %v5690_v33 }
 0x681   : > { %vm3793_vm4 = vweird.f32 %v6653_v4  ;;  %v3781_v36 = vmul.f32 %v9037_v25, %v3780_v41  ;;  %v4064_v63 = vpack.c.bf16 %v4039_v23, %v4038_v6  ;;  %vm3802_vm13 = vweird.f32 %v9070_v28 }
 0x682   : > { %v3525_v15 = vsub.f32 %v3461_v31, %v3493_v12  ;;  %v3788_v0 = vmul.f32 %v6653_v4, %v3787_v40  ;;  %vm3794_vm7 = vmor %vm3792_vm5, %vm3793_vm4  ;;  %v3587_v40 = vsub.f32 %v8758_v39, %v8972_v27 }
 0x683   : > { %v5621_v16 = vpop.f32.mrf.mxu2  ;;  %v3785_v18 = vsel %vm9102_vm8, %v9037_v25, %v3781_v36 }
 0x684   : > { %v3557_v5 = vmax.f32 %v3525_v15, 0.0  ;;  %v3789_v2 = vmul.f32 0.5, %v3788_v0  ;;  %v5622_v47 = vadd.f32 %v8755_v26, %v5621_v16 }
 0x685   : > { %v3289_v49 = vpop.xlane.xlu2 %3288 }
 0x686   : > { %v9083_v20 = vpop.eup %6654  ;;  %v9086_v60 = vmul.f32 0.25, %v3289_v49  ;;  %v3621_v9 = vadd.f32 1e-05, %v3557_v5  ;;  %v3790_v32 = vsub.f32 1.5, %v3789_v2  ;;  %v5691_v12 = vadd.f32 %v5622_v47, %v8309_v10 }
 0x687   : > { %v3385_v24 = vpop.xlane.xlu1 %3384  ;;  %v3797_v29 = vmul.f32 %v9083_v20, %v9070_v28  ;;  %vm3803_vm10 = vweird.f32 %v9083_v20 }
 0x688   : > { %v3494_v17 = vmul.f32 %v9086_v60, %v9086_v60  ;;  %v3462_v1 = vmul.f32 0.25, %v3385_v24  ;;  %6656 = vrsqrt.f32 %v3621_v9  ;;  %v3791_v26 = vmul.f32 %v6653_v4, %v3790_v32  ;;  %5723 = vst [vmem:[%s8766_s20 + $0x38] sm:$0xff] %v5691_v12  ;;  %vm3804_vm14 = vmor %vm3802_vm13, %vm3803_vm10 }
 0x689   : > { %v3798_v15 = vmul.f32 %v9083_v20, %v3797_v29  ;;  %vm3812_vm11 = vweird.f32 %v3621_v9 }
 0x68a   : > { %v3526_v33 = vsub.f32 %v3462_v1, %v3494_v17  ;;  %v3795_v19 = vsel %vm3794_vm7, %v6653_v4, %v3791_v26  ;;  %v3970_v4 = vmul.f32 %v3785_v18, %v3586_v38 }
 0x68b   : > { %4180 = vmatmul.bf16.gmra.mxu1 %v4064_v63  ;;  %v3971_v5 = vmul.f32 %v3795_v19, %v3587_v40  ;;  %v3799_v16 = vmul.f32 0.5, %v3798_v15 }
 0x68c   : > { %v3558_v10 = vmax.f32 %v3526_v33, 0.0  ;;  %v4005_v32 = vmul.f32 %v8927_v45, %v3970_v4 }
 0x68d   : > { %v3291_v44 = vpop.xlane.xlu0 %3290  ;;  %v4006_v7 = vmul.f32 %v8927_v45, %v3971_v5  ;;  %v3800_v17 = vsub.f32 1.5, %v3799_v16  ;;  %v3588_v16 = vsub.f32 %v8775_v42, %v9022_v48 }
 0x68e   : > { %v9114_v0 = vadd.f32 1e-05, %v3558_v10  ;;  %v9116_v41 = vmul.f32 0.25, %v3291_v44  ;;  %v6657_v49 = vpop.eup %6656  ;;  %v4040_v40 = vadd.f32 %v8949_v14, %v4005_v32 }
 0x68f   : > { %v3387_v27 = vpop.xlane.xlu2 %3386  ;;  %v3807_v2 = vmul.f32 %v6657_v49, %v3621_v9  ;;  %v4041_v12 = vadd.f32 %v8949_v14, %v4006_v7  ;;  %vm3813_vm9 = vweird.f32 %v6657_v49  ;;  %v3801_v19 = vmul.f32 %v9083_v20, %v3800_v17 }
 0x690   : > { %6658 = vrsqrt.f32 %v9114_v0  ;;  %v3495_v23 = vmul.f32 %v9116_v41, %v9116_v41  ;;  %v3463_v25 = vmul.f32 0.25, %v3387_v27  ;;  %vm3814_vm12 = vmor %vm3812_vm11, %vm3813_vm9  ;;  %v3589_v9 = vsub.f32 %v8785_v58, %v9072_v59 }
 0x691   : > { %v3808_v47 = vmul.f32 %v6657_v49, %v3807_v2  ;;  %v4065_v18 = vpack.c.bf16 %v4041_v12, %v4040_v40  ;;  %v3805_v4 = vsel %vm3804_vm14, %v9083_v20, %v3801_v19  ;;  %vm3822_vm3 = vweird.f32 %v9114_v0 }
 0x692   : > { %v3527_v6 = vsub.f32 %v3463_v25, %v3495_v23  ;;  %v3972_v59 = vmul.f32 %v3805_v4, %v3588_v16 }
 0x693   : > { %v3809_v24 = vmul.f32 0.5, %v3808_v47 }
 0x694   : > { %v3559_v1 = vmax.f32 %v3527_v6, 0.0 }
 0x695   : > { %v3810_v29 = vsub.f32 1.5, %v3809_v24  ;;  %v3293_v26 = vpop.xlane.xlu0 %3292 }
 0x696   : > { %v9123_v36 = vpop.eup %6658  ;;  %v3623_v63 = vadd.f32 1e-05, %v3559_v1  ;;  %v9126_v33 = vmul.f32 0.25, %v3293_v26  ;;  %v4007_v26 = vmul.f32 %v8927_v45, %v3972_v59 }
 0x697   : > { %v3811_v31 = vmul.f32 %v6657_v49, %v3810_v29  ;;  %v3389_v10 = vpop.xlane.xlu2 %3388  ;;  %v3817_v15 = vmul.f32 %v9123_v36, %v9114_v0  ;;  %vm3823_vm0 = vweird.f32 %v9123_v36 }
 0x698   : > { %6660 = vrsqrt.f32 %v3623_v63  ;;  %v3496_v44 = vmul.f32 %v9126_v33, %v9126_v33  ;;  %v3464_v38 = vmul.f32 0.25, %v3389_v10  ;;  %vm3832_vm1 = vweird.f32 %v3623_v63  ;;  %vm3824_vm4 = vmor %vm3822_vm3, %vm3823_vm0 }
 0x699   : > { %v3815_v5 = vsel %vm3814_vm12, %v6657_v49, %v3811_v31  ;;  %v3818_v2 = vmul.f32 %v9123_v36, %v3817_v15 }
 0x69a   : > { %v3528_v27 = vsub.f32 %v3464_v38, %v3496_v44  ;;  %v3973_v47 = vmul.f32 %v3815_v5, %v3589_v9  ;;  %v4042_v9 = vadd.f32 %v8949_v14, %v4007_v26 }
 0x69b   : > { %4185 = vmatmul.bf16.gmra.mxu1 %v4065_v18  ;;  %v3819_v32 = vmul.f32 0.5, %v3818_v2 }
 0x69c   : > { %v3560_v23 = vmax.f32 %v3528_v27, 0.0  ;;  %v4008_v48 = vmul.f32 %v8927_v45, %v3973_v47 }
 0x69d   : > { %v3295_v25 = vpop.xlane.xlu1 %3294  ;;  %v3820_v31 = vsub.f32 1.5, %v3819_v32  ;;  %v3590_v32 = vsub.f32 %v8792_v56, %v9086_v60 }
 0x69e   : > { %v6661_v7 = vpop.eup %6660  ;;  %v9142_v6 = vmul.f32 0.25, %v3295_v25  ;;  %v9144_v49 = vadd.f32 1e-05, %v3560_v23  ;;  %v4043_v19 = vadd.f32 %v8949_v14, %v4008_v48 }
 0x69f   : > { %v3827_v28 = vmul.f32 %v6661_v7, %v3623_v63  ;;  %v3391_v24 = vpop.xlane.xlu0 %3390  ;;  %vm3833_vm15 = vweird.f32 %v6661_v7  ;;  %v3821_v2 = vmul.f32 %v9123_v36, %v3820_v31 }
 0x6a0   : > { %v3497_v17 = vmul.f32 %v9142_v6, %v9142_v6  ;;  %v3465_v20 = vmul.f32 0.25, %v3391_v24  ;;  %6662 = vrsqrt.f32 %v9144_v49  ;;  %vm3834_vm2 = vmor %vm3832_vm1, %vm3833_vm15  ;;  %v4066_v16 = vpack.c.bf16 %v4043_v19, %v4042_v9 }
 0x6a1   : > { %v3828_v1 = vmul.f32 %v6661_v7, %v3827_v28  ;;  %v3591_v28 = vsub.f32 %v8799_v50, %v9116_v41  ;;  %v3825_v59 = vsel %vm3824_vm4, %v9123_v36, %v3821_v2  ;;  %vm3842_vm9 = vweird.f32 %v9144_v49 }
 0x6a2   : > { %v3529_v29 = vsub.f32 %v3465_v20, %v3497_v17  ;;  %v3974_v41 = vmul.f32 %v3825_v59, %v3590_v32 }
 0x6a3   : > { %v3829_v12 = vmul.f32 0.5, %v3828_v1 }
 0x6a4   : > { %v3561_v40 = vmax.f32 %v3529_v29, 0.0 }
 0x6a5   : > { %v3830_v10 = vsub.f32 1.5, %v3829_v12  ;;  %v3297_v15 = vpop.xlane.xlu1 %3296 }
 0x6a6   : > { %v3625_v44 = vadd.f32 1e-05, %v3561_v40  ;;  %v9152_v18 = vmul.f32 0.25, %v3297_v15  ;;  %v9154_v38 = vpop.eup %6662  ;;  %v4009_v15 = vmul.f32 %v8927_v45, %v3974_v41 }
 0x6a7   : > { %v3831_v5 = vmul.f32 %v6661_v7, %v3830_v10  ;;  %v3393_v27 = vpop.xlane.xlu0 %3392  ;;  %v3837_v4 = vmul.f32 %v9154_v38, %v9144_v49  ;;  %vm3843_vm6 = vweird.f32 %v9154_v38 }
 0x6a8   : > { %6664 = vrsqrt.f32 %v3625_v44  ;;  %v3498_v23 = vmul.f32 %v9152_v18, %v9152_v18  ;;  %v3466_v25 = vmul.f32 0.25, %v3393_v27  ;;  %vm3852_vm7 = vweird.f32 %v3625_v44  ;;  %vm3844_vm10 = vmor %vm3842_vm9, %vm3843_vm6 }
 0x6a9   : > { %v3835_v47 = vsel %vm3834_vm2, %v6661_v7, %v3831_v5  ;;  %v3838_v63 = vmul.f32 %v9154_v38, %v3837_v4 }
 0x6aa   : > { %v3530_v24 = vsub.f32 %v3466_v25, %v3498_v23  ;;  %v3975_v1 = vmul.f32 %v3835_v47, %v3591_v28  ;;  %v4044_v28 = vadd.f32 %v8949_v14, %v4009_v15 }
 0x6ab   : > { %4190 = vmatmul.bf16.gmra.mxu1 %v4066_v16  ;;  %v3839_v26 = vmul.f32 0.5, %v3838_v63 }
 0x6ac   : > { %v3562_v17 = vmax.f32 %v3530_v24, 0.0  ;;  %v4010_v60 = vmul.f32 %v8927_v45, %v3975_v1 }
 0x6ad   : > { %v3299_v20 = vpop.xlane.xlu2 %3298  ;;  %v3840_v5 = vsub.f32 1.5, %v3839_v26  ;;  %v3592_v26 = vsub.f32 %v8806_v34, %v9126_v33 }
 0x6ae   : > { %v6665_v48 = vpop.eup %6664  ;;  %v9170_v29 = vmul.f32 0.25, %v3299_v20  ;;  %v9172_v7 = vadd.f32 1e-05, %v3562_v17  ;;  %v4045_v2 = vadd.f32 %v8949_v14, %v4010_v60 }
 0x6af   : > { %v3847_v0 = vmul.f32 %v6665_v48, %v3625_v44  ;;  %v3395_v12 = vpop.xlane.xlu1 %3394  ;;  %vm3853_vm5 = vweird.f32 %v6665_v48  ;;  %v3841_v63 = vmul.f32 %v9154_v38, %v3840_v5 }
 0x6b0   : > { %v3499_v31 = vmul.f32 %v9170_v29, %v9170_v29  ;;  %v3467_v36 = vmul.f32 0.25, %v3395_v12  ;;  %6666 = vrsqrt.f32 %v9172_v7  ;;  %vm3854_vm8 = vmor %vm3852_vm7, %vm3853_vm5  ;;  %v4067_v32 = vpack.c.bf16 %v4045_v2, %v4044_v28 }
 0x6b1   : > { %v3848_v40 = vmul.f32 %v6665_v48, %v3847_v0  ;;  %v3593_v0 = vsub.f32 %v8813_v51, %v9142_v6  ;;  %v3845_v41 = vsel %vm3844_vm10, %v9154_v38, %v3841_v63  ;;  %vm3862_vm15 = vweird.f32 %v9172_v7 }
 0x6b2   : > { %v3531_v10 = vsub.f32 %v3467_v36, %v3499_v31  ;;  %v3976_v6 = vmul.f32 %v3845_v41, %v3592_v26 }
 0x6b3   : > { %v3849_v19 = vmul.f32 0.5, %v3848_v40 }
 0x6b4   : > { %v3563_v9 = vmax.f32 %v3531_v10, 0.0 }
 0x6b5   : > { %v3850_v27 = vsub.f32 1.5, %v3849_v19  ;;  %v3301_v4 = vpop.xlane.xlu2 %3300 }
 0x6b6   : > { %v3627_v16 = vadd.f32 1e-05, %v3563_v9  ;;  %v9180_v23 = vmul.f32 0.25, %v3301_v4  ;;  %v9182_v25 = vpop.eup %6666  ;;  %v4011_v4 = vmul.f32 %v8927_v45, %v3976_v6 }
 0x6b7   : > { %v3851_v47 = vmul.f32 %v6665_v48, %v3850_v27  ;;  %v3397_v24 = vpop.xlane.xlu1 %3396  ;;  %v3857_v59 = vmul.f32 %v9182_v25, %v9172_v7  ;;  %vm3863_vm12 = vweird.f32 %v9182_v25 }
 0x6b8   : > { %6668 = vrsqrt.f32 %v3627_v16  ;;  %v3500_v17 = vmul.f32 %v9180_v23, %v9180_v23  ;;  %v3468_v20 = vmul.f32 0.25, %v3397_v24  ;;  %vm3872_vm13 = vweird.f32 %v3627_v16  ;;  %vm3864_vm0 = vmor %vm3862_vm15, %vm3863_vm12 }
 0x6b9   : > { %v3855_v1 = vsel %vm3854_vm8, %v6665_v48, %v3851_v47  ;;  %v3858_v44 = vmul.f32 %v9182_v25, %v3857_v59 }
 0x6ba   : > { %v3532_v12 = vsub.f32 %v3468_v20, %v3500_v17  ;;  %v3977_v40 = vmul.f32 %v3855_v1, %v3593_v0  ;;  %v4046_v0 = vadd.f32 %v8949_v14, %v4011_v4 }
 0x6bb   : > { %4195 = vmatmul.bf16.gmra.mxu1 %v4067_v32  ;;  %v3859_v15 = vmul.f32 0.5, %v3858_v44 }
 0x6bc   : > { %v3564_v31 = vmax.f32 %v3532_v12, 0.0  ;;  %v4012_v33 = vmul.f32 %v8927_v45, %v3977_v40 }
 0x6bd   : > { %v3303_v36 = vpop.xlane.xlu0 %3302  ;;  %v3860_v47 = vsub.f32 1.5, %v3859_v15  ;;  %v3594_v15 = vsub.f32 %v8820_v13, %v9152_v18 }
 0x6be   : > { %v6669_v60 = vpop.eup %6668  ;;  %v9198_v10 = vmul.f32 0.25, %v3303_v36  ;;  %v9200_v48 = vadd.f32 1e-05, %v3564_v31  ;;  %v4047_v63 = vadd.f32 %v8949_v14, %v4012_v33 }
 0x6bf   : > { %v3867_v49 = vmul.f32 %v6669_v60, %v3627_v16  ;;  %v3399_v19 = vpop.xlane.xlu2 %3398  ;;  %vm3873_vm11 = vweird.f32 %v6669_v60  ;;  %v3861_v44 = vmul.f32 %v9182_v25, %v3860_v47 }
 0x6c0   : > { %v3501_v5 = vmul.f32 %v9198_v10, %v9198_v10  ;;  %v3469_v38 = vmul.f32 0.25, %v3399_v19  ;;  %6670 = vrsqrt.f32 %v9200_v48  ;;  %vm3874_vm14 = vmor %vm3872_vm13, %vm3873_vm11  ;;  %v4068_v26 = vpack.c.bf16 %v4047_v63, %v4046_v0 }
 0x6c1   : > { %v3868_v9 = vmul.f32 %v6669_v60, %v3867_v49  ;;  %v3595_v49 = vsub.f32 %v8827_v54, %v9170_v29  ;;  %v3865_v6 = vsel %vm3864_vm0, %v9182_v25, %v3861_v44  ;;  %vm3882_vm5 = vweird.f32 %v9200_v48 }
 0x6c2   : > { %v3533_v27 = vsub.f32 %v3469_v38, %v3501_v5 }
 0x6c3   : > { %v3869_v2 = vmul.f32 0.5, %v3868_v9 }
 0x6c4   : > { %v3565_v28 = vmax.f32 %v3533_v27, 0.0 }
 0x6c5   : > { %v3870_v24 = vsub.f32 1.5, %v3869_v2  ;;  %v3305_v59 = vpop.xlane.xlu0 %3304  ;;  %v3978_v2 = vmul.f32 %v3865_v6, %v3594_v15 }
 0x6c6   : > { %v3629_v32 = vadd.f32 1e-05, %v3565_v28  ;;  %v9208_v17 = vmul.f32 0.25, %v3305_v59  ;;  %v9210_v20 = vpop.eup %6670 }
 0x6c7   : > { %v3871_v1 = vmul.f32 %v6669_v60, %v3870_v24  ;;  %v3401_v12 = vpop.xlane.xlu2 %3400  ;;  %v3877_v41 = vmul.f32 %v9210_v20, %v9200_v48  ;;  %v4013_v59 = vmul.f32 %v8927_v45, %v3978_v2  ;;  %vm3883_vm2 = vweird.f32 %v9210_v20 }
 0x6c8   : > { %6672 = vrsqrt.f32 %v3629_v32  ;;  %v3502_v31 = vmul.f32 %v9208_v17, %v9208_v17  ;;  %v3470_v36 = vmul.f32 0.25, %v3401_v12  ;;  %vm3892_vm3 = vweird.f32 %v3629_v32  ;;  %vm3884_vm6 = vmor %vm3882_vm5, %vm3883_vm2 }
 0x6c9   : > { %v3875_v40 = vsel %vm3874_vm14, %v6669_v60, %v3871_v1  ;;  %v3878_v16 = vmul.f32 %v9210_v20, %v3877_v41 }
 0x6ca   : > { %v3534_v19 = vsub.f32 %v3470_v36, %v3502_v31  ;;  %v3979_v9 = vmul.f32 %v3875_v40, %v3595_v49  ;;  %v4048_v49 = vadd.f32 %v8949_v14, %v4013_v59 }
 0x6cb   : > { %4200 = vmatmul.bf16.gmra.mxu1 %v4068_v26  ;;  %v3879_v29 = vmul.f32 0.5, %v3878_v16 }
 0x6cc   : > { %v3566_v5 = vmax.f32 %v3534_v19, 0.0  ;;  %v4014_v28 = vmul.f32 %v8927_v45, %v3979_v9 }
 0x6cd   : > { %v3307_v38 = vpop.xlane.xlu1 %3306  ;;  %v3880_v1 = vsub.f32 1.5, %v3879_v29 }
 0x6ce   : > { %v6673_v33 = vpop.eup %6672  ;;  %v9226_v27 = vmul.f32 0.25, %v3307_v38  ;;  %v9228_v60 = vadd.f32 1e-05, %v3566_v5  ;;  %v4049_v44 = vadd.f32 %v8949_v14, %v4014_v28 }
 0x6cf   : > { %v3887_v7 = vmul.f32 %v6673_v33, %v3629_v32  ;;  %v3403_v47 = vpop.xlane.xlu0 %3402  ;;  %vm3893_vm1 = vweird.f32 %v6673_v33  ;;  %v3881_v19 = vmul.f32 %v9210_v20, %v3880_v1  ;;  %v3597_v32 = vsub.f32 %v8845_v62, %v9198_v10 }
 0x6d0   : > { %v3503_v4 = vmul.f32 %v9226_v27, %v9226_v27  ;;  %6674 = vrsqrt.f32 %v9228_v60  ;;  %v3471_v18 = vmul.f32 0.25, %v3403_v47  ;;  %vm3894_vm4 = vmor %vm3892_vm3, %vm3893_vm1  ;;  %v4069_v5 = vpack.c.bf16 %v4049_v44, %v4048_v49 }
 0x6d1   : > { %v3888_v25 = vmul.f32 %v6673_v33, %v3887_v7  ;;  %v3885_v29 = vsel %vm3884_vm6, %v9210_v20, %v3881_v19  ;;  %vm3902_vm11 = vweird.f32 %v9228_v60 }
 0x6d2   : > { %v3535_v63 = vsub.f32 %v3471_v18, %v3503_v4  ;;  %v3596_v4 = vsub.f32 %v8836_v37, %v9180_v23 }
 0x6d3   : > { %v3889_v24 = vmul.f32 0.5, %v3888_v25 }
 0x6d4   : > { %v3567_v12 = vmax.f32 %v3535_v63, 0.0 }
 0x6d5   : > { %v3890_v0 = vsub.f32 1.5, %v3889_v24  ;;  %v3309_v41 = vpop.xlane.xlu1 %3308 }
 0x6d6   : > { %v9236_v26 = vmul.f32 0.25, %v3309_v41  ;;  %v9238_v31 = vpop.eup %6674  ;;  %v3631_v40 = vadd.f32 1e-05, %v3567_v12 }
 0x6d7   : > { %v3891_v36 = vmul.f32 %v6673_v33, %v3890_v0  ;;  %v3897_v16 = vmul.f32 %v9238_v31, %v9228_v60  ;;  %v3405_v15 = vpop.xlane.xlu0 %3404  ;;  %vm3903_vm8 = vweird.f32 %v9238_v31 }
 0x6d8   : > { %v3504_v6 = vmul.f32 %v9236_v26, %v9236_v26  ;;  %6676 = vrsqrt.f32 %v3631_v40  ;;  %v3472_v38 = vmul.f32 0.25, %v3405_v15  ;;  %vm3912_vm9 = vweird.f32 %v3631_v40  ;;  %vm3904_vm12 = vmor %vm3902_vm11, %vm3903_vm8 }
 0x6d9   : > { %v3895_v9 = vsel %vm3894_vm4, %v6673_v33, %v3891_v36  ;;  %v3898_v2 = vmul.f32 %v9238_v31, %v3897_v16  ;;  %v3980_v33 = vmul.f32 %v3885_v29, %v3596_v4 }
 0x6da   : > { %v3536_v7 = vsub.f32 %v3472_v38, %v3504_v6  ;;  %v3981_v25 = vmul.f32 %v3895_v9, %v3597_v32 }
 0x6db   : > { %4205 = vmatmul.bf16.gmra.mxu1 %v4069_v5  ;;  %v3899_v28 = vmul.f32 0.5, %v3898_v2  ;;  %v4015_v12 = vmul.f32 %v8927_v45, %v3980_v33 }
 0x6dc   : > { %v3568_v47 = vmax.f32 %v3536_v7, 0.0  ;;  %v4016_v1 = vmul.f32 %v8927_v45, %v3981_v25 }
 0x6dd   : > { %v3311_v48 = vpop.xlane.xlu2 %3310  ;;  %v3900_v44 = vsub.f32 1.5, %v3899_v28  ;;  %v4050_v6 = vadd.f32 %v8949_v14, %v4015_v12 }
 0x6de   : > { %v6677_v18 = vpop.eup %6676  ;;  %v9256_v63 = vadd.f32 1e-05, %v3568_v47  ;;  %v9258_v59 = vmul.f32 0.25, %v3311_v48  ;;  %v4051_v49 = vadd.f32 %v8949_v14, %v4016_v1  ;;  %v9287_v48 = vld [vmem:[%s10375_s9] ss:$0 sm:$0xff] }
 0x6df   : > { %v3907_v24 = vmul.f32 %v6677_v18, %v3631_v40  ;;  %v3407_v10 = vpop.xlane.xlu1 %3406  ;;  %vm3913_vm7 = vweird.f32 %v6677_v18  ;;  %v3901_v5 = vmul.f32 %v9238_v31, %v3900_v44  ;;  %v3599_v40 = vsub.f32 %v8875_v35, %v9226_v27 }
 0x6e0   : > { %v3505_v20 = vmul.f32 %v9258_v59, %v9258_v59  ;;  %v3473_v23 = vmul.f32 0.25, %v3407_v10  ;;  %6678 = vrsqrt.f32 %v9256_v63  ;;  %vm9269_vm10 = vmor %vm3912_vm9, %vm3913_vm7  ;;  %v4070_v32 = vpack.c.bf16 %v4051_v49, %v4050_v6 }
 0x6e1   : > { %v3908_v0 = vmul.f32 %v6677_v18, %v3907_v24  ;;  %v3905_v24 = vsel %vm3904_vm12, %v9238_v31, %v3901_v5  ;;  %vm3922_vm13 = vweird.f32 %v9256_v63 }
 0x6e2   : > { %v3537_v36 = vsub.f32 %v3473_v23, %v3505_v20 }
 0x6e3   : > { %v3909_v41 = vmul.f32 0.5, %v3908_v0 }
 0x6e4   : > { %v3569_v16 = vmax.f32 %v3537_v36, 0.0 }
 0x6e5   : > { %v3910_v19 = vsub.f32 1.5, %v3909_v41  ;;  %v3313_v15 = vpop.xlane.xlu2 %3312 }
 0x6e6   : > { %v9273_v7 = vmul.f32 0.25, %v3313_v15  ;;  %v9275_v2 = vpop.eup %6678  ;;  %v9278_v29 = vadd.f32 1e-05, %v3569_v16 }
 0x6e7   : > { %v3911_v38 = vmul.f32 %v6677_v18, %v3910_v19  ;;  %v4171_v4 = vpop.f32.mrf.mxu1  ;;  %v3917_v10 = vmul.f32 %v9275_v2, %v9256_v63  ;;  %vm3923_vm14 = vweird.f32 %v9275_v2 }
 0x6e8   : > { %v3409_v47 = vpop.xlane.xlu1 %3408  ;;  %v4172_v33 = vadd.f32 %v9287_v48, %v4171_v4  ;;  %v3506_v60 = vmul.f32 %v9273_v7, %v9273_v7  ;;  %6680 = vrsqrt.f32 %v9278_v29  ;;  %vm9355_vm0 = vmor %vm3922_vm13, %vm3923_vm14  ;;  %vm3932_vm2 = vweird.f32 %v9278_v29 }
 0x6e9   : > { %v3915_v25 = vsel %vm9269_vm10, %v6677_v18, %v3911_v38  ;;  %v3474_v28 = vmul.f32 0.25, %v3409_v47  ;;  %v3598_v18 = vsub.f32 %v8856_v30, %v9208_v17  ;;  %v3918_v12 = vmul.f32 %v9275_v2, %v3917_v10 }
 0x6ea   : > { %v9297_v27 = vmul.f32 0.70710677, %v4172_v33  ;;  %v3983_v1 = vmul.f32 %v3915_v25, %v3599_v40 }
 0x6eb   : > { %4210 = vmatmul.bf16.gmra.mxu1 %v4070_v32  ;;  %v3538_v20 = vsub.f32 %v3474_v28, %v3506_v60  ;;  %v3982_v23 = vmul.f32 %v3905_v24, %v3598_v18  ;;  %v3919_v15 = vmul.f32 0.5, %v3918_v12 }
 0x6ec   : > { %v4367_v0 = vand.u32 2147483647, %v9297_v27  ;;  %v4018_v31 = vmul.f32 %v8927_v45, %v3983_v1  ;;  %vm4303_vm15 = vcmp.ge.f32.partialorder %v9297_v27, 0.0 }
 0x6ed   : > { %v3570_v36 = vmax.f32 %v3538_v20, 0.0  ;;  %v3315_v19 = vpop.xlane.xlu0 %3314  ;;  %v4017_v16 = vmul.f32 %v8927_v45, %v3982_v23  ;;  %v3920_v40 = vsub.f32 1.5, %v3919_v15  ;;  %v3600_v23 = vsub.f32 %v8908_v52, %v9236_v26 }
 0x6ee   : > { %v4399_v44 = vmul.f32 0.3275911, %v4367_v0  ;;  %v9309_v6 = vpop.eup %6680  ;;  %v4053_v5 = vadd.f32 %v8949_v14, %v4018_v31  ;;  %v9316_v9 = vmul.f32 0.25, %v3315_v19  ;;  %v5231_v28 = vsub.f32 0.0, %v4367_v0 }
 0x6ef   : > { %v4173_v41 = vpop.f32.mrf.mxu1  ;;  %v3927_v32 = vmul.f32 %v9309_v6, %v9278_v29  ;;  %v9320_v4 = vadd.f32 1e-05, %v3570_v36  ;;  %v3411_v47 = vpop.xlane.xlu2 %3410  ;;  %v4052_v45 = vadd.f32 %v8949_v14, %v4017_v16  ;;  %v3921_v36 = vmul.f32 %v9275_v2, %v3920_v40 }
 0x6f0   : > { %v9303_v17 = vadd.f32 1.0, %v4399_v44  ;;  %v9306_v49 = vadd.f32 %v9287_v48, %v4173_v41  ;;  %v3507_v18 = vmul.f32 %v9316_v9, %v9316_v9  ;;  %v3475_v1 = vmul.f32 0.25, %v3411_v47 }
 0x6f1   : > { %v4071_v60 = vpack.c.bf16 %v4053_v5, %v4052_v45  ;;  %v3928_v12 = vmul.f32 %v9309_v6, %v3927_v32  ;;  %v5263_v16 = vmul.f32 %v5231_v28, %v4367_v0  ;;  %vm3933_vm7 = vweird.f32 %v9309_v6 }
 0x6f2   : > { %6682 = vrcp.f32 %v9303_v17  ;;  %v9314_v38 = vmul.f32 0.70710677, %v9306_v49  ;;  %v3539_v15 = vsub.f32 %v3475_v1, %v3507_v18  ;;  %v4584_v32 = vand.u32 2147483647, %v9303_v17  ;;  %vm9415_vm9 = vmor %vm3932_vm2, %vm3933_vm7 }
 0x6f3   : > { %6684 = vrsqrt.f32 %v9320_v4  ;;  %v3929_v5 = vmul.f32 0.5, %v3928_v12  ;;  %v4586_v47 = vand.u32 2147483648, %v9303_v17  ;;  %v9370_v18 = vsel %vm4303_vm15, 1.0, %v10465_v46 }
 0x6f4   : > { %v9324_v25 = vand.u32 2147483647, %v9314_v38  ;;  %vm4580_vm3 = vweird.f32 %v9303_v17  ;;  %v5303_v1 = vmul.f32 1.442695, %v5263_v16  ;;  %vm4585_vm5 = vcmp.eq.f32.partialorder %v4584_v32, 8.507059e+37 }
 0x6f5   : > { %v3930_v45 = vsub.f32 1.5, %v3929_v5  ;;  %v4587_v27 = vor.u32 1.1754944e-38, %v4586_v47  ;;  %vm4304_vm6 = vcmp.ge.f32.partialorder %v9314_v38, 0.0  ;;  %v9391_v16 = vmul.f32 0.5, %v9306_v49 }
 0x6f6   : > { %v4400_v24 = vmul.f32 0.3275911, %v9324_v25  ;;  %v10727_v40 = vmov -1.0   ;;  %vm3942_vm15 = vweird.f32 %v9320_v4 }
 0x6f7   : > { %v3931_v47 = vmul.f32 %v9309_v6, %v3930_v45  ;;  %v5232_v45 = vsub.f32 0.0, %v9324_v25 }
 0x6f8   : > { %v4176_v10 = vpop.f32.mrf.mxu1  ;;  %v6683_v20 = vpop.eup %6682  ;;  %v9340_v41 = vadd.f32 1.0, %v4400_v24 }
 0x6f9   : > { %v9334_v14 = vadd.f32 %v9287_v48, %v4176_v10  ;;  %v4576_v31 = vmul.f32 %v6683_v20, %v9303_v17  ;;  %vm4581_vm1 = vweird.f32 %v6683_v20  ;;  %v9364_v24 = vpop.eup %6684 }
 0x6fa   : > { %6686 = vrcp.f32 %v9340_v41  ;;  %vm4582_vm4 = vmor %vm4580_vm3, %vm4581_vm1  ;;  %v3937_v63 = vmul.f32 %v9364_v24, %v9320_v4  ;;  %vm4595_vm10 = vweird.f32 %v9340_v41  ;;  %vm3943_vm13 = vweird.f32 %v9364_v24 }
 0x6fb   : > { %v9346_v26 = vmul.f32 0.70710677, %v9334_v14  ;;  %4215 = vmatmul.bf16.gmra.mxu1 %v4071_v60  ;;  %v4577_v19 = vsub.f32 1.0, %v4576_v31  ;;  %v9359_v60 = vmul.f32 0.5, %v4172_v33  ;;  %v3925_v33 = vsel %vm9355_vm0, %v9275_v2, %v3921_v36 }
 0x6fc   : > { %v3571_v31 = vmax.f32 %v3539_v15, 0.0  ;;  %v3984_v32 = vmul.f32 %v3925_v33, %v3600_v23  ;;  %v4599_v23 = vand.u32 2147483647, %v9340_v41 }
 0x6fd   : > { %v4578_v0 = vmul.f32 %v6683_v20, %v4577_v19  ;;  %v9362_v28 = vand.u32 2147483647, %v9346_v26  ;;  %vm4305_vm1 = vcmp.ge.f32.partialorder %v9346_v26, 0.0 }
 0x6fe   : > { %vm4600_vm12 = vcmp.eq.f32.partialorder %v4599_v23, 8.507059e+37 }
 0x6ff   : > { %v4579_v10 = vadd.f32 %v6683_v20, %v4578_v0  ;;  %v4401_v12 = vmul.f32 0.3275911, %v9362_v28 }
 0x700   : > { %v4178_v19 = vpop.f32.mrf.mxu1  ;;  %v6687_v17 = vpop.eup %6686 }
 0x701   : > { %v4583_v44 = vsel %vm4582_vm4, %v6683_v20, %v4579_v10  ;;  %v9382_v46 = vadd.f32 1.0, %v4401_v12  ;;  %v9385_v2 = vadd.f32 %v9287_v48, %v4178_v19  ;;  %v4591_v15 = vmul.f32 %v6687_v17, %v9340_v41  ;;  %vm9514_vm4 = vmor %vm3942_vm15, %vm3943_vm13 }
 0x702   : > { %v9388_v36 = vsel %vm4585_vm5, %v4587_v27, %v4583_v44  ;;  %v9396_v20 = vadd.f32 1e-05, %v3571_v31  ;;  %v9402_v44 = vsel %vm4304_vm6, 1.0, %v10727_v40  ;;  %v3938_v10 = vmul.f32 %v9364_v24, %v3937_v63  ;;  %v9427_v27 = vld [vmem:[%s10372_s6] ss:$0 sm:$0xff] }
 0x703   : > { %v4943_v5 = vmul.f32 1.0614054, %v9388_v36  ;;  %6688 = vrcp.f32 %v9382_v46  ;;  %v4592_v0 = vsub.f32 1.0, %v4591_v15  ;;  %v4601_v12 = vand.u32 2147483648, %v9340_v41 }
 0x704   : > { %6690 = vpow2.f32 %v5303_v1  ;;  %v9407_v19 = vmul.f32 0.70710677, %v9385_v2  ;;  %vm4596_vm8 = vweird.f32 %v6687_v17  ;;  %v9430_v15 = vmul.f32 %v9427_v27, %v3984_v32 }
 0x705   : > { %v4975_v49 = vadd.f32 -1.4531521, %v4943_v5  ;;  %v4593_v31 = vmul.f32 %v6687_v17, %v4592_v0  ;;  %6692 = vrsqrt.f32 %v9396_v20  ;;  %v3935_v0 = vsel %vm9415_vm9, %v9309_v6, %v3931_v47  ;;  %vm4597_vm11 = vmor %vm4595_vm10, %vm4596_vm8 }
 0x706   : > { %v9422_v33 = vand.u32 2147483647, %v9407_v19  ;;  %v3939_v35 = vmul.f32 0.5, %v3938_v10  ;;  %v4602_v30 = vor.u32 1.1754944e-38, %v4601_v12  ;;  %v5264_v41 = vmul.f32 %v5232_v45, %v9324_v25 }
 0x707   : > { %v5007_v63 = vmul.f32 %v4975_v49, %v9388_v36  ;;  %v4594_v29 = vadd.f32 %v6687_v17, %v4593_v31  ;;  %v10730_v47 = vsub.f32 %v8957_v57, %v9258_v59  ;;  %vm4610_vm0 = vweird.f32 %v9382_v46 }
 0x708   : > { %v4181_v1 = vpop.f32.mrf.mxu1  ;;  %v4402_v62 = vmul.f32 0.3275911, %v9422_v33  ;;  %vm3952_vm10 = vweird.f32 %v9396_v20 }
 0x709   : > { %v9434_v5 = vadd.f32 %v9287_v48, %v4181_v1  ;;  %v6689_v49 = vpop.eup %6688  ;;  %v5039_v52 = vadd.f32 1.4214138, %v5007_v63  ;;  %v4598_v31 = vsel %vm4597_vm11, %v6687_v17, %v4594_v29  ;;  %v3985_v10 = vmul.f32 %v3935_v0, %v10730_v47 }
 0x70a   : > { %v9441_v32 = vpop.eup %6690  ;;  %v4606_v1 = vmul.f32 %v6689_v49, %v9382_v46  ;;  %v9446_v38 = vsel %vm4600_vm12, %v4602_v30, %v4598_v31  ;;  %v9448_v6 = vadd.f32 1.0, %v4402_v62  ;;  %v9455_v63 = vmul.f32 0.5, %v9334_v14 }
 0x70b   : > { %v5071_v37 = vmul.f32 %v5039_v52, %v9388_v36  ;;  %v4944_v12 = vmul.f32 1.0614054, %v9446_v38  ;;  %v9458_v25 = vmul.f32 0.70710677, %v9434_v5  ;;  %v9460_v23 = vpop.eup %6692  ;;  %v3940_v30 = vsub.f32 1.5, %v3939_v35 }
 0x70c   : > { %v4607_v17 = vsub.f32 1.0, %v4606_v1  ;;  %v4616_v62 = vand.u32 2147483648, %v9382_v46  ;;  %6694 = vrcp.f32 %v9448_v6  ;;  %vm4611_vm14 = vweird.f32 %v6689_v49 }
 0x70d   : > { %v5103_v52 = vadd.f32 -0.28449672, %v5071_v37  ;;  %v4976_v59 = vadd.f32 -1.4531521, %v4944_v12  ;;  %v4614_v14 = vand.u32 2147483647, %v9382_v46  ;;  %v4020_v37 = vmul.f32 %v9427_v27, %v3985_v10  ;;  %vm4612_vm2 = vmor %vm4610_vm0, %vm4611_vm14 }
 0x70e   : > { %v4608_v45 = vmul.f32 %v6689_v49, %v4607_v17  ;;  %v5305_v0 = vmul.f32 1.442695, %v5264_v41  ;;  %v9469_v31 = vand.u32 2147483647, %v9458_v25  ;;  %v3947_v12 = vmul.f32 %v9460_v23, %v9396_v20 }
 0x70f   : > { %v5135_v29 = vmul.f32 %v5103_v52, %v9388_v36  ;;  %v5008_v1 = vmul.f32 %v4976_v59, %v9446_v38  ;;  %v4617_v17 = vor.u32 1.1754944e-38, %v4616_v62  ;;  %v5233_v41 = vsub.f32 0.0, %v9362_v28  ;;  %v9489_v62 = vld [vmem:[%s10373_s7] ss:$0 sm:$0xff] }
 0x710   : > { %v4183_v35 = vpop.f32.mrf.mxu1  ;;  %v4609_v47 = vadd.f32 %v6689_v49, %v4608_v45  ;;  %v4403_v52 = vmul.f32 0.3275911, %v9469_v31  ;;  %v9480_v57 = vmul.f32 %v9364_v24, %v3940_v30  ;;  %vm4615_vm3 = vcmp.eq.f32.partialorder %v4614_v14, 8.507059e+37 }
 0x711   : > { %v5040_v10 = vadd.f32 1.4214138, %v5008_v1  ;;  %v5167_v45 = vadd.f32 0.2548296, %v5135_v29  ;;  %v4055_v51 = vadd.f32 %v9489_v62, %v4020_v37  ;;  %v4054_v29 = vadd.f32 %v9489_v62, %v9430_v15 }
 0x712   : > { %v4613_v54 = vsel %vm4612_vm2, %v6689_v49, %v4609_v47  ;;  %v6695_v59 = vpop.eup %6694  ;;  %v9484_v13 = vadd.f32 1.0, %v4403_v52  ;;  %v3948_v49 = vmul.f32 %v9460_v23, %v3947_v12  ;;  %v9501_v1 = vadd.f32 %v9287_v48, %v4183_v35 }
 0x713   : > { %v9482_v46 = vsel %vm4615_vm3, %v4617_v17, %v4613_v54  ;;  %v5072_v34 = vmul.f32 %v5040_v10, %v9446_v38  ;;  %v4621_v14 = vmul.f32 %v6695_v59, %v9448_v6  ;;  %v4629_v54 = vand.u32 2147483647, %v9448_v6 }
 0x714   : > { %v4945_v30 = vmul.f32 1.0614054, %v9482_v46  ;;  %6696 = vrcp.f32 %v9484_v13  ;;  %v9506_v37 = vsel %vm4305_vm1, 1.0, %v10727_v40  ;;  %v5199_v52 = vmul.f32 %v5167_v45, %v9388_v36 }
 0x715   : > { %v5104_v47 = vadd.f32 -0.28449672, %v5072_v34  ;;  %v4622_v12 = vsub.f32 1.0, %v4621_v14  ;;  %6698 = vpow2.f32 %v5305_v0  ;;  %v4631_v10 = vand.u32 2147483648, %v9448_v6 }
 0x716   : > { %v4977_v17 = vadd.f32 -1.4531521, %v4945_v30  ;;  %v4072_v50 = vpack.c.bf16 %v4055_v51, %v4054_v29  ;;  %vm4626_vm5 = vweird.f32 %v6695_v59  ;;  %v5265_v36 = vmul.f32 %v5233_v41, %v9362_v28 }
 0x717   : > { %v5136_v26 = vmul.f32 %v5104_v47, %v9446_v38  ;;  %v4623_v35 = vmul.f32 %v6695_v59, %v4622_v12  ;;  %v3949_v0 = vmul.f32 0.5, %v3948_v49  ;;  %v9526_v4 = vmul.f32 0.70710677, %v9501_v1 }
 0x718   : > { %v4186_v56 = vpop.f32.mrf.mxu1  ;;  %v5009_v15 = vmul.f32 %v4977_v17, %v9482_v46  ;;  %4220 = vmatmul.bf16.gmra.mxu1 %v4072_v50  ;;  %vm3953_vm6 = vweird.f32 %v9460_v23  ;;  %vm4625_vm7 = vweird.f32 %v9448_v6  ;;  %vm4630_vm8 = vcmp.eq.f32.partialorder %v4629_v54, 8.507059e+37 }
 0x719   : > { %v5168_v45 = vadd.f32 0.2548296, %v5136_v26  ;;  %v4624_v30 = vadd.f32 %v6695_v59, %v4623_v35  ;;  %vm4627_vm9 = vmor %vm4625_vm7, %vm4626_vm5  ;;  %v4632_v47 = vor.u32 1.1754944e-38, %v4631_v10  ;;  %v9531_v17 = vand.u32 2147483647, %v9526_v4 }
 0x71a   : > { %v6697_v14 = vpop.eup %6696  ;;  %v5041_v29 = vadd.f32 1.4214138, %v5009_v15  ;;  %v9534_v28 = vadd.f32 %v9287_v48, %v4186_v56  ;;  %v5359_v50 = vmul.f32 %v9441_v32, %v5199_v52  ;;  %v5307_v12 = vmul.f32 1.442695, %v5265_v36  ;;  %vm9570_vm15 = vmor %vm3952_vm10, %vm3953_vm6 }
 0x71b   : > { %v5200_v41 = vmul.f32 %v5168_v45, %v9446_v38  ;;  %v4628_v49 = vsel %vm4627_vm9, %v6695_v59, %v4624_v30  ;;  %v4636_v6 = vmul.f32 %v6697_v14, %v9484_v13  ;;  %v6699_v54 = vpop.eup %6698  ;;  %v3950_v26 = vsub.f32 1.5, %v3949_v0 }
 0x71c   : > { %v9540_v15 = vsel %vm4630_vm8, %v4632_v47, %v4628_v49  ;;  %v5234_v10 = vsub.f32 0.0, %v9422_v33  ;;  %v4644_v32 = vand.u32 2147483647, %v9484_v13  ;;  %v5073_v38 = vmul.f32 %v5041_v29, %v9482_v46 }
 0x71d   : > { %v5360_v35 = vmul.f32 %v6699_v54, %v5200_v41  ;;  %v4946_v56 = vmul.f32 1.0614054, %v9540_v15  ;;  %v4637_v51 = vsub.f32 1.0, %v4636_v6  ;;  %v4646_v52 = vand.u32 2147483648, %v9484_v13 }
 0x71e   : > { %v4404_v59 = vmul.f32 0.3275911, %v9531_v17  ;;  %v9549_v45 = vmul.f32 0.70710677, %v9534_v28  ;;  %v5391_v36 = vsub.f32 1.0, %v5359_v50  ;;  %vm4641_vm11 = vweird.f32 %v6697_v14 }
 0x71f   : > { %v4978_v0 = vadd.f32 -1.4531521, %v4946_v56  ;;  %v4638_v30 = vmul.f32 %v6697_v14, %v4637_v51  ;;  %v5392_v41 = vsub.f32 1.0, %v5360_v35  ;;  %v3951_v49 = vmul.f32 %v9460_v23, %v3950_v26 }
 0x720   : > { %v4188_v47 = vpop.f32.mrf.mxu1  ;;  %v9553_v6 = vmul.f32 0.5, %v9385_v2  ;;  %v9555_v54 = vadd.f32 1.0, %v4404_v59  ;;  %v5266_v58 = vmul.f32 %v5234_v10, %v9422_v33  ;;  %vm4640_vm12 = vweird.f32 %v9484_v13 }
 0x721   : > { %v5010_v29 = vmul.f32 %v4978_v0, %v9540_v15  ;;  %v4639_v42 = vadd.f32 %v6697_v14, %v4638_v30  ;;  %v5105_v50 = vadd.f32 -0.28449672, %v5073_v38  ;;  %vm4642_vm13 = vmor %vm4640_vm12, %vm4641_vm11  ;;  %v4647_v51 = vor.u32 1.1754944e-38, %v4646_v52 }
 0x722   : > { %6700 = vrcp.f32 %v9555_v54  ;;  %v9562_v35 = vand.u32 2147483647, %v9549_v45  ;;  %v5423_v2 = vmul.f32 %v5391_v36, %v9370_v18  ;;  %vm4645_vm14 = vcmp.eq.f32.partialorder %v4644_v32, 8.507059e+37 }
 0x723   : > { %v5042_v26 = vadd.f32 1.4214138, %v5010_v29  ;;  %v4643_v56 = vsel %vm4642_vm13, %v6697_v14, %v4639_v42  ;;  %v5424_v59 = vmul.f32 %v5392_v41, %v9402_v44  ;;  %6702 = vpow2.f32 %v5307_v12 }
 0x724   : > { %vm4306_vm0 = vcmp.ge.f32.partialorder %v9407_v19, 0.0  ;;  %v9575_v33 = vsel %vm4645_vm14, %v4647_v51, %v4643_v56  ;;  %v3955_v42 = vsel %vm9570_vm15, %v9460_v23, %v3951_v49  ;;  %v5309_v44 = vmul.f32 1.442695, %v5266_v58 }
 0x725   : > { %v5074_v18 = vmul.f32 %v5042_v26, %v9540_v15  ;;  %v4947_v14 = vmul.f32 1.0614054, %v9575_v33  ;;  %v5137_v12 = vmul.f32 %v5105_v50, %v9482_v46  ;;  %v5235_v20 = vsub.f32 0.0, %v9469_v31 }
 0x726   : > { %v4405_v10 = vmul.f32 0.3275911, %v9562_v35  ;;  %v10735_v19 = vsub.f32 %v9004_v11, %v9273_v7  ;;  %v10736_v32 = vsel %vm9514_vm4, %v9364_v24, %v9480_v57  ;;  %v5455_v38 = vadd.f32 1.0, %v5423_v2 }
 0x727   : > { %v9594_v58 = vsel %vm4306_vm0, 1.0, %v10727_v40  ;;  %v5106_v52 = vadd.f32 -0.28449672, %v5074_v18  ;;  %v4979_v36 = vadd.f32 -1.4531521, %v4947_v14  ;;  %v5456_v30 = vadd.f32 1.0, %v5424_v59 }
 0x728   : > { %v3986_v23 = vmul.f32 %v10736_v32, %v10735_v19  ;;  %v6701_v0 = vpop.eup %6700  ;;  %v9597_v41 = vmul.f32 0.5, %v9434_v5  ;;  %v9599_v49 = vadd.f32 1.0, %v4405_v10  ;;  %v10737_v7 = vsub.f32 %v9035_v8, %v9316_v9  ;;  %v4191_v29 = vpop.f32.mrf.mxu1 }
 0x729   : > { %v5138_v57 = vmul.f32 %v5106_v52, %v9540_v15  ;;  %6704 = vpow2.f32 %v5309_v44  ;;  %v5011_v24 = vmul.f32 %v4979_v36, %v9575_v33  ;;  %v4651_v50 = vmul.f32 %v6701_v0, %v9555_v54  ;;  %v6703_v51 = vpop.eup %6702 }
 0x72a   : > { %v3987_v34 = vmul.f32 %v3955_v42, %v10737_v7  ;;  %v5169_v2 = vadd.f32 0.2548296, %v5137_v12  ;;  %v5267_v26 = vmul.f32 %v5235_v20, %v9469_v31  ;;  %6706 = vrcp.f32 %v9599_v49 }
 0x72b   : > { %v4021_v5 = vmul.f32 %v9427_v27, %v3986_v23  ;;  %v5487_v56 = vmul.f32 %v5455_v38, %v9359_v60  ;;  %v5170_v9 = vadd.f32 0.2548296, %v5138_v57  ;;  %v5043_v59 = vadd.f32 1.4214138, %v5011_v24 }
 0x72c   : > { %v4652_v13 = vsub.f32 1.0, %v4651_v50  ;;  %v5488_v42 = vmul.f32 %v5456_v30, %v9391_v16  ;;  %v4661_v18 = vand.u32 2147483648, %v9555_v54  ;;  %v4022_v44 = vmul.f32 %v9427_v27, %v3987_v34 }
 0x72d   : > { %v9615_v14 = vadd.f32 %v9287_v48, %v4188_v47  ;;  %v5075_v31 = vmul.f32 %v5043_v59, %v9575_v33  ;;  %vm4656_vm1 = vweird.f32 %v6701_v0  ;;  %v4659_v20 = vand.u32 2147483647, %v9555_v54 }
 0x72e   : > { %v4653_v12 = vmul.f32 %v6701_v0, %v4652_v13  ;;  %v5201_v60 = vmul.f32 %v5169_v2, %v9482_v46  ;;  %v5202_v10 = vmul.f32 %v5170_v9, %v9540_v15  ;;  %v4056_v19 = vadd.f32 %v9489_v62, %v4021_v5 }
 0x72f   : > { %v4057_v16 = vadd.f32 %v9489_v62, %v4022_v44  ;;  %v6705_v32 = vpop.eup %6704  ;;  %v5107_v23 = vadd.f32 -0.28449672, %v5075_v31  ;;  %v5311_v27 = vmul.f32 1.442695, %v5267_v26  ;;  %vm4655_vm2 = vweird.f32 %v9555_v54 }
 0x730   : > { %v4654_v38 = vadd.f32 %v6701_v0, %v4653_v12  ;;  %v6707_v47 = vpop.eup %6706  ;;  %vm4657_vm3 = vmor %vm4655_vm2, %vm4656_vm1  ;;  %v4662_v52 = vor.u32 1.1754944e-38, %v4661_v18  ;;  %v9625_v30 = vmul.f32 0.70710677, %v9615_v14  ;;  %v5515_v46 = vpack.c.bf16 %v5488_v42, %v5487_v56  ;;  %v4193_v50 = vpop.f32.mrf.mxu1 }
 0x731   : > { %v4073_v36 = vpack.c.bf16 %v4057_v16, %v4056_v19  ;;  %vm4660_vm4 = vcmp.eq.f32.partialorder %v4659_v20, 8.507059e+37  ;;  %v5236_v15 = vsub.f32 0.0, %v9531_v17  ;;  %v4666_v62 = vmul.f32 %v6707_v47, %v9599_v49 }
 0x732   : > { %v4658_v7 = vsel %vm4657_vm3, %v6701_v0, %v4654_v38  ;;  %v5361_v34 = vmul.f32 %v6703_v51, %v5201_v60  ;;  %v5362_v57 = vmul.f32 %v6705_v32, %v5202_v10  ;;  %v9632_v54 = vand.u32 2147483647, %v9625_v30  ;;  %5623 = vmatmul.bf16.gmra.mxu2 %v5515_v46 }
 0x733   : > { %v9629_v24 = vsel %vm4660_vm4, %v4662_v52, %v4658_v7  ;;  %4225 = vmatmul.bf16.gmra.mxu1 %v4073_v36  ;;  %vm4307_vm5 = vcmp.ge.f32.partialorder %v9458_v25, 0.0  ;;  %v5139_v2 = vmul.f32 %v5107_v23, %v9575_v33  ;;  %v4667_v26 = vsub.f32 1.0, %v4666_v62 }
 0x734   : > { %v4948_v0 = vmul.f32 1.0614054, %v9629_v24  ;;  %6708 = vpow2.f32 %v5311_v27  ;;  %v4676_v5 = vand.u32 2147483648, %v9599_v49  ;;  %v4406_v51 = vmul.f32 0.3275911, %v9632_v54 }
 0x735   : > { %v9640_v56 = vadd.f32 %v9287_v48, %v4191_v29  ;;  %v4668_v59 = vmul.f32 %v6707_v47, %v4667_v26  ;;  %vm4671_vm6 = vweird.f32 %v6707_v47  ;;  %v4674_v13 = vand.u32 2147483647, %v9599_v49 }
 0x736   : > { %v4980_v9 = vadd.f32 -1.4531521, %v4948_v0  ;;  %v5393_v42 = vsub.f32 1.0, %v5361_v34  ;;  %v5394_v18 = vsub.f32 1.0, %v5362_v57  ;;  %v5268_v44 = vmul.f32 %v5236_v15, %v9531_v17 }
 0x737   : > { %v9644_v31 = vadd.f32 1.0, %v4406_v51  ;;  %v5171_v12 = vadd.f32 0.2548296, %v5139_v2  ;;  %v4669_v60 = vadd.f32 %v6707_v47, %v4668_v59  ;;  %vm4670_vm7 = vweird.f32 %v9599_v49 }
 0x738   : > { %v5012_v20 = vmul.f32 %v4980_v9, %v9629_v24  ;;  %vm4672_vm8 = vmor %vm4670_vm7, %vm4671_vm6  ;;  %v4677_v29 = vor.u32 1.1754944e-38, %v4676_v5  ;;  %v9650_v10 = vmul.f32 0.70710677, %v9640_v56  ;;  %v9653_v19 = vadd.f32 %v9287_v48, %v4193_v50  ;;  %v4196_v15 = vpop.f32.mrf.mxu1 }
 0x739   : > { %6710 = vrcp.f32 %v9644_v31  ;;  %v4339_v17 = vsel %vm4307_vm5, 1.0, %v10727_v40  ;;  %v4673_v32 = vsel %vm4672_vm8, %v6707_v47, %v4669_v60  ;;  %vm4675_vm9 = vcmp.eq.f32.partialorder %v4674_v13, 8.507059e+37 }
 0x73a   : > { %v5044_v16 = vadd.f32 1.4214138, %v5012_v20  ;;  %v6709_v23 = vpop.eup %6708  ;;  %v5426_v49 = vmul.f32 %v5394_v18, %v9594_v58  ;;  %vm4308_vm10 = vcmp.ge.f32.partialorder %v9526_v4, 0.0  ;;  %v5313_v27 = vmul.f32 1.442695, %v5268_v44 }
 0x73b   : > { %v9660_v38 = vsel %vm4675_vm9, %v4677_v29, %v4673_v32  ;;  %v5203_v52 = vmul.f32 %v5171_v12, %v9575_v33  ;;  %v9664_v36 = vmul.f32 0.5, %v9501_v1  ;;  %v5425_v47 = vmul.f32 %v5393_v42, %v9506_v37 }
 0x73c   : > { %v5076_v46 = vmul.f32 %v5044_v16, %v9629_v24  ;;  %v4949_v25 = vmul.f32 1.0614054, %v9660_v38  ;;  %v5237_v7 = vsub.f32 0.0, %v9562_v35  ;;  %v9671_v58 = vand.u32 2147483647, %v9650_v10 }
 0x73d   : > { %v9674_v4 = vmul.f32 0.70710677, %v9653_v19  ;;  %v9677_v33 = vsel %vm4308_vm10, 1.0, %v10727_v40  ;;  %v9680_v62 = vmul.f32 0.5, %v9534_v28  ;;  %v5458_v50 = vadd.f32 1.0, %v5426_v49 }
 0x73e   : > { %v5108_v1 = vadd.f32 -0.28449672, %v5076_v46  ;;  %v4981_v34 = vadd.f32 -1.4531521, %v4949_v25  ;;  %6712 = vpow2.f32 %v5313_v27  ;;  %vm4309_vm11 = vcmp.ge.f32.partialorder %v9549_v45, 0.0 }
 0x73f   : > { %v6711_v57 = vpop.eup %6710  ;;  %v4407_v37 = vmul.f32 0.3275911, %v9671_v58  ;;  %v5363_v2 = vmul.f32 %v6709_v23, %v5203_v52  ;;  %v5457_v51 = vadd.f32 1.0, %v5425_v47  ;;  %v5269_v9 = vmul.f32 %v5237_v7, %v9562_v35 }
 0x740   : > { %v5140_v0 = vmul.f32 %v5108_v1, %v9629_v24  ;;  %v5013_v26 = vmul.f32 %v4981_v34, %v9660_v38  ;;  %v4681_v5 = vmul.f32 %v6711_v57, %v9644_v31  ;;  %v9691_v59 = vand.u32 2147483647, %v9674_v4 }
 0x741   : > { %v9688_v28 = vadd.f32 1.0, %v4407_v37  ;;  %v5238_v44 = vsub.f32 0.0, %v9632_v54  ;;  %v5490_v12 = vmul.f32 %v5458_v50, %v9553_v6  ;;  %v4689_v20 = vand.u32 2147483647, %v9644_v31 }
 0x742   : > { %v5172_v13 = vadd.f32 0.2548296, %v5140_v0  ;;  %v5045_v42 = vadd.f32 1.4214138, %v5013_v26  ;;  %v4682_v18 = vsub.f32 1.0, %v4681_v5  ;;  %v4691_v60 = vand.u32 2147483648, %v9644_v31 }
 0x743   : > { %6714 = vrcp.f32 %v9688_v28  ;;  %v5395_v29 = vsub.f32 1.0, %v5363_v2  ;;  %vm4686_vm12 = vweird.f32 %v6711_v57  ;;  %v5489_v23 = vmul.f32 %v5457_v51, %v9455_v63  ;;  %v4198_v63 = vpop.f32.mrf.mxu1 }
 0x744   : > { %v5204_v35 = vmul.f32 %v5172_v13, %v9629_v24  ;;  %v4683_v16 = vmul.f32 %v6711_v57, %v4682_v18  ;;  %v6713_v32 = vpop.eup %6712  ;;  %v5315_v49 = vmul.f32 1.442695, %v5269_v9  ;;  %v4408_v27 = vmul.f32 0.3275911, %v9691_v59 }
 0x745   : > { %v9702_v52 = vadd.f32 %v9287_v48, %v4196_v15  ;;  %v5077_v46 = vmul.f32 %v5045_v42, %v9660_v38  ;;  %vm4685_vm13 = vweird.f32 %v9644_v31  ;;  %vm4310_vm14 = vcmp.ge.f32.partialorder %v9625_v30, 0.0 }
 0x746   : > { %v5364_v6 = vmul.f32 %v6713_v32, %v5204_v35  ;;  %v4684_v25 = vadd.f32 %v6711_v57, %v4683_v16  ;;  %vm4687_vm15 = vmor %vm4685_vm13, %vm4686_vm12  ;;  %v4692_v24 = vor.u32 1.1754944e-38, %v4691_v60  ;;  %v5270_v47 = vmul.f32 %v5238_v44, %v9632_v54 }
 0x747   : > { %v9708_v7 = vadd.f32 1.0, %v4408_v27  ;;  %v5427_v1 = vmul.f32 %v5395_v29, %v4339_v17  ;;  %vm4690_vm0 = vcmp.eq.f32.partialorder %v4689_v20, 8.507059e+37  ;;  %v5516_v15 = vpack.c.bf16 %v5490_v12, %v5489_v23 }
 0x748   : > { %v4688_v34 = vsel %vm4687_vm15, %v6711_v57, %v4684_v25  ;;  %v5396_v37 = vsub.f32 1.0, %v5364_v6  ;;  %v9714_v31 = vmul.f32 0.70710677, %v9702_v52  ;;  %v9719_v54 = vsel %vm4309_vm11, 1.0, %v10727_v40 }
 0x749   : > { %v6715_v50 = vpop.eup %6714  ;;  %v9710_v2 = vsel %vm4690_vm0, %v4692_v24, %v4688_v34  ;;  %6716 = vrcp.f32 %v9708_v7  ;;  %v5109_v0 = vadd.f32 -0.28449672, %v5077_v46  ;;  %5628 = vmatmul.bf16.gmra.mxu2 %v5516_v15  ;;  %v9724_v26 = vmul.f32 0.5, %v9615_v14 }
 0x74a   : > { %v4950_v17 = vmul.f32 1.0614054, %v9710_v2  ;;  %v4696_v57 = vmul.f32 %v6715_v50, %v9688_v28  ;;  %6718 = vpow2.f32 %v5315_v49  ;;  %v9729_v5 = vsel %vm4310_vm14, 1.0, %v10727_v40 }
 0x74b   : > { %v5317_v51 = vmul.f32 1.442695, %v5270_v47  ;;  %v9732_v45 = vmul.f32 0.5, %v9640_v56  ;;  %v4704_v42 = vand.u32 2147483647, %v9688_v28  ;;  %v5459_v18 = vadd.f32 1.0, %v5427_v1 }
 0x74c   : > { %v4982_v9 = vadd.f32 -1.4531521, %v4950_v17  ;;  %v4697_v13 = vsub.f32 1.0, %v4696_v57  ;;  %v5428_v44 = vmul.f32 %v5396_v37, %v9677_v33  ;;  %v4706_v12 = vand.u32 2147483648, %v9688_v28 }
 0x74d   : > { %v9738_v14 = vand.u32 2147483647, %v9714_v31  ;;  %v5141_v30 = vmul.f32 %v5109_v0, %v9660_v38  ;;  %vm4701_vm1 = vweird.f32 %v6715_v50  ;;  %vm4700_vm2 = vweird.f32 %v9688_v28  ;;  %v4201_v28 = vpop.f32.mrf.mxu1 }
 0x74e   : > { %v5014_v20 = vmul.f32 %v4982_v9, %v9710_v2  ;;  %v4698_v60 = vmul.f32 %v6715_v50, %v4697_v13  ;;  %v5239_v56 = vsub.f32 0.0, %v9671_v58  ;;  %v9746_v33 = vadd.f32 %v9287_v48, %v4198_v63  ;;  %vm4702_vm4 = vmor %vm4700_vm2, %vm4701_vm1 }
 0x74f   : > { %v6717_v29 = vpop.eup %6716  ;;  %v4409_v35 = vmul.f32 0.3275911, %v9738_v14  ;;  %vm4705_vm3 = vcmp.eq.f32.partialorder %v4704_v42, 8.507059e+37  ;;  %v5460_v27 = vadd.f32 1.0, %v5428_v44  ;;  %v4707_v6 = vor.u32 1.1754944e-38, %v4706_v12 }
 0x750   : > { %v5046_v16 = vadd.f32 1.4214138, %v5014_v20  ;;  %v4699_v32 = vadd.f32 %v6715_v50, %v4698_v60  ;;  %v4711_v23 = vmul.f32 %v6717_v29, %v9708_v7  ;;  %v6719_v49 = vpop.eup %6718  ;;  %v4719_v46 = vand.u32 2147483647, %v9708_v7 }
 0x751   : > { %v9750_v25 = vadd.f32 1.0, %v4409_v35  ;;  %v5173_v24 = vadd.f32 0.2548296, %v5141_v30  ;;  %v4721_v15 = vand.u32 2147483648, %v9708_v7  ;;  %v9758_v37 = vmul.f32 0.70710677, %v9746_v33 }
 0x752   : > { %v5078_v47 = vmul.f32 %v5046_v16, %v9710_v2  ;;  %v4703_v1 = vsel %vm4702_vm4, %v6715_v50, %v4699_v32  ;;  %v4712_v63 = vsub.f32 1.0, %v4711_v23  ;;  %vm4716_vm5 = vweird.f32 %v6717_v29 }
 0x753   : > { %v9753_v34 = vsel %vm4705_vm3, %v4707_v6, %v4703_v1  ;;  %6720 = vrcp.f32 %v9750_v25  ;;  %v5491_v9 = vmul.f32 %v5459_v18, %v9597_v41  ;;  %v5492_v13 = vmul.f32 %v5460_v27, %v9664_v36 }
 0x754   : > { %v5110_v0 = vadd.f32 -0.28449672, %v5078_v47  ;;  %v4951_v17 = vmul.f32 1.0614054, %v9753_v34  ;;  %v4713_v57 = vmul.f32 %v6717_v29, %v4712_v63  ;;  %6722 = vpow2.f32 %v5317_v51 }
 0x755   : > { %vm4311_vm6 = vcmp.ge.f32.partialorder %v9650_v10, 0.0  ;;  %vm4715_vm7 = vweird.f32 %v9708_v7  ;;  %v5271_v12 = vmul.f32 %v5239_v56, %v9671_v58  ;;  %v4722_v30 = vor.u32 1.1754944e-38, %v4721_v15 }
 0x756   : > { %v5142_v50 = vmul.f32 %v5110_v0, %v9710_v2  ;;  %v4983_v42 = vadd.f32 -1.4531521, %v4951_v17  ;;  %v4714_v44 = vadd.f32 %v6717_v29, %v4713_v57  ;;  %vm4717_vm8 = vmor %vm4715_vm7, %vm4716_vm5  ;;  %v5240_v20 = vsub.f32 0.0, %v9691_v59 }
 0x757   : > { %v9769_v60 = vand.u32 2147483647, %v9758_v37  ;;  %v5205_v41 = vmul.f32 %v5173_v24, %v9660_v38  ;;  %vm4720_vm9 = vcmp.eq.f32.partialorder %v4719_v46, 8.507059e+37  ;;  %v5517_v58 = vpack.c.bf16 %v5492_v13, %v5491_v9  ;;  %v4203_v24 = vpop.f32.mrf.mxu1 }
 0x758   : > { %v5015_v36 = vmul.f32 %v4983_v42, %v9753_v34  ;;  %v4718_v51 = vsel %vm4717_vm8, %v6717_v29, %v4714_v44  ;;  %v5174_v35 = vadd.f32 0.2548296, %v5142_v50  ;;  %v9779_v56 = vsel %vm4311_vm6, 1.0, %v10727_v40 }
 0x759   : > { %v6721_v18 = vpop.eup %6720  ;;  %v9773_v16 = vsel %vm4720_vm9, %v4722_v30, %v4718_v51  ;;  %v4410_v7 = vmul.f32 0.3275911, %v9769_v60  ;;  %v5319_v29 = vmul.f32 1.442695, %v5271_v12  ;;  %vm4312_vm10 = vcmp.ge.f32.partialorder %v9674_v4, 0.0  ;;  %5633 = vmatmul.bf16.gmra.mxu2 %v5517_v58 }
 0x75a   : > { %v5047_v32 = vadd.f32 1.4214138, %v5015_v36  ;;  %v4952_v23 = vmul.f32 1.0614054, %v9773_v16  ;;  %v4726_v38 = vmul.f32 %v6721_v18, %v9750_v25  ;;  %v6723_v27 = vpop.eup %6722  ;;  %v9787_v46 = vadd.f32 %v9287_v48, %v4201_v28 }
 0x75b   : > { %v9784_v6 = vadd.f32 1.0, %v4410_v7  ;;  %v5365_v47 = vmul.f32 %v6719_v49, %v5205_v41  ;;  %v5272_v1 = vmul.f32 %v5240_v20, %v9691_v59  ;;  %v5206_v15 = vmul.f32 %v5174_v35, %v9710_v2 }
 0x75c   : > { %v4984_v10 = vadd.f32 -1.4531521, %v4952_v23  ;;  %v4727_v63 = vsub.f32 1.0, %v4726_v38  ;;  %v4734_v0 = vand.u32 2147483647, %v9750_v25  ;;  %v4736_v17 = vand.u32 2147483648, %v9750_v25 }
 0x75d   : > { %6724 = vrcp.f32 %v9784_v6  ;;  %v5079_v57 = vmul.f32 %v5047_v32, %v9753_v34  ;;  %vm4731_vm11 = vweird.f32 %v6721_v18  ;;  %v9797_v49 = vmul.f32 0.5, %v9653_v19 }
 0x75e   : > { %v5016_v48 = vmul.f32 %v4984_v10, %v9773_v16  ;;  %v4728_v28 = vmul.f32 %v6721_v18, %v4727_v63  ;;  %6726 = vpow2.f32 %v5319_v29  ;;  %v9802_v59 = vsel %vm4312_vm10, 1.0, %v10727_v40 }
 0x75f   : > { %v9805_v2 = vmul.f32 0.70710677, %v9787_v46  ;;  %v5321_v13 = vmul.f32 1.442695, %v5272_v1  ;;  %vm4730_vm12 = vweird.f32 %v9750_v25  ;;  %v5397_v42 = vsub.f32 1.0, %v5365_v47  ;;  %v4206_v29 = vpop.f32.mrf.mxu1 }
 0x760   : > { %v5048_v9 = vadd.f32 1.4214138, %v5016_v48  ;;  %v4729_v50 = vadd.f32 %v6721_v18, %v4728_v28  ;;  %vm4732_vm13 = vmor %vm4730_vm12, %vm4731_vm11  ;;  %vm4735_vm14 = vcmp.eq.f32.partialorder %v4734_v0, 8.507059e+37  ;;  %v4737_v44 = vor.u32 1.1754944e-38, %v4736_v17 }
 0x761   : > { %v9809_v19 = vand.u32 2147483647, %v9805_v2  ;;  %v5366_v12 = vmul.f32 %v6723_v27, %v5206_v15  ;;  %v5111_v30 = vadd.f32 -0.28449672, %v5079_v57  ;;  %v9813_v36 = vmul.f32 0.5, %v9702_v52 }
 0x762   : > { %v5080_v4 = vmul.f32 %v5048_v9, %v9773_v16  ;;  %v4733_v20 = vsel %vm4732_vm13, %v6721_v18, %v4729_v50  ;;  %v5241_v25 = vsub.f32 0.0, %v9738_v14  ;;  %6728 = vpow2.f32 %v5321_v13  ;;  %v9828_v52 = vld [vmem:[%s10375_s9] ss:$0 sm:$0xff] }
 0x763   : > { %v6725_v41 = vpop.eup %6724  ;;  %v9815_v51 = vsel %vm4735_vm14, %v4737_v44, %v4733_v20  ;;  %v4411_v35 = vmul.f32 0.3275911, %v9809_v19  ;;  %vm4313_vm15 = vcmp.ge.f32.partialorder %v9714_v31, 0.0  ;;  %v5429_v23 = vmul.f32 %v5397_v42, %v9719_v54 }
 0x764   : > { %v5112_v7 = vadd.f32 -0.28449672, %v5080_v4  ;;  %v4953_v58 = vmul.f32 1.0614054, %v9815_v51  ;;  %v6727_v32 = vpop.eup %6726  ;;  %v4741_v18 = vmul.f32 %v6725_v41, %v9784_v6  ;;  %v9831_v27 = vadd.f32 %v9828_v52, %v4203_v24 }
 0x765   : > { %v9823_v38 = vadd.f32 1.0, %v4411_v35  ;;  %v5398_v47 = vsub.f32 1.0, %v5366_v12  ;;  %v5143_v31 = vmul.f32 %v5111_v30, %v9753_v34  ;;  %v9836_v54 = vsel %vm4313_vm15, 1.0, %v10727_v40 }
 0x766   : > { %v5144_v10 = vmul.f32 %v5112_v7, %v9773_v16  ;;  %v4985_v1 = vadd.f32 -1.4531521, %v4953_v58  ;;  %v5273_v63 = vmul.f32 %v5241_v25, %v9738_v14  ;;  %v4742_v15 = vsub.f32 1.0, %v4741_v18 }
 0x767   : > { %6730 = vrcp.f32 %v9823_v38  ;;  %v9842_v24 = vmul.f32 0.5, %v9746_v33  ;;  %v4751_v57 = vand.u32 2147483648, %v9784_v6  ;;  %vm4746_vm0 = vweird.f32 %v6725_v41 }
 0x768   : > { %v5176_v0 = vadd.f32 0.2548296, %v5144_v10  ;;  %v5017_v17 = vmul.f32 %v4985_v1, %v9815_v51  ;;  %v4743_v48 = vmul.f32 %v6725_v41, %v4742_v15  ;;  %v4749_v28 = vand.u32 2147483647, %v9784_v6  ;;  %v6729_v13 = vpop.eup %6728 }
 0x769   : > { %v9847_v9 = vmul.f32 0.70710677, %v9831_v27  ;;  %v5461_v14 = vadd.f32 1.0, %v5429_v23  ;;  %v5430_v50 = vmul.f32 %v5398_v47, %v9729_v5  ;;  %v5175_v42 = vadd.f32 0.2548296, %v5143_v31 }
 0x76a   : > { %v5049_v44 = vadd.f32 1.4214138, %v5017_v17  ;;  %v5323_v12 = vmul.f32 1.442695, %v5273_v63  ;;  %v4744_v30 = vadd.f32 %v6725_v41, %v4743_v48  ;;  %vm4745_vm1 = vweird.f32 %v9784_v6 }
 0x76b   : > { %v9852_v33 = vand.u32 2147483647, %v9847_v9  ;;  %v5208_v4 = vmul.f32 %v5176_v0, %v9773_v16  ;;  %vm4747_vm2 = vmor %vm4745_vm1, %vm4746_vm0  ;;  %v4752_v25 = vor.u32 1.1754944e-38, %v4751_v57  ;;  %v5242_v35 = vsub.f32 0.0, %v9769_v60 }
 0x76c   : > { %v5081_v20 = vmul.f32 %v5049_v44, %v9815_v51  ;;  %vm4314_vm3 = vcmp.ge.f32.partialorder %v9758_v37, 0.0  ;;  %v4748_v5 = vsel %vm4747_vm2, %v6725_v41, %v4744_v30  ;;  %vm4750_vm4 = vcmp.eq.f32.partialorder %v4749_v28, 8.507059e+37  ;;  %v4208_v41 = vpop.f32.mrf.mxu1 }
 0x76d   : > { %v6731_v7 = vpop.eup %6730  ;;  %v4412_v58 = vmul.f32 0.3275911, %v9852_v33  ;;  %v5493_v6 = vmul.f32 %v5461_v14, %v9680_v62  ;;  %v5462_v23 = vadd.f32 1.0, %v5430_v50  ;;  %v5207_v18 = vmul.f32 %v5175_v42, %v9753_v34 }
 0x76e   : > { %v9861_v47 = vsel %vm4750_vm4, %v4752_v25, %v4748_v5  ;;  %v4756_v31 = vmul.f32 %v6731_v7, %v9823_v38  ;;  %v9868_v1 = vadd.f32 %v9828_v52, %v4206_v29  ;;  %v5368_v63 = vmul.f32 %v6729_v13, %v5208_v4 }
 0x76f   : > { %v4954_v16 = vmul.f32 1.0614054, %v9861_v47  ;;  %v9865_v10 = vadd.f32 1.0, %v4412_v58  ;;  %v5113_v15 = vadd.f32 -0.28449672, %v5081_v20  ;;  %6732 = vpow2.f32 %v5323_v12 }
 0x770   : > { %v5274_v62 = vmul.f32 %v5242_v35, %v9769_v60  ;;  %v9874_v34 = vsel %vm4314_vm3, 1.0, %v10727_v40  ;;  %v4757_v17 = vsub.f32 1.0, %v4756_v31  ;;  %v5494_v57 = vmul.f32 %v5462_v23, %v9724_v26 }
 0x771   : > { %v4986_v0 = vadd.f32 -1.4531521, %v4954_v16  ;;  %6734 = vrcp.f32 %v9865_v10  ;;  %v5367_v48 = vmul.f32 %v6727_v32, %v5207_v18  ;;  %v4764_v29 = vand.u32 2147483647, %v9823_v38 }
 0x772   : > { %v4766_v28 = vand.u32 2147483648, %v9823_v38  ;;  %v4758_v14 = vmul.f32 %v6731_v7, %v4757_v17  ;;  %vm4761_vm5 = vweird.f32 %v6731_v7  ;;  %v9882_v60 = vmul.f32 0.70710677, %v9868_v1 }
 0x773   : > { %v5018_v13 = vmul.f32 %v4986_v0, %v9861_v47  ;;  %v5400_v37 = vsub.f32 1.0, %v5368_v63  ;;  %v5145_v50 = vmul.f32 %v5113_v15, %v9815_v51  ;;  %v5325_v42 = vmul.f32 1.442695, %v5274_v62 }
 0x774   : > { %v9886_v44 = vmul.f32 0.5, %v9787_v46  ;;  %v4759_v32 = vadd.f32 %v6731_v7, %v4758_v14  ;;  %vm4760_vm6 = vweird.f32 %v9823_v38  ;;  %v5243_v12 = vsub.f32 0.0, %v9809_v19  ;;  %v4211_v15 = vpop.f32.mrf.mxu1 }
 0x775   : > { %v5050_v26 = vadd.f32 1.4214138, %v5018_v13  ;;  %v6733_v30 = vpop.eup %6732  ;;  %v5399_v4 = vsub.f32 1.0, %v5367_v48  ;;  %vm4762_vm7 = vmor %vm4760_vm6, %vm4761_vm5  ;;  %v4767_v20 = vor.u32 1.1754944e-38, %v4766_v28  ;;  %v9891_v25 = vand.u32 2147483647, %v9882_v60 }
 0x776   : > { %v5518_v35 = vpack.c.bf16 %v5494_v57, %v5493_v6  ;;  %vm4315_vm8 = vcmp.ge.f32.partialorder %v9805_v2, 0.0  ;;  %v4763_v46 = vsel %vm4762_vm7, %v6731_v7, %v4759_v32  ;;  %vm4765_vm9 = vcmp.eq.f32.partialorder %v4764_v29, 8.507059e+37 }
 0x777   : > { %v6735_v5 = vpop.eup %6734  ;;  %v5082_v58 = vmul.f32 %v5050_v26, %v9861_v47  ;;  %v5432_v23 = vmul.f32 %v5400_v37, %v9802_v59  ;;  %v5177_v38 = vadd.f32 0.2548296, %v5145_v50  ;;  %v9896_v18 = vsel %vm4765_vm9, %v4767_v20, %v4763_v46 }
 0x778   : > { %v4771_v16 = vmul.f32 %v6735_v5, %v9865_v10  ;;  %5638 = vmatmul.bf16.gmra.mxu2 %v5518_v35  ;;  %6736 = vpow2.f32 %v5325_v42  ;;  %v4955_v63 = vmul.f32 1.0614054, %v9896_v18  ;;  %v4413_v6 = vmul.f32 0.3275911, %v9891_v25 }
 0x779   : > { %v5114_v31 = vadd.f32 -0.28449672, %v5082_v58  ;;  %v5431_v62 = vmul.f32 %v5399_v4, %v9779_v56  ;;  %v5275_v7 = vmul.f32 %v5243_v12, %v9809_v19  ;;  %v9904_v59 = vadd.f32 %v9828_v52, %v4208_v41 }
 0x77a   : > { %v4772_v0 = vsub.f32 1.0, %v4771_v16  ;;  %v4987_v57 = vadd.f32 -1.4531521, %v4955_v63  ;;  %v4781_v48 = vand.u32 2147483648, %v9865_v10  ;;  %v9908_v29 = vadd.f32 1.0, %v4413_v6 }
 0x77b   : > { %v5146_v17 = vmul.f32 %v5114_v31, %v9861_v47  ;;  %v5464_v28 = vadd.f32 1.0, %v5432_v23  ;;  %vm4776_vm10 = vweird.f32 %v6735_v5  ;;  %v4779_v14 = vand.u32 2147483647, %v9865_v10 }
 0x77c   : > { %v4773_v13 = vmul.f32 %v6735_v5, %v4772_v0  ;;  %v5209_v56 = vmul.f32 %v5177_v38, %v9815_v51  ;;  %v5019_v19 = vmul.f32 %v4987_v57, %v9896_v18  ;;  %v5244_v37 = vsub.f32 0.0, %v9852_v33 }
 0x77d   : > { %6738 = vrcp.f32 %v9908_v29  ;;  %v5463_v41 = vadd.f32 1.0, %v5431_v62  ;;  %vm4775_vm11 = vweird.f32 %v9865_v10  ;;  %v9917_v42 = vmul.f32 0.70710677, %v9904_v59 }
 0x77e   : > { %v4774_v50 = vadd.f32 %v6735_v5, %v4773_v13  ;;  %v6737_v26 = vpop.eup %6736  ;;  %v5178_v32 = vadd.f32 0.2548296, %v5146_v17  ;;  %v5051_v12 = vadd.f32 1.4214138, %v5019_v19  ;;  %vm4777_vm12 = vmor %vm4775_vm11, %vm4776_vm10  ;;  %v4782_v4 = vor.u32 1.1754944e-38, %v4781_v48 }
 0x77f   : > { %v9920_v51 = vadd.f32 %v9828_v52, %v4211_v15  ;;  %v5496_v20 = vmul.f32 %v5464_v28, %v9797_v49  ;;  %v5327_v35 = vmul.f32 1.442695, %v5275_v7  ;;  %vm4780_vm13 = vcmp.eq.f32.partialorder %v4779_v14, 8.507059e+37 }
 0x780   : > { %v4778_v58 = vsel %vm4777_vm12, %v6735_v5, %v4774_v50  ;;  %v5369_v46 = vmul.f32 %v6733_v30, %v5209_v56  ;;  %v5083_v23 = vmul.f32 %v5051_v12, %v9896_v18  ;;  %v5276_v38 = vmul.f32 %v5244_v37, %v9852_v33 }
 0x781   : > { %v9924_v10 = vsel %vm4780_vm13, %v4782_v4, %v4778_v58  ;;  %v5495_v16 = vmul.f32 %v5463_v41, %v9732_v45  ;;  %v9931_v31 = vsel %vm4315_vm8, 1.0, %v10727_v40  ;;  %v9935_v49 = vand.u32 2147483647, %v9917_v42  ;;  %v4213_v45 = vpop.f32.mrf.mxu1 }
 0x782   : > { %v4956_v63 = vmul.f32 1.0614054, %v9924_v10  ;;  %v5210_v30 = vmul.f32 %v5178_v32, %v9861_v47  ;;  %v5115_v6 = vadd.f32 -0.28449672, %v5083_v23  ;;  %v9939_v15 = vmul.f32 0.5, %v9831_v27 }
 0x783   : > { %v6739_v5 = vpop.eup %6738  ;;  %v9942_v33 = vmul.f32 0.70710677, %v9920_v51  ;;  %v4414_v7 = vmul.f32 0.3275911, %v9935_v49  ;;  %v5519_v0 = vpack.c.bf16 %v5496_v20, %v5495_v16  ;;  %v5401_v17 = vsub.f32 1.0, %v5369_v46 }
 0x784   : > { %v4988_v62 = vadd.f32 -1.4531521, %v4956_v63  ;;  %v4786_v2 = vmul.f32 %v6739_v5, %v9908_v29  ;;  %6740 = vpow2.f32 %v5327_v35  ;;  %vm4316_vm14 = vcmp.ge.f32.partialorder %v9847_v9, 0.0 }
 0x785   : > { %v5329_v57 = vmul.f32 1.442695, %v5276_v38  ;;  %v4794_v27 = vand.u32 2147483647, %v9908_v29  ;;  %v9949_v28 = vadd.f32 1.0, %v4414_v7  ;;  %v5370_v13 = vmul.f32 %v6737_v26, %v5210_v30 }
 0x786   : > { %v5020_v47 = vmul.f32 %v4988_v62, %v9924_v10  ;;  %v4787_v48 = vsub.f32 1.0, %v4786_v2  ;;  %v5147_v14 = vmul.f32 %v5115_v6, %v9896_v18  ;;  %v4796_v56 = vand.u32 2147483648, %v9908_v29 }
 0x787   : > { %v9954_v19 = vand.u32 2147483647, %v9942_v33  ;;  %vm4791_vm15 = vweird.f32 %v6739_v5  ;;  %6742 = vrcp.f32 %v9949_v28  ;;  %v5433_v50 = vmul.f32 %v5401_v17, %v9836_v54 }
 0x788   : > { %v5052_v37 = vadd.f32 1.4214138, %v5020_v47  ;;  %v4788_v41 = vmul.f32 %v6739_v5, %v4787_v48  ;;  %5643 = vmatmul.bf16.gmra.mxu2 %v5519_v0  ;;  %v9961_v32 = vsel %vm4316_vm14, 1.0, %v10727_v40  ;;  %v9964_v26 = vmul.f32 0.5, %v9868_v1 }
 0x789   : > { %vm4317_vm0 = vcmp.ge.f32.partialorder %v9882_v60, 0.0  ;;  %vm4790_vm1 = vweird.f32 %v9908_v29  ;;  %v4415_v20 = vmul.f32 0.3275911, %v9954_v19  ;;  %v5402_v58 = vsub.f32 1.0, %v5370_v13  ;;  %v4216_v30 = vpop.f32.mrf.mxu1 }
 0x78a   : > { %v5084_v12 = vmul.f32 %v5052_v37, %v9924_v10  ;;  %v4789_v4 = vadd.f32 %v6739_v5, %v4788_v41  ;;  %v6741_v35 = vpop.eup %6740  ;;  %v5179_v54 = vadd.f32 0.2548296, %v5147_v14  ;;  %6744 = vpow2.f32 %v5329_v57  ;;  %vm4792_vm2 = vmor %vm4790_vm1, %vm4791_vm15 }
 0x78b   : > { %v4797_v9 = vor.u32 1.1754944e-38, %v4796_v56  ;;  %vm4795_vm3 = vcmp.eq.f32.partialorder %v4794_v27, 8.507059e+37  ;;  %v9971_v1 = vadd.f32 1.0, %v4415_v20  ;;  %v5465_v38 = vadd.f32 1.0, %v5433_v50 }
 0x78c   : > { %v5116_v46 = vadd.f32 -0.28449672, %v5084_v12  ;;  %v4793_v23 = vsel %vm4792_vm2, %v6739_v5, %v4789_v4  ;;  %v9976_v16 = vsel %vm4317_vm0, 1.0, %v10727_v40  ;;  %v5245_v63 = vsub.f32 0.0, %v9891_v25 }
 0x78d   : > { %v9978_v29 = vsel %vm4795_vm3, %v4797_v9, %v4793_v23  ;;  %v6743_v6 = vpop.eup %6742  ;;  %6746 = vrcp.f32 %v9971_v1  ;;  %v9985_v5 = vadd.f32 %v9828_v52, %v4213_v45  ;;  %v5434_v7 = vmul.f32 %v5402_v58, %v9874_v34 }
 0x78e   : > { %v5148_v62 = vmul.f32 %v5116_v46, %v9924_v10  ;;  %v4957_v2 = vmul.f32 1.0614054, %v9978_v29  ;;  %v5211_v60 = vmul.f32 %v5179_v54, %v9896_v18  ;;  %v9990_v0 = vmul.f32 0.5, %v9904_v59 }
 0x78f   : > { %v4801_v17 = vmul.f32 %v6743_v6, %v9949_v28  ;;  %v5246_v48 = vsub.f32 0.0, %v9935_v49  ;;  %v9995_v27 = vadd.f32 %v9828_v52, %v4216_v30  ;;  %v9998_v45 = vmul.f32 %v5465_v38, %v9813_v36 }
 0x790   : > { %v5180_v57 = vadd.f32 0.2548296, %v5148_v62  ;;  %v4989_v47 = vadd.f32 -1.4531521, %v4957_v2  ;;  %v6745_v13 = vpop.eup %6744  ;;  %v5277_v34 = vmul.f32 %v5245_v63, %v9891_v25  ;;  %v4809_v18 = vand.u32 2147483647, %v9949_v28 }
 0x791   : > { %v4802_v14 = vsub.f32 1.0, %v4801_v17  ;;  %v4811_v37 = vand.u32 2147483648, %v9949_v28  ;;  %v10006_v41 = vmul.f32 0.70710677, %v9985_v5  ;;  %v5466_v50 = vadd.f32 1.0, %v5434_v7 }
 0x792   : > { %v5212_v59 = vmul.f32 %v5180_v57, %v9924_v10  ;;  %v5021_v56 = vmul.f32 %v4989_v47, %v9978_v29  ;;  %v5371_v12 = vmul.f32 %v6741_v35, %v5211_v60  ;;  %vm4806_vm4 = vweird.f32 %v6743_v6 }
 0x793   : > { %v4803_v4 = vmul.f32 %v6743_v6, %v4802_v14  ;;  %v6747_v36 = vpop.eup %6746  ;;  %v5278_v25 = vmul.f32 %v5246_v48, %v9935_v49  ;;  %v10010_v58 = vand.u32 2147483647, %v10006_v41  ;;  %v10013_v10 = vmul.f32 0.70710677, %v9995_v27 }
 0x794   : > { %v5053_v20 = vadd.f32 1.4214138, %v5021_v56  ;;  %vm4805_vm5 = vweird.f32 %v9949_v28  ;;  %vm4810_vm6 = vcmp.eq.f32.partialorder %v4809_v18, 8.507059e+37  ;;  %v4816_v9 = vmul.f32 %v6747_v36, %v9971_v1 }
 0x795   : > { %v4804_v54 = vadd.f32 %v6743_v6, %v4803_v4  ;;  %v5372_v46 = vmul.f32 %v6745_v13, %v5212_v59  ;;  %vm4807_vm7 = vmor %vm4805_vm5, %vm4806_vm4  ;;  %v4812_v23 = vor.u32 1.1754944e-38, %v4811_v37  ;;  %v4416_v38 = vmul.f32 0.3275911, %v10010_v58  ;;  %v4218_v59 = vpop.f32.mrf.mxu1 }
 0x796   : > { %v5085_v35 = vmul.f32 %v5053_v20, %v9978_v29  ;;  %v5403_v49 = vsub.f32 1.0, %v5371_v12  ;;  %v4817_v30 = vsub.f32 1.0, %v4816_v9  ;;  %v4826_v62 = vand.u32 2147483648, %v9971_v1 }
 0x797   : > { %v4808_v63 = vsel %vm4807_vm7, %v6743_v6, %v4804_v54  ;;  %v10022_v60 = vadd.f32 1.0, %v4416_v38  ;;  %v10025_v28 = vand.u32 2147483647, %v10013_v10  ;;  %vm4821_vm8 = vweird.f32 %v6747_v36 }
 0x798   : > { %v5117_v2 = vadd.f32 -0.28449672, %v5085_v35  ;;  %v10020_v7 = vsel %vm4810_vm6, %v4812_v23, %v4808_v63  ;;  %v4818_v57 = vmul.f32 %v6747_v36, %v4817_v30  ;;  %v4824_v47 = vand.u32 2147483647, %v9971_v1 }
 0x799   : > { %v4958_v17 = vmul.f32 1.0614054, %v10020_v7  ;;  %v5404_v48 = vsub.f32 1.0, %v5372_v46  ;;  %v5331_v13 = vmul.f32 1.442695, %v5277_v34  ;;  %vm4318_vm9 = vcmp.ge.f32.partialorder %v9917_v42, 0.0 }
 0x79a   : > { %6748 = vrcp.f32 %v10022_v60  ;;  %v5498_v6 = vmul.f32 %v5466_v50, %v9842_v24  ;;  %v4819_v18 = vadd.f32 %v6747_v36, %v4818_v57  ;;  %vm4820_vm10 = vweird.f32 %v9971_v1 }
 0x79b   : > { %v4990_v14 = vadd.f32 -1.4531521, %v4958_v17  ;;  %v5435_v56 = vmul.f32 %v5403_v49, %v9931_v31  ;;  %v5149_v37 = vmul.f32 %v5117_v2, %v9978_v29  ;;  %vm4822_vm11 = vmor %vm4820_vm10, %vm4821_vm8  ;;  %v4827_v12 = vor.u32 1.1754944e-38, %v4826_v62 }
 0x79c   : > { %v4417_v4 = vmul.f32 0.3275911, %v10025_v28  ;;  %v5333_v20 = vmul.f32 1.442695, %v5278_v25  ;;  %v4823_v54 = vsel %vm4822_vm11, %v6747_v36, %v4819_v18  ;;  %vm4825_vm12 = vcmp.eq.f32.partialorder %v4824_v47, 8.507059e+37 }
 0x79d   : > { %v5022_v34 = vmul.f32 %v4990_v14, %v10020_v7  ;;  %v5436_v24 = vmul.f32 %v5404_v48, %v9961_v32  ;;  %v10038_v50 = vsel %vm4825_vm12, %v4827_v12, %v4823_v54  ;;  %v5247_v1 = vsub.f32 0.0, %v9954_v19 }
 0x79e   : > { %v10041_v9 = vadd.f32 1.0, %v4417_v4  ;;  %v10044_v46 = vmul.f32 0.5, %v9920_v51  ;;  %v4959_v35 = vmul.f32 1.0614054, %v10038_v50  ;;  %v5520_v23 = vpack.c.bf16 %v5498_v6, %v9998_v45 }
 0x79f   : > { %v5054_v31 = vadd.f32 1.4214138, %v5022_v34  ;;  %v5467_v25 = vadd.f32 1.0, %v5435_v56  ;;  %v5181_v36 = vadd.f32 0.2548296, %v5149_v37  ;;  %v10051_v32 = vsel %vm4318_vm9, 1.0, %v10727_v40  ;;  %v4221_v56 = vpop.f32.mrf.mxu1 }
 0x7a0   : > { %v6749_v38 = vpop.eup %6748  ;;  %6750 = vrcp.f32 %v10041_v9  ;;  %v4991_v63 = vadd.f32 -1.4531521, %v4959_v35  ;;  %5648 = vmatmul.bf16.gmra.mxu2 %v5520_v23  ;;  %v5468_v30 = vadd.f32 1.0, %v5436_v24  ;;  %v5279_v45 = vmul.f32 %v5247_v1, %v9954_v19 }
 0x7a1   : > { %6752 = vpow2.f32 %v5331_v13  ;;  %v5086_v49 = vmul.f32 %v5054_v31, %v10020_v7  ;;  %v4831_v51 = vmul.f32 %v6749_v38, %v10022_v60  ;;  %v4839_v62 = vand.u32 2147483647, %v10022_v60 }
 0x7a2   : > { %6754 = vpow2.f32 %v5333_v20  ;;  %v5023_v42 = vmul.f32 %v4991_v63, %v10038_v50  ;;  %v10060_v57 = vadd.f32 %v9828_v52, %v4218_v59  ;;  %v10063_v47 = vmul.f32 %v5467_v25, %v9886_v44 }
 0x7a3   : > { %v5118_v2 = vadd.f32 -0.28449672, %v5086_v49  ;;  %v4832_v17 = vsub.f32 1.0, %v4831_v51  ;;  %v5213_v48 = vmul.f32 %v5181_v36, %v9978_v29  ;;  %v4841_v13 = vand.u32 2147483648, %v10022_v60 }
 0x7a4   : > { %v5248_v6 = vsub.f32 0.0, %v10010_v58  ;;  %vm4319_vm13 = vcmp.ge.f32.partialorder %v9942_v33, 0.0  ;;  %v5055_v14 = vadd.f32 1.4214138, %v5023_v42  ;;  %vm4836_vm14 = vweird.f32 %v6749_v38 }
 0x7a5   : > { %v5150_v19 = vmul.f32 %v5118_v2, %v10020_v7  ;;  %v4833_v18 = vmul.f32 %v6749_v38, %v4832_v17  ;;  %v5500_v59 = vmul.f32 %v5468_v30, %v9939_v15  ;;  %vm4835_vm15 = vweird.f32 %v10022_v60 }
 0x7a6   : > { %v6751_v37 = vpop.eup %6750  ;;  %vm10072_vm0 = vcmp.eq.f32.partialorder %v4839_v62, 8.507059e+37  ;;  %v10077_v29 = vmul.f32 0.70710677, %v10060_v57  ;;  %v5087_v34 = vmul.f32 %v5055_v14, %v10038_v50  ;;  %vm4837_vm1 = vmor %vm4835_vm15, %vm4836_vm14  ;;  %v4842_v15 = vor.u32 1.1754944e-38, %v4841_v13 }
 0x7a7   : > { %v6753_v12 = vpop.eup %6752  ;;  %v5182_v4 = vadd.f32 0.2548296, %v5150_v19  ;;  %v4834_v20 = vadd.f32 %v6749_v38, %v4833_v18  ;;  %v4846_v54 = vmul.f32 %v6751_v37, %v10041_v9  ;;  %v4854_v60 = vand.u32 2147483647, %v10041_v9 }
 0x7a8   : > { %v6755_v24 = vpop.eup %6754  ;;  %v5373_v1 = vmul.f32 %v6753_v12, %v5213_v48  ;;  %v10083_v31 = vand.u32 2147483647, %v10077_v29  ;;  %v4856_v36 = vand.u32 2147483648, %v10041_v9  ;;  %v5119_v49 = vadd.f32 -0.28449672, %v5087_v34 }
 0x7a9   : > { %v5214_v35 = vmul.f32 %v5182_v4, %v10020_v7  ;;  %v4838_v23 = vsel %vm4837_vm1, %v6749_v38, %v4834_v20  ;;  %v4847_v25 = vsub.f32 1.0, %v4846_v54  ;;  %v10093_v30 = vadd.f32 %v9828_v52, %v4221_v56 }
 0x7aa   : > { %v10089_v63 = vsel %vm10072_vm0, %v4842_v15, %v4838_v23  ;;  %v4418_v51 = vmul.f32 0.3275911, %v10083_v31  ;;  %vm4851_vm2 = vweird.f32 %v6751_v37  ;;  %v5405_v7 = vsub.f32 1.0, %v5373_v1 }
 0x7ab   : > { %v5374_v62 = vmul.f32 %v6755_v24, %v5214_v35  ;;  %v4960_v2 = vmul.f32 1.0614054, %v10089_v63  ;;  %v4848_v42 = vmul.f32 %v6751_v37, %v4847_v25  ;;  %v5280_v38 = vmul.f32 %v5248_v6, %v10010_v58  ;;  %v4223_v6 = vpop.f32.mrf.mxu1 }
 0x7ac   : > { %vm4850_vm3 = vweird.f32 %v10041_v9  ;;  %v10098_v17 = vadd.f32 1.0, %v4418_v51  ;;  %v5521_v14 = vpack.c.bf16 %v5500_v59, %v10063_v47  ;;  %v5151_v18 = vmul.f32 %v5119_v49, %v10038_v50 }
 0x7ad   : > { %v5406_v48 = vsub.f32 1.0, %v5374_v62  ;;  %v4992_v13 = vadd.f32 -1.4531521, %v4960_v2  ;;  %v4849_v19 = vadd.f32 %v6751_v37, %v4848_v42  ;;  %vm4852_vm4 = vmor %vm4850_vm3, %vm4851_vm2  ;;  %v4857_v56 = vor.u32 1.1754944e-38, %v4856_v36 }
 0x7ae   : > { %6756 = vrcp.f32 %v10098_v17  ;;  %v10104_v44 = vmul.f32 0.70710677, %v10093_v30  ;;  %v5335_v12 = vmul.f32 1.442695, %v5279_v45  ;;  %vm4855_vm5 = vcmp.eq.f32.partialorder %v4854_v60, 8.507059e+37 }
 0x7af   : > { %v5024_v58 = vmul.f32 %v4992_v13, %v10089_v63  ;;  %v4853_v9 = vsel %vm4852_vm4, %v6751_v37, %v4849_v19  ;;  %v5438_v4 = vmul.f32 %v5406_v48, %v10051_v32  ;;  %v10111_v47 = vsel %vm4319_vm13, 1.0, %v10727_v40 }
 0x7b0   : > { %vm4320_vm6 = vcmp.ge.f32.partialorder %v10006_v41, 0.0  ;;  %v10114_v59 = vsel %vm4855_vm5, %v4857_v56, %v4853_v9  ;;  %v5337_v20 = vmul.f32 1.442695, %v5280_v38  ;;  %5653 = vmatmul.bf16.gmra.mxu2 %v5521_v14  ;;  %v5437_v37 = vmul.f32 %v5405_v7, %v9976_v16 }
 0x7b1   : > { %v5056_v34 = vadd.f32 1.4214138, %v5024_v58  ;;  %v4961_v45 = vmul.f32 1.0614054, %v10114_v59  ;;  %v5183_v54 = vadd.f32 0.2548296, %v5151_v18  ;;  %6758 = vpow2.f32 %v5335_v12 }
 0x7b2   : > { %v5249_v24 = vsub.f32 0.0, %v10025_v28  ;;  %v10120_v32 = vand.u32 2147483647, %v10104_v44  ;;  %v10123_v33 = vmul.f32 0.5, %v9985_v5  ;;  %v5470_v35 = vadd.f32 1.0, %v5438_v4 }
 0x7b3   : > { %v5088_v1 = vmul.f32 %v5056_v34, %v10089_v63  ;;  %v4993_v15 = vadd.f32 -1.4531521, %v4961_v45  ;;  %v4352_v23 = vsel %vm4320_vm6, 1.0, %v10727_v40  ;;  %v10131_v25 = vadd.f32 %v9828_v52, %v4223_v6  ;;  %v4226_v12 = vpop.f32.mrf.mxu1 }
 0x7b4   : > { %v6757_v60 = vpop.eup %6756  ;;  %v4419_v16 = vmul.f32 0.3275911, %v10120_v32  ;;  %6760 = vpow2.f32 %v5337_v20  ;;  %v5469_v51 = vadd.f32 1.0, %v5437_v37  ;;  %v5215_v62 = vmul.f32 %v5183_v54, %v10038_v50 }
 0x7b5   : > { %v5120_v36 = vadd.f32 -0.28449672, %v5088_v1  ;;  %v5025_v49 = vmul.f32 %v4993_v15, %v10114_v59  ;;  %v4861_v5 = vmul.f32 %v6757_v60, %v10098_v17  ;;  %v5281_v2 = vmul.f32 %v5249_v24, %v10025_v28  ;;  %v10148_v58 = vpop.f32.mrf.mxu2 }
 0x7b6   : > { %v10137_v42 = vadd.f32 1.0, %v4419_v16  ;;  %v4869_v48 = vand.u32 2147483647, %v10098_v17  ;;  %v5502_v13 = vmul.f32 %v5470_v35, %v9990_v0  ;;  %v4871_v19 = vand.u32 2147483648, %v10098_v17 }
 0x7b7   : > { %v5152_v41 = vmul.f32 %v5120_v36, %v10089_v63  ;;  %v5057_v7 = vadd.f32 1.4214138, %v5025_v49  ;;  %v4862_v38 = vsub.f32 1.0, %v4861_v5  ;;  %v10145_v14 = vmul.f32 0.70710677, %v10131_v25  ;;  %v6759_v50 = vpop.eup %6758 }
 0x7b8   : > { %6762 = vrcp.f32 %v10137_v42  ;;  %vm4866_vm7 = vweird.f32 %v6757_v60  ;;  %v5501_v9 = vmul.f32 %v5469_v51, %v9964_v26  ;;  %v5375_v6 = vmul.f32 %v6759_v50, %v5215_v62 }
 0x7b9   : > { %v5184_v18 = vadd.f32 0.2548296, %v5152_v41  ;;  %v5089_v28 = vmul.f32 %v5057_v7, %v10114_v59  ;;  %v4863_v56 = vmul.f32 %v6757_v60, %v4862_v38  ;;  %vm4321_vm8 = vcmp.ge.f32.partialorder %v10013_v10, 0.0 }
 0x7ba   : > { %v5339_v0 = vmul.f32 1.442695, %v5281_v2  ;;  %v6761_v4 = vpop.eup %6760  ;;  %vm4865_vm9 = vweird.f32 %v10098_v17  ;;  %vm4870_vm11 = vcmp.eq.f32.partialorder %v4869_v48, 8.507059e+37  ;;  %v4872_v37 = vor.u32 1.1754944e-38, %v4871_v19 }
 0x7bb   : > { %v5216_v34 = vmul.f32 %v5184_v18, %v10089_v63  ;;  %v5121_v20 = vadd.f32 -0.28449672, %v5089_v28  ;;  %v4864_v45 = vadd.f32 %v6757_v60, %v4863_v56  ;;  %vm4867_vm10 = vmor %vm4865_vm9, %vm4866_vm7  ;;  %v5250_v54 = vsub.f32 0.0, %v10083_v31  ;;  %v4228_v56 = vpop.f32.mrf.mxu1 }
 0x7bc   : > { %v10156_v24 = vand.u32 2147483647, %v10145_v14  ;;  %v5522_v35 = vpack.c.bf16 %v5502_v13, %v5501_v9  ;;  %v5407_v36 = vsub.f32 1.0, %v5375_v6  ;;  %v10163_v17 = vadd.f32 %v9828_v52, %v4226_v12 }
 0x7bd   : > { %v5376_v26 = vmul.f32 %v6761_v4, %v5216_v34  ;;  %v5153_v1 = vmul.f32 %v5121_v20, %v10114_v59  ;;  %v4868_v15 = vsel %vm4867_vm10, %v6757_v60, %v4864_v45  ;;  %v10168_v51 = vsel %vm4321_vm8, 1.0, %v10727_v40  ;;  %v10184_v12 = vpop.f32.mrf.mxu2 }
 0x7be   : > { %v6763_v16 = vpop.eup %6762  ;;  %v10159_v63 = vsel %vm4870_vm11, %v4872_v37, %v4868_v15  ;;  %v4420_v49 = vmul.f32 0.3275911, %v10156_v24  ;;  %6764 = vpow2.f32 %v5339_v0  ;;  %v5282_v41 = vmul.f32 %v5250_v54, %v10083_v31 }
 0x7bf   : > { %v5408_v5 = vsub.f32 1.0, %v5376_v26  ;;  %v4962_v62 = vmul.f32 1.0614054, %v10159_v63  ;;  %v4876_v60 = vmul.f32 %v6763_v16, %v10137_v42  ;;  %v5185_v2 = vadd.f32 0.2548296, %v5153_v1 }
 0x7c0   : > { %v10173_v7 = vadd.f32 1.0, %v4420_v49  ;;  %v5251_v19 = vsub.f32 0.0, %v10120_v32  ;;  %5658 = vmatmul.bf16.gmra.mxu2 %v5522_v35  ;;  %v5439_v10 = vmul.f32 %v5407_v36, %v10111_v47  ;;  %v4886_v50 = vand.u32 2147483648, %v10137_v42 }
 0x7c1   : > { %v5440_v38 = vmul.f32 %v5408_v5, %v4352_v23  ;;  %v4994_v48 = vadd.f32 -1.4531521, %v4962_v62  ;;  %v4877_v13 = vsub.f32 1.0, %v4876_v60  ;;  %v10180_v18 = vmul.f32 0.70710677, %v10163_v17 }
 0x7c2   : > { %6766 = vrcp.f32 %v10173_v7  ;;  %vm4881_vm12 = vweird.f32 %v6763_v16  ;;  %v4884_v23 = vand.u32 2147483647, %v10137_v42  ;;  %v5217_v6 = vmul.f32 %v5185_v2, %v10114_v59 }
 0x7c3   : > { %v5026_v28 = vmul.f32 %v4994_v48, %v10159_v63  ;;  %v4878_v31 = vmul.f32 %v6763_v16, %v4877_v13  ;;  %v5472_v9 = vadd.f32 1.0, %v5440_v38  ;;  %v10188_v47 = vmul.f32 0.5, %v10060_v57 }
 0x7c4   : > { %v5341_v0 = vmul.f32 1.442695, %v5282_v41  ;;  %vm4880_vm13 = vweird.f32 %v10137_v42  ;;  %v5283_v20 = vmul.f32 %v5251_v19, %v10120_v32  ;;  %v6765_v45 = vpop.eup %6764  ;;  %v5471_v37 = vadd.f32 1.0, %v5439_v10 }
 0x7c5   : > { %v5058_v4 = vadd.f32 1.4214138, %v5026_v28  ;;  %v4879_v34 = vadd.f32 %v6763_v16, %v4878_v31  ;;  %vm4882_vm14 = vmor %vm4880_vm13, %vm4881_vm12  ;;  %v4887_v54 = vor.u32 1.1754944e-38, %v4886_v50  ;;  %v10193_v26 = vand.u32 2147483647, %v10180_v18 }
 0x7c6   : > { %v10196_v1 = vadd.f32 %v9828_v52, %v4228_v56  ;;  %vm4322_vm15 = vcmp.ge.f32.partialorder %v10077_v29, 0.0  ;;  %vm4885_vm0 = vcmp.eq.f32.partialorder %v4884_v23, 8.507059e+37  ;;  %v5504_v42 = vmul.f32 %v5472_v9, %v10123_v33 }
 0x7c7   : > { %v5090_v57 = vmul.f32 %v5058_v4, %v10159_v63  ;;  %v4883_v59 = vsel %vm4882_vm14, %v6763_v16, %v4879_v34  ;;  %v5377_v32 = vmul.f32 %v6765_v45, %v5217_v6  ;;  %v4421_v36 = vmul.f32 0.3275911, %v10193_v26 }
 0x7c8   : > { %v6767_v15 = vpop.eup %6766  ;;  %v10201_v35 = vsel %vm4885_vm0, %v4887_v54, %v4883_v59  ;;  %6768 = vpow2.f32 %v5341_v0  ;;  %v5503_v62 = vmul.f32 %v5471_v37, %v10044_v46  ;;  %v5343_v60 = vmul.f32 1.442695, %v5283_v20  ;;  %v10231_v37 = vld [vmem:[%s10377_s11] ss:$0 sm:$0xff] }
 0x7c9   : > { %v5122_v49 = vadd.f32 -0.28449672, %v5090_v57  ;;  %v4963_v5 = vmul.f32 1.0614054, %v10201_v35  ;;  %v4891_v52 = vmul.f32 %v6767_v15, %v10173_v7  ;;  %v10207_v2 = vadd.f32 1.0, %v4421_v36 }
 0x7ca   : > { %v10210_v16 = vmul.f32 0.70710677, %v10196_v1  ;;  %v4899_v48 = vand.u32 2147483647, %v10173_v7  ;;  %v5409_v13 = vsub.f32 1.0, %v5377_v32  ;;  %v4901_v19 = vand.u32 2147483648, %v10173_v7 }
 0x7cb   : > { %v5154_v33 = vmul.f32 %v5122_v49, %v10159_v63  ;;  %v4995_v41 = vadd.f32 -1.4531521, %v4963_v5  ;;  %v4892_v38 = vsub.f32 1.0, %v4891_v52  ;;  %6770 = vrcp.f32 %v10207_v2 }
 0x7cc   : > { %v5523_v10 = vpack.c.bf16 %v5504_v42, %v5503_v62  ;;  %vm4896_vm1 = vweird.f32 %v6767_v15  ;;  %v5629_v31 = vpop.f32.mrf.mxu2  ;;  %v4354_v23 = vsel %vm4322_vm15, 1.0, %v10727_v40  ;;  %6772 = vpow2.f32 %v5343_v60 }
 0x7cd   : > { %v5186_v50 = vadd.f32 0.2548296, %v5154_v33  ;;  %v5027_v46 = vmul.f32 %v4995_v41, %v10201_v35  ;;  %v4893_v28 = vmul.f32 %v6767_v15, %v4892_v38  ;;  %v5252_v56 = vsub.f32 0.0, %v10156_v24 }
 0x7ce   : > { %v10222_v9 = vand.u32 2147483647, %v10210_v16  ;;  %v6769_v6 = vpop.eup %6768  ;;  %vm4895_vm2 = vweird.f32 %v10173_v7  ;;  %v5441_v20 = vmul.f32 %v5409_v13, %v10168_v51  ;;  %v4902_v45 = vor.u32 1.1754944e-38, %v4901_v19 }
 0x7cf   : > { %v5218_v0 = vmul.f32 %v5186_v50, %v10159_v63  ;;  %v5059_v4 = vadd.f32 1.4214138, %v5027_v46  ;;  %v4894_v34 = vadd.f32 %v6767_v15, %v4893_v28  ;;  %vm4897_vm3 = vmor %vm4895_vm2, %vm4896_vm1  ;;  %v5625_v54 = vadd.f32 %v10231_v37, %v10148_v58 }
 0x7d0   : > { %v4422_v29 = vmul.f32 0.3275911, %v10222_v9  ;;  %vm4900_vm4 = vcmp.eq.f32.partialorder %v4899_v48, 8.507059e+37  ;;  %5663 = vmatmul.bf16.gmra.mxu2 %v5523_v10  ;;  %v5627_v36 = vadd.f32 %v10231_v37, %v10184_v12  ;;  %v5473_v62 = vadd.f32 1.0, %v5441_v20 }
 0x7d1   : > { %v5378_v57 = vmul.f32 %v6769_v6, %v5218_v0  ;;  %v5091_v63 = vmul.f32 %v5059_v4, %v10201_v35  ;;  %v4898_v59 = vsel %vm4897_vm3, %v6767_v15, %v4894_v34  ;;  %v6771_v51 = vpop.eup %6770  ;;  %v5692_v32 = vadd.f32 %v5625_v54, %v8656_v3 }
 0x7d2   : > { %v10236_v7 = vsel %vm4900_vm4, %v4902_v45, %v4898_v59  ;;  %v10238_v42 = vadd.f32 1.0, %v4422_v29  ;;  %v4906_v52 = vmul.f32 %v6771_v51, %v10207_v2  ;;  %v6773_v15 = vpop.eup %6772  ;;  %v5284_v60 = vmul.f32 %v5252_v56, %v10156_v24 }
 0x7d3   : > { %v5410_v49 = vsub.f32 1.0, %v5378_v57  ;;  %v5123_v5 = vadd.f32 -0.28449672, %v5091_v63  ;;  %v4964_v58 = vmul.f32 1.0614054, %v10236_v7  ;;  %5724 = vst [vmem:[%s8766_s20 + $0x40] sm:$0xff] %v5692_v32  ;;  %v5630_v33 = vadd.f32 %v10231_v37, %v5629_v31 }
 0x7d4   : > { %6774 = vrcp.f32 %v10238_v42  ;;  %v4907_v38 = vsub.f32 1.0, %v4906_v52  ;;  %v5631_v48 = vpop.f32.mrf.mxu2  ;;  %vm4911_vm5 = vweird.f32 %v6771_v51  ;;  %v4914_v13 = vand.u32 2147483647, %v10207_v2 }
 0x7d5   : > { %v5442_v3 = vmul.f32 %v5410_v49, %v4354_v23  ;;  %v5155_v41 = vmul.f32 %v5123_v5, %v10201_v35  ;;  %v4996_v12 = vadd.f32 -1.4531521, %v4964_v58  ;;  %v4916_v19 = vand.u32 2147483648, %v10207_v2 }
 0x7d6   : > { %v5693_v10 = vadd.f32 %v5627_v36, %v8687_v61  ;;  %v4908_v28 = vmul.f32 %v6771_v51, %v4907_v38  ;;  %v4257_v31 = vmul.f32 0.5, %v9995_v27  ;;  %vm4910_vm6 = vweird.f32 %v10207_v2 }
 0x7d7   : > { %v5474_v24 = vadd.f32 1.0, %v5442_v3  ;;  %v5187_v50 = vadd.f32 0.2548296, %v5155_v41  ;;  %v5028_v46 = vmul.f32 %v4996_v12, %v10236_v7  ;;  %v5694_v23 = vadd.f32 %v5630_v33, %v8702_v21  ;;  %vm4912_vm7 = vmor %vm4910_vm6, %vm4911_vm5 }
 0x7d8   : > { %5725 = vst [vmem:[%s8766_s20 + $0x48] sm:$0xff] %v5693_v10  ;;  %v5632_v56 = vadd.f32 %v10231_v37, %v5631_v48  ;;  %v4909_v4 = vadd.f32 %v6771_v51, %v4908_v28  ;;  %v5505_v20 = vmul.f32 %v5473_v62, %v4257_v31  ;;  %v5345_v45 = vmul.f32 1.442695, %v5284_v60 }
 0x7d9   : > { %v5506_v6 = vmul.f32 %v5474_v24, %v10188_v47  ;;  %v5219_v0 = vmul.f32 %v5187_v50, %v10201_v35  ;;  %v5060_v61 = vadd.f32 1.4214138, %v5028_v46  ;;  %v4917_v27 = vor.u32 1.1754944e-38, %v4916_v19  ;;  %5726 = vst [vmem:[%s8766_s20 + $0x50] sm:$0xff] %v5694_v23 }
 0x7da   : > { %v6775_v34 = vpop.eup %6774  ;;  %v5695_v2 = vadd.f32 %v5632_v56, %v8704_v43  ;;  %v4913_v29 = vsel %vm4912_vm7, %v6771_v51, %v4909_v4  ;;  %vm4915_vm8 = vcmp.eq.f32.partialorder %v4914_v13, 8.507059e+37  ;;  %v5253_v57 = vsub.f32 0.0, %v10193_v26 }
 0x7db   : > { %v5092_v21 = vmul.f32 %v5060_v61, %v10236_v7  ;;  %v4921_v47 = vmul.f32 %v6775_v34, %v10238_v42  ;;  %v5379_v54 = vmul.f32 %v6773_v15, %v5219_v0  ;;  %v10266_v35 = vsel %vm4915_vm8, %v4917_v27, %v4913_v29 }
 0x7dc   : > { %5727 = vst [vmem:[%s8766_s20 + $0x58] sm:$0xff] %v5695_v2  ;;  %v4965_v59 = vmul.f32 1.0614054, %v10266_v35  ;;  %v5524_v36 = vpack.c.bf16 %v5506_v6, %v5505_v20  ;;  %vm4323_vm9 = vcmp.ge.f32.partialorder %v10104_v44, 0.0  ;;  %6776 = vpow2.f32 %v5345_v45  ;;  %v5634_v49 = vpop.f32.mrf.mxu2 }
 0x7dd   : > { %v5124_v63 = vadd.f32 -0.28449672, %v5092_v21  ;;  %v4922_v32 = vsub.f32 1.0, %v4921_v47  ;;  %v4929_v43 = vand.u32 2147483647, %v10238_v42  ;;  %v4931_v51 = vand.u32 2147483648, %v10238_v42 }
 0x7de   : > { %v4997_v58 = vadd.f32 -1.4531521, %v4965_v59  ;;  %vm4926_vm10 = vweird.f32 %v6775_v34  ;;  %v5411_v15 = vsub.f32 1.0, %v5379_v54  ;;  %v5285_v62 = vmul.f32 %v5253_v57, %v10193_v26 }
 0x7df   : > { %v5156_v5 = vmul.f32 %v5124_v63, %v10236_v7  ;;  %v4923_v52 = vmul.f32 %v6775_v34, %v4922_v32  ;;  %v5635_v60 = vadd.f32 %v10231_v37, %v5634_v49  ;;  %vm4925_vm11 = vweird.f32 %v10238_v42 }
 0x7e0   : > { %v5029_v3 = vmul.f32 %v4997_v58, %v10266_v35  ;;  %5668 = vmatmul.bf16.gmra.mxu2 %v5524_v36  ;;  %v4355_v12 = vsel %vm4323_vm9, 1.0, %v10727_v40  ;;  %vm4927_vm12 = vmor %vm4925_vm11, %vm4926_vm10  ;;  %v4932_v38 = vor.u32 1.1754944e-38, %v4931_v51  ;;  %vm4930_vm13 = vcmp.eq.f32.partialorder %v4929_v43, 8.507059e+37 }
 0x7e1   : > { %v5188_v33 = vadd.f32 0.2548296, %v5156_v5  ;;  %v4924_v41 = vadd.f32 %v6775_v34, %v4923_v52  ;;  %v5696_v48 = vadd.f32 %v5635_v60, %v8721_v55  ;;  %v5443_v24 = vmul.f32 %v5411_v15, %v4355_v12 }
 0x7e2   : > { %v5061_v13 = vadd.f32 1.4214138, %v5029_v3  ;;  %v6777_v10 = vpop.eup %6776  ;;  %v5347_v50 = vmul.f32 1.442695, %v5285_v62  ;;  %v5254_v42 = vsub.f32 0.0, %v10222_v9  ;;  %vm4324_vm14 = vcmp.ge.f32.partialorder %v10145_v14, 0.0 }
 0x7e3   : > { %v5220_v26 = vmul.f32 %v5188_v33, %v10236_v7  ;;  %v4928_v19 = vsel %vm4927_vm12, %v6775_v34, %v4924_v41  ;;  %5728 = vst [vmem:[%s8766_s20 + $0x60] sm:$0xff] %v5696_v48  ;;  %v5475_v0 = vadd.f32 1.0, %v5443_v24  ;;  %v4356_v61 = vsel %vm4324_vm14, 1.0, %v10727_v40  ;;  %v10740_v24 = vld [vmem:[#allocation36_spill] sm:$0xff] }
 0x7e4   : > { %v4933_v46 = vsel %vm4930_vm13, %v4932_v38, %v4928_v19  ;;  %v5093_v28 = vmul.f32 %v5061_v13, %v10266_v35  ;;  %v5636_v23 = vpop.f32.mrf.mxu2  ;;  %6778 = vpow2.f32 %v5347_v50  ;;  %v5286_v4 = vmul.f32 %v5254_v42, %v10222_v9  ;;  %v10741_v42 = vld [vmem:[#allocation35_spill] sm:$0xff] }
 0x7e5   : > { %v5380_v44 = vmul.f32 %v6777_v10, %v5220_v26  ;;  %v4966_v31 = vmul.f32 1.0614054, %v4933_v46  ;;  %v5637_v6 = vadd.f32 %v10231_v37, %v5636_v23  ;;  %v4259_v27 = vmul.f32 0.5, %v10093_v30 }
 0x7e6   : > { %v5125_v56 = vadd.f32 -0.28449672, %v5093_v28  ;;  %v4260_v2 = vmul.f32 0.5, %v10131_v25  ;;  %v5349_v54 = vmul.f32 1.442695, %v5286_v4  ;;  %vm4325_vm15 = vcmp.ge.f32.partialorder %v10180_v18, 0.0 }
 0x7e7   : > { %v5412_v55 = vsub.f32 1.0, %v5380_v44  ;;  %v4998_v7 = vadd.f32 -1.4531521, %v4966_v31  ;;  %v5697_v45 = vadd.f32 %v5637_v6, %v8731_v53  ;;  %v5507_v57 = vmul.f32 %v5475_v0, %v4259_v27  ;;  %v10744_v4 = vld [vmem:[#allocation18_spill] sm:$0xff] }
 0x7e8   : > { %v5157_v14 = vmul.f32 %v5125_v56, %v10266_v35  ;;  %6780 = vpow2.f32 %v5349_v54  ;;  %v4357_v58 = vsel %vm4325_vm15, 1.0, %v10727_v40  ;;  %vm4326_vm0 = vcmp.ge.f32.partialorder %v10210_v16, 0.0 }
 0x7e9   : > { %v5444_v34 = vmul.f32 %v5412_v55, %v4356_v61  ;;  %v5030_v20 = vmul.f32 %v4998_v7, %v4933_v46  ;;  %5729 = vst [vmem:[%s8766_s20 + $0x68] sm:$0xff] %v5697_v45  ;;  %v4358_v62 = vsel %vm4326_vm0, 1.0, %v10727_v40  ;;  %v4261_v41 = vmul.f32 0.5, %v10163_v17  ;;  %v10743_v7 = vld [vmem:[#allocation31_spill] sm:$0xff] }
 0x7ea   : > { %v5189_v29 = vadd.f32 0.2548296, %v5157_v14  ;;  %v6779_v32 = vpop.eup %6778  ;;  %v4262_v12 = vmul.f32 0.5, %v10196_v1  ;;  %v10745_v45 = vld [vmem:[#allocation15_spill] sm:$0xff] }
 0x7eb   : > { %v5476_v21 = vadd.f32 1.0, %v5444_v34  ;;  %v5062_v47 = vadd.f32 1.4214138, %v5030_v20 }
 0x7ec   : > { %v5221_v59 = vmul.f32 %v5189_v29, %v10266_v35  ;;  %v10746_v29 = vld [vmem:[#allocation7_spill] sm:$0xff] }
 0x7ed   : > { %v5508_v63 = vmul.f32 %v5476_v21, %v4260_v2  ;;  %v5094_v9 = vmul.f32 %v5062_v47, %v4933_v46 }
 0x7ee   : > { %v5381_v36 = vmul.f32 %v6779_v32, %v5221_v59  ;;  %v6781_v5 = vpop.eup %6780 }
 0x7ef   : > { %v5126_v43 = vadd.f32 -0.28449672, %v5094_v9  ;;  %v5525_v51 = vpack.c.bf16 %v5508_v63, %v5507_v57  ;;  %v10747_v63 = vld [vmem:[#allocation8_spill] sm:$0xff] }
 0x7f0   : > { %v5413_v30 = vsub.f32 1.0, %v5381_v36  ;;  %v10748_v36 = vld [vmem:[#allocation10_spill] sm:$0xff] }
 0x7f1   : > { %v5158_v53 = vmul.f32 %v5126_v43, %v4933_v46  ;;  %5673 = vmatmul.bf16.gmra.mxu2 %v5525_v51 }
 0x7f2   : > { %v5445_v52 = vmul.f32 %v5413_v30, %v4357_v58  ;;  %v10749_v30 = vld [vmem:[#allocation11_spill] sm:$0xff]  ;;  %v10750_v58 = vld [vmem:[#allocation22_spill] sm:$0xff] }
 0x7f3   : > { %v5190_v25 = vadd.f32 0.2548296, %v5158_v53 }
 0x7f4   : > { %v5477_v60 = vadd.f32 1.0, %v5445_v52 }
 0x7f5   : > { %v5222_v49 = vmul.f32 %v5190_v25, %v4933_v46 }
 0x7f6   : > { %v5509_v26 = vmul.f32 %v5477_v60, %v4261_v41 }
 0x7f7   : > { %v5382_v35 = vmul.f32 %v6781_v5, %v5222_v49 }
 0x7f9   : > { %v5414_v15 = vsub.f32 1.0, %v5382_v35 }
 0x7fb   : > { %v5446_v33 = vmul.f32 %v5414_v15, %v4358_v62  ;;  %v5639_v3 = vpop.f32.mrf.mxu2  ;;  %v10751_v62 = vld [vmem:[#allocation23_spill] sm:$0xff] }
 0x7fc   : > { %v5640_v18 = vadd.f32 %v10231_v37, %v5639_v3 }
 0x7fd   : > { %v5478_v38 = vadd.f32 1.0, %v5446_v33 }
 0x7fe   : > { %v5698_v48 = vadd.f32 %v5640_v18, %v8743_v22  ;;  %v10752_v18 = vld [vmem:[#allocation19_spill] sm:$0xff] }
 0x7ff   : > { %v5510_v16 = vmul.f32 %v5478_v38, %v4262_v12 }
 0x800   : > { %5730 = vst [vmem:[%s8766_s20 + $0x70] sm:$0xff] %v5698_v48  ;;  %v10753_v48 = vld [vmem:[#allocation20_spill] sm:$0xff] }
 0x801   : > { %v5526_v13 = vpack.c.bf16 %v5510_v16, %v5509_v26 }
 0x803   : > { %5678 = vmatmul.bf16.gmra.mxu2 %v5526_v13  ;;  %v5641_v40 = vpop.f32.mrf.mxu2 }
 0x804   : > { %v5642_v19 = vadd.f32 %v10231_v37, %v5641_v40 }
 0x806   : > { %v5699_v10 = vadd.f32 %v5642_v19, %v8758_v39  ;;  %v10742_v39 = vld [vmem:[#allocation30_spill] sm:$0xff] }
 0x808   : > { %5731 = vst [vmem:[%s8766_s20 + $0x78] sm:$0xff] %v5699_v10 }
 0x80b   : > { %v5644_v17 = vpop.f32.mrf.mxu2 }
 0x80c   : > { %v5645_v1 = vadd.f32 %v10231_v37, %v5644_v17 }
 0x80e   : > { %v5700_v50 = vadd.f32 %v5645_v1, %v10740_v24 }
 0x810   : > { %5732 = vst [vmem:[%s8766_s20 + $0x80] sm:$0xff] %v5700_v50 }
 0x813   : > { %v5646_v22 = vpop.f32.mrf.mxu2 }
 0x814   : > { %v5647_v46 = vadd.f32 %v10231_v37, %v5646_v22 }
 0x816   : > { %v5701_v44 = vadd.f32 %v5647_v46, %v10741_v42 }
 0x818   : > { %5733 = vst [vmem:[%s8766_s20 + $0x88] sm:$0xff] %v5701_v44 }
 0x823   : > { %v5649_v28 = vpop.f32.mrf.mxu2 }
 0x824   : > { %v5650_v31 = vadd.f32 %v10231_v37, %v5649_v28 }
 0x826   : > { %v5702_v23 = vadd.f32 %v5650_v31, %v10742_v39 }
 0x828   : > { %5734 = vst [vmem:[%s8766_s20 + $0x90] sm:$0xff] %v5702_v23 }
 0x82b   : > { %v5651_v55 = vpop.f32.mrf.mxu2 }
 0x82c   : > { %v5652_v56 = vadd.f32 %v10231_v37, %v5651_v55 }
 0x82e   : > { %v5703_v6 = vadd.f32 %v5652_v56, %v10743_v7 }
 0x830   : > { %5735 = vst [vmem:[%s8766_s20 + $0x98] sm:$0xff] %v5703_v6 }
 0x833   : > { %v5654_v0 = vpop.f32.mrf.mxu2 }
 0x834   : > { %v5655_v61 = vadd.f32 %v10231_v37, %v5654_v0 }
 0x836   : > { %v5704_v34 = vadd.f32 %v5655_v61, %v10744_v4 }
 0x838   : > { %5736 = vst [vmem:[%s8766_s20 + $0xa0] sm:$0xff] %v5704_v34 }
 0x83b   : > { %v5656_v14 = vpop.f32.mrf.mxu2 }
 0x83c   : > { %v5657_v20 = vadd.f32 %v10231_v37, %v5656_v14 }
 0x83e   : > { %v5705_v27 = vadd.f32 %v5657_v20, %v10745_v45 }
 0x840   : > { %5737 = vst [vmem:[%s8766_s20 + $0xa8] sm:$0xff] %v5705_v27 }
 0x843   : > { %v5659_v2 = vpop.f32.mrf.mxu2 }
 0x844   : > { %v5660_v21 = vadd.f32 %v10231_v37, %v5659_v2 }
 0x846   : > { %v5706_v47 = vadd.f32 %v5660_v21, %v10746_v29 }
 0x848   : > { %5738 = vst [vmem:[%s8766_s20 + $0xb0] sm:$0xff] %v5706_v47 }
 0x84b   : > { %v5661_v54 = vpop.f32.mrf.mxu2 }
 0x84c   : > { %v5662_v57 = vadd.f32 %v10231_v37, %v5661_v54 }
 0x84e   : > { %v5707_v59 = vadd.f32 %v5662_v57, %v10747_v63 }
 0x850   : > { %5739 = vst [vmem:[%s8766_s20 + $0xb8] sm:$0xff] %v5707_v59 }
 0x853   : > { %v5664_v9 = vpop.f32.mrf.mxu2 }
 0x854   : > { %v5665_v32 = vadd.f32 %v10231_v37, %v5664_v9 }
 0x856   : > { %v5708_v43 = vadd.f32 %v5665_v32, %v10748_v36 }
 0x858   : > { %5740 = vst [vmem:[%s8766_s20 + $0xc0] sm:$0xff] %v5708_v43 }
 0x85b   : > { %v5666_v51 = vpop.f32.mrf.mxu2 }
 0x85c   : > { %v5667_v53 = vadd.f32 %v10231_v37, %v5666_v51 }
 0x85e   : > { %v5709_v25 = vadd.f32 %v5667_v53, %v10749_v30 }
 0x860   : > { %5741 = vst [vmem:[%s8766_s20 + $0xc8] sm:$0xff] %v5709_v25 }
 0x863   : > { %v5669_v49 = vpop.f32.mrf.mxu2 }
 0x864   : > { %v5670_v5 = vadd.f32 %v10231_v37, %v5669_v49 }
 0x866   : > { %v5710_v52 = vadd.f32 %v5670_v5, %v10750_v58 }
 0x868   : > { %5742 = vst [vmem:[%s8766_s20 + $0xd0] sm:$0xff] %v5710_v52 }
 0x86b   : > { %v5671_v35 = vpop.f32.mrf.mxu2 }
 0x86c   : > { %v5672_v15 = vadd.f32 %v10231_v37, %v5671_v35 }
 0x86e   : > { %v5711_v60 = vadd.f32 %v5672_v15, %v10751_v62 }
 0x870   : > { %5743 = vst [vmem:[%s8766_s20 + $0xd8] sm:$0xff] %v5711_v60 }
 0x874   : > { %v5674_v33 = vpop.f32.mrf.mxu2 }
 0x875   : > { %v5675_v3 = vadd.f32 %v10231_v37, %v5674_v33 }
 0x877   : > { %v5712_v41 = vadd.f32 %v5675_v3, %v10752_v18 }
 0x879   : > { %5744 = vst [vmem:[%s8766_s20 + $0xe0] sm:$0xff] %v5712_v41 }
 0x87c   : > { %v5676_v12 = vpop.f32.mrf.mxu2 }
 0x87d   : > { %v5677_v38 = vadd.f32 %v10231_v37, %v5676_v12 }
 0x87f   : > { %v5713_v26 = vadd.f32 %v5677_v38, %v10753_v48 }
 0x881   : > { %5745 = vst [vmem:[%s8766_s20 + $0xe8] sm:$0xff] %v5713_v26 }
 0x886   : > { %v5679_v16 = vpop.f32.mrf.mxu2 }
 0x887   : > { %v5680_v13 = vadd.f32 %v10231_v37, %v5679_v16 }
 0x889   : > { %v5714_v40 = vadd.f32 %v5680_v13, %v9004_v11 }
 0x88b   : > { %5746 = vst [vmem:[%s8766_s20 + $0xf0] sm:$0xff] %v5714_v40 }
 0x88e   : > { %v5681_v19 = vpop.f32.mrf.mxu2 }
 0x88f   : > { %v5682_v10 = vadd.f32 %v10231_v37, %v5681_v19 }
 0x891   : > { %v5715_v17 = vadd.f32 %v5682_v10, %v9035_v8 }
 0x893   : > { %5747 = vst [vmem:[%s8766_s20 + $0xf8] sm:$0xff] %v5715_v17 }
 0x894 PF: > { %s22_s23 = sadd.s32 1, %s6812_s23   ;;  %s10754_s21 = smov %s6808_s22 }
 0x895   : > { %p19_p5 = scmp.ge.s32.totalorder %s22_s23, 4   ;;  %s10755_s22 = smov %s10757_s24 }
 0x897   :  { %21 = sbr.rel (!%p19_p5) target bundleno = 2 (0x2), region = 115 }

</bundles_post_ra>
